<compile_context>
chip_gen: v6e
topology: v6e:2x2x1
jax: 0.10.0
libtpu: 0.0.40
codegen_flags: <defaults>
</compile_context>

<pallas_src>
import functools

import jax
import jax.numpy as jnp
from jax.experimental import pallas as pl
from jax.experimental.pallas import tpu as pltpu

LANES = 128

# (out_channels, kernel, stride) — fixed by the DQN architecture.
_CONV_CFG = ((32, 8, 4), (64, 4, 2), (64, 3, 1))


def _round_up(x, m):
    return (x + m - 1) // m * m


# ----------------------------------------------------------------------------
# Fused conv + bias + ReLU kernel.
#   x_ref : (1, Hin, Win, Ce)   stride-1-ready (post space-to-depth) input
#   w_ref : (KHe*KWe, Ce, Ncol) packed weights (Ncol = 128, zero-padded Cout)
#   b_ref : (1, Ncol)           f32 bias (zero-padded)
#   o_ref : (1, OH, OW, Ncol)   bf16 output (lane-dense, padded channels)
# Per output row: accumulate KHe*KWe stride-1 sub-matmuls (f32 acc), then
# bias + ReLU in f32 and a single bf16 row store.  No reshapes/concats.
# ----------------------------------------------------------------------------
def _conv_relu_kernel(x_ref, w_ref, b_ref, o_ref, *, khe, kwe, oh, ow):
    bias = b_ref[...]                                      # (1, Ncol) f32
    for r in range(oh):
        acc = None
        for kh in range(khe):
            for kw in range(kwe):
                patch = x_ref[0, r + kh, kw:kw + ow, :]    # (OW, Ce) bf16
                w = w_ref[kh * kwe + kw]                   # (Ce, Ncol) bf16
                d = jnp.dot(patch, w, preferred_element_type=jnp.float32)
                acc = d if acc is None else acc + d
        row = jnp.maximum(acc + bias, 0.0)                 # f32 epilogue
        o_ref[0, r] = row.astype(o_ref.dtype)


def conv_relu(x_eff, w_packed, b_packed, *, khe, kwe, oh, ow):
    B, Hin, Win, Ce = x_eff.shape
    K, Ce2, Ncol = w_packed.shape
    assert Ce == Ce2 and K == khe * kwe

    return pl.pallas_call(
        functools.partial(_conv_relu_kernel, khe=khe, kwe=kwe, oh=oh, ow=ow),
        out_shape=jax.ShapeDtypeStruct((B, oh, ow, Ncol), jnp.bfloat16),
        grid=(B,),
        in_specs=[
            pl.BlockSpec((1, Hin, Win, Ce), lambda b: (b, 0, 0, 0)),
            pl.BlockSpec((K, Ce, Ncol), lambda b: (0, 0, 0)),
            pl.BlockSpec((1, Ncol), lambda b: (0, 0)),
        ],
        out_specs=pl.BlockSpec((1, oh, ow, Ncol), lambda b: (b, 0, 0, 0)),
        compiler_params=pltpu.CompilerParams(
            dimension_semantics=("parallel",),
            vmem_limit_bytes=32 * 1024 * 1024,
        ),
    )(x_eff, w_packed, b_packed)


# ----------------------------------------------------------------------------
# Fused FC head: q = relu(x @ w1 + b1) @ w2 + b2 in a single pallas_call.
# ----------------------------------------------------------------------------
def _head_kernel(x_ref, w1_ref, b1_ref, w2_ref, b2_ref, o_ref):
    h = jnp.dot(x_ref[...], w1_ref[...], preferred_element_type=jnp.float32)
    h = jnp.maximum(h + b1_ref[...], 0.0)
    q = jnp.dot(h.astype(w2_ref.dtype), w2_ref[...],
                preferred_element_type=jnp.float32)
    o_ref[...] = (q + b2_ref[...]).astype(o_ref.dtype)


def fused_head(x_flat, w1, b1, w2, b2):
    B, K1 = x_flat.shape
    H1 = w1.shape[1]
    N2 = w2.shape[1]

    # >=2 parallel batch blocks once the batch is big enough (v7x megacore);
    # at tiny batches use a single full-extent block (no padding copies).
    if B >= 32:
        TB = min(128, _round_up((B + 1) // 2, 16))
        Bp = _round_up(B, TB)
    else:
        TB, Bp = B, B

    xb = x_flat.astype(jnp.bfloat16)
    if Bp != B:
        xb = jnp.zeros((Bp, K1), jnp.bfloat16).at[:B].set(xb)

    out = pl.pallas_call(
        _head_kernel,
        out_shape=jax.ShapeDtypeStruct((Bp, N2), jnp.float32),
        grid=(Bp // TB,),
        in_specs=[
            pl.BlockSpec((TB, K1), lambda i: (i, 0)),
            pl.BlockSpec((K1, H1), lambda i: (0, 0)),
            pl.BlockSpec((1, H1), lambda i: (0, 0)),
            pl.BlockSpec((H1, N2), lambda i: (0, 0)),
            pl.BlockSpec((1, N2), lambda i: (0, 0)),
        ],
        out_specs=pl.BlockSpec((TB, N2), lambda i: (i, 0)),
        compiler_params=pltpu.CompilerParams(
            dimension_semantics=("parallel",),
            vmem_limit_bytes=32 * 1024 * 1024,
        ),
    )(xb, w1, b1, w2, b2)
    return out[:B]


# ----------------------------------------------------------------------------
# Space-to-depth: turns a stride-s conv into a stride-1 conv with a
# (KH/s, KW/s) kernel and s*s*C channels.  Pure layout shuffle, no expansion.
# Channel order of the output is ((p*s + q)*C + c) for input offset (p, q).
# ----------------------------------------------------------------------------
def _space_to_depth(x_nhwc, s, out_h, out_w, khe, kwe):
    N, H, W, C = x_nhwc.shape
    hc = (out_h + khe - 1) * s
    wc = (out_w + kwe - 1) * s
    xs = x_nhwc[:, :hc, :wc, :].reshape(N, hc // s, s, wc // s, s, C)
    xs = jnp.transpose(xs, (0, 1, 3, 2, 4, 5))
    return xs.reshape(N, hc // s, wc // s, s * s * C)


# ----------------------------------------------------------------------------
# One-time weight packing (hoisted out of the forward path).
# ----------------------------------------------------------------------------
def _pack_conv(w_oihw, b, stride, cin_pad, cout_pad):
    Cout, Cin, KH, KW = w_oihw.shape
    s = stride
    assert KH % s == 0 and KW % s == 0
    khe, kwe = KH // s, KW // s
    # (Cout, Cin, KH, KW) -> (khe, kwe, p, q, Cin, Cout), kh = khe_idx*s + p.
    wr = w_oihw.reshape(Cout, Cin, khe, s, kwe, s)
    wr = jnp.transpose(wr, (2, 4, 3, 5, 1, 0))
    wfull = jnp.zeros((khe, kwe, s, s, cin_pad, cout_pad), jnp.float32)
    wfull = wfull.at[..., :Cin, :Cout].set(wr)
    w_packed = wfull.reshape(khe * kwe, s * s * cin_pad, cout_pad).astype(jnp.bfloat16)
    b_packed = jnp.zeros((1, cout_pad), jnp.float32).at[0, :Cout].set(
        b.astype(jnp.float32))
    return w_packed, b_packed


def prepare_params(params, in_channels, spatial_hw):
    """Pack/pad/cast all weights once; the forward only consumes the result."""
    H, W = spatial_hw
    packed = {}
    cin_pad = in_channels            # raw input channels are not padded
    h, w = H, W
    for idx, (cout, k, s) in enumerate(_CONV_CFG, start=1):
        w_p, b_p = _pack_conv(params[f"conv{idx}_w"], params[f"conv{idx}_b"],
                              s, cin_pad, LANES)
        packed[f"conv{idx}_w"] = w_p
        packed[f"conv{idx}_b"] = b_p
        h = (h - k) // s + 1
        w = (w - k) // s + 1
        cin_pad = LANES              # every conv output is padded to 128 ch.

    H3, W3 = h, w
    C3 = _CONV_CFG[-1][0]
    hidden = params["fc1_w"].shape[1]
    # fc1 rows: PyTorch (C,H,W) flatten order -> (H, W, padded C) order with
    # zero rows for the padded channels, so the padded NHWC conv3 output can
    # be flattened directly (no channel slice, no activation transpose).
    fc1 = params["fc1_w"].reshape(C3, H3, W3, hidden)
    fc1 = jnp.transpose(fc1, (1, 2, 0, 3))
    fc1p = jnp.zeros((H3, W3, LANES, hidden), jnp.float32).at[:, :, :C3, :].set(fc1)
    packed["fc1_w"] = fc1p.reshape(H3 * W3 * LANES, hidden).astype(jnp.bfloat16)
    packed["fc1_b"] = params["fc1_b"].reshape(1, hidden).astype(jnp.float32)

    n_actions = params["fc2_w"].shape[1]
    n2p = _round_up(max(n_actions, LANES), LANES)
    packed["fc2_w"] = (jnp.zeros((hidden, n2p), jnp.float32)
                       .at[:, :n_actions].set(params["fc2_w"])
                       .astype(jnp.bfloat16))
    packed["fc2_b"] = (jnp.zeros((1, n2p), jnp.float32)
                       .at[0, :n_actions].set(params["fc2_b"].astype(jnp.float32)))
    return packed


# ----------------------------------------------------------------------------
# Full DQN forward (matches the PyTorch module's forward semantics).
# ----------------------------------------------------------------------------
def dqn_forward(packed, x_nchw, n_actions):
    x = jnp.transpose(x_nchw, (0, 2, 3, 1)).astype(jnp.bfloat16)   # NHWC bf16
    for idx, (cout, k, s) in enumerate(_CONV_CFG, start=1):
        B, H, W, _ = x.shape
        oh = (H - k) // s + 1
        ow = (W - k) // s + 1
        khe, kwe = k // s, k // s
        if s > 1:
            x = _space_to_depth(x, s, oh, ow, khe, kwe)
        x = conv_relu(x, packed[f"conv{idx}_w"], packed[f"conv{idx}_b"],
                      khe=khe, kwe=kwe, oh=oh, ow=ow)

    B, H3, W3, Cp = x.shape
    x_flat = x.reshape(B, H3 * W3 * Cp)                            # free reshape
    q = fused_head(x_flat, packed["fc1_w"], packed["fc1_b"],
                   packed["fc2_w"], packed["fc2_b"])
    return q[:, :n_actions]


# ----------------------------------------------------------------------------
# Pure-JAX f32 reference (correctness check only).
# ----------------------------------------------------------------------------
def dqn_forward_ref(params, x_nchw):
    dn = ("NCHW", "OIHW", "NCHW")
    x = x_nchw.astype(jnp.float32)
    for w, b, s in [
        (params["conv1_w"], params["conv1_b"], 4),
        (params["conv2_w"], params["conv2_b"], 2),
        (params["conv3_w"], params["conv3_b"], 1),
    ]:
        x = jax.lax.conv_general_dilated(x, w, (s, s), "VALID",
                                         dimension_numbers=dn)
        x = jnp.maximum(x + b[None, :, None, None], 0.0)
    x = x.reshape(x.shape[0], -1)
    x = jnp.maximum(x @ params["fc1_w"] + params["fc1_b"], 0.0)
    return x @ params["fc2_w"] + params["fc2_b"]


# ----------------------------------------------------------------------------
# Deterministic parameter init + run
# ----------------------------------------------------------------------------
def init_params(key, in_channels, n_actions, conv_out_size):
    ks = jax.random.split(key, 10)
    s = 0.05
    return {
        # conv weights kept in PyTorch OIHW layout
        "conv1_w": s * jax.random.normal(ks[0], (32, in_channels, 8, 8), jnp.float32),
        "conv1_b": s * jax.random.normal(ks[1], (32,), jnp.float32),
        "conv2_w": s * jax.random.normal(ks[2], (64, 32, 4, 4), jnp.float32),
        "conv2_b": s * jax.random.normal(ks[3], (64,), jnp.float32),
        "conv3_w": s * jax.random.normal(ks[4], (64, 64, 3, 3), jnp.float32),
        "conv3_b": s * jax.random.normal(ks[5], (64,), jnp.float32),
        # fc weights stored as (in_features, out_features)
        "fc1_w": s * jax.random.normal(ks[6], (conv_out_size, 512), jnp.float32),
        "fc1_b": s * jax.random.normal(ks[7], (512,), jnp.float32),
        "fc2_w": s * jax.random.normal(ks[8], (512, n_actions), jnp.float32),
        "fc2_b": s * jax.random.normal(ks[9], (n_actions,), jnp.float32),
    }


if __name__ == "__main__":
    # 52x52 input -> conv spatial 12 -> 5 -> 3 (exercises all three conv
    # geometries and the NHWC-padded flatten / fc1 row permutation).
    batch, in_channels, spatial, n_actions = 2, 4, 52, 6
    h1 = (spatial - 8) // 4 + 1
    h2 = (h1 - 4) // 2 + 1
    h3 = (h2 - 3) // 1 + 1
    conv_out_size = 64 * h3 * h3

    key = jax.random.PRNGKey(0)
    k_params, k_x = jax.random.split(key)
    params = init_params(k_params, in_channels, n_actions, conv_out_size)
    x = jax.random.normal(k_x, (batch, in_channels, spatial, spatial), jnp.float32)

    # One-time weight packing (hoisted out of the forward path).
    packed = jax.tree_util.tree_map(jax.block_until_ready,
                                    prepare_params(params, in_channels,
                                                   (spatial, spatial)))

    fwd = jax.jit(functools.partial(dqn_forward, n_actions=n_actions))
    q_pallas = jax.block_until_ready(fwd(packed, x))
    q_ref = jax.block_until_ready(dqn_forward_ref(params, x))

    assert q_pallas.shape == (batch, n_actions)
    # Tolerance accounts for bf16 MXU operands (f32 accumulation) vs f32 ref.
    assert jnp.allclose(q_pallas.astype(jnp.float32), q_ref, atol=5e-2, rtol=5e-2), (
        "Pallas DQN output mismatch vs reference"
    )
    print("KERNEL_OK")
</pallas_src>

<mosaic_0001>
module attributes {stable_mosaic.version = 11 : i64} {
  func.func @_conv_relu_kernel(%arg0: i32, %arg1: memref<1x13x13x64xbf16, #tpu.memory_space<vmem>>, %arg2: memref<4x64x128xbf16, #tpu.memory_space<vmem>>, %arg3: memref<1x128xf32, #tpu.memory_space<vmem>>, %arg4: memref<1x12x12x128xbf16, #tpu.memory_space<vmem>>) attributes {dimension_semantics = [#tpu.dimension_semantics<parallel>], iteration_bounds = array<i64: 2>, scalar_prefetch = 0 : i64, scratch_operands = 0 : i64, tpu.core_type = #tpu.core_type<tc>, window_params = [{transform_indices = @transform_0, window_bounds = array<i64: 1, 13, 13, 64>}, {pipeline_mode = #tpu.pipeline_mode<synchronous>, transform_indices = @transform_1, window_bounds = array<i64: 4, 64, 128>}, {pipeline_mode = #tpu.pipeline_mode<synchronous>, transform_indices = @transform_2, window_bounds = array<i64: 1, 128>}, {transform_indices = @transform_3, window_bounds = array<i64: 1, 12, 12, 128>}]} {
    %c0 = arith.constant 0 : index
    %c0_0 = arith.constant 0 : index
    %0 = vector.load %arg3[%c0, %c0_0] : memref<1x128xf32, #tpu.memory_space<vmem>>, vector<1x128xf32>
    %c0_1 = arith.constant 0 : index
    %c0_2 = arith.constant 0 : index
    %c0_3 = arith.constant 0 : index
    %c0_4 = arith.constant 0 : index
    %1 = vector.load %arg1[%c0_1, %c0_2, %c0_3, %c0_4] : memref<1x13x13x64xbf16, #tpu.memory_space<vmem>>, vector<1x1x12x64xbf16>
    %2 = vector.shape_cast %1 : vector<1x1x12x64xbf16> to vector<12x64xbf16>
    %c0_5 = arith.constant 0 : index
    %c0_6 = arith.constant 0 : index
    %c0_7 = arith.constant 0 : index
    %3 = vector.load %arg2[%c0_5, %c0_6, %c0_7] : memref<4x64x128xbf16, #tpu.memory_space<vmem>>, vector<1x64x128xbf16>
    %4 = vector.shape_cast %3 : vector<1x64x128xbf16> to vector<64x128xbf16>
    %cst = arith.constant dense<0.000000e+00> : vector<12x128xf32>
    %5 = tpu.matmul %2, %4, %cst {dimension_numbers = #tpu.dot_dimension_numbers<[1], [0], [0], [1], [0, 0, 1, 1], [], []>} : vector<12x64xbf16>, vector<64x128xbf16>, vector<12x128xf32> -> vector<12x128xf32>
    %c0_8 = arith.constant 0 : index
    %c0_9 = arith.constant 0 : index
    %c1 = arith.constant 1 : index
    %c0_10 = arith.constant 0 : index
    %6 = vector.load %arg1[%c0_8, %c0_9, %c1, %c0_10] : memref<1x13x13x64xbf16, #tpu.memory_space<vmem>>, vector<1x1x12x64xbf16>
    %7 = vector.shape_cast %6 : vector<1x1x12x64xbf16> to vector<12x64xbf16>
    %c1_11 = arith.constant 1 : index
    %c0_12 = arith.constant 0 : index
    %c0_13 = arith.constant 0 : index
    %8 = vector.load %arg2[%c1_11, %c0_12, %c0_13] : memref<4x64x128xbf16, #tpu.memory_space<vmem>>, vector<1x64x128xbf16>
    %9 = vector.shape_cast %8 : vector<1x64x128xbf16> to vector<64x128xbf16>
    %cst_14 = arith.constant dense<0.000000e+00> : vector<12x128xf32>
    %10 = tpu.matmul %7, %9, %cst_14 {dimension_numbers = #tpu.dot_dimension_numbers<[1], [0], [0], [1], [0, 0, 1, 1], [], []>} : vector<12x64xbf16>, vector<64x128xbf16>, vector<12x128xf32> -> vector<12x128xf32>
    %11 = arith.addf %5, %10 : vector<12x128xf32>
    %c0_15 = arith.constant 0 : index
    %c1_16 = arith.constant 1 : index
    %c0_17 = arith.constant 0 : index
    %c0_18 = arith.constant 0 : index
    %12 = vector.load %arg1[%c0_15, %c1_16, %c0_17, %c0_18] : memref<1x13x13x64xbf16, #tpu.memory_space<vmem>>, vector<1x1x12x64xbf16>
    %13 = vector.shape_cast %12 : vector<1x1x12x64xbf16> to vector<12x64xbf16>
    %c2 = arith.constant 2 : index
    %c0_19 = arith.constant 0 : index
    %c0_20 = arith.constant 0 : index
    %14 = vector.load %arg2[%c2, %c0_19, %c0_20] : memref<4x64x128xbf16, #tpu.memory_space<vmem>>, vector<1x64x128xbf16>
    %15 = vector.shape_cast %14 : vector<1x64x128xbf16> to vector<64x128xbf16>
    %cst_21 = arith.constant dense<0.000000e+00> : vector<12x128xf32>
    %16 = tpu.matmul %13, %15, %cst_21 {dimension_numbers = #tpu.dot_dimension_numbers<[1], [0], [0], [1], [0, 0, 1, 1], [], []>} : vector<12x64xbf16>, vector<64x128xbf16>, vector<12x128xf32> -> vector<12x128xf32>
    %17 = arith.addf %11, %16 : vector<12x128xf32>
    %c0_22 = arith.constant 0 : index
    %c1_23 = arith.constant 1 : index
    %c1_24 = arith.constant 1 : index
    %c0_25 = arith.constant 0 : index
    %18 = vector.load %arg1[%c0_22, %c1_23, %c1_24, %c0_25] : memref<1x13x13x64xbf16, #tpu.memory_space<vmem>>, vector<1x1x12x64xbf16>
    %19 = vector.shape_cast %18 : vector<1x1x12x64xbf16> to vector<12x64xbf16>
    %c3 = arith.constant 3 : index
    %c0_26 = arith.constant 0 : index
    %c0_27 = arith.constant 0 : index
    %20 = vector.load %arg2[%c3, %c0_26, %c0_27] : memref<4x64x128xbf16, #tpu.memory_space<vmem>>, vector<1x64x128xbf16>
    %21 = vector.shape_cast %20 : vector<1x64x128xbf16> to vector<64x128xbf16>
    %cst_28 = arith.constant dense<0.000000e+00> : vector<12x128xf32>
    %22 = tpu.matmul %19, %21, %cst_28 {dimension_numbers = #tpu.dot_dimension_numbers<[1], [0], [0], [1], [0, 0, 1, 1], [], []>} : vector<12x64xbf16>, vector<64x128xbf16>, vector<12x128xf32> -> vector<12x128xf32>
    %23 = arith.addf %17, %22 : vector<12x128xf32>
    %24 = vector.broadcast %0 : vector<1x128xf32> to vector<12x128xf32>
    %25 = arith.addf %23, %24 : vector<12x128xf32>
    %cst_29 = arith.constant 0.000000e+00 : f32
    %26 = vector.broadcast %cst_29 : f32 to vector<12x128xf32>
    %27 = arith.maximumf %25, %26 : vector<12x128xf32>
    %28 = arith.truncf %27 : vector<12x128xf32> to vector<12x128xbf16>
    %c0_30 = arith.constant 0 : index
    %c0_31 = arith.constant 0 : index
    %c0_32 = arith.constant 0 : index
    %c0_33 = arith.constant 0 : index
    %29 = vector.load %arg4[%c0_30, %c0_31, %c0_32, %c0_33] : memref<1x12x12x128xbf16, #tpu.memory_space<vmem>>, vector<1x1x12x128xbf16>
    %30 = vector.shape_cast %29 : vector<1x1x12x128xbf16> to vector<12x128xbf16>
    %31 = vector.shape_cast %28 : vector<12x128xbf16> to vector<1x1x12x128xbf16>
    tpu.vector_store %arg4[%c0_30, %c0_31, %c0_32, %c0_33], %31 {strides = array<i32>} : memref<1x12x12x128xbf16, #tpu.memory_space<vmem>>, vector<1x1x12x128xbf16>,
    %c0_34 = arith.constant 0 : index
    %c1_35 = arith.constant 1 : index
    %c0_36 = arith.constant 0 : index
    %c0_37 = arith.constant 0 : index
    %32 = vector.load %arg1[%c0_34, %c1_35, %c0_36, %c0_37] : memref<1x13x13x64xbf16, #tpu.memory_space<vmem>>, vector<1x1x12x64xbf16>
    %33 = vector.shape_cast %32 : vector<1x1x12x64xbf16> to vector<12x64xbf16>
    %c0_38 = arith.constant 0 : index
    %c0_39 = arith.constant 0 : index
    %c0_40 = arith.constant 0 : index
    %34 = vector.load %arg2[%c0_38, %c0_39, %c0_40] : memref<4x64x128xbf16, #tpu.memory_space<vmem>>, vector<1x64x128xbf16>
    %35 = vector.shape_cast %34 : vector<1x64x128xbf16> to vector<64x128xbf16>
    %cst_41 = arith.constant dense<0.000000e+00> : vector<12x128xf32>
    %36 = tpu.matmul %33, %35, %cst_41 {dimension_numbers = #tpu.dot_dimension_numbers<[1], [0], [0], [1], [0, 0, 1, 1], [], []>} : vector<12x64xbf16>, vector<64x128xbf16>, vector<12x128xf32> -> vector<12x128xf32>
    %c0_42 = arith.constant 0 : index
    %c1_43 = arith.constant 1 : index
    %c1_44 = arith.constant 1 : index
    %c0_45 = arith.constant 0 : index
    %37 = vector.load %arg1[%c0_42, %c1_43, %c1_44, %c0_45] : memref<1x13x13x64xbf16, #tpu.memory_space<vmem>>, vector<1x1x12x64xbf16>
    %38 = vector.shape_cast %37 : vector<1x1x12x64xbf16> to vector<12x64xbf16>
    %c1_46 = arith.constant 1 : index
    %c0_47 = arith.constant 0 : index
    %c0_48 = arith.constant 0 : index
    %39 = vector.load %arg2[%c1_46, %c0_47, %c0_48] : memref<4x64x128xbf16, #tpu.memory_space<vmem>>, vector<1x64x128xbf16>
    %40 = vector.shape_cast %39 : vector<1x64x128xbf16> to vector<64x128xbf16>
    %cst_49 = arith.constant dense<0.000000e+00> : vector<12x128xf32>
    %41 = tpu.matmul %38, %40, %cst_49 {dimension_numbers = #tpu.dot_dimension_numbers<[1], [0], [0], [1], [0, 0, 1, 1], [], []>} : vector<12x64xbf16>, vector<64x128xbf16>, vector<12x128xf32> -> vector<12x128xf32>
    %42 = arith.addf %36, %41 : vector<12x128xf32>
    %c0_50 = arith.constant 0 : index
    %c2_51 = arith.constant 2 : index
    %c0_52 = arith.constant 0 : index
    %c0_53 = arith.constant 0 : index
    %43 = vector.load %arg1[%c0_50, %c2_51, %c0_52, %c0_53] : memref<1x13x13x64xbf16, #tpu.memory_space<vmem>>, vector<1x1x12x64xbf16>
    %44 = vector.shape_cast %43 : vector<1x1x12x64xbf16> to vector<12x64xbf16>
    %c2_54 = arith.constant 2 : index
    %c0_55 = arith.constant 0 : index
    %c0_56 = arith.constant 0 : index
    %45 = vector.load %arg2[%c2_54, %c0_55, %c0_56] : memref<4x64x128xbf16, #tpu.memory_space<vmem>>, vector<1x64x128xbf16>
    %46 = vector.shape_cast %45 : vector<1x64x128xbf16> to vector<64x128xbf16>
    %cst_57 = arith.constant dense<0.000000e+00> : vector<12x128xf32>
    %47 = tpu.matmul %44, %46, %cst_57 {dimension_numbers = #tpu.dot_dimension_numbers<[1], [0], [0], [1], [0, 0, 1, 1], [], []>} : vector<12x64xbf16>, vector<64x128xbf16>, vector<12x128xf32> -> vector<12x128xf32>
    %48 = arith.addf %42, %47 : vector<12x128xf32>
    %c0_58 = arith.constant 0 : index
    %c2_59 = arith.constant 2 : index
    %c1_60 = arith.constant 1 : index
    %c0_61 = arith.constant 0 : index
    %49 = vector.load %arg1[%c0_58, %c2_59, %c1_60, %c0_61] : memref<1x13x13x64xbf16, #tpu.memory_space<vmem>>, vector<1x1x12x64xbf16>
    %50 = vector.shape_cast %49 : vector<1x1x12x64xbf16> to vector<12x64xbf16>
    %c3_62 = arith.constant 3 : index
    %c0_63 = arith.constant 0 : index
    %c0_64 = arith.constant 0 : index
    %51 = vector.load %arg2[%c3_62, %c0_63, %c0_64] : memref<4x64x128xbf16, #tpu.memory_space<vmem>>, vector<1x64x128xbf16>
    %52 = vector.shape_cast %51 : vector<1x64x128xbf16> to vector<64x128xbf16>
    %cst_65 = arith.constant dense<0.000000e+00> : vector<12x128xf32>
    %53 = tpu.matmul %50, %52, %cst_65 {dimension_numbers = #tpu.dot_dimension_numbers<[1], [0], [0], [1], [0, 0, 1, 1], [], []>} : vector<12x64xbf16>, vector<64x128xbf16>, vector<12x128xf32> -> vector<12x128xf32>
    %54 = arith.addf %48, %53 : vector<12x128xf32>
    %55 = vector.broadcast %0 : vector<1x128xf32> to vector<12x128xf32>
    %56 = arith.addf %54, %55 : vector<12x128xf32>
    %cst_66 = arith.constant 0.000000e+00 : f32
    %57 = vector.broadcast %cst_66 : f32 to vector<12x128xf32>
    %58 = arith.maximumf %56, %57 : vector<12x128xf32>
    %59 = arith.truncf %58 : vector<12x128xf32> to vector<12x128xbf16>
    %c0_67 = arith.constant 0 : index
    %c1_68 = arith.constant 1 : index
    %c0_69 = arith.constant 0 : index
    %c0_70 = arith.constant 0 : index
    %60 = vector.load %arg4[%c0_67, %c1_68, %c0_69, %c0_70] : memref<1x12x12x128xbf16, #tpu.memory_space<vmem>>, vector<1x1x12x128xbf16>
    %61 = vector.shape_cast %60 : vector<1x1x12x128xbf16> to vector<12x128xbf16>
    %62 = vector.shape_cast %59 : vector<12x128xbf16> to vector<1x1x12x128xbf16>
    tpu.vector_store %arg4[%c0_67, %c1_68, %c0_69, %c0_70], %62 {strides = array<i32>} : memref<1x12x12x128xbf16, #tpu.memory_space<vmem>>, vector<1x1x12x128xbf16>,
    %c0_71 = arith.constant 0 : index
    %c2_72 = arith.constant 2 : index
    %c0_73 = arith.constant 0 : index
    %c0_74 = arith.constant 0 : index
    %63 = vector.load %arg1[%c0_71, %c2_72, %c0_73, %c0_74] : memref<1x13x13x64xbf16, #tpu.memory_space<vmem>>, vector<1x1x12x64xbf16>
    %64 = vector.shape_cast %63 : vector<1x1x12x64xbf16> to vector<12x64xbf16>
    %c0_75 = arith.constant 0 : index
    %c0_76 = arith.constant 0 : index
    %c0_77 = arith.constant 0 : index
    %65 = vector.load %arg2[%c0_75, %c0_76, %c0_77] : memref<4x64x128xbf16, #tpu.memory_space<vmem>>, vector<1x64x128xbf16>
    %66 = vector.shape_cast %65 : vector<1x64x128xbf16> to vector<64x128xbf16>
    %cst_78 = arith.constant dense<0.000000e+00> : vector<12x128xf32>
    %67 = tpu.matmul %64, %66, %cst_78 {dimension_numbers = #tpu.dot_dimension_numbers<[1], [0], [0], [1], [0, 0, 1, 1], [], []>} : vector<12x64xbf16>, vector<64x128xbf16>, vector<12x128xf32> -> vector<12x128xf32>
    %c0_79 = arith.constant 0 : index
    %c2_80 = arith.constant 2 : index
    %c1_81 = arith.constant 1 : index
    %c0_82 = arith.constant 0 : index
    %68 = vector.load %arg1[%c0_79, %c2_80, %c1_81, %c0_82] : memref<1x13x13x64xbf16, #tpu.memory_space<vmem>>, vector<1x1x12x64xbf16>
    %69 = vector.shape_cast %68 : vector<1x1x12x64xbf16> to vector<12x64xbf16>
    %c1_83 = arith.constant 1 : index
    %c0_84 = arith.constant 0 : index
    %c0_85 = arith.constant 0 : index
    %70 = vector.load %arg2[%c1_83, %c0_84, %c0_85] : memref<4x64x128xbf16, #tpu.memory_space<vmem>>, vector<1x64x128xbf16>
    %71 = vector.shape_cast %70 : vector<1x64x128xbf16> to vector<64x128xbf16>
    %cst_86 = arith.constant dense<0.000000e+00> : vector<12x128xf32>
    %72 = tpu.matmul %69, %71, %cst_86 {dimension_numbers = #tpu.dot_dimension_numbers<[1], [0], [0], [1], [0, 0, 1, 1], [], []>} : vector<12x64xbf16>, vector<64x128xbf16>, vector<12x128xf32> -> vector<12x128xf32>
    %73 = arith.addf %67, %72 : vector<12x128xf32>
    %c0_87 = arith.constant 0 : index
    %c3_88 = arith.constant 3 : index
    %c0_89 = arith.constant 0 : index
    %c0_90 = arith.constant 0 : index
    %74 = vector.load %arg1[%c0_87, %c3_88, %c0_89, %c0_90] : memref<1x13x13x64xbf16, #tpu.memory_space<vmem>>, vector<1x1x12x64xbf16>
    %75 = vector.shape_cast %74 : vector<1x1x12x64xbf16> to vector<12x64xbf16>
    %c2_91 = arith.constant 2 : index
    %c0_92 = arith.constant 0 : index
    %c0_93 = arith.constant 0 : index
    %76 = vector.load %arg2[%c2_91, %c0_92, %c0_93] : memref<4x64x128xbf16, #tpu.memory_space<vmem>>, vector<1x64x128xbf16>
    %77 = vector.shape_cast %76 : vector<1x64x128xbf16> to vector<64x128xbf16>
    %cst_94 = arith.constant dense<0.000000e+00> : vector<12x128xf32>
    %78 = tpu.matmul %75, %77, %cst_94 {dimension_numbers = #tpu.dot_dimension_numbers<[1], [0], [0], [1], [0, 0, 1, 1], [], []>} : vector<12x64xbf16>, vector<64x128xbf16>, vector<12x128xf32> -> vector<12x128xf32>
    %79 = arith.addf %73, %78 : vector<12x128xf32>
    %c0_95 = arith.constant 0 : index
    %c3_96 = arith.constant 3 : index
    %c1_97 = arith.constant 1 : index
    %c0_98 = arith.constant 0 : index
    %80 = vector.load %arg1[%c0_95, %c3_96, %c1_97, %c0_98] : memref<1x13x13x64xbf16, #tpu.memory_space<vmem>>, vector<1x1x12x64xbf16>
    %81 = vector.shape_cast %80 : vector<1x1x12x64xbf16> to vector<12x64xbf16>
    %c3_99 = arith.constant 3 : index
    %c0_100 = arith.constant 0 : index
    %c0_101 = arith.constant 0 : index
    %82 = vector.load %arg2[%c3_99, %c0_100, %c0_101] : memref<4x64x128xbf16, #tpu.memory_space<vmem>>, vector<1x64x128xbf16>
    %83 = vector.shape_cast %82 : vector<1x64x128xbf16> to vector<64x128xbf16>
    %cst_102 = arith.constant dense<0.000000e+00> : vector<12x128xf32>
    %84 = tpu.matmul %81, %83, %cst_102 {dimension_numbers = #tpu.dot_dimension_numbers<[1], [0], [0], [1], [0, 0, 1, 1], [], []>} : vector<12x64xbf16>, vector<64x128xbf16>, vector<12x128xf32> -> vector<12x128xf32>
    %85 = arith.addf %79, %84 : vector<12x128xf32>
    %86 = vector.broadcast %0 : vector<1x128xf32> to vector<12x128xf32>
    %87 = arith.addf %85, %86 : vector<12x128xf32>
    %cst_103 = arith.constant 0.000000e+00 : f32
    %88 = vector.broadcast %cst_103 : f32 to vector<12x128xf32>
    %89 = arith.maximumf %87, %88 : vector<12x128xf32>
    %90 = arith.truncf %89 : vector<12x128xf32> to vector<12x128xbf16>
    %c0_104 = arith.constant 0 : index
    %c2_105 = arith.constant 2 : index
    %c0_106 = arith.constant 0 : index
    %c0_107 = arith.constant 0 : index
    %91 = vector.load %arg4[%c0_104, %c2_105, %c0_106, %c0_107] : memref<1x12x12x128xbf16, #tpu.memory_space<vmem>>, vector<1x1x12x128xbf16>
    %92 = vector.shape_cast %91 : vector<1x1x12x128xbf16> to vector<12x128xbf16>
    %93 = vector.shape_cast %90 : vector<12x128xbf16> to vector<1x1x12x128xbf16>
    tpu.vector_store %arg4[%c0_104, %c2_105, %c0_106, %c0_107], %93 {strides = array<i32>} : memref<1x12x12x128xbf16, #tpu.memory_space<vmem>>, vector<1x1x12x128xbf16>,
    %c0_108 = arith.constant 0 : index
    %c3_109 = arith.constant 3 : index
    %c0_110 = arith.constant 0 : index
    %c0_111 = arith.constant 0 : index
    %94 = vector.load %arg1[%c0_108, %c3_109, %c0_110, %c0_111] : memref<1x13x13x64xbf16, #tpu.memory_space<vmem>>, vector<1x1x12x64xbf16>
    %95 = vector.shape_cast %94 : vector<1x1x12x64xbf16> to vector<12x64xbf16>
    %c0_112 = arith.constant 0 : index
    %c0_113 = arith.constant 0 : index
    %c0_114 = arith.constant 0 : index
    %96 = vector.load %arg2[%c0_112, %c0_113, %c0_114] : memref<4x64x128xbf16, #tpu.memory_space<vmem>>, vector<1x64x128xbf16>
    %97 = vector.shape_cast %96 : vector<1x64x128xbf16> to vector<64x128xbf16>
    %cst_115 = arith.constant dense<0.000000e+00> : vector<12x128xf32>
    %98 = tpu.matmul %95, %97, %cst_115 {dimension_numbers = #tpu.dot_dimension_numbers<[1], [0], [0], [1], [0, 0, 1, 1], [], []>} : vector<12x64xbf16>, vector<64x128xbf16>, vector<12x128xf32> -> vector<12x128xf32>
    %c0_116 = arith.constant 0 : index
    %c3_117 = arith.constant 3 : index
    %c1_118 = arith.constant 1 : index
    %c0_119 = arith.constant 0 : index
    %99 = vector.load %arg1[%c0_116, %c3_117, %c1_118, %c0_119] : memref<1x13x13x64xbf16, #tpu.memory_space<vmem>>, vector<1x1x12x64xbf16>
    %100 = vector.shape_cast %99 : vector<1x1x12x64xbf16> to vector<12x64xbf16>
    %c1_120 = arith.constant 1 : index
    %c0_121 = arith.constant 0 : index
    %c0_122 = arith.constant 0 : index
    %101 = vector.load %arg2[%c1_120, %c0_121, %c0_122] : memref<4x64x128xbf16, #tpu.memory_space<vmem>>, vector<1x64x128xbf16>
    %102 = vector.shape_cast %101 : vector<1x64x128xbf16> to vector<64x128xbf16>
    %cst_123 = arith.constant dense<0.000000e+00> : vector<12x128xf32>
    %103 = tpu.matmul %100, %102, %cst_123 {dimension_numbers = #tpu.dot_dimension_numbers<[1], [0], [0], [1], [0, 0, 1, 1], [], []>} : vector<12x64xbf16>, vector<64x128xbf16>, vector<12x128xf32> -> vector<12x128xf32>
    %104 = arith.addf %98, %103 : vector<12x128xf32>
    %c0_124 = arith.constant 0 : index
    %c4 = arith.constant 4 : index
    %c0_125 = arith.constant 0 : index
    %c0_126 = arith.constant 0 : index
    %105 = vector.load %arg1[%c0_124, %c4, %c0_125, %c0_126] : memref<1x13x13x64xbf16, #tpu.memory_space<vmem>>, vector<1x1x12x64xbf16>
    %106 = vector.shape_cast %105 : vector<1x1x12x64xbf16> to vector<12x64xbf16>
    %c2_127 = arith.constant 2 : index
    %c0_128 = arith.constant 0 : index
    %c0_129 = arith.constant 0 : index
    %107 = vector.load %arg2[%c2_127, %c0_128, %c0_129] : memref<4x64x128xbf16, #tpu.memory_space<vmem>>, vector<1x64x128xbf16>
    %108 = vector.shape_cast %107 : vector<1x64x128xbf16> to vector<64x128xbf16>
    %cst_130 = arith.constant dense<0.000000e+00> : vector<12x128xf32>
    %109 = tpu.matmul %106, %108, %cst_130 {dimension_numbers = #tpu.dot_dimension_numbers<[1], [0], [0], [1], [0, 0, 1, 1], [], []>} : vector<12x64xbf16>, vector<64x128xbf16>, vector<12x128xf32> -> vector<12x128xf32>
    %110 = arith.addf %104, %109 : vector<12x128xf32>
    %c0_131 = arith.constant 0 : index
    %c4_132 = arith.constant 4 : index
    %c1_133 = arith.constant 1 : index
    %c0_134 = arith.constant 0 : index
    %111 = vector.load %arg1[%c0_131, %c4_132, %c1_133, %c0_134] : memref<1x13x13x64xbf16, #tpu.memory_space<vmem>>, vector<1x1x12x64xbf16>
    %112 = vector.shape_cast %111 : vector<1x1x12x64xbf16> to vector<12x64xbf16>
    %c3_135 = arith.constant 3 : index
    %c0_136 = arith.constant 0 : index
    %c0_137 = arith.constant 0 : index
    %113 = vector.load %arg2[%c3_135, %c0_136, %c0_137] : memref<4x64x128xbf16, #tpu.memory_space<vmem>>, vector<1x64x128xbf16>
    %114 = vector.shape_cast %113 : vector<1x64x128xbf16> to vector<64x128xbf16>
    %cst_138 = arith.constant dense<0.000000e+00> : vector<12x128xf32>
    %115 = tpu.matmul %112, %114, %cst_138 {dimension_numbers = #tpu.dot_dimension_numbers<[1], [0], [0], [1], [0, 0, 1, 1], [], []>} : vector<12x64xbf16>, vector<64x128xbf16>, vector<12x128xf32> -> vector<12x128xf32>
    %116 = arith.addf %110, %115 : vector<12x128xf32>
    %117 = vector.broadcast %0 : vector<1x128xf32> to vector<12x128xf32>
    %118 = arith.addf %116, %117 : vector<12x128xf32>
    %cst_139 = arith.constant 0.000000e+00 : f32
    %119 = vector.broadcast %cst_139 : f32 to vector<12x128xf32>
    %120 = arith.maximumf %118, %119 : vector<12x128xf32>
    %121 = arith.truncf %120 : vector<12x128xf32> to vector<12x128xbf16>
    %c0_140 = arith.constant 0 : index
    %c3_141 = arith.constant 3 : index
    %c0_142 = arith.constant 0 : index
    %c0_143 = arith.constant 0 : index
    %122 = vector.load %arg4[%c0_140, %c3_141, %c0_142, %c0_143] : memref<1x12x12x128xbf16, #tpu.memory_space<vmem>>, vector<1x1x12x128xbf16>
    %123 = vector.shape_cast %122 : vector<1x1x12x128xbf16> to vector<12x128xbf16>
    %124 = vector.shape_cast %121 : vector<12x128xbf16> to vector<1x1x12x128xbf16>
    tpu.vector_store %arg4[%c0_140, %c3_141, %c0_142, %c0_143], %124 {strides = array<i32>} : memref<1x12x12x128xbf16, #tpu.memory_space<vmem>>, vector<1x1x12x128xbf16>,
    %c0_144 = arith.constant 0 : index
    %c4_145 = arith.constant 4 : index
    %c0_146 = arith.constant 0 : index
    %c0_147 = arith.constant 0 : index
    %125 = vector.load %arg1[%c0_144, %c4_145, %c0_146, %c0_147] : memref<1x13x13x64xbf16, #tpu.memory_space<vmem>>, vector<1x1x12x64xbf16>
    %126 = vector.shape_cast %125 : vector<1x1x12x64xbf16> to vector<12x64xbf16>
    %c0_148 = arith.constant 0 : index
    %c0_149 = arith.constant 0 : index
    %c0_150 = arith.constant 0 : index
    %127 = vector.load %arg2[%c0_148, %c0_149, %c0_150] : memref<4x64x128xbf16, #tpu.memory_space<vmem>>, vector<1x64x128xbf16>
    %128 = vector.shape_cast %127 : vector<1x64x128xbf16> to vector<64x128xbf16>
    %cst_151 = arith.constant dense<0.000000e+00> : vector<12x128xf32>
    %129 = tpu.matmul %126, %128, %cst_151 {dimension_numbers = #tpu.dot_dimension_numbers<[1], [0], [0], [1], [0, 0, 1, 1], [], []>} : vector<12x64xbf16>, vector<64x128xbf16>, vector<12x128xf32> -> vector<12x128xf32>
    %c0_152 = arith.constant 0 : index
    %c4_153 = arith.constant 4 : index
    %c1_154 = arith.constant 1 : index
    %c0_155 = arith.constant 0 : index
    %130 = vector.load %arg1[%c0_152, %c4_153, %c1_154, %c0_155] : memref<1x13x13x64xbf16, #tpu.memory_space<vmem>>, vector<1x1x12x64xbf16>
    %131 = vector.shape_cast %130 : vector<1x1x12x64xbf16> to vector<12x64xbf16>
    %c1_156 = arith.constant 1 : index
    %c0_157 = arith.constant 0 : index
    %c0_158 = arith.constant 0 : index
    %132 = vector.load %arg2[%c1_156, %c0_157, %c0_158] : memref<4x64x128xbf16, #tpu.memory_space<vmem>>, vector<1x64x128xbf16>
    %133 = vector.shape_cast %132 : vector<1x64x128xbf16> to vector<64x128xbf16>
    %cst_159 = arith.constant dense<0.000000e+00> : vector<12x128xf32>
    %134 = tpu.matmul %131, %133, %cst_159 {dimension_numbers = #tpu.dot_dimension_numbers<[1], [0], [0], [1], [0, 0, 1, 1], [], []>} : vector<12x64xbf16>, vector<64x128xbf16>, vector<12x128xf32> -> vector<12x128xf32>
    %135 = arith.addf %129, %134 : vector<12x128xf32>
    %c0_160 = arith.constant 0 : index
    %c5 = arith.constant 5 : index
    %c0_161 = arith.constant 0 : index
    %c0_162 = arith.constant 0 : index
    %136 = vector.load %arg1[%c0_160, %c5, %c0_161, %c0_162] : memref<1x13x13x64xbf16, #tpu.memory_space<vmem>>, vector<1x1x12x64xbf16>
    %137 = vector.shape_cast %136 : vector<1x1x12x64xbf16> to vector<12x64xbf16>
    %c2_163 = arith.constant 2 : index
    %c0_164 = arith.constant 0 : index
    %c0_165 = arith.constant 0 : index
    %138 = vector.load %arg2[%c2_163, %c0_164, %c0_165] : memref<4x64x128xbf16, #tpu.memory_space<vmem>>, vector<1x64x128xbf16>
    %139 = vector.shape_cast %138 : vector<1x64x128xbf16> to vector<64x128xbf16>
    %cst_166 = arith.constant dense<0.000000e+00> : vector<12x128xf32>
    %140 = tpu.matmul %137, %139, %cst_166 {dimension_numbers = #tpu.dot_dimension_numbers<[1], [0], [0], [1], [0, 0, 1, 1], [], []>} : vector<12x64xbf16>, vector<64x128xbf16>, vector<12x128xf32> -> vector<12x128xf32>
    %141 = arith.addf %135, %140 : vector<12x128xf32>
    %c0_167 = arith.constant 0 : index
    %c5_168 = arith.constant 5 : index
    %c1_169 = arith.constant 1 : index
    %c0_170 = arith.constant 0 : index
    %142 = vector.load %arg1[%c0_167, %c5_168, %c1_169, %c0_170] : memref<1x13x13x64xbf16, #tpu.memory_space<vmem>>, vector<1x1x12x64xbf16>
    %143 = vector.shape_cast %142 : vector<1x1x12x64xbf16> to vector<12x64xbf16>
    %c3_171 = arith.constant 3 : index
    %c0_172 = arith.constant 0 : index
    %c0_173 = arith.constant 0 : index
    %144 = vector.load %arg2[%c3_171, %c0_172, %c0_173] : memref<4x64x128xbf16, #tpu.memory_space<vmem>>, vector<1x64x128xbf16>
    %145 = vector.shape_cast %144 : vector<1x64x128xbf16> to vector<64x128xbf16>
    %cst_174 = arith.constant dense<0.000000e+00> : vector<12x128xf32>
    %146 = tpu.matmul %143, %145, %cst_174 {dimension_numbers = #tpu.dot_dimension_numbers<[1], [0], [0], [1], [0, 0, 1, 1], [], []>} : vector<12x64xbf16>, vector<64x128xbf16>, vector<12x128xf32> -> vector<12x128xf32>
    %147 = arith.addf %141, %146 : vector<12x128xf32>
    %148 = vector.broadcast %0 : vector<1x128xf32> to vector<12x128xf32>
    %149 = arith.addf %147, %148 : vector<12x128xf32>
    %cst_175 = arith.constant 0.000000e+00 : f32
    %150 = vector.broadcast %cst_175 : f32 to vector<12x128xf32>
    %151 = arith.maximumf %149, %150 : vector<12x128xf32>
    %152 = arith.truncf %151 : vector<12x128xf32> to vector<12x128xbf16>
    %c0_176 = arith.constant 0 : index
    %c4_177 = arith.constant 4 : index
    %c0_178 = arith.constant 0 : index
    %c0_179 = arith.constant 0 : index
    %153 = vector.load %arg4[%c0_176, %c4_177, %c0_178, %c0_179] : memref<1x12x12x128xbf16, #tpu.memory_space<vmem>>, vector<1x1x12x128xbf16>
    %154 = vector.shape_cast %153 : vector<1x1x12x128xbf16> to vector<12x128xbf16>
    %155 = vector.shape_cast %152 : vector<12x128xbf16> to vector<1x1x12x128xbf16>
    tpu.vector_store %arg4[%c0_176, %c4_177, %c0_178, %c0_179], %155 {strides = array<i32>} : memref<1x12x12x128xbf16, #tpu.memory_space<vmem>>, vector<1x1x12x128xbf16>,
    %c0_180 = arith.constant 0 : index
    %c5_181 = arith.constant 5 : index
    %c0_182 = arith.constant 0 : index
    %c0_183 = arith.constant 0 : index
    %156 = vector.load %arg1[%c0_180, %c5_181, %c0_182, %c0_183] : memref<1x13x13x64xbf16, #tpu.memory_space<vmem>>, vector<1x1x12x64xbf16>
    %157 = vector.shape_cast %156 : vector<1x1x12x64xbf16> to vector<12x64xbf16>
    %c0_184 = arith.constant 0 : index
    %c0_185 = arith.constant 0 : index
    %c0_186 = arith.constant 0 : index
    %158 = vector.load %arg2[%c0_184, %c0_185, %c0_186] : memref<4x64x128xbf16, #tpu.memory_space<vmem>>, vector<1x64x128xbf16>
    %159 = vector.shape_cast %158 : vector<1x64x128xbf16> to vector<64x128xbf16>
    %cst_187 = arith.constant dense<0.000000e+00> : vector<12x128xf32>
    %160 = tpu.matmul %157, %159, %cst_187 {dimension_numbers = #tpu.dot_dimension_numbers<[1], [0], [0], [1], [0, 0, 1, 1], [], []>} : vector<12x64xbf16>, vector<64x128xbf16>, vector<12x128xf32> -> vector<12x128xf32>
    %c0_188 = arith.constant 0 : index
    %c5_189 = arith.constant 5 : index
    %c1_190 = arith.constant 1 : index
    %c0_191 = arith.constant 0 : index
    %161 = vector.load %arg1[%c0_188, %c5_189, %c1_190, %c0_191] : memref<1x13x13x64xbf16, #tpu.memory_space<vmem>>, vector<1x1x12x64xbf16>
    %162 = vector.shape_cast %161 : vector<1x1x12x64xbf16> to vector<12x64xbf16>
    %c1_192 = arith.constant 1 : index
    %c0_193 = arith.constant 0 : index
    %c0_194 = arith.constant 0 : index
    %163 = vector.load %arg2[%c1_192, %c0_193, %c0_194] : memref<4x64x128xbf16, #tpu.memory_space<vmem>>, vector<1x64x128xbf16>
    %164 = vector.shape_cast %163 : vector<1x64x128xbf16> to vector<64x128xbf16>
    %cst_195 = arith.constant dense<0.000000e+00> : vector<12x128xf32>
    %165 = tpu.matmul %162, %164, %cst_195 {dimension_numbers = #tpu.dot_dimension_numbers<[1], [0], [0], [1], [0, 0, 1, 1], [], []>} : vector<12x64xbf16>, vector<64x128xbf16>, vector<12x128xf32> -> vector<12x128xf32>
    %166 = arith.addf %160, %165 : vector<12x128xf32>
    %c0_196 = arith.constant 0 : index
    %c6 = arith.constant 6 : index
    %c0_197 = arith.constant 0 : index
    %c0_198 = arith.constant 0 : index
    %167 = vector.load %arg1[%c0_196, %c6, %c0_197, %c0_198] : memref<1x13x13x64xbf16, #tpu.memory_space<vmem>>, vector<1x1x12x64xbf16>
    %168 = vector.shape_cast %167 : vector<1x1x12x64xbf16> to vector<12x64xbf16>
    %c2_199 = arith.constant 2 : index
    %c0_200 = arith.constant 0 : index
    %c0_201 = arith.constant 0 : index
    %169 = vector.load %arg2[%c2_199, %c0_200, %c0_201] : memref<4x64x128xbf16, #tpu.memory_space<vmem>>, vector<1x64x128xbf16>
    %170 = vector.shape_cast %169 : vector<1x64x128xbf16> to vector<64x128xbf16>
    %cst_202 = arith.constant dense<0.000000e+00> : vector<12x128xf32>
    %171 = tpu.matmul %168, %170, %cst_202 {dimension_numbers = #tpu.dot_dimension_numbers<[1], [0], [0], [1], [0, 0, 1, 1], [], []>} : vector<12x64xbf16>, vector<64x128xbf16>, vector<12x128xf32> -> vector<12x128xf32>
    %172 = arith.addf %166, %171 : vector<12x128xf32>
    %c0_203 = arith.constant 0 : index
    %c6_204 = arith.constant 6 : index
    %c1_205 = arith.constant 1 : index
    %c0_206 = arith.constant 0 : index
    %173 = vector.load %arg1[%c0_203, %c6_204, %c1_205, %c0_206] : memref<1x13x13x64xbf16, #tpu.memory_space<vmem>>, vector<1x1x12x64xbf16>
    %174 = vector.shape_cast %173 : vector<1x1x12x64xbf16> to vector<12x64xbf16>
    %c3_207 = arith.constant 3 : index
    %c0_208 = arith.constant 0 : index
    %c0_209 = arith.constant 0 : index
    %175 = vector.load %arg2[%c3_207, %c0_208, %c0_209] : memref<4x64x128xbf16, #tpu.memory_space<vmem>>, vector<1x64x128xbf16>
    %176 = vector.shape_cast %175 : vector<1x64x128xbf16> to vector<64x128xbf16>
    %cst_210 = arith.constant dense<0.000000e+00> : vector<12x128xf32>
    %177 = tpu.matmul %174, %176, %cst_210 {dimension_numbers = #tpu.dot_dimension_numbers<[1], [0], [0], [1], [0, 0, 1, 1], [], []>} : vector<12x64xbf16>, vector<64x128xbf16>, vector<12x128xf32> -> vector<12x128xf32>
    %178 = arith.addf %172, %177 : vector<12x128xf32>
    %179 = vector.broadcast %0 : vector<1x128xf32> to vector<12x128xf32>
    %180 = arith.addf %178, %179 : vector<12x128xf32>
    %cst_211 = arith.constant 0.000000e+00 : f32
    %181 = vector.broadcast %cst_211 : f32 to vector<12x128xf32>
    %182 = arith.maximumf %180, %181 : vector<12x128xf32>
    %183 = arith.truncf %182 : vector<12x128xf32> to vector<12x128xbf16>
    %c0_212 = arith.constant 0 : index
    %c5_213 = arith.constant 5 : index
    %c0_214 = arith.constant 0 : index
    %c0_215 = arith.constant 0 : index
    %184 = vector.load %arg4[%c0_212, %c5_213, %c0_214, %c0_215] : memref<1x12x12x128xbf16, #tpu.memory_space<vmem>>, vector<1x1x12x128xbf16>
    %185 = vector.shape_cast %184 : vector<1x1x12x128xbf16> to vector<12x128xbf16>
    %186 = vector.shape_cast %183 : vector<12x128xbf16> to vector<1x1x12x128xbf16>
    tpu.vector_store %arg4[%c0_212, %c5_213, %c0_214, %c0_215], %186 {strides = array<i32>} : memref<1x12x12x128xbf16, #tpu.memory_space<vmem>>, vector<1x1x12x128xbf16>,
    %c0_216 = arith.constant 0 : index
    %c6_217 = arith.constant 6 : index
    %c0_218 = arith.constant 0 : index
    %c0_219 = arith.constant 0 : index
    %187 = vector.load %arg1[%c0_216, %c6_217, %c0_218, %c0_219] : memref<1x13x13x64xbf16, #tpu.memory_space<vmem>>, vector<1x1x12x64xbf16>
    %188 = vector.shape_cast %187 : vector<1x1x12x64xbf16> to vector<12x64xbf16>
    %c0_220 = arith.constant 0 : index
    %c0_221 = arith.constant 0 : index
    %c0_222 = arith.constant 0 : index
    %189 = vector.load %arg2[%c0_220, %c0_221, %c0_222] : memref<4x64x128xbf16, #tpu.memory_space<vmem>>, vector<1x64x128xbf16>
    %190 = vector.shape_cast %189 : vector<1x64x128xbf16> to vector<64x128xbf16>
    %cst_223 = arith.constant dense<0.000000e+00> : vector<12x128xf32>
    %191 = tpu.matmul %188, %190, %cst_223 {dimension_numbers = #tpu.dot_dimension_numbers<[1], [0], [0], [1], [0, 0, 1, 1], [], []>} : vector<12x64xbf16>, vector<64x128xbf16>, vector<12x128xf32> -> vector<12x128xf32>
    %c0_224 = arith.constant 0 : index
    %c6_225 = arith.constant 6 : index
    %c1_226 = arith.constant 1 : index
    %c0_227 = arith.constant 0 : index
    %192 = vector.load %arg1[%c0_224, %c6_225, %c1_226, %c0_227] : memref<1x13x13x64xbf16, #tpu.memory_space<vmem>>, vector<1x1x12x64xbf16>
    %193 = vector.shape_cast %192 : vector<1x1x12x64xbf16> to vector<12x64xbf16>
    %c1_228 = arith.constant 1 : index
    %c0_229 = arith.constant 0 : index
    %c0_230 = arith.constant 0 : index
    %194 = vector.load %arg2[%c1_228, %c0_229, %c0_230] : memref<4x64x128xbf16, #tpu.memory_space<vmem>>, vector<1x64x128xbf16>
    %195 = vector.shape_cast %194 : vector<1x64x128xbf16> to vector<64x128xbf16>
    %cst_231 = arith.constant dense<0.000000e+00> : vector<12x128xf32>
    %196 = tpu.matmul %193, %195, %cst_231 {dimension_numbers = #tpu.dot_dimension_numbers<[1], [0], [0], [1], [0, 0, 1, 1], [], []>} : vector<12x64xbf16>, vector<64x128xbf16>, vector<12x128xf32> -> vector<12x128xf32>
    %197 = arith.addf %191, %196 : vector<12x128xf32>
    %c0_232 = arith.constant 0 : index
    %c7 = arith.constant 7 : index
    %c0_233 = arith.constant 0 : index
    %c0_234 = arith.constant 0 : index
    %198 = vector.load %arg1[%c0_232, %c7, %c0_233, %c0_234] : memref<1x13x13x64xbf16, #tpu.memory_space<vmem>>, vector<1x1x12x64xbf16>
    %199 = vector.shape_cast %198 : vector<1x1x12x64xbf16> to vector<12x64xbf16>
    %c2_235 = arith.constant 2 : index
    %c0_236 = arith.constant 0 : index
    %c0_237 = arith.constant 0 : index
    %200 = vector.load %arg2[%c2_235, %c0_236, %c0_237] : memref<4x64x128xbf16, #tpu.memory_space<vmem>>, vector<1x64x128xbf16>
    %201 = vector.shape_cast %200 : vector<1x64x128xbf16> to vector<64x128xbf16>
    %cst_238 = arith.constant dense<0.000000e+00> : vector<12x128xf32>
    %202 = tpu.matmul %199, %201, %cst_238 {dimension_numbers = #tpu.dot_dimension_numbers<[1], [0], [0], [1], [0, 0, 1, 1], [], []>} : vector<12x64xbf16>, vector<64x128xbf16>, vector<12x128xf32> -> vector<12x128xf32>
    %203 = arith.addf %197, %202 : vector<12x128xf32>
    %c0_239 = arith.constant 0 : index
    %c7_240 = arith.constant 7 : index
    %c1_241 = arith.constant 1 : index
    %c0_242 = arith.constant 0 : index
    %204 = vector.load %arg1[%c0_239, %c7_240, %c1_241, %c0_242] : memref<1x13x13x64xbf16, #tpu.memory_space<vmem>>, vector<1x1x12x64xbf16>
    %205 = vector.shape_cast %204 : vector<1x1x12x64xbf16> to vector<12x64xbf16>
    %c3_243 = arith.constant 3 : index
    %c0_244 = arith.constant 0 : index
    %c0_245 = arith.constant 0 : index
    %206 = vector.load %arg2[%c3_243, %c0_244, %c0_245] : memref<4x64x128xbf16, #tpu.memory_space<vmem>>, vector<1x64x128xbf16>
    %207 = vector.shape_cast %206 : vector<1x64x128xbf16> to vector<64x128xbf16>
    %cst_246 = arith.constant dense<0.000000e+00> : vector<12x128xf32>
    %208 = tpu.matmul %205, %207, %cst_246 {dimension_numbers = #tpu.dot_dimension_numbers<[1], [0], [0], [1], [0, 0, 1, 1], [], []>} : vector<12x64xbf16>, vector<64x128xbf16>, vector<12x128xf32> -> vector<12x128xf32>
    %209 = arith.addf %203, %208 : vector<12x128xf32>
    %210 = vector.broadcast %0 : vector<1x128xf32> to vector<12x128xf32>
    %211 = arith.addf %209, %210 : vector<12x128xf32>
    %cst_247 = arith.constant 0.000000e+00 : f32
    %212 = vector.broadcast %cst_247 : f32 to vector<12x128xf32>
    %213 = arith.maximumf %211, %212 : vector<12x128xf32>
    %214 = arith.truncf %213 : vector<12x128xf32> to vector<12x128xbf16>
    %c0_248 = arith.constant 0 : index
    %c6_249 = arith.constant 6 : index
    %c0_250 = arith.constant 0 : index
    %c0_251 = arith.constant 0 : index
    %215 = vector.load %arg4[%c0_248, %c6_249, %c0_250, %c0_251] : memref<1x12x12x128xbf16, #tpu.memory_space<vmem>>, vector<1x1x12x128xbf16>
    %216 = vector.shape_cast %215 : vector<1x1x12x128xbf16> to vector<12x128xbf16>
    %217 = vector.shape_cast %214 : vector<12x128xbf16> to vector<1x1x12x128xbf16>
    tpu.vector_store %arg4[%c0_248, %c6_249, %c0_250, %c0_251], %217 {strides = array<i32>} : memref<1x12x12x128xbf16, #tpu.memory_space<vmem>>, vector<1x1x12x128xbf16>,
    %c0_252 = arith.constant 0 : index
    %c7_253 = arith.constant 7 : index
    %c0_254 = arith.constant 0 : index
    %c0_255 = arith.constant 0 : index
    %218 = vector.load %arg1[%c0_252, %c7_253, %c0_254, %c0_255] : memref<1x13x13x64xbf16, #tpu.memory_space<vmem>>, vector<1x1x12x64xbf16>
    %219 = vector.shape_cast %218 : vector<1x1x12x64xbf16> to vector<12x64xbf16>
    %c0_256 = arith.constant 0 : index
    %c0_257 = arith.constant 0 : index
    %c0_258 = arith.constant 0 : index
    %220 = vector.load %arg2[%c0_256, %c0_257, %c0_258] : memref<4x64x128xbf16, #tpu.memory_space<vmem>>, vector<1x64x128xbf16>
    %221 = vector.shape_cast %220 : vector<1x64x128xbf16> to vector<64x128xbf16>
    %cst_259 = arith.constant dense<0.000000e+00> : vector<12x128xf32>
    %222 = tpu.matmul %219, %221, %cst_259 {dimension_numbers = #tpu.dot_dimension_numbers<[1], [0], [0], [1], [0, 0, 1, 1], [], []>} : vector<12x64xbf16>, vector<64x128xbf16>, vector<12x128xf32> -> vector<12x128xf32>
    %c0_260 = arith.constant 0 : index
    %c7_261 = arith.constant 7 : index
    %c1_262 = arith.constant 1 : index
    %c0_263 = arith.constant 0 : index
    %223 = vector.load %arg1[%c0_260, %c7_261, %c1_262, %c0_263] : memref<1x13x13x64xbf16, #tpu.memory_space<vmem>>, vector<1x1x12x64xbf16>
    %224 = vector.shape_cast %223 : vector<1x1x12x64xbf16> to vector<12x64xbf16>
    %c1_264 = arith.constant 1 : index
    %c0_265 = arith.constant 0 : index
    %c0_266 = arith.constant 0 : index
    %225 = vector.load %arg2[%c1_264, %c0_265, %c0_266] : memref<4x64x128xbf16, #tpu.memory_space<vmem>>, vector<1x64x128xbf16>
    %226 = vector.shape_cast %225 : vector<1x64x128xbf16> to vector<64x128xbf16>
    %cst_267 = arith.constant dense<0.000000e+00> : vector<12x128xf32>
    %227 = tpu.matmul %224, %226, %cst_267 {dimension_numbers = #tpu.dot_dimension_numbers<[1], [0], [0], [1], [0, 0, 1, 1], [], []>} : vector<12x64xbf16>, vector<64x128xbf16>, vector<12x128xf32> -> vector<12x128xf32>
    %228 = arith.addf %222, %227 : vector<12x128xf32>
    %c0_268 = arith.constant 0 : index
    %c8 = arith.constant 8 : index
    %c0_269 = arith.constant 0 : index
    %c0_270 = arith.constant 0 : index
    %229 = vector.load %arg1[%c0_268, %c8, %c0_269, %c0_270] : memref<1x13x13x64xbf16, #tpu.memory_space<vmem>>, vector<1x1x12x64xbf16>
    %230 = vector.shape_cast %229 : vector<1x1x12x64xbf16> to vector<12x64xbf16>
    %c2_271 = arith.constant 2 : index
    %c0_272 = arith.constant 0 : index
    %c0_273 = arith.constant 0 : index
    %231 = vector.load %arg2[%c2_271, %c0_272, %c0_273] : memref<4x64x128xbf16, #tpu.memory_space<vmem>>, vector<1x64x128xbf16>
    %232 = vector.shape_cast %231 : vector<1x64x128xbf16> to vector<64x128xbf16>
    %cst_274 = arith.constant dense<0.000000e+00> : vector<12x128xf32>
    %233 = tpu.matmul %230, %232, %cst_274 {dimension_numbers = #tpu.dot_dimension_numbers<[1], [0], [0], [1], [0, 0, 1, 1], [], []>} : vector<12x64xbf16>, vector<64x128xbf16>, vector<12x128xf32> -> vector<12x128xf32>
    %234 = arith.addf %228, %233 : vector<12x128xf32>
    %c0_275 = arith.constant 0 : index
    %c8_276 = arith.constant 8 : index
    %c1_277 = arith.constant 1 : index
    %c0_278 = arith.constant 0 : index
    %235 = vector.load %arg1[%c0_275, %c8_276, %c1_277, %c0_278] : memref<1x13x13x64xbf16, #tpu.memory_space<vmem>>, vector<1x1x12x64xbf16>
    %236 = vector.shape_cast %235 : vector<1x1x12x64xbf16> to vector<12x64xbf16>
    %c3_279 = arith.constant 3 : index
    %c0_280 = arith.constant 0 : index
    %c0_281 = arith.constant 0 : index
    %237 = vector.load %arg2[%c3_279, %c0_280, %c0_281] : memref<4x64x128xbf16, #tpu.memory_space<vmem>>, vector<1x64x128xbf16>
    %238 = vector.shape_cast %237 : vector<1x64x128xbf16> to vector<64x128xbf16>
    %cst_282 = arith.constant dense<0.000000e+00> : vector<12x128xf32>
    %239 = tpu.matmul %236, %238, %cst_282 {dimension_numbers = #tpu.dot_dimension_numbers<[1], [0], [0], [1], [0, 0, 1, 1], [], []>} : vector<12x64xbf16>, vector<64x128xbf16>, vector<12x128xf32> -> vector<12x128xf32>
    %240 = arith.addf %234, %239 : vector<12x128xf32>
    %241 = vector.broadcast %0 : vector<1x128xf32> to vector<12x128xf32>
    %242 = arith.addf %240, %241 : vector<12x128xf32>
    %cst_283 = arith.constant 0.000000e+00 : f32
    %243 = vector.broadcast %cst_283 : f32 to vector<12x128xf32>
    %244 = arith.maximumf %242, %243 : vector<12x128xf32>
    %245 = arith.truncf %244 : vector<12x128xf32> to vector<12x128xbf16>
    %c0_284 = arith.constant 0 : index
    %c7_285 = arith.constant 7 : index
    %c0_286 = arith.constant 0 : index
    %c0_287 = arith.constant 0 : index
    %246 = vector.load %arg4[%c0_284, %c7_285, %c0_286, %c0_287] : memref<1x12x12x128xbf16, #tpu.memory_space<vmem>>, vector<1x1x12x128xbf16>
    %247 = vector.shape_cast %246 : vector<1x1x12x128xbf16> to vector<12x128xbf16>
    %248 = vector.shape_cast %245 : vector<12x128xbf16> to vector<1x1x12x128xbf16>
    tpu.vector_store %arg4[%c0_284, %c7_285, %c0_286, %c0_287], %248 {strides = array<i32>} : memref<1x12x12x128xbf16, #tpu.memory_space<vmem>>, vector<1x1x12x128xbf16>,
    %c0_288 = arith.constant 0 : index
    %c8_289 = arith.constant 8 : index
    %c0_290 = arith.constant 0 : index
    %c0_291 = arith.constant 0 : index
    %249 = vector.load %arg1[%c0_288, %c8_289, %c0_290, %c0_291] : memref<1x13x13x64xbf16, #tpu.memory_space<vmem>>, vector<1x1x12x64xbf16>
    %250 = vector.shape_cast %249 : vector<1x1x12x64xbf16> to vector<12x64xbf16>
    %c0_292 = arith.constant 0 : index
    %c0_293 = arith.constant 0 : index
    %c0_294 = arith.constant 0 : index
    %251 = vector.load %arg2[%c0_292, %c0_293, %c0_294] : memref<4x64x128xbf16, #tpu.memory_space<vmem>>, vector<1x64x128xbf16>
    %252 = vector.shape_cast %251 : vector<1x64x128xbf16> to vector<64x128xbf16>
    %cst_295 = arith.constant dense<0.000000e+00> : vector<12x128xf32>
    %253 = tpu.matmul %250, %252, %cst_295 {dimension_numbers = #tpu.dot_dimension_numbers<[1], [0], [0], [1], [0, 0, 1, 1], [], []>} : vector<12x64xbf16>, vector<64x128xbf16>, vector<12x128xf32> -> vector<12x128xf32>
    %c0_296 = arith.constant 0 : index
    %c8_297 = arith.constant 8 : index
    %c1_298 = arith.constant 1 : index
    %c0_299 = arith.constant 0 : index
    %254 = vector.load %arg1[%c0_296, %c8_297, %c1_298, %c0_299] : memref<1x13x13x64xbf16, #tpu.memory_space<vmem>>, vector<1x1x12x64xbf16>
    %255 = vector.shape_cast %254 : vector<1x1x12x64xbf16> to vector<12x64xbf16>
    %c1_300 = arith.constant 1 : index
    %c0_301 = arith.constant 0 : index
    %c0_302 = arith.constant 0 : index
    %256 = vector.load %arg2[%c1_300, %c0_301, %c0_302] : memref<4x64x128xbf16, #tpu.memory_space<vmem>>, vector<1x64x128xbf16>
    %257 = vector.shape_cast %256 : vector<1x64x128xbf16> to vector<64x128xbf16>
    %cst_303 = arith.constant dense<0.000000e+00> : vector<12x128xf32>
    %258 = tpu.matmul %255, %257, %cst_303 {dimension_numbers = #tpu.dot_dimension_numbers<[1], [0], [0], [1], [0, 0, 1, 1], [], []>} : vector<12x64xbf16>, vector<64x128xbf16>, vector<12x128xf32> -> vector<12x128xf32>
    %259 = arith.addf %253, %258 : vector<12x128xf32>
    %c0_304 = arith.constant 0 : index
    %c9 = arith.constant 9 : index
    %c0_305 = arith.constant 0 : index
    %c0_306 = arith.constant 0 : index
    %260 = vector.load %arg1[%c0_304, %c9, %c0_305, %c0_306] : memref<1x13x13x64xbf16, #tpu.memory_space<vmem>>, vector<1x1x12x64xbf16>
    %261 = vector.shape_cast %260 : vector<1x1x12x64xbf16> to vector<12x64xbf16>
    %c2_307 = arith.constant 2 : index
    %c0_308 = arith.constant 0 : index
    %c0_309 = arith.constant 0 : index
    %262 = vector.load %arg2[%c2_307, %c0_308, %c0_309] : memref<4x64x128xbf16, #tpu.memory_space<vmem>>, vector<1x64x128xbf16>
    %263 = vector.shape_cast %262 : vector<1x64x128xbf16> to vector<64x128xbf16>
    %cst_310 = arith.constant dense<0.000000e+00> : vector<12x128xf32>
    %264 = tpu.matmul %261, %263, %cst_310 {dimension_numbers = #tpu.dot_dimension_numbers<[1], [0], [0], [1], [0, 0, 1, 1], [], []>} : vector<12x64xbf16>, vector<64x128xbf16>, vector<12x128xf32> -> vector<12x128xf32>
    %265 = arith.addf %259, %264 : vector<12x128xf32>
    %c0_311 = arith.constant 0 : index
    %c9_312 = arith.constant 9 : index
    %c1_313 = arith.constant 1 : index
    %c0_314 = arith.constant 0 : index
    %266 = vector.load %arg1[%c0_311, %c9_312, %c1_313, %c0_314] : memref<1x13x13x64xbf16, #tpu.memory_space<vmem>>, vector<1x1x12x64xbf16>
    %267 = vector.shape_cast %266 : vector<1x1x12x64xbf16> to vector<12x64xbf16>
    %c3_315 = arith.constant 3 : index
    %c0_316 = arith.constant 0 : index
    %c0_317 = arith.constant 0 : index
    %268 = vector.load %arg2[%c3_315, %c0_316, %c0_317] : memref<4x64x128xbf16, #tpu.memory_space<vmem>>, vector<1x64x128xbf16>
    %269 = vector.shape_cast %268 : vector<1x64x128xbf16> to vector<64x128xbf16>
    %cst_318 = arith.constant dense<0.000000e+00> : vector<12x128xf32>
    %270 = tpu.matmul %267, %269, %cst_318 {dimension_numbers = #tpu.dot_dimension_numbers<[1], [0], [0], [1], [0, 0, 1, 1], [], []>} : vector<12x64xbf16>, vector<64x128xbf16>, vector<12x128xf32> -> vector<12x128xf32>
    %271 = arith.addf %265, %270 : vector<12x128xf32>
    %272 = vector.broadcast %0 : vector<1x128xf32> to vector<12x128xf32>
    %273 = arith.addf %271, %272 : vector<12x128xf32>
    %cst_319 = arith.constant 0.000000e+00 : f32
    %274 = vector.broadcast %cst_319 : f32 to vector<12x128xf32>
    %275 = arith.maximumf %273, %274 : vector<12x128xf32>
    %276 = arith.truncf %275 : vector<12x128xf32> to vector<12x128xbf16>
    %c0_320 = arith.constant 0 : index
    %c8_321 = arith.constant 8 : index
    %c0_322 = arith.constant 0 : index
    %c0_323 = arith.constant 0 : index
    %277 = vector.load %arg4[%c0_320, %c8_321, %c0_322, %c0_323] : memref<1x12x12x128xbf16, #tpu.memory_space<vmem>>, vector<1x1x12x128xbf16>
    %278 = vector.shape_cast %277 : vector<1x1x12x128xbf16> to vector<12x128xbf16>
    %279 = vector.shape_cast %276 : vector<12x128xbf16> to vector<1x1x12x128xbf16>
    tpu.vector_store %arg4[%c0_320, %c8_321, %c0_322, %c0_323], %279 {strides = array<i32>} : memref<1x12x12x128xbf16, #tpu.memory_space<vmem>>, vector<1x1x12x128xbf16>,
    %c0_324 = arith.constant 0 : index
    %c9_325 = arith.constant 9 : index
    %c0_326 = arith.constant 0 : index
    %c0_327 = arith.constant 0 : index
    %280 = vector.load %arg1[%c0_324, %c9_325, %c0_326, %c0_327] : memref<1x13x13x64xbf16, #tpu.memory_space<vmem>>, vector<1x1x12x64xbf16>
    %281 = vector.shape_cast %280 : vector<1x1x12x64xbf16> to vector<12x64xbf16>
    %c0_328 = arith.constant 0 : index
    %c0_329 = arith.constant 0 : index
    %c0_330 = arith.constant 0 : index
    %282 = vector.load %arg2[%c0_328, %c0_329, %c0_330] : memref<4x64x128xbf16, #tpu.memory_space<vmem>>, vector<1x64x128xbf16>
    %283 = vector.shape_cast %282 : vector<1x64x128xbf16> to vector<64x128xbf16>
    %cst_331 = arith.constant dense<0.000000e+00> : vector<12x128xf32>
    %284 = tpu.matmul %281, %283, %cst_331 {dimension_numbers = #tpu.dot_dimension_numbers<[1], [0], [0], [1], [0, 0, 1, 1], [], []>} : vector<12x64xbf16>, vector<64x128xbf16>, vector<12x128xf32> -> vector<12x128xf32>
    %c0_332 = arith.constant 0 : index
    %c9_333 = arith.constant 9 : index
    %c1_334 = arith.constant 1 : index
    %c0_335 = arith.constant 0 : index
    %285 = vector.load %arg1[%c0_332, %c9_333, %c1_334, %c0_335] : memref<1x13x13x64xbf16, #tpu.memory_space<vmem>>, vector<1x1x12x64xbf16>
    %286 = vector.shape_cast %285 : vector<1x1x12x64xbf16> to vector<12x64xbf16>
    %c1_336 = arith.constant 1 : index
    %c0_337 = arith.constant 0 : index
    %c0_338 = arith.constant 0 : index
    %287 = vector.load %arg2[%c1_336, %c0_337, %c0_338] : memref<4x64x128xbf16, #tpu.memory_space<vmem>>, vector<1x64x128xbf16>
    %288 = vector.shape_cast %287 : vector<1x64x128xbf16> to vector<64x128xbf16>
    %cst_339 = arith.constant dense<0.000000e+00> : vector<12x128xf32>
    %289 = tpu.matmul %286, %288, %cst_339 {dimension_numbers = #tpu.dot_dimension_numbers<[1], [0], [0], [1], [0, 0, 1, 1], [], []>} : vector<12x64xbf16>, vector<64x128xbf16>, vector<12x128xf32> -> vector<12x128xf32>
    %290 = arith.addf %284, %289 : vector<12x128xf32>
    %c0_340 = arith.constant 0 : index
    %c10 = arith.constant 10 : index
    %c0_341 = arith.constant 0 : index
    %c0_342 = arith.constant 0 : index
    %291 = vector.load %arg1[%c0_340, %c10, %c0_341, %c0_342] : memref<1x13x13x64xbf16, #tpu.memory_space<vmem>>, vector<1x1x12x64xbf16>
    %292 = vector.shape_cast %291 : vector<1x1x12x64xbf16> to vector<12x64xbf16>
    %c2_343 = arith.constant 2 : index
    %c0_344 = arith.constant 0 : index
    %c0_345 = arith.constant 0 : index
    %293 = vector.load %arg2[%c2_343, %c0_344, %c0_345] : memref<4x64x128xbf16, #tpu.memory_space<vmem>>, vector<1x64x128xbf16>
    %294 = vector.shape_cast %293 : vector<1x64x128xbf16> to vector<64x128xbf16>
    %cst_346 = arith.constant dense<0.000000e+00> : vector<12x128xf32>
    %295 = tpu.matmul %292, %294, %cst_346 {dimension_numbers = #tpu.dot_dimension_numbers<[1], [0], [0], [1], [0, 0, 1, 1], [], []>} : vector<12x64xbf16>, vector<64x128xbf16>, vector<12x128xf32> -> vector<12x128xf32>
    %296 = arith.addf %290, %295 : vector<12x128xf32>
    %c0_347 = arith.constant 0 : index
    %c10_348 = arith.constant 10 : index
    %c1_349 = arith.constant 1 : index
    %c0_350 = arith.constant 0 : index
    %297 = vector.load %arg1[%c0_347, %c10_348, %c1_349, %c0_350] : memref<1x13x13x64xbf16, #tpu.memory_space<vmem>>, vector<1x1x12x64xbf16>
    %298 = vector.shape_cast %297 : vector<1x1x12x64xbf16> to vector<12x64xbf16>
    %c3_351 = arith.constant 3 : index
    %c0_352 = arith.constant 0 : index
    %c0_353 = arith.constant 0 : index
    %299 = vector.load %arg2[%c3_351, %c0_352, %c0_353] : memref<4x64x128xbf16, #tpu.memory_space<vmem>>, vector<1x64x128xbf16>
    %300 = vector.shape_cast %299 : vector<1x64x128xbf16> to vector<64x128xbf16>
    %cst_354 = arith.constant dense<0.000000e+00> : vector<12x128xf32>
    %301 = tpu.matmul %298, %300, %cst_354 {dimension_numbers = #tpu.dot_dimension_numbers<[1], [0], [0], [1], [0, 0, 1, 1], [], []>} : vector<12x64xbf16>, vector<64x128xbf16>, vector<12x128xf32> -> vector<12x128xf32>
    %302 = arith.addf %296, %301 : vector<12x128xf32>
    %303 = vector.broadcast %0 : vector<1x128xf32> to vector<12x128xf32>
    %304 = arith.addf %302, %303 : vector<12x128xf32>
    %cst_355 = arith.constant 0.000000e+00 : f32
    %305 = vector.broadcast %cst_355 : f32 to vector<12x128xf32>
    %306 = arith.maximumf %304, %305 : vector<12x128xf32>
    %307 = arith.truncf %306 : vector<12x128xf32> to vector<12x128xbf16>
    %c0_356 = arith.constant 0 : index
    %c9_357 = arith.constant 9 : index
    %c0_358 = arith.constant 0 : index
    %c0_359 = arith.constant 0 : index
    %308 = vector.load %arg4[%c0_356, %c9_357, %c0_358, %c0_359] : memref<1x12x12x128xbf16, #tpu.memory_space<vmem>>, vector<1x1x12x128xbf16>
    %309 = vector.shape_cast %308 : vector<1x1x12x128xbf16> to vector<12x128xbf16>
    %310 = vector.shape_cast %307 : vector<12x128xbf16> to vector<1x1x12x128xbf16>
    tpu.vector_store %arg4[%c0_356, %c9_357, %c0_358, %c0_359], %310 {strides = array<i32>} : memref<1x12x12x128xbf16, #tpu.memory_space<vmem>>, vector<1x1x12x128xbf16>,
    %c0_360 = arith.constant 0 : index
    %c10_361 = arith.constant 10 : index
    %c0_362 = arith.constant 0 : index
    %c0_363 = arith.constant 0 : index
    %311 = vector.load %arg1[%c0_360, %c10_361, %c0_362, %c0_363] : memref<1x13x13x64xbf16, #tpu.memory_space<vmem>>, vector<1x1x12x64xbf16>
    %312 = vector.shape_cast %311 : vector<1x1x12x64xbf16> to vector<12x64xbf16>
    %c0_364 = arith.constant 0 : index
    %c0_365 = arith.constant 0 : index
    %c0_366 = arith.constant 0 : index
    %313 = vector.load %arg2[%c0_364, %c0_365, %c0_366] : memref<4x64x128xbf16, #tpu.memory_space<vmem>>, vector<1x64x128xbf16>
    %314 = vector.shape_cast %313 : vector<1x64x128xbf16> to vector<64x128xbf16>
    %cst_367 = arith.constant dense<0.000000e+00> : vector<12x128xf32>
    %315 = tpu.matmul %312, %314, %cst_367 {dimension_numbers = #tpu.dot_dimension_numbers<[1], [0], [0], [1], [0, 0, 1, 1], [], []>} : vector<12x64xbf16>, vector<64x128xbf16>, vector<12x128xf32> -> vector<12x128xf32>
    %c0_368 = arith.constant 0 : index
    %c10_369 = arith.constant 10 : index
    %c1_370 = arith.constant 1 : index
    %c0_371 = arith.constant 0 : index
    %316 = vector.load %arg1[%c0_368, %c10_369, %c1_370, %c0_371] : memref<1x13x13x64xbf16, #tpu.memory_space<vmem>>, vector<1x1x12x64xbf16>
    %317 = vector.shape_cast %316 : vector<1x1x12x64xbf16> to vector<12x64xbf16>
    %c1_372 = arith.constant 1 : index
    %c0_373 = arith.constant 0 : index
    %c0_374 = arith.constant 0 : index
    %318 = vector.load %arg2[%c1_372, %c0_373, %c0_374] : memref<4x64x128xbf16, #tpu.memory_space<vmem>>, vector<1x64x128xbf16>
    %319 = vector.shape_cast %318 : vector<1x64x128xbf16> to vector<64x128xbf16>
    %cst_375 = arith.constant dense<0.000000e+00> : vector<12x128xf32>
    %320 = tpu.matmul %317, %319, %cst_375 {dimension_numbers = #tpu.dot_dimension_numbers<[1], [0], [0], [1], [0, 0, 1, 1], [], []>} : vector<12x64xbf16>, vector<64x128xbf16>, vector<12x128xf32> -> vector<12x128xf32>
    %321 = arith.addf %315, %320 : vector<12x128xf32>
    %c0_376 = arith.constant 0 : index
    %c11 = arith.constant 11 : index
    %c0_377 = arith.constant 0 : index
    %c0_378 = arith.constant 0 : index
    %322 = vector.load %arg1[%c0_376, %c11, %c0_377, %c0_378] : memref<1x13x13x64xbf16, #tpu.memory_space<vmem>>, vector<1x1x12x64xbf16>
    %323 = vector.shape_cast %322 : vector<1x1x12x64xbf16> to vector<12x64xbf16>
    %c2_379 = arith.constant 2 : index
    %c0_380 = arith.constant 0 : index
    %c0_381 = arith.constant 0 : index
    %324 = vector.load %arg2[%c2_379, %c0_380, %c0_381] : memref<4x64x128xbf16, #tpu.memory_space<vmem>>, vector<1x64x128xbf16>
    %325 = vector.shape_cast %324 : vector<1x64x128xbf16> to vector<64x128xbf16>
    %cst_382 = arith.constant dense<0.000000e+00> : vector<12x128xf32>
    %326 = tpu.matmul %323, %325, %cst_382 {dimension_numbers = #tpu.dot_dimension_numbers<[1], [0], [0], [1], [0, 0, 1, 1], [], []>} : vector<12x64xbf16>, vector<64x128xbf16>, vector<12x128xf32> -> vector<12x128xf32>
    %327 = arith.addf %321, %326 : vector<12x128xf32>
    %c0_383 = arith.constant 0 : index
    %c11_384 = arith.constant 11 : index
    %c1_385 = arith.constant 1 : index
    %c0_386 = arith.constant 0 : index
    %328 = vector.load %arg1[%c0_383, %c11_384, %c1_385, %c0_386] : memref<1x13x13x64xbf16, #tpu.memory_space<vmem>>, vector<1x1x12x64xbf16>
    %329 = vector.shape_cast %328 : vector<1x1x12x64xbf16> to vector<12x64xbf16>
    %c3_387 = arith.constant 3 : index
    %c0_388 = arith.constant 0 : index
    %c0_389 = arith.constant 0 : index
    %330 = vector.load %arg2[%c3_387, %c0_388, %c0_389] : memref<4x64x128xbf16, #tpu.memory_space<vmem>>, vector<1x64x128xbf16>
    %331 = vector.shape_cast %330 : vector<1x64x128xbf16> to vector<64x128xbf16>
    %cst_390 = arith.constant dense<0.000000e+00> : vector<12x128xf32>
    %332 = tpu.matmul %329, %331, %cst_390 {dimension_numbers = #tpu.dot_dimension_numbers<[1], [0], [0], [1], [0, 0, 1, 1], [], []>} : vector<12x64xbf16>, vector<64x128xbf16>, vector<12x128xf32> -> vector<12x128xf32>
    %333 = arith.addf %327, %332 : vector<12x128xf32>
    %334 = vector.broadcast %0 : vector<1x128xf32> to vector<12x128xf32>
    %335 = arith.addf %333, %334 : vector<12x128xf32>
    %cst_391 = arith.constant 0.000000e+00 : f32
    %336 = vector.broadcast %cst_391 : f32 to vector<12x128xf32>
    %337 = arith.maximumf %335, %336 : vector<12x128xf32>
    %338 = arith.truncf %337 : vector<12x128xf32> to vector<12x128xbf16>
    %c0_392 = arith.constant 0 : index
    %c10_393 = arith.constant 10 : index
    %c0_394 = arith.constant 0 : index
    %c0_395 = arith.constant 0 : index
    %339 = vector.load %arg4[%c0_392, %c10_393, %c0_394, %c0_395] : memref<1x12x12x128xbf16, #tpu.memory_space<vmem>>, vector<1x1x12x128xbf16>
    %340 = vector.shape_cast %339 : vector<1x1x12x128xbf16> to vector<12x128xbf16>
    %341 = vector.shape_cast %338 : vector<12x128xbf16> to vector<1x1x12x128xbf16>
    tpu.vector_store %arg4[%c0_392, %c10_393, %c0_394, %c0_395], %341 {strides = array<i32>} : memref<1x12x12x128xbf16, #tpu.memory_space<vmem>>, vector<1x1x12x128xbf16>,
    %c0_396 = arith.constant 0 : index
    %c11_397 = arith.constant 11 : index
    %c0_398 = arith.constant 0 : index
    %c0_399 = arith.constant 0 : index
    %342 = vector.load %arg1[%c0_396, %c11_397, %c0_398, %c0_399] : memref<1x13x13x64xbf16, #tpu.memory_space<vmem>>, vector<1x1x12x64xbf16>
    %343 = vector.shape_cast %342 : vector<1x1x12x64xbf16> to vector<12x64xbf16>
    %c0_400 = arith.constant 0 : index
    %c0_401 = arith.constant 0 : index
    %c0_402 = arith.constant 0 : index
    %344 = vector.load %arg2[%c0_400, %c0_401, %c0_402] : memref<4x64x128xbf16, #tpu.memory_space<vmem>>, vector<1x64x128xbf16>
    %345 = vector.shape_cast %344 : vector<1x64x128xbf16> to vector<64x128xbf16>
    %cst_403 = arith.constant dense<0.000000e+00> : vector<12x128xf32>
    %346 = tpu.matmul %343, %345, %cst_403 {dimension_numbers = #tpu.dot_dimension_numbers<[1], [0], [0], [1], [0, 0, 1, 1], [], []>} : vector<12x64xbf16>, vector<64x128xbf16>, vector<12x128xf32> -> vector<12x128xf32>
    %c0_404 = arith.constant 0 : index
    %c11_405 = arith.constant 11 : index
    %c1_406 = arith.constant 1 : index
    %c0_407 = arith.constant 0 : index
    %347 = vector.load %arg1[%c0_404, %c11_405, %c1_406, %c0_407] : memref<1x13x13x64xbf16, #tpu.memory_space<vmem>>, vector<1x1x12x64xbf16>
    %348 = vector.shape_cast %347 : vector<1x1x12x64xbf16> to vector<12x64xbf16>
    %c1_408 = arith.constant 1 : index
    %c0_409 = arith.constant 0 : index
    %c0_410 = arith.constant 0 : index
    %349 = vector.load %arg2[%c1_408, %c0_409, %c0_410] : memref<4x64x128xbf16, #tpu.memory_space<vmem>>, vector<1x64x128xbf16>
    %350 = vector.shape_cast %349 : vector<1x64x128xbf16> to vector<64x128xbf16>
    %cst_411 = arith.constant dense<0.000000e+00> : vector<12x128xf32>
    %351 = tpu.matmul %348, %350, %cst_411 {dimension_numbers = #tpu.dot_dimension_numbers<[1], [0], [0], [1], [0, 0, 1, 1], [], []>} : vector<12x64xbf16>, vector<64x128xbf16>, vector<12x128xf32> -> vector<12x128xf32>
    %352 = arith.addf %346, %351 : vector<12x128xf32>
    %c0_412 = arith.constant 0 : index
    %c12 = arith.constant 12 : index
    %c0_413 = arith.constant 0 : index
    %c0_414 = arith.constant 0 : index
    %353 = vector.load %arg1[%c0_412, %c12, %c0_413, %c0_414] : memref<1x13x13x64xbf16, #tpu.memory_space<vmem>>, vector<1x1x12x64xbf16>
    %354 = vector.shape_cast %353 : vector<1x1x12x64xbf16> to vector<12x64xbf16>
    %c2_415 = arith.constant 2 : index
    %c0_416 = arith.constant 0 : index
    %c0_417 = arith.constant 0 : index
    %355 = vector.load %arg2[%c2_415, %c0_416, %c0_417] : memref<4x64x128xbf16, #tpu.memory_space<vmem>>, vector<1x64x128xbf16>
    %356 = vector.shape_cast %355 : vector<1x64x128xbf16> to vector<64x128xbf16>
    %cst_418 = arith.constant dense<0.000000e+00> : vector<12x128xf32>
    %357 = tpu.matmul %354, %356, %cst_418 {dimension_numbers = #tpu.dot_dimension_numbers<[1], [0], [0], [1], [0, 0, 1, 1], [], []>} : vector<12x64xbf16>, vector<64x128xbf16>, vector<12x128xf32> -> vector<12x128xf32>
    %358 = arith.addf %352, %357 : vector<12x128xf32>
    %c0_419 = arith.constant 0 : index
    %c12_420 = arith.constant 12 : index
    %c1_421 = arith.constant 1 : index
    %c0_422 = arith.constant 0 : index
    %359 = vector.load %arg1[%c0_419, %c12_420, %c1_421, %c0_422] : memref<1x13x13x64xbf16, #tpu.memory_space<vmem>>, vector<1x1x12x64xbf16>
    %360 = vector.shape_cast %359 : vector<1x1x12x64xbf16> to vector<12x64xbf16>
    %c3_423 = arith.constant 3 : index
    %c0_424 = arith.constant 0 : index
    %c0_425 = arith.constant 0 : index
    %361 = vector.load %arg2[%c3_423, %c0_424, %c0_425] : memref<4x64x128xbf16, #tpu.memory_space<vmem>>, vector<1x64x128xbf16>
    %362 = vector.shape_cast %361 : vector<1x64x128xbf16> to vector<64x128xbf16>
    %cst_426 = arith.constant dense<0.000000e+00> : vector<12x128xf32>
    %363 = tpu.matmul %360, %362, %cst_426 {dimension_numbers = #tpu.dot_dimension_numbers<[1], [0], [0], [1], [0, 0, 1, 1], [], []>} : vector<12x64xbf16>, vector<64x128xbf16>, vector<12x128xf32> -> vector<12x128xf32>
    %364 = arith.addf %358, %363 : vector<12x128xf32>
    %365 = vector.broadcast %0 : vector<1x128xf32> to vector<12x128xf32>
    %366 = arith.addf %364, %365 : vector<12x128xf32>
    %cst_427 = arith.constant 0.000000e+00 : f32
    %367 = vector.broadcast %cst_427 : f32 to vector<12x128xf32>
    %368 = arith.maximumf %366, %367 : vector<12x128xf32>
    %369 = arith.truncf %368 : vector<12x128xf32> to vector<12x128xbf16>
    %c0_428 = arith.constant 0 : index
    %c11_429 = arith.constant 11 : index
    %c0_430 = arith.constant 0 : index
    %c0_431 = arith.constant 0 : index
    %370 = vector.load %arg4[%c0_428, %c11_429, %c0_430, %c0_431] : memref<1x12x12x128xbf16, #tpu.memory_space<vmem>>, vector<1x1x12x128xbf16>
    %371 = vector.shape_cast %370 : vector<1x1x12x128xbf16> to vector<12x128xbf16>
    %372 = vector.shape_cast %369 : vector<12x128xbf16> to vector<1x1x12x128xbf16>
    tpu.vector_store %arg4[%c0_428, %c11_429, %c0_430, %c0_431], %372 {strides = array<i32>} : memref<1x12x12x128xbf16, #tpu.memory_space<vmem>>, vector<1x1x12x128xbf16>,
    return
  }
  func.func @transform_0(%arg0: i32) -> (i32, i32, i32, i32) {
    %c0_i32 = arith.constant 0 : i32
    %c0_i32_0 = arith.constant 0 : i32
    %c0_i32_1 = arith.constant 0 : i32
    %c0_i32_2 = arith.constant 0 : i32
    return %arg0, %c0_i32, %c0_i32_0, %c0_i32_1 : i32, i32, i32, i32
  }
  func.func @transform_1(%arg0: i32) -> (i32, i32, i32) {
    %c0_i32 = arith.constant 0 : i32
    %c0_i32_0 = arith.constant 0 : i32
    %c0_i32_1 = arith.constant 0 : i32
    %c0_i32_2 = arith.constant 0 : i32
    return %c0_i32, %c0_i32_0, %c0_i32_1 : i32, i32, i32
  }
  func.func @transform_2(%arg0: i32) -> (i32, i32) {
    %c0_i32 = arith.constant 0 : i32
    %c0_i32_0 = arith.constant 0 : i32
    %c0_i32_1 = arith.constant 0 : i32
    return %c0_i32, %c0_i32_0 : i32, i32
  }
  func.func @transform_3(%arg0: i32) -> (i32, i32, i32, i32) {
    %c0_i32 = arith.constant 0 : i32
    %c0_i32_0 = arith.constant 0 : i32
    %c0_i32_1 = arith.constant 0 : i32
    %c0_i32_2 = arith.constant 0 : i32
    return %arg0, %c0_i32, %c0_i32_0, %c0_i32_1 : i32, i32, i32, i32
  }
}

module attributes {stable_mosaic.version = 11 : i64} {
  func.func @_conv_relu_kernel(%arg0: i32, %arg1: memref<1x6x6x512xbf16, #tpu.memory_space<vmem>>, %arg2: memref<4x512x128xbf16, #tpu.memory_space<vmem>>, %arg3: memref<1x128xf32, #tpu.memory_space<vmem>>, %arg4: memref<1x5x5x128xbf16, #tpu.memory_space<vmem>>) attributes {dimension_semantics = [#tpu.dimension_semantics<parallel>], iteration_bounds = array<i64: 2>, scalar_prefetch = 0 : i64, scratch_operands = 0 : i64, tpu.core_type = #tpu.core_type<tc>, window_params = [{transform_indices = @transform_0, window_bounds = array<i64: 1, 6, 6, 512>}, {pipeline_mode = #tpu.pipeline_mode<synchronous>, transform_indices = @transform_1, window_bounds = array<i64: 4, 512, 128>}, {pipeline_mode = #tpu.pipeline_mode<synchronous>, transform_indices = @transform_2, window_bounds = array<i64: 1, 128>}, {transform_indices = @transform_3, window_bounds = array<i64: 1, 5, 5, 128>}]} {
    %c0 = arith.constant 0 : index
    %c0_0 = arith.constant 0 : index
    %0 = vector.load %arg3[%c0, %c0_0] : memref<1x128xf32, #tpu.memory_space<vmem>>, vector<1x128xf32>
    %c0_1 = arith.constant 0 : index
    %c0_2 = arith.constant 0 : index
    %c0_3 = arith.constant 0 : index
    %c0_4 = arith.constant 0 : index
    %1 = vector.load %arg1[%c0_1, %c0_2, %c0_3, %c0_4] : memref<1x6x6x512xbf16, #tpu.memory_space<vmem>>, vector<1x1x5x512xbf16>
    %2 = vector.shape_cast %1 : vector<1x1x5x512xbf16> to vector<5x512xbf16>
    %c0_5 = arith.constant 0 : index
    %c0_6 = arith.constant 0 : index
    %c0_7 = arith.constant 0 : index
    %3 = vector.load %arg2[%c0_5, %c0_6, %c0_7] : memref<4x512x128xbf16, #tpu.memory_space<vmem>>, vector<1x512x128xbf16>
    %4 = vector.shape_cast %3 : vector<1x512x128xbf16> to vector<512x128xbf16>
    %cst = arith.constant dense<0.000000e+00> : vector<5x128xf32>
    %5 = tpu.matmul %2, %4, %cst {dimension_numbers = #tpu.dot_dimension_numbers<[1], [0], [0], [1], [0, 0, 1, 1], [], []>} : vector<5x512xbf16>, vector<512x128xbf16>, vector<5x128xf32> -> vector<5x128xf32>
    %c0_8 = arith.constant 0 : index
    %c0_9 = arith.constant 0 : index
    %c1 = arith.constant 1 : index
    %c0_10 = arith.constant 0 : index
    %6 = vector.load %arg1[%c0_8, %c0_9, %c1, %c0_10] : memref<1x6x6x512xbf16, #tpu.memory_space<vmem>>, vector<1x1x5x512xbf16>
    %7 = vector.shape_cast %6 : vector<1x1x5x512xbf16> to vector<5x512xbf16>
    %c1_11 = arith.constant 1 : index
    %c0_12 = arith.constant 0 : index
    %c0_13 = arith.constant 0 : index
    %8 = vector.load %arg2[%c1_11, %c0_12, %c0_13] : memref<4x512x128xbf16, #tpu.memory_space<vmem>>, vector<1x512x128xbf16>
    %9 = vector.shape_cast %8 : vector<1x512x128xbf16> to vector<512x128xbf16>
    %cst_14 = arith.constant dense<0.000000e+00> : vector<5x128xf32>
    %10 = tpu.matmul %7, %9, %cst_14 {dimension_numbers = #tpu.dot_dimension_numbers<[1], [0], [0], [1], [0, 0, 1, 1], [], []>} : vector<5x512xbf16>, vector<512x128xbf16>, vector<5x128xf32> -> vector<5x128xf32>
    %11 = arith.addf %5, %10 : vector<5x128xf32>
    %c0_15 = arith.constant 0 : index
    %c1_16 = arith.constant 1 : index
    %c0_17 = arith.constant 0 : index
    %c0_18 = arith.constant 0 : index
    %12 = vector.load %arg1[%c0_15, %c1_16, %c0_17, %c0_18] : memref<1x6x6x512xbf16, #tpu.memory_space<vmem>>, vector<1x1x5x512xbf16>
    %13 = vector.shape_cast %12 : vector<1x1x5x512xbf16> to vector<5x512xbf16>
    %c2 = arith.constant 2 : index
    %c0_19 = arith.constant 0 : index
    %c0_20 = arith.constant 0 : index
    %14 = vector.load %arg2[%c2, %c0_19, %c0_20] : memref<4x512x128xbf16, #tpu.memory_space<vmem>>, vector<1x512x128xbf16>
    %15 = vector.shape_cast %14 : vector<1x512x128xbf16> to vector<512x128xbf16>
    %cst_21 = arith.constant dense<0.000000e+00> : vector<5x128xf32>
    %16 = tpu.matmul %13, %15, %cst_21 {dimension_numbers = #tpu.dot_dimension_numbers<[1], [0], [0], [1], [0, 0, 1, 1], [], []>} : vector<5x512xbf16>, vector<512x128xbf16>, vector<5x128xf32> -> vector<5x128xf32>
    %17 = arith.addf %11, %16 : vector<5x128xf32>
    %c0_22 = arith.constant 0 : index
    %c1_23 = arith.constant 1 : index
    %c1_24 = arith.constant 1 : index
    %c0_25 = arith.constant 0 : index
    %18 = vector.load %arg1[%c0_22, %c1_23, %c1_24, %c0_25] : memref<1x6x6x512xbf16, #tpu.memory_space<vmem>>, vector<1x1x5x512xbf16>
    %19 = vector.shape_cast %18 : vector<1x1x5x512xbf16> to vector<5x512xbf16>
    %c3 = arith.constant 3 : index
    %c0_26 = arith.constant 0 : index
    %c0_27 = arith.constant 0 : index
    %20 = vector.load %arg2[%c3, %c0_26, %c0_27] : memref<4x512x128xbf16, #tpu.memory_space<vmem>>, vector<1x512x128xbf16>
    %21 = vector.shape_cast %20 : vector<1x512x128xbf16> to vector<512x128xbf16>
    %cst_28 = arith.constant dense<0.000000e+00> : vector<5x128xf32>
    %22 = tpu.matmul %19, %21, %cst_28 {dimension_numbers = #tpu.dot_dimension_numbers<[1], [0], [0], [1], [0, 0, 1, 1], [], []>} : vector<5x512xbf16>, vector<512x128xbf16>, vector<5x128xf32> -> vector<5x128xf32>
    %23 = arith.addf %17, %22 : vector<5x128xf32>
    %24 = vector.broadcast %0 : vector<1x128xf32> to vector<5x128xf32>
    %25 = arith.addf %23, %24 : vector<5x128xf32>
    %cst_29 = arith.constant 0.000000e+00 : f32
    %26 = vector.broadcast %cst_29 : f32 to vector<5x128xf32>
    %27 = arith.maximumf %25, %26 : vector<5x128xf32>
    %28 = arith.truncf %27 : vector<5x128xf32> to vector<5x128xbf16>
    %c0_30 = arith.constant 0 : index
    %c0_31 = arith.constant 0 : index
    %c0_32 = arith.constant 0 : index
    %c0_33 = arith.constant 0 : index
    %29 = vector.load %arg4[%c0_30, %c0_31, %c0_32, %c0_33] : memref<1x5x5x128xbf16, #tpu.memory_space<vmem>>, vector<1x1x5x128xbf16>
    %30 = vector.shape_cast %29 : vector<1x1x5x128xbf16> to vector<5x128xbf16>
    %31 = vector.shape_cast %28 : vector<5x128xbf16> to vector<1x1x5x128xbf16>
    tpu.vector_store %arg4[%c0_30, %c0_31, %c0_32, %c0_33], %31 {strides = array<i32>} : memref<1x5x5x128xbf16, #tpu.memory_space<vmem>>, vector<1x1x5x128xbf16>,
    %c0_34 = arith.constant 0 : index
    %c1_35 = arith.constant 1 : index
    %c0_36 = arith.constant 0 : index
    %c0_37 = arith.constant 0 : index
    %32 = vector.load %arg1[%c0_34, %c1_35, %c0_36, %c0_37] : memref<1x6x6x512xbf16, #tpu.memory_space<vmem>>, vector<1x1x5x512xbf16>
    %33 = vector.shape_cast %32 : vector<1x1x5x512xbf16> to vector<5x512xbf16>
    %c0_38 = arith.constant 0 : index
    %c0_39 = arith.constant 0 : index
    %c0_40 = arith.constant 0 : index
    %34 = vector.load %arg2[%c0_38, %c0_39, %c0_40] : memref<4x512x128xbf16, #tpu.memory_space<vmem>>, vector<1x512x128xbf16>
    %35 = vector.shape_cast %34 : vector<1x512x128xbf16> to vector<512x128xbf16>
    %cst_41 = arith.constant dense<0.000000e+00> : vector<5x128xf32>
    %36 = tpu.matmul %33, %35, %cst_41 {dimension_numbers = #tpu.dot_dimension_numbers<[1], [0], [0], [1], [0, 0, 1, 1], [], []>} : vector<5x512xbf16>, vector<512x128xbf16>, vector<5x128xf32> -> vector<5x128xf32>
    %c0_42 = arith.constant 0 : index
    %c1_43 = arith.constant 1 : index
    %c1_44 = arith.constant 1 : index
    %c0_45 = arith.constant 0 : index
    %37 = vector.load %arg1[%c0_42, %c1_43, %c1_44, %c0_45] : memref<1x6x6x512xbf16, #tpu.memory_space<vmem>>, vector<1x1x5x512xbf16>
    %38 = vector.shape_cast %37 : vector<1x1x5x512xbf16> to vector<5x512xbf16>
    %c1_46 = arith.constant 1 : index
    %c0_47 = arith.constant 0 : index
    %c0_48 = arith.constant 0 : index
    %39 = vector.load %arg2[%c1_46, %c0_47, %c0_48] : memref<4x512x128xbf16, #tpu.memory_space<vmem>>, vector<1x512x128xbf16>
    %40 = vector.shape_cast %39 : vector<1x512x128xbf16> to vector<512x128xbf16>
    %cst_49 = arith.constant dense<0.000000e+00> : vector<5x128xf32>
    %41 = tpu.matmul %38, %40, %cst_49 {dimension_numbers = #tpu.dot_dimension_numbers<[1], [0], [0], [1], [0, 0, 1, 1], [], []>} : vector<5x512xbf16>, vector<512x128xbf16>, vector<5x128xf32> -> vector<5x128xf32>
    %42 = arith.addf %36, %41 : vector<5x128xf32>
    %c0_50 = arith.constant 0 : index
    %c2_51 = arith.constant 2 : index
    %c0_52 = arith.constant 0 : index
    %c0_53 = arith.constant 0 : index
    %43 = vector.load %arg1[%c0_50, %c2_51, %c0_52, %c0_53] : memref<1x6x6x512xbf16, #tpu.memory_space<vmem>>, vector<1x1x5x512xbf16>
    %44 = vector.shape_cast %43 : vector<1x1x5x512xbf16> to vector<5x512xbf16>
    %c2_54 = arith.constant 2 : index
    %c0_55 = arith.constant 0 : index
    %c0_56 = arith.constant 0 : index
    %45 = vector.load %arg2[%c2_54, %c0_55, %c0_56] : memref<4x512x128xbf16, #tpu.memory_space<vmem>>, vector<1x512x128xbf16>
    %46 = vector.shape_cast %45 : vector<1x512x128xbf16> to vector<512x128xbf16>
    %cst_57 = arith.constant dense<0.000000e+00> : vector<5x128xf32>
    %47 = tpu.matmul %44, %46, %cst_57 {dimension_numbers = #tpu.dot_dimension_numbers<[1], [0], [0], [1], [0, 0, 1, 1], [], []>} : vector<5x512xbf16>, vector<512x128xbf16>, vector<5x128xf32> -> vector<5x128xf32>
    %48 = arith.addf %42, %47 : vector<5x128xf32>
    %c0_58 = arith.constant 0 : index
    %c2_59 = arith.constant 2 : index
    %c1_60 = arith.constant 1 : index
    %c0_61 = arith.constant 0 : index
    %49 = vector.load %arg1[%c0_58, %c2_59, %c1_60, %c0_61] : memref<1x6x6x512xbf16, #tpu.memory_space<vmem>>, vector<1x1x5x512xbf16>
    %50 = vector.shape_cast %49 : vector<1x1x5x512xbf16> to vector<5x512xbf16>
    %c3_62 = arith.constant 3 : index
    %c0_63 = arith.constant 0 : index
    %c0_64 = arith.constant 0 : index
    %51 = vector.load %arg2[%c3_62, %c0_63, %c0_64] : memref<4x512x128xbf16, #tpu.memory_space<vmem>>, vector<1x512x128xbf16>
    %52 = vector.shape_cast %51 : vector<1x512x128xbf16> to vector<512x128xbf16>
    %cst_65 = arith.constant dense<0.000000e+00> : vector<5x128xf32>
    %53 = tpu.matmul %50, %52, %cst_65 {dimension_numbers = #tpu.dot_dimension_numbers<[1], [0], [0], [1], [0, 0, 1, 1], [], []>} : vector<5x512xbf16>, vector<512x128xbf16>, vector<5x128xf32> -> vector<5x128xf32>
    %54 = arith.addf %48, %53 : vector<5x128xf32>
    %55 = vector.broadcast %0 : vector<1x128xf32> to vector<5x128xf32>
    %56 = arith.addf %54, %55 : vector<5x128xf32>
    %cst_66 = arith.constant 0.000000e+00 : f32
    %57 = vector.broadcast %cst_66 : f32 to vector<5x128xf32>
    %58 = arith.maximumf %56, %57 : vector<5x128xf32>
    %59 = arith.truncf %58 : vector<5x128xf32> to vector<5x128xbf16>
    %c0_67 = arith.constant 0 : index
    %c1_68 = arith.constant 1 : index
    %c0_69 = arith.constant 0 : index
    %c0_70 = arith.constant 0 : index
    %60 = vector.load %arg4[%c0_67, %c1_68, %c0_69, %c0_70] : memref<1x5x5x128xbf16, #tpu.memory_space<vmem>>, vector<1x1x5x128xbf16>
    %61 = vector.shape_cast %60 : vector<1x1x5x128xbf16> to vector<5x128xbf16>
    %62 = vector.shape_cast %59 : vector<5x128xbf16> to vector<1x1x5x128xbf16>
    tpu.vector_store %arg4[%c0_67, %c1_68, %c0_69, %c0_70], %62 {strides = array<i32>} : memref<1x5x5x128xbf16, #tpu.memory_space<vmem>>, vector<1x1x5x128xbf16>,
    %c0_71 = arith.constant 0 : index
    %c2_72 = arith.constant 2 : index
    %c0_73 = arith.constant 0 : index
    %c0_74 = arith.constant 0 : index
    %63 = vector.load %arg1[%c0_71, %c2_72, %c0_73, %c0_74] : memref<1x6x6x512xbf16, #tpu.memory_space<vmem>>, vector<1x1x5x512xbf16>
    %64 = vector.shape_cast %63 : vector<1x1x5x512xbf16> to vector<5x512xbf16>
    %c0_75 = arith.constant 0 : index
    %c0_76 = arith.constant 0 : index
    %c0_77 = arith.constant 0 : index
    %65 = vector.load %arg2[%c0_75, %c0_76, %c0_77] : memref<4x512x128xbf16, #tpu.memory_space<vmem>>, vector<1x512x128xbf16>
    %66 = vector.shape_cast %65 : vector<1x512x128xbf16> to vector<512x128xbf16>
    %cst_78 = arith.constant dense<0.000000e+00> : vector<5x128xf32>
    %67 = tpu.matmul %64, %66, %cst_78 {dimension_numbers = #tpu.dot_dimension_numbers<[1], [0], [0], [1], [0, 0, 1, 1], [], []>} : vector<5x512xbf16>, vector<512x128xbf16>, vector<5x128xf32> -> vector<5x128xf32>
    %c0_79 = arith.constant 0 : index
    %c2_80 = arith.constant 2 : index
    %c1_81 = arith.constant 1 : index
    %c0_82 = arith.constant 0 : index
    %68 = vector.load %arg1[%c0_79, %c2_80, %c1_81, %c0_82] : memref<1x6x6x512xbf16, #tpu.memory_space<vmem>>, vector<1x1x5x512xbf16>
    %69 = vector.shape_cast %68 : vector<1x1x5x512xbf16> to vector<5x512xbf16>
    %c1_83 = arith.constant 1 : index
    %c0_84 = arith.constant 0 : index
    %c0_85 = arith.constant 0 : index
    %70 = vector.load %arg2[%c1_83, %c0_84, %c0_85] : memref<4x512x128xbf16, #tpu.memory_space<vmem>>, vector<1x512x128xbf16>
    %71 = vector.shape_cast %70 : vector<1x512x128xbf16> to vector<512x128xbf16>
    %cst_86 = arith.constant dense<0.000000e+00> : vector<5x128xf32>
    %72 = tpu.matmul %69, %71, %cst_86 {dimension_numbers = #tpu.dot_dimension_numbers<[1], [0], [0], [1], [0, 0, 1, 1], [], []>} : vector<5x512xbf16>, vector<512x128xbf16>, vector<5x128xf32> -> vector<5x128xf32>
    %73 = arith.addf %67, %72 : vector<5x128xf32>
    %c0_87 = arith.constant 0 : index
    %c3_88 = arith.constant 3 : index
    %c0_89 = arith.constant 0 : index
    %c0_90 = arith.constant 0 : index
    %74 = vector.load %arg1[%c0_87, %c3_88, %c0_89, %c0_90] : memref<1x6x6x512xbf16, #tpu.memory_space<vmem>>, vector<1x1x5x512xbf16>
    %75 = vector.shape_cast %74 : vector<1x1x5x512xbf16> to vector<5x512xbf16>
    %c2_91 = arith.constant 2 : index
    %c0_92 = arith.constant 0 : index
    %c0_93 = arith.constant 0 : index
    %76 = vector.load %arg2[%c2_91, %c0_92, %c0_93] : memref<4x512x128xbf16, #tpu.memory_space<vmem>>, vector<1x512x128xbf16>
    %77 = vector.shape_cast %76 : vector<1x512x128xbf16> to vector<512x128xbf16>
    %cst_94 = arith.constant dense<0.000000e+00> : vector<5x128xf32>
    %78 = tpu.matmul %75, %77, %cst_94 {dimension_numbers = #tpu.dot_dimension_numbers<[1], [0], [0], [1], [0, 0, 1, 1], [], []>} : vector<5x512xbf16>, vector<512x128xbf16>, vector<5x128xf32> -> vector<5x128xf32>
    %79 = arith.addf %73, %78 : vector<5x128xf32>
    %c0_95 = arith.constant 0 : index
    %c3_96 = arith.constant 3 : index
    %c1_97 = arith.constant 1 : index
    %c0_98 = arith.constant 0 : index
    %80 = vector.load %arg1[%c0_95, %c3_96, %c1_97, %c0_98] : memref<1x6x6x512xbf16, #tpu.memory_space<vmem>>, vector<1x1x5x512xbf16>
    %81 = vector.shape_cast %80 : vector<1x1x5x512xbf16> to vector<5x512xbf16>
    %c3_99 = arith.constant 3 : index
    %c0_100 = arith.constant 0 : index
    %c0_101 = arith.constant 0 : index
    %82 = vector.load %arg2[%c3_99, %c0_100, %c0_101] : memref<4x512x128xbf16, #tpu.memory_space<vmem>>, vector<1x512x128xbf16>
    %83 = vector.shape_cast %82 : vector<1x512x128xbf16> to vector<512x128xbf16>
    %cst_102 = arith.constant dense<0.000000e+00> : vector<5x128xf32>
    %84 = tpu.matmul %81, %83, %cst_102 {dimension_numbers = #tpu.dot_dimension_numbers<[1], [0], [0], [1], [0, 0, 1, 1], [], []>} : vector<5x512xbf16>, vector<512x128xbf16>, vector<5x128xf32> -> vector<5x128xf32>
    %85 = arith.addf %79, %84 : vector<5x128xf32>
    %86 = vector.broadcast %0 : vector<1x128xf32> to vector<5x128xf32>
    %87 = arith.addf %85, %86 : vector<5x128xf32>
    %cst_103 = arith.constant 0.000000e+00 : f32
    %88 = vector.broadcast %cst_103 : f32 to vector<5x128xf32>
    %89 = arith.maximumf %87, %88 : vector<5x128xf32>
    %90 = arith.truncf %89 : vector<5x128xf32> to vector<5x128xbf16>
    %c0_104 = arith.constant 0 : index
    %c2_105 = arith.constant 2 : index
    %c0_106 = arith.constant 0 : index
    %c0_107 = arith.constant 0 : index
    %91 = vector.load %arg4[%c0_104, %c2_105, %c0_106, %c0_107] : memref<1x5x5x128xbf16, #tpu.memory_space<vmem>>, vector<1x1x5x128xbf16>
    %92 = vector.shape_cast %91 : vector<1x1x5x128xbf16> to vector<5x128xbf16>
    %93 = vector.shape_cast %90 : vector<5x128xbf16> to vector<1x1x5x128xbf16>
    tpu.vector_store %arg4[%c0_104, %c2_105, %c0_106, %c0_107], %93 {strides = array<i32>} : memref<1x5x5x128xbf16, #tpu.memory_space<vmem>>, vector<1x1x5x128xbf16>,
    %c0_108 = arith.constant 0 : index
    %c3_109 = arith.constant 3 : index
    %c0_110 = arith.constant 0 : index
    %c0_111 = arith.constant 0 : index
    %94 = vector.load %arg1[%c0_108, %c3_109, %c0_110, %c0_111] : memref<1x6x6x512xbf16, #tpu.memory_space<vmem>>, vector<1x1x5x512xbf16>
    %95 = vector.shape_cast %94 : vector<1x1x5x512xbf16> to vector<5x512xbf16>
    %c0_112 = arith.constant 0 : index
    %c0_113 = arith.constant 0 : index
    %c0_114 = arith.constant 0 : index
    %96 = vector.load %arg2[%c0_112, %c0_113, %c0_114] : memref<4x512x128xbf16, #tpu.memory_space<vmem>>, vector<1x512x128xbf16>
    %97 = vector.shape_cast %96 : vector<1x512x128xbf16> to vector<512x128xbf16>
    %cst_115 = arith.constant dense<0.000000e+00> : vector<5x128xf32>
    %98 = tpu.matmul %95, %97, %cst_115 {dimension_numbers = #tpu.dot_dimension_numbers<[1], [0], [0], [1], [0, 0, 1, 1], [], []>} : vector<5x512xbf16>, vector<512x128xbf16>, vector<5x128xf32> -> vector<5x128xf32>
    %c0_116 = arith.constant 0 : index
    %c3_117 = arith.constant 3 : index
    %c1_118 = arith.constant 1 : index
    %c0_119 = arith.constant 0 : index
    %99 = vector.load %arg1[%c0_116, %c3_117, %c1_118, %c0_119] : memref<1x6x6x512xbf16, #tpu.memory_space<vmem>>, vector<1x1x5x512xbf16>
    %100 = vector.shape_cast %99 : vector<1x1x5x512xbf16> to vector<5x512xbf16>
    %c1_120 = arith.constant 1 : index
    %c0_121 = arith.constant 0 : index
    %c0_122 = arith.constant 0 : index
    %101 = vector.load %arg2[%c1_120, %c0_121, %c0_122] : memref<4x512x128xbf16, #tpu.memory_space<vmem>>, vector<1x512x128xbf16>
    %102 = vector.shape_cast %101 : vector<1x512x128xbf16> to vector<512x128xbf16>
    %cst_123 = arith.constant dense<0.000000e+00> : vector<5x128xf32>
    %103 = tpu.matmul %100, %102, %cst_123 {dimension_numbers = #tpu.dot_dimension_numbers<[1], [0], [0], [1], [0, 0, 1, 1], [], []>} : vector<5x512xbf16>, vector<512x128xbf16>, vector<5x128xf32> -> vector<5x128xf32>
    %104 = arith.addf %98, %103 : vector<5x128xf32>
    %c0_124 = arith.constant 0 : index
    %c4 = arith.constant 4 : index
    %c0_125 = arith.constant 0 : index
    %c0_126 = arith.constant 0 : index
    %105 = vector.load %arg1[%c0_124, %c4, %c0_125, %c0_126] : memref<1x6x6x512xbf16, #tpu.memory_space<vmem>>, vector<1x1x5x512xbf16>
    %106 = vector.shape_cast %105 : vector<1x1x5x512xbf16> to vector<5x512xbf16>
    %c2_127 = arith.constant 2 : index
    %c0_128 = arith.constant 0 : index
    %c0_129 = arith.constant 0 : index
    %107 = vector.load %arg2[%c2_127, %c0_128, %c0_129] : memref<4x512x128xbf16, #tpu.memory_space<vmem>>, vector<1x512x128xbf16>
    %108 = vector.shape_cast %107 : vector<1x512x128xbf16> to vector<512x128xbf16>
    %cst_130 = arith.constant dense<0.000000e+00> : vector<5x128xf32>
    %109 = tpu.matmul %106, %108, %cst_130 {dimension_numbers = #tpu.dot_dimension_numbers<[1], [0], [0], [1], [0, 0, 1, 1], [], []>} : vector<5x512xbf16>, vector<512x128xbf16>, vector<5x128xf32> -> vector<5x128xf32>
    %110 = arith.addf %104, %109 : vector<5x128xf32>
    %c0_131 = arith.constant 0 : index
    %c4_132 = arith.constant 4 : index
    %c1_133 = arith.constant 1 : index
    %c0_134 = arith.constant 0 : index
    %111 = vector.load %arg1[%c0_131, %c4_132, %c1_133, %c0_134] : memref<1x6x6x512xbf16, #tpu.memory_space<vmem>>, vector<1x1x5x512xbf16>
    %112 = vector.shape_cast %111 : vector<1x1x5x512xbf16> to vector<5x512xbf16>
    %c3_135 = arith.constant 3 : index
    %c0_136 = arith.constant 0 : index
    %c0_137 = arith.constant 0 : index
    %113 = vector.load %arg2[%c3_135, %c0_136, %c0_137] : memref<4x512x128xbf16, #tpu.memory_space<vmem>>, vector<1x512x128xbf16>
    %114 = vector.shape_cast %113 : vector<1x512x128xbf16> to vector<512x128xbf16>
    %cst_138 = arith.constant dense<0.000000e+00> : vector<5x128xf32>
    %115 = tpu.matmul %112, %114, %cst_138 {dimension_numbers = #tpu.dot_dimension_numbers<[1], [0], [0], [1], [0, 0, 1, 1], [], []>} : vector<5x512xbf16>, vector<512x128xbf16>, vector<5x128xf32> -> vector<5x128xf32>
    %116 = arith.addf %110, %115 : vector<5x128xf32>
    %117 = vector.broadcast %0 : vector<1x128xf32> to vector<5x128xf32>
    %118 = arith.addf %116, %117 : vector<5x128xf32>
    %cst_139 = arith.constant 0.000000e+00 : f32
    %119 = vector.broadcast %cst_139 : f32 to vector<5x128xf32>
    %120 = arith.maximumf %118, %119 : vector<5x128xf32>
    %121 = arith.truncf %120 : vector<5x128xf32> to vector<5x128xbf16>
    %c0_140 = arith.constant 0 : index
    %c3_141 = arith.constant 3 : index
    %c0_142 = arith.constant 0 : index
    %c0_143 = arith.constant 0 : index
    %122 = vector.load %arg4[%c0_140, %c3_141, %c0_142, %c0_143] : memref<1x5x5x128xbf16, #tpu.memory_space<vmem>>, vector<1x1x5x128xbf16>
    %123 = vector.shape_cast %122 : vector<1x1x5x128xbf16> to vector<5x128xbf16>
    %124 = vector.shape_cast %121 : vector<5x128xbf16> to vector<1x1x5x128xbf16>
    tpu.vector_store %arg4[%c0_140, %c3_141, %c0_142, %c0_143], %124 {strides = array<i32>} : memref<1x5x5x128xbf16, #tpu.memory_space<vmem>>, vector<1x1x5x128xbf16>,
    %c0_144 = arith.constant 0 : index
    %c4_145 = arith.constant 4 : index
    %c0_146 = arith.constant 0 : index
    %c0_147 = arith.constant 0 : index
    %125 = vector.load %arg1[%c0_144, %c4_145, %c0_146, %c0_147] : memref<1x6x6x512xbf16, #tpu.memory_space<vmem>>, vector<1x1x5x512xbf16>
    %126 = vector.shape_cast %125 : vector<1x1x5x512xbf16> to vector<5x512xbf16>
    %c0_148 = arith.constant 0 : index
    %c0_149 = arith.constant 0 : index
    %c0_150 = arith.constant 0 : index
    %127 = vector.load %arg2[%c0_148, %c0_149, %c0_150] : memref<4x512x128xbf16, #tpu.memory_space<vmem>>, vector<1x512x128xbf16>
    %128 = vector.shape_cast %127 : vector<1x512x128xbf16> to vector<512x128xbf16>
    %cst_151 = arith.constant dense<0.000000e+00> : vector<5x128xf32>
    %129 = tpu.matmul %126, %128, %cst_151 {dimension_numbers = #tpu.dot_dimension_numbers<[1], [0], [0], [1], [0, 0, 1, 1], [], []>} : vector<5x512xbf16>, vector<512x128xbf16>, vector<5x128xf32> -> vector<5x128xf32>
    %c0_152 = arith.constant 0 : index
    %c4_153 = arith.constant 4 : index
    %c1_154 = arith.constant 1 : index
    %c0_155 = arith.constant 0 : index
    %130 = vector.load %arg1[%c0_152, %c4_153, %c1_154, %c0_155] : memref<1x6x6x512xbf16, #tpu.memory_space<vmem>>, vector<1x1x5x512xbf16>
    %131 = vector.shape_cast %130 : vector<1x1x5x512xbf16> to vector<5x512xbf16>
    %c1_156 = arith.constant 1 : index
    %c0_157 = arith.constant 0 : index
    %c0_158 = arith.constant 0 : index
    %132 = vector.load %arg2[%c1_156, %c0_157, %c0_158] : memref<4x512x128xbf16, #tpu.memory_space<vmem>>, vector<1x512x128xbf16>
    %133 = vector.shape_cast %132 : vector<1x512x128xbf16> to vector<512x128xbf16>
    %cst_159 = arith.constant dense<0.000000e+00> : vector<5x128xf32>
    %134 = tpu.matmul %131, %133, %cst_159 {dimension_numbers = #tpu.dot_dimension_numbers<[1], [0], [0], [1], [0, 0, 1, 1], [], []>} : vector<5x512xbf16>, vector<512x128xbf16>, vector<5x128xf32> -> vector<5x128xf32>
    %135 = arith.addf %129, %134 : vector<5x128xf32>
    %c0_160 = arith.constant 0 : index
    %c5 = arith.constant 5 : index
    %c0_161 = arith.constant 0 : index
    %c0_162 = arith.constant 0 : index
    %136 = vector.load %arg1[%c0_160, %c5, %c0_161, %c0_162] : memref<1x6x6x512xbf16, #tpu.memory_space<vmem>>, vector<1x1x5x512xbf16>
    %137 = vector.shape_cast %136 : vector<1x1x5x512xbf16> to vector<5x512xbf16>
    %c2_163 = arith.constant 2 : index
    %c0_164 = arith.constant 0 : index
    %c0_165 = arith.constant 0 : index
    %138 = vector.load %arg2[%c2_163, %c0_164, %c0_165] : memref<4x512x128xbf16, #tpu.memory_space<vmem>>, vector<1x512x128xbf16>
    %139 = vector.shape_cast %138 : vector<1x512x128xbf16> to vector<512x128xbf16>
    %cst_166 = arith.constant dense<0.000000e+00> : vector<5x128xf32>
    %140 = tpu.matmul %137, %139, %cst_166 {dimension_numbers = #tpu.dot_dimension_numbers<[1], [0], [0], [1], [0, 0, 1, 1], [], []>} : vector<5x512xbf16>, vector<512x128xbf16>, vector<5x128xf32> -> vector<5x128xf32>
    %141 = arith.addf %135, %140 : vector<5x128xf32>
    %c0_167 = arith.constant 0 : index
    %c5_168 = arith.constant 5 : index
    %c1_169 = arith.constant 1 : index
    %c0_170 = arith.constant 0 : index
    %142 = vector.load %arg1[%c0_167, %c5_168, %c1_169, %c0_170] : memref<1x6x6x512xbf16, #tpu.memory_space<vmem>>, vector<1x1x5x512xbf16>
    %143 = vector.shape_cast %142 : vector<1x1x5x512xbf16> to vector<5x512xbf16>
    %c3_171 = arith.constant 3 : index
    %c0_172 = arith.constant 0 : index
    %c0_173 = arith.constant 0 : index
    %144 = vector.load %arg2[%c3_171, %c0_172, %c0_173] : memref<4x512x128xbf16, #tpu.memory_space<vmem>>, vector<1x512x128xbf16>
    %145 = vector.shape_cast %144 : vector<1x512x128xbf16> to vector<512x128xbf16>
    %cst_174 = arith.constant dense<0.000000e+00> : vector<5x128xf32>
    %146 = tpu.matmul %143, %145, %cst_174 {dimension_numbers = #tpu.dot_dimension_numbers<[1], [0], [0], [1], [0, 0, 1, 1], [], []>} : vector<5x512xbf16>, vector<512x128xbf16>, vector<5x128xf32> -> vector<5x128xf32>
    %147 = arith.addf %141, %146 : vector<5x128xf32>
    %148 = vector.broadcast %0 : vector<1x128xf32> to vector<5x128xf32>
    %149 = arith.addf %147, %148 : vector<5x128xf32>
    %cst_175 = arith.constant 0.000000e+00 : f32
    %150 = vector.broadcast %cst_175 : f32 to vector<5x128xf32>
    %151 = arith.maximumf %149, %150 : vector<5x128xf32>
    %152 = arith.truncf %151 : vector<5x128xf32> to vector<5x128xbf16>
    %c0_176 = arith.constant 0 : index
    %c4_177 = arith.constant 4 : index
    %c0_178 = arith.constant 0 : index
    %c0_179 = arith.constant 0 : index
    %153 = vector.load %arg4[%c0_176, %c4_177, %c0_178, %c0_179] : memref<1x5x5x128xbf16, #tpu.memory_space<vmem>>, vector<1x1x5x128xbf16>
    %154 = vector.shape_cast %153 : vector<1x1x5x128xbf16> to vector<5x128xbf16>
    %155 = vector.shape_cast %152 : vector<5x128xbf16> to vector<1x1x5x128xbf16>
    tpu.vector_store %arg4[%c0_176, %c4_177, %c0_178, %c0_179], %155 {strides = array<i32>} : memref<1x5x5x128xbf16, #tpu.memory_space<vmem>>, vector<1x1x5x128xbf16>,
    return
  }
  func.func @transform_0(%arg0: i32) -> (i32, i32, i32, i32) {
    %c0_i32 = arith.constant 0 : i32
    %c0_i32_0 = arith.constant 0 : i32
    %c0_i32_1 = arith.constant 0 : i32
    %c0_i32_2 = arith.constant 0 : i32
    return %arg0, %c0_i32, %c0_i32_0, %c0_i32_1 : i32, i32, i32, i32
  }
  func.func @transform_1(%arg0: i32) -> (i32, i32, i32) {
    %c0_i32 = arith.constant 0 : i32
    %c0_i32_0 = arith.constant 0 : i32
    %c0_i32_1 = arith.constant 0 : i32
    %c0_i32_2 = arith.constant 0 : i32
    return %c0_i32, %c0_i32_0, %c0_i32_1 : i32, i32, i32
  }
  func.func @transform_2(%arg0: i32) -> (i32, i32) {
    %c0_i32 = arith.constant 0 : i32
    %c0_i32_0 = arith.constant 0 : i32
    %c0_i32_1 = arith.constant 0 : i32
    return %c0_i32, %c0_i32_0 : i32, i32
  }
  func.func @transform_3(%arg0: i32) -> (i32, i32, i32, i32) {
    %c0_i32 = arith.constant 0 : i32
    %c0_i32_0 = arith.constant 0 : i32
    %c0_i32_1 = arith.constant 0 : i32
    %c0_i32_2 = arith.constant 0 : i32
    return %arg0, %c0_i32, %c0_i32_0, %c0_i32_1 : i32, i32, i32, i32
  }
}

module attributes {stable_mosaic.version = 11 : i64} {
  func.func @_conv_relu_kernel(%arg0: i32, %arg1: memref<1x5x5x128xbf16, #tpu.memory_space<vmem>>, %arg2: memref<9x128x128xbf16, #tpu.memory_space<vmem>>, %arg3: memref<1x128xf32, #tpu.memory_space<vmem>>, %arg4: memref<1x3x3x128xbf16, #tpu.memory_space<vmem>>) attributes {dimension_semantics = [#tpu.dimension_semantics<parallel>], iteration_bounds = array<i64: 2>, scalar_prefetch = 0 : i64, scratch_operands = 0 : i64, tpu.core_type = #tpu.core_type<tc>, window_params = [{transform_indices = @transform_0, window_bounds = array<i64: 1, 5, 5, 128>}, {pipeline_mode = #tpu.pipeline_mode<synchronous>, transform_indices = @transform_1, window_bounds = array<i64: 9, 128, 128>}, {pipeline_mode = #tpu.pipeline_mode<synchronous>, transform_indices = @transform_2, window_bounds = array<i64: 1, 128>}, {transform_indices = @transform_3, window_bounds = array<i64: 1, 3, 3, 128>}]} {
    %c0 = arith.constant 0 : index
    %c0_0 = arith.constant 0 : index
    %0 = vector.load %arg3[%c0, %c0_0] : memref<1x128xf32, #tpu.memory_space<vmem>>, vector<1x128xf32>
    %c0_1 = arith.constant 0 : index
    %c0_2 = arith.constant 0 : index
    %c0_3 = arith.constant 0 : index
    %c0_4 = arith.constant 0 : index
    %1 = vector.load %arg1[%c0_1, %c0_2, %c0_3, %c0_4] : memref<1x5x5x128xbf16, #tpu.memory_space<vmem>>, vector<1x1x3x128xbf16>
    %2 = vector.shape_cast %1 : vector<1x1x3x128xbf16> to vector<3x128xbf16>
    %c0_5 = arith.constant 0 : index
    %c0_6 = arith.constant 0 : index
    %c0_7 = arith.constant 0 : index
    %3 = vector.load %arg2[%c0_5, %c0_6, %c0_7] : memref<9x128x128xbf16, #tpu.memory_space<vmem>>, vector<1x128x128xbf16>
    %4 = vector.shape_cast %3 : vector<1x128x128xbf16> to vector<128x128xbf16>
    %cst = arith.constant dense<0.000000e+00> : vector<3x128xf32>
    %5 = tpu.matmul %2, %4, %cst {dimension_numbers = #tpu.dot_dimension_numbers<[1], [0], [0], [1], [0, 0, 1, 1], [], []>} : vector<3x128xbf16>, vector<128x128xbf16>, vector<3x128xf32> -> vector<3x128xf32>
    %c0_8 = arith.constant 0 : index
    %c0_9 = arith.constant 0 : index
    %c1 = arith.constant 1 : index
    %c0_10 = arith.constant 0 : index
    %6 = vector.load %arg1[%c0_8, %c0_9, %c1, %c0_10] : memref<1x5x5x128xbf16, #tpu.memory_space<vmem>>, vector<1x1x3x128xbf16>
    %7 = vector.shape_cast %6 : vector<1x1x3x128xbf16> to vector<3x128xbf16>
    %c1_11 = arith.constant 1 : index
    %c0_12 = arith.constant 0 : index
    %c0_13 = arith.constant 0 : index
    %8 = vector.load %arg2[%c1_11, %c0_12, %c0_13] : memref<9x128x128xbf16, #tpu.memory_space<vmem>>, vector<1x128x128xbf16>
    %9 = vector.shape_cast %8 : vector<1x128x128xbf16> to vector<128x128xbf16>
    %cst_14 = arith.constant dense<0.000000e+00> : vector<3x128xf32>
    %10 = tpu.matmul %7, %9, %cst_14 {dimension_numbers = #tpu.dot_dimension_numbers<[1], [0], [0], [1], [0, 0, 1, 1], [], []>} : vector<3x128xbf16>, vector<128x128xbf16>, vector<3x128xf32> -> vector<3x128xf32>
    %11 = arith.addf %5, %10 : vector<3x128xf32>
    %c0_15 = arith.constant 0 : index
    %c0_16 = arith.constant 0 : index
    %c2 = arith.constant 2 : index
    %c0_17 = arith.constant 0 : index
    %12 = vector.load %arg1[%c0_15, %c0_16, %c2, %c0_17] : memref<1x5x5x128xbf16, #tpu.memory_space<vmem>>, vector<1x1x3x128xbf16>
    %13 = vector.shape_cast %12 : vector<1x1x3x128xbf16> to vector<3x128xbf16>
    %c2_18 = arith.constant 2 : index
    %c0_19 = arith.constant 0 : index
    %c0_20 = arith.constant 0 : index
    %14 = vector.load %arg2[%c2_18, %c0_19, %c0_20] : memref<9x128x128xbf16, #tpu.memory_space<vmem>>, vector<1x128x128xbf16>
    %15 = vector.shape_cast %14 : vector<1x128x128xbf16> to vector<128x128xbf16>
    %cst_21 = arith.constant dense<0.000000e+00> : vector<3x128xf32>
    %16 = tpu.matmul %13, %15, %cst_21 {dimension_numbers = #tpu.dot_dimension_numbers<[1], [0], [0], [1], [0, 0, 1, 1], [], []>} : vector<3x128xbf16>, vector<128x128xbf16>, vector<3x128xf32> -> vector<3x128xf32>
    %17 = arith.addf %11, %16 : vector<3x128xf32>
    %c0_22 = arith.constant 0 : index
    %c1_23 = arith.constant 1 : index
    %c0_24 = arith.constant 0 : index
    %c0_25 = arith.constant 0 : index
    %18 = vector.load %arg1[%c0_22, %c1_23, %c0_24, %c0_25] : memref<1x5x5x128xbf16, #tpu.memory_space<vmem>>, vector<1x1x3x128xbf16>
    %19 = vector.shape_cast %18 : vector<1x1x3x128xbf16> to vector<3x128xbf16>
    %c3 = arith.constant 3 : index
    %c0_26 = arith.constant 0 : index
    %c0_27 = arith.constant 0 : index
    %20 = vector.load %arg2[%c3, %c0_26, %c0_27] : memref<9x128x128xbf16, #tpu.memory_space<vmem>>, vector<1x128x128xbf16>
    %21 = vector.shape_cast %20 : vector<1x128x128xbf16> to vector<128x128xbf16>
    %cst_28 = arith.constant dense<0.000000e+00> : vector<3x128xf32>
    %22 = tpu.matmul %19, %21, %cst_28 {dimension_numbers = #tpu.dot_dimension_numbers<[1], [0], [0], [1], [0, 0, 1, 1], [], []>} : vector<3x128xbf16>, vector<128x128xbf16>, vector<3x128xf32> -> vector<3x128xf32>
    %23 = arith.addf %17, %22 : vector<3x128xf32>
    %c0_29 = arith.constant 0 : index
    %c1_30 = arith.constant 1 : index
    %c1_31 = arith.constant 1 : index
    %c0_32 = arith.constant 0 : index
    %24 = vector.load %arg1[%c0_29, %c1_30, %c1_31, %c0_32] : memref<1x5x5x128xbf16, #tpu.memory_space<vmem>>, vector<1x1x3x128xbf16>
    %25 = vector.shape_cast %24 : vector<1x1x3x128xbf16> to vector<3x128xbf16>
    %c4 = arith.constant 4 : index
    %c0_33 = arith.constant 0 : index
    %c0_34 = arith.constant 0 : index
    %26 = vector.load %arg2[%c4, %c0_33, %c0_34] : memref<9x128x128xbf16, #tpu.memory_space<vmem>>, vector<1x128x128xbf16>
    %27 = vector.shape_cast %26 : vector<1x128x128xbf16> to vector<128x128xbf16>
    %cst_35 = arith.constant dense<0.000000e+00> : vector<3x128xf32>
    %28 = tpu.matmul %25, %27, %cst_35 {dimension_numbers = #tpu.dot_dimension_numbers<[1], [0], [0], [1], [0, 0, 1, 1], [], []>} : vector<3x128xbf16>, vector<128x128xbf16>, vector<3x128xf32> -> vector<3x128xf32>
    %29 = arith.addf %23, %28 : vector<3x128xf32>
    %c0_36 = arith.constant 0 : index
    %c1_37 = arith.constant 1 : index
    %c2_38 = arith.constant 2 : index
    %c0_39 = arith.constant 0 : index
    %30 = vector.load %arg1[%c0_36, %c1_37, %c2_38, %c0_39] : memref<1x5x5x128xbf16, #tpu.memory_space<vmem>>, vector<1x1x3x128xbf16>
    %31 = vector.shape_cast %30 : vector<1x1x3x128xbf16> to vector<3x128xbf16>
    %c5 = arith.constant 5 : index
    %c0_40 = arith.constant 0 : index
    %c0_41 = arith.constant 0 : index
    %32 = vector.load %arg2[%c5, %c0_40, %c0_41] : memref<9x128x128xbf16, #tpu.memory_space<vmem>>, vector<1x128x128xbf16>
    %33 = vector.shape_cast %32 : vector<1x128x128xbf16> to vector<128x128xbf16>
    %cst_42 = arith.constant dense<0.000000e+00> : vector<3x128xf32>
    %34 = tpu.matmul %31, %33, %cst_42 {dimension_numbers = #tpu.dot_dimension_numbers<[1], [0], [0], [1], [0, 0, 1, 1], [], []>} : vector<3x128xbf16>, vector<128x128xbf16>, vector<3x128xf32> -> vector<3x128xf32>
    %35 = arith.addf %29, %34 : vector<3x128xf32>
    %c0_43 = arith.constant 0 : index
    %c2_44 = arith.constant 2 : index
    %c0_45 = arith.constant 0 : index
    %c0_46 = arith.constant 0 : index
    %36 = vector.load %arg1[%c0_43, %c2_44, %c0_45, %c0_46] : memref<1x5x5x128xbf16, #tpu.memory_space<vmem>>, vector<1x1x3x128xbf16>
    %37 = vector.shape_cast %36 : vector<1x1x3x128xbf16> to vector<3x128xbf16>
    %c6 = arith.constant 6 : index
    %c0_47 = arith.constant 0 : index
    %c0_48 = arith.constant 0 : index
    %38 = vector.load %arg2[%c6, %c0_47, %c0_48] : memref<9x128x128xbf16, #tpu.memory_space<vmem>>, vector<1x128x128xbf16>
    %39 = vector.shape_cast %38 : vector<1x128x128xbf16> to vector<128x128xbf16>
    %cst_49 = arith.constant dense<0.000000e+00> : vector<3x128xf32>
    %40 = tpu.matmul %37, %39, %cst_49 {dimension_numbers = #tpu.dot_dimension_numbers<[1], [0], [0], [1], [0, 0, 1, 1], [], []>} : vector<3x128xbf16>, vector<128x128xbf16>, vector<3x128xf32> -> vector<3x128xf32>
    %41 = arith.addf %35, %40 : vector<3x128xf32>
    %c0_50 = arith.constant 0 : index
    %c2_51 = arith.constant 2 : index
    %c1_52 = arith.constant 1 : index
    %c0_53 = arith.constant 0 : index
    %42 = vector.load %arg1[%c0_50, %c2_51, %c1_52, %c0_53] : memref<1x5x5x128xbf16, #tpu.memory_space<vmem>>, vector<1x1x3x128xbf16>
    %43 = vector.shape_cast %42 : vector<1x1x3x128xbf16> to vector<3x128xbf16>
    %c7 = arith.constant 7 : index
    %c0_54 = arith.constant 0 : index
    %c0_55 = arith.constant 0 : index
    %44 = vector.load %arg2[%c7, %c0_54, %c0_55] : memref<9x128x128xbf16, #tpu.memory_space<vmem>>, vector<1x128x128xbf16>
    %45 = vector.shape_cast %44 : vector<1x128x128xbf16> to vector<128x128xbf16>
    %cst_56 = arith.constant dense<0.000000e+00> : vector<3x128xf32>
    %46 = tpu.matmul %43, %45, %cst_56 {dimension_numbers = #tpu.dot_dimension_numbers<[1], [0], [0], [1], [0, 0, 1, 1], [], []>} : vector<3x128xbf16>, vector<128x128xbf16>, vector<3x128xf32> -> vector<3x128xf32>
    %47 = arith.addf %41, %46 : vector<3x128xf32>
    %c0_57 = arith.constant 0 : index
    %c2_58 = arith.constant 2 : index
    %c2_59 = arith.constant 2 : index
    %c0_60 = arith.constant 0 : index
    %48 = vector.load %arg1[%c0_57, %c2_58, %c2_59, %c0_60] : memref<1x5x5x128xbf16, #tpu.memory_space<vmem>>, vector<1x1x3x128xbf16>
    %49 = vector.shape_cast %48 : vector<1x1x3x128xbf16> to vector<3x128xbf16>
    %c8 = arith.constant 8 : index
    %c0_61 = arith.constant 0 : index
    %c0_62 = arith.constant 0 : index
    %50 = vector.load %arg2[%c8, %c0_61, %c0_62] : memref<9x128x128xbf16, #tpu.memory_space<vmem>>, vector<1x128x128xbf16>
    %51 = vector.shape_cast %50 : vector<1x128x128xbf16> to vector<128x128xbf16>
    %cst_63 = arith.constant dense<0.000000e+00> : vector<3x128xf32>
    %52 = tpu.matmul %49, %51, %cst_63 {dimension_numbers = #tpu.dot_dimension_numbers<[1], [0], [0], [1], [0, 0, 1, 1], [], []>} : vector<3x128xbf16>, vector<128x128xbf16>, vector<3x128xf32> -> vector<3x128xf32>
    %53 = arith.addf %47, %52 : vector<3x128xf32>
    %54 = vector.broadcast %0 : vector<1x128xf32> to vector<3x128xf32>
    %55 = arith.addf %53, %54 : vector<3x128xf32>
    %cst_64 = arith.constant 0.000000e+00 : f32
    %56 = vector.broadcast %cst_64 : f32 to vector<3x128xf32>
    %57 = arith.maximumf %55, %56 : vector<3x128xf32>
    %58 = arith.truncf %57 : vector<3x128xf32> to vector<3x128xbf16>
    %c0_65 = arith.constant 0 : index
    %c0_66 = arith.constant 0 : index
    %c0_67 = arith.constant 0 : index
    %c0_68 = arith.constant 0 : index
    %59 = vector.load %arg4[%c0_65, %c0_66, %c0_67, %c0_68] : memref<1x3x3x128xbf16, #tpu.memory_space<vmem>>, vector<1x1x3x128xbf16>
    %60 = vector.shape_cast %59 : vector<1x1x3x128xbf16> to vector<3x128xbf16>
    %61 = vector.shape_cast %58 : vector<3x128xbf16> to vector<1x1x3x128xbf16>
    tpu.vector_store %arg4[%c0_65, %c0_66, %c0_67, %c0_68], %61 {strides = array<i32>} : memref<1x3x3x128xbf16, #tpu.memory_space<vmem>>, vector<1x1x3x128xbf16>,
    %c0_69 = arith.constant 0 : index
    %c1_70 = arith.constant 1 : index
    %c0_71 = arith.constant 0 : index
    %c0_72 = arith.constant 0 : index
    %62 = vector.load %arg1[%c0_69, %c1_70, %c0_71, %c0_72] : memref<1x5x5x128xbf16, #tpu.memory_space<vmem>>, vector<1x1x3x128xbf16>
    %63 = vector.shape_cast %62 : vector<1x1x3x128xbf16> to vector<3x128xbf16>
    %c0_73 = arith.constant 0 : index
    %c0_74 = arith.constant 0 : index
    %c0_75 = arith.constant 0 : index
    %64 = vector.load %arg2[%c0_73, %c0_74, %c0_75] : memref<9x128x128xbf16, #tpu.memory_space<vmem>>, vector<1x128x128xbf16>
    %65 = vector.shape_cast %64 : vector<1x128x128xbf16> to vector<128x128xbf16>
    %cst_76 = arith.constant dense<0.000000e+00> : vector<3x128xf32>
    %66 = tpu.matmul %63, %65, %cst_76 {dimension_numbers = #tpu.dot_dimension_numbers<[1], [0], [0], [1], [0, 0, 1, 1], [], []>} : vector<3x128xbf16>, vector<128x128xbf16>, vector<3x128xf32> -> vector<3x128xf32>
    %c0_77 = arith.constant 0 : index
    %c1_78 = arith.constant 1 : index
    %c1_79 = arith.constant 1 : index
    %c0_80 = arith.constant 0 : index
    %67 = vector.load %arg1[%c0_77, %c1_78, %c1_79, %c0_80] : memref<1x5x5x128xbf16, #tpu.memory_space<vmem>>, vector<1x1x3x128xbf16>
    %68 = vector.shape_cast %67 : vector<1x1x3x128xbf16> to vector<3x128xbf16>
    %c1_81 = arith.constant 1 : index
    %c0_82 = arith.constant 0 : index
    %c0_83 = arith.constant 0 : index
    %69 = vector.load %arg2[%c1_81, %c0_82, %c0_83] : memref<9x128x128xbf16, #tpu.memory_space<vmem>>, vector<1x128x128xbf16>
    %70 = vector.shape_cast %69 : vector<1x128x128xbf16> to vector<128x128xbf16>
    %cst_84 = arith.constant dense<0.000000e+00> : vector<3x128xf32>
    %71 = tpu.matmul %68, %70, %cst_84 {dimension_numbers = #tpu.dot_dimension_numbers<[1], [0], [0], [1], [0, 0, 1, 1], [], []>} : vector<3x128xbf16>, vector<128x128xbf16>, vector<3x128xf32> -> vector<3x128xf32>
    %72 = arith.addf %66, %71 : vector<3x128xf32>
    %c0_85 = arith.constant 0 : index
    %c1_86 = arith.constant 1 : index
    %c2_87 = arith.constant 2 : index
    %c0_88 = arith.constant 0 : index
    %73 = vector.load %arg1[%c0_85, %c1_86, %c2_87, %c0_88] : memref<1x5x5x128xbf16, #tpu.memory_space<vmem>>, vector<1x1x3x128xbf16>
    %74 = vector.shape_cast %73 : vector<1x1x3x128xbf16> to vector<3x128xbf16>
    %c2_89 = arith.constant 2 : index
    %c0_90 = arith.constant 0 : index
    %c0_91 = arith.constant 0 : index
    %75 = vector.load %arg2[%c2_89, %c0_90, %c0_91] : memref<9x128x128xbf16, #tpu.memory_space<vmem>>, vector<1x128x128xbf16>
    %76 = vector.shape_cast %75 : vector<1x128x128xbf16> to vector<128x128xbf16>
    %cst_92 = arith.constant dense<0.000000e+00> : vector<3x128xf32>
    %77 = tpu.matmul %74, %76, %cst_92 {dimension_numbers = #tpu.dot_dimension_numbers<[1], [0], [0], [1], [0, 0, 1, 1], [], []>} : vector<3x128xbf16>, vector<128x128xbf16>, vector<3x128xf32> -> vector<3x128xf32>
    %78 = arith.addf %72, %77 : vector<3x128xf32>
    %c0_93 = arith.constant 0 : index
    %c2_94 = arith.constant 2 : index
    %c0_95 = arith.constant 0 : index
    %c0_96 = arith.constant 0 : index
    %79 = vector.load %arg1[%c0_93, %c2_94, %c0_95, %c0_96] : memref<1x5x5x128xbf16, #tpu.memory_space<vmem>>, vector<1x1x3x128xbf16>
    %80 = vector.shape_cast %79 : vector<1x1x3x128xbf16> to vector<3x128xbf16>
    %c3_97 = arith.constant 3 : index
    %c0_98 = arith.constant 0 : index
    %c0_99 = arith.constant 0 : index
    %81 = vector.load %arg2[%c3_97, %c0_98, %c0_99] : memref<9x128x128xbf16, #tpu.memory_space<vmem>>, vector<1x128x128xbf16>
    %82 = vector.shape_cast %81 : vector<1x128x128xbf16> to vector<128x128xbf16>
    %cst_100 = arith.constant dense<0.000000e+00> : vector<3x128xf32>
    %83 = tpu.matmul %80, %82, %cst_100 {dimension_numbers = #tpu.dot_dimension_numbers<[1], [0], [0], [1], [0, 0, 1, 1], [], []>} : vector<3x128xbf16>, vector<128x128xbf16>, vector<3x128xf32> -> vector<3x128xf32>
    %84 = arith.addf %78, %83 : vector<3x128xf32>
    %c0_101 = arith.constant 0 : index
    %c2_102 = arith.constant 2 : index
    %c1_103 = arith.constant 1 : index
    %c0_104 = arith.constant 0 : index
    %85 = vector.load %arg1[%c0_101, %c2_102, %c1_103, %c0_104] : memref<1x5x5x128xbf16, #tpu.memory_space<vmem>>, vector<1x1x3x128xbf16>
    %86 = vector.shape_cast %85 : vector<1x1x3x128xbf16> to vector<3x128xbf16>
    %c4_105 = arith.constant 4 : index
    %c0_106 = arith.constant 0 : index
    %c0_107 = arith.constant 0 : index
    %87 = vector.load %arg2[%c4_105, %c0_106, %c0_107] : memref<9x128x128xbf16, #tpu.memory_space<vmem>>, vector<1x128x128xbf16>
    %88 = vector.shape_cast %87 : vector<1x128x128xbf16> to vector<128x128xbf16>
    %cst_108 = arith.constant dense<0.000000e+00> : vector<3x128xf32>
    %89 = tpu.matmul %86, %88, %cst_108 {dimension_numbers = #tpu.dot_dimension_numbers<[1], [0], [0], [1], [0, 0, 1, 1], [], []>} : vector<3x128xbf16>, vector<128x128xbf16>, vector<3x128xf32> -> vector<3x128xf32>
    %90 = arith.addf %84, %89 : vector<3x128xf32>
    %c0_109 = arith.constant 0 : index
    %c2_110 = arith.constant 2 : index
    %c2_111 = arith.constant 2 : index
    %c0_112 = arith.constant 0 : index
    %91 = vector.load %arg1[%c0_109, %c2_110, %c2_111, %c0_112] : memref<1x5x5x128xbf16, #tpu.memory_space<vmem>>, vector<1x1x3x128xbf16>
    %92 = vector.shape_cast %91 : vector<1x1x3x128xbf16> to vector<3x128xbf16>
    %c5_113 = arith.constant 5 : index
    %c0_114 = arith.constant 0 : index
    %c0_115 = arith.constant 0 : index
    %93 = vector.load %arg2[%c5_113, %c0_114, %c0_115] : memref<9x128x128xbf16, #tpu.memory_space<vmem>>, vector<1x128x128xbf16>
    %94 = vector.shape_cast %93 : vector<1x128x128xbf16> to vector<128x128xbf16>
    %cst_116 = arith.constant dense<0.000000e+00> : vector<3x128xf32>
    %95 = tpu.matmul %92, %94, %cst_116 {dimension_numbers = #tpu.dot_dimension_numbers<[1], [0], [0], [1], [0, 0, 1, 1], [], []>} : vector<3x128xbf16>, vector<128x128xbf16>, vector<3x128xf32> -> vector<3x128xf32>
    %96 = arith.addf %90, %95 : vector<3x128xf32>
    %c0_117 = arith.constant 0 : index
    %c3_118 = arith.constant 3 : index
    %c0_119 = arith.constant 0 : index
    %c0_120 = arith.constant 0 : index
    %97 = vector.load %arg1[%c0_117, %c3_118, %c0_119, %c0_120] : memref<1x5x5x128xbf16, #tpu.memory_space<vmem>>, vector<1x1x3x128xbf16>
    %98 = vector.shape_cast %97 : vector<1x1x3x128xbf16> to vector<3x128xbf16>
    %c6_121 = arith.constant 6 : index
    %c0_122 = arith.constant 0 : index
    %c0_123 = arith.constant 0 : index
    %99 = vector.load %arg2[%c6_121, %c0_122, %c0_123] : memref<9x128x128xbf16, #tpu.memory_space<vmem>>, vector<1x128x128xbf16>
    %100 = vector.shape_cast %99 : vector<1x128x128xbf16> to vector<128x128xbf16>
    %cst_124 = arith.constant dense<0.000000e+00> : vector<3x128xf32>
    %101 = tpu.matmul %98, %100, %cst_124 {dimension_numbers = #tpu.dot_dimension_numbers<[1], [0], [0], [1], [0, 0, 1, 1], [], []>} : vector<3x128xbf16>, vector<128x128xbf16>, vector<3x128xf32> -> vector<3x128xf32>
    %102 = arith.addf %96, %101 : vector<3x128xf32>
    %c0_125 = arith.constant 0 : index
    %c3_126 = arith.constant 3 : index
    %c1_127 = arith.constant 1 : index
    %c0_128 = arith.constant 0 : index
    %103 = vector.load %arg1[%c0_125, %c3_126, %c1_127, %c0_128] : memref<1x5x5x128xbf16, #tpu.memory_space<vmem>>, vector<1x1x3x128xbf16>
    %104 = vector.shape_cast %103 : vector<1x1x3x128xbf16> to vector<3x128xbf16>
    %c7_129 = arith.constant 7 : index
    %c0_130 = arith.constant 0 : index
    %c0_131 = arith.constant 0 : index
    %105 = vector.load %arg2[%c7_129, %c0_130, %c0_131] : memref<9x128x128xbf16, #tpu.memory_space<vmem>>, vector<1x128x128xbf16>
    %106 = vector.shape_cast %105 : vector<1x128x128xbf16> to vector<128x128xbf16>
    %cst_132 = arith.constant dense<0.000000e+00> : vector<3x128xf32>
    %107 = tpu.matmul %104, %106, %cst_132 {dimension_numbers = #tpu.dot_dimension_numbers<[1], [0], [0], [1], [0, 0, 1, 1], [], []>} : vector<3x128xbf16>, vector<128x128xbf16>, vector<3x128xf32> -> vector<3x128xf32>
    %108 = arith.addf %102, %107 : vector<3x128xf32>
    %c0_133 = arith.constant 0 : index
    %c3_134 = arith.constant 3 : index
    %c2_135 = arith.constant 2 : index
    %c0_136 = arith.constant 0 : index
    %109 = vector.load %arg1[%c0_133, %c3_134, %c2_135, %c0_136] : memref<1x5x5x128xbf16, #tpu.memory_space<vmem>>, vector<1x1x3x128xbf16>
    %110 = vector.shape_cast %109 : vector<1x1x3x128xbf16> to vector<3x128xbf16>
    %c8_137 = arith.constant 8 : index
    %c0_138 = arith.constant 0 : index
    %c0_139 = arith.constant 0 : index
    %111 = vector.load %arg2[%c8_137, %c0_138, %c0_139] : memref<9x128x128xbf16, #tpu.memory_space<vmem>>, vector<1x128x128xbf16>
    %112 = vector.shape_cast %111 : vector<1x128x128xbf16> to vector<128x128xbf16>
    %cst_140 = arith.constant dense<0.000000e+00> : vector<3x128xf32>
    %113 = tpu.matmul %110, %112, %cst_140 {dimension_numbers = #tpu.dot_dimension_numbers<[1], [0], [0], [1], [0, 0, 1, 1], [], []>} : vector<3x128xbf16>, vector<128x128xbf16>, vector<3x128xf32> -> vector<3x128xf32>
    %114 = arith.addf %108, %113 : vector<3x128xf32>
    %115 = vector.broadcast %0 : vector<1x128xf32> to vector<3x128xf32>
    %116 = arith.addf %114, %115 : vector<3x128xf32>
    %cst_141 = arith.constant 0.000000e+00 : f32
    %117 = vector.broadcast %cst_141 : f32 to vector<3x128xf32>
    %118 = arith.maximumf %116, %117 : vector<3x128xf32>
    %119 = arith.truncf %118 : vector<3x128xf32> to vector<3x128xbf16>
    %c0_142 = arith.constant 0 : index
    %c1_143 = arith.constant 1 : index
    %c0_144 = arith.constant 0 : index
    %c0_145 = arith.constant 0 : index
    %120 = vector.load %arg4[%c0_142, %c1_143, %c0_144, %c0_145] : memref<1x3x3x128xbf16, #tpu.memory_space<vmem>>, vector<1x1x3x128xbf16>
    %121 = vector.shape_cast %120 : vector<1x1x3x128xbf16> to vector<3x128xbf16>
    %122 = vector.shape_cast %119 : vector<3x128xbf16> to vector<1x1x3x128xbf16>
    tpu.vector_store %arg4[%c0_142, %c1_143, %c0_144, %c0_145], %122 {strides = array<i32>} : memref<1x3x3x128xbf16, #tpu.memory_space<vmem>>, vector<1x1x3x128xbf16>,
    %c0_146 = arith.constant 0 : index
    %c2_147 = arith.constant 2 : index
    %c0_148 = arith.constant 0 : index
    %c0_149 = arith.constant 0 : index
    %123 = vector.load %arg1[%c0_146, %c2_147, %c0_148, %c0_149] : memref<1x5x5x128xbf16, #tpu.memory_space<vmem>>, vector<1x1x3x128xbf16>
    %124 = vector.shape_cast %123 : vector<1x1x3x128xbf16> to vector<3x128xbf16>
    %c0_150 = arith.constant 0 : index
    %c0_151 = arith.constant 0 : index
    %c0_152 = arith.constant 0 : index
    %125 = vector.load %arg2[%c0_150, %c0_151, %c0_152] : memref<9x128x128xbf16, #tpu.memory_space<vmem>>, vector<1x128x128xbf16>
    %126 = vector.shape_cast %125 : vector<1x128x128xbf16> to vector<128x128xbf16>
    %cst_153 = arith.constant dense<0.000000e+00> : vector<3x128xf32>
    %127 = tpu.matmul %124, %126, %cst_153 {dimension_numbers = #tpu.dot_dimension_numbers<[1], [0], [0], [1], [0, 0, 1, 1], [], []>} : vector<3x128xbf16>, vector<128x128xbf16>, vector<3x128xf32> -> vector<3x128xf32>
    %c0_154 = arith.constant 0 : index
    %c2_155 = arith.constant 2 : index
    %c1_156 = arith.constant 1 : index
    %c0_157 = arith.constant 0 : index
    %128 = vector.load %arg1[%c0_154, %c2_155, %c1_156, %c0_157] : memref<1x5x5x128xbf16, #tpu.memory_space<vmem>>, vector<1x1x3x128xbf16>
    %129 = vector.shape_cast %128 : vector<1x1x3x128xbf16> to vector<3x128xbf16>
    %c1_158 = arith.constant 1 : index
    %c0_159 = arith.constant 0 : index
    %c0_160 = arith.constant 0 : index
    %130 = vector.load %arg2[%c1_158, %c0_159, %c0_160] : memref<9x128x128xbf16, #tpu.memory_space<vmem>>, vector<1x128x128xbf16>
    %131 = vector.shape_cast %130 : vector<1x128x128xbf16> to vector<128x128xbf16>
    %cst_161 = arith.constant dense<0.000000e+00> : vector<3x128xf32>
    %132 = tpu.matmul %129, %131, %cst_161 {dimension_numbers = #tpu.dot_dimension_numbers<[1], [0], [0], [1], [0, 0, 1, 1], [], []>} : vector<3x128xbf16>, vector<128x128xbf16>, vector<3x128xf32> -> vector<3x128xf32>
    %133 = arith.addf %127, %132 : vector<3x128xf32>
    %c0_162 = arith.constant 0 : index
    %c2_163 = arith.constant 2 : index
    %c2_164 = arith.constant 2 : index
    %c0_165 = arith.constant 0 : index
    %134 = vector.load %arg1[%c0_162, %c2_163, %c2_164, %c0_165] : memref<1x5x5x128xbf16, #tpu.memory_space<vmem>>, vector<1x1x3x128xbf16>
    %135 = vector.shape_cast %134 : vector<1x1x3x128xbf16> to vector<3x128xbf16>
    %c2_166 = arith.constant 2 : index
    %c0_167 = arith.constant 0 : index
    %c0_168 = arith.constant 0 : index
    %136 = vector.load %arg2[%c2_166, %c0_167, %c0_168] : memref<9x128x128xbf16, #tpu.memory_space<vmem>>, vector<1x128x128xbf16>
    %137 = vector.shape_cast %136 : vector<1x128x128xbf16> to vector<128x128xbf16>
    %cst_169 = arith.constant dense<0.000000e+00> : vector<3x128xf32>
    %138 = tpu.matmul %135, %137, %cst_169 {dimension_numbers = #tpu.dot_dimension_numbers<[1], [0], [0], [1], [0, 0, 1, 1], [], []>} : vector<3x128xbf16>, vector<128x128xbf16>, vector<3x128xf32> -> vector<3x128xf32>
    %139 = arith.addf %133, %138 : vector<3x128xf32>
    %c0_170 = arith.constant 0 : index
    %c3_171 = arith.constant 3 : index
    %c0_172 = arith.constant 0 : index
    %c0_173 = arith.constant 0 : index
    %140 = vector.load %arg1[%c0_170, %c3_171, %c0_172, %c0_173] : memref<1x5x5x128xbf16, #tpu.memory_space<vmem>>, vector<1x1x3x128xbf16>
    %141 = vector.shape_cast %140 : vector<1x1x3x128xbf16> to vector<3x128xbf16>
    %c3_174 = arith.constant 3 : index
    %c0_175 = arith.constant 0 : index
    %c0_176 = arith.constant 0 : index
    %142 = vector.load %arg2[%c3_174, %c0_175, %c0_176] : memref<9x128x128xbf16, #tpu.memory_space<vmem>>, vector<1x128x128xbf16>
    %143 = vector.shape_cast %142 : vector<1x128x128xbf16> to vector<128x128xbf16>
    %cst_177 = arith.constant dense<0.000000e+00> : vector<3x128xf32>
    %144 = tpu.matmul %141, %143, %cst_177 {dimension_numbers = #tpu.dot_dimension_numbers<[1], [0], [0], [1], [0, 0, 1, 1], [], []>} : vector<3x128xbf16>, vector<128x128xbf16>, vector<3x128xf32> -> vector<3x128xf32>
    %145 = arith.addf %139, %144 : vector<3x128xf32>
    %c0_178 = arith.constant 0 : index
    %c3_179 = arith.constant 3 : index
    %c1_180 = arith.constant 1 : index
    %c0_181 = arith.constant 0 : index
    %146 = vector.load %arg1[%c0_178, %c3_179, %c1_180, %c0_181] : memref<1x5x5x128xbf16, #tpu.memory_space<vmem>>, vector<1x1x3x128xbf16>
    %147 = vector.shape_cast %146 : vector<1x1x3x128xbf16> to vector<3x128xbf16>
    %c4_182 = arith.constant 4 : index
    %c0_183 = arith.constant 0 : index
    %c0_184 = arith.constant 0 : index
    %148 = vector.load %arg2[%c4_182, %c0_183, %c0_184] : memref<9x128x128xbf16, #tpu.memory_space<vmem>>, vector<1x128x128xbf16>
    %149 = vector.shape_cast %148 : vector<1x128x128xbf16> to vector<128x128xbf16>
    %cst_185 = arith.constant dense<0.000000e+00> : vector<3x128xf32>
    %150 = tpu.matmul %147, %149, %cst_185 {dimension_numbers = #tpu.dot_dimension_numbers<[1], [0], [0], [1], [0, 0, 1, 1], [], []>} : vector<3x128xbf16>, vector<128x128xbf16>, vector<3x128xf32> -> vector<3x128xf32>
    %151 = arith.addf %145, %150 : vector<3x128xf32>
    %c0_186 = arith.constant 0 : index
    %c3_187 = arith.constant 3 : index
    %c2_188 = arith.constant 2 : index
    %c0_189 = arith.constant 0 : index
    %152 = vector.load %arg1[%c0_186, %c3_187, %c2_188, %c0_189] : memref<1x5x5x128xbf16, #tpu.memory_space<vmem>>, vector<1x1x3x128xbf16>
    %153 = vector.shape_cast %152 : vector<1x1x3x128xbf16> to vector<3x128xbf16>
    %c5_190 = arith.constant 5 : index
    %c0_191 = arith.constant 0 : index
    %c0_192 = arith.constant 0 : index
    %154 = vector.load %arg2[%c5_190, %c0_191, %c0_192] : memref<9x128x128xbf16, #tpu.memory_space<vmem>>, vector<1x128x128xbf16>
    %155 = vector.shape_cast %154 : vector<1x128x128xbf16> to vector<128x128xbf16>
    %cst_193 = arith.constant dense<0.000000e+00> : vector<3x128xf32>
    %156 = tpu.matmul %153, %155, %cst_193 {dimension_numbers = #tpu.dot_dimension_numbers<[1], [0], [0], [1], [0, 0, 1, 1], [], []>} : vector<3x128xbf16>, vector<128x128xbf16>, vector<3x128xf32> -> vector<3x128xf32>
    %157 = arith.addf %151, %156 : vector<3x128xf32>
    %c0_194 = arith.constant 0 : index
    %c4_195 = arith.constant 4 : index
    %c0_196 = arith.constant 0 : index
    %c0_197 = arith.constant 0 : index
    %158 = vector.load %arg1[%c0_194, %c4_195, %c0_196, %c0_197] : memref<1x5x5x128xbf16, #tpu.memory_space<vmem>>, vector<1x1x3x128xbf16>
    %159 = vector.shape_cast %158 : vector<1x1x3x128xbf16> to vector<3x128xbf16>
    %c6_198 = arith.constant 6 : index
    %c0_199 = arith.constant 0 : index
    %c0_200 = arith.constant 0 : index
    %160 = vector.load %arg2[%c6_198, %c0_199, %c0_200] : memref<9x128x128xbf16, #tpu.memory_space<vmem>>, vector<1x128x128xbf16>
    %161 = vector.shape_cast %160 : vector<1x128x128xbf16> to vector<128x128xbf16>
    %cst_201 = arith.constant dense<0.000000e+00> : vector<3x128xf32>
    %162 = tpu.matmul %159, %161, %cst_201 {dimension_numbers = #tpu.dot_dimension_numbers<[1], [0], [0], [1], [0, 0, 1, 1], [], []>} : vector<3x128xbf16>, vector<128x128xbf16>, vector<3x128xf32> -> vector<3x128xf32>
    %163 = arith.addf %157, %162 : vector<3x128xf32>
    %c0_202 = arith.constant 0 : index
    %c4_203 = arith.constant 4 : index
    %c1_204 = arith.constant 1 : index
    %c0_205 = arith.constant 0 : index
    %164 = vector.load %arg1[%c0_202, %c4_203, %c1_204, %c0_205] : memref<1x5x5x128xbf16, #tpu.memory_space<vmem>>, vector<1x1x3x128xbf16>
    %165 = vector.shape_cast %164 : vector<1x1x3x128xbf16> to vector<3x128xbf16>
    %c7_206 = arith.constant 7 : index
    %c0_207 = arith.constant 0 : index
    %c0_208 = arith.constant 0 : index
    %166 = vector.load %arg2[%c7_206, %c0_207, %c0_208] : memref<9x128x128xbf16, #tpu.memory_space<vmem>>, vector<1x128x128xbf16>
    %167 = vector.shape_cast %166 : vector<1x128x128xbf16> to vector<128x128xbf16>
    %cst_209 = arith.constant dense<0.000000e+00> : vector<3x128xf32>
    %168 = tpu.matmul %165, %167, %cst_209 {dimension_numbers = #tpu.dot_dimension_numbers<[1], [0], [0], [1], [0, 0, 1, 1], [], []>} : vector<3x128xbf16>, vector<128x128xbf16>, vector<3x128xf32> -> vector<3x128xf32>
    %169 = arith.addf %163, %168 : vector<3x128xf32>
    %c0_210 = arith.constant 0 : index
    %c4_211 = arith.constant 4 : index
    %c2_212 = arith.constant 2 : index
    %c0_213 = arith.constant 0 : index
    %170 = vector.load %arg1[%c0_210, %c4_211, %c2_212, %c0_213] : memref<1x5x5x128xbf16, #tpu.memory_space<vmem>>, vector<1x1x3x128xbf16>
    %171 = vector.shape_cast %170 : vector<1x1x3x128xbf16> to vector<3x128xbf16>
    %c8_214 = arith.constant 8 : index
    %c0_215 = arith.constant 0 : index
    %c0_216 = arith.constant 0 : index
    %172 = vector.load %arg2[%c8_214, %c0_215, %c0_216] : memref<9x128x128xbf16, #tpu.memory_space<vmem>>, vector<1x128x128xbf16>
    %173 = vector.shape_cast %172 : vector<1x128x128xbf16> to vector<128x128xbf16>
    %cst_217 = arith.constant dense<0.000000e+00> : vector<3x128xf32>
    %174 = tpu.matmul %171, %173, %cst_217 {dimension_numbers = #tpu.dot_dimension_numbers<[1], [0], [0], [1], [0, 0, 1, 1], [], []>} : vector<3x128xbf16>, vector<128x128xbf16>, vector<3x128xf32> -> vector<3x128xf32>
    %175 = arith.addf %169, %174 : vector<3x128xf32>
    %176 = vector.broadcast %0 : vector<1x128xf32> to vector<3x128xf32>
    %177 = arith.addf %175, %176 : vector<3x128xf32>
    %cst_218 = arith.constant 0.000000e+00 : f32
    %178 = vector.broadcast %cst_218 : f32 to vector<3x128xf32>
    %179 = arith.maximumf %177, %178 : vector<3x128xf32>
    %180 = arith.truncf %179 : vector<3x128xf32> to vector<3x128xbf16>
    %c0_219 = arith.constant 0 : index
    %c2_220 = arith.constant 2 : index
    %c0_221 = arith.constant 0 : index
    %c0_222 = arith.constant 0 : index
    %181 = vector.load %arg4[%c0_219, %c2_220, %c0_221, %c0_222] : memref<1x3x3x128xbf16, #tpu.memory_space<vmem>>, vector<1x1x3x128xbf16>
    %182 = vector.shape_cast %181 : vector<1x1x3x128xbf16> to vector<3x128xbf16>
    %183 = vector.shape_cast %180 : vector<3x128xbf16> to vector<1x1x3x128xbf16>
    tpu.vector_store %arg4[%c0_219, %c2_220, %c0_221, %c0_222], %183 {strides = array<i32>} : memref<1x3x3x128xbf16, #tpu.memory_space<vmem>>, vector<1x1x3x128xbf16>,
    return
  }
  func.func @transform_0(%arg0: i32) -> (i32, i32, i32, i32) {
    %c0_i32 = arith.constant 0 : i32
    %c0_i32_0 = arith.constant 0 : i32
    %c0_i32_1 = arith.constant 0 : i32
    %c0_i32_2 = arith.constant 0 : i32
    return %arg0, %c0_i32, %c0_i32_0, %c0_i32_1 : i32, i32, i32, i32
  }
  func.func @transform_1(%arg0: i32) -> (i32, i32, i32) {
    %c0_i32 = arith.constant 0 : i32
    %c0_i32_0 = arith.constant 0 : i32
    %c0_i32_1 = arith.constant 0 : i32
    %c0_i32_2 = arith.constant 0 : i32
    return %c0_i32, %c0_i32_0, %c0_i32_1 : i32, i32, i32
  }
  func.func @transform_2(%arg0: i32) -> (i32, i32) {
    %c0_i32 = arith.constant 0 : i32
    %c0_i32_0 = arith.constant 0 : i32
    %c0_i32_1 = arith.constant 0 : i32
    return %c0_i32, %c0_i32_0 : i32, i32
  }
  func.func @transform_3(%arg0: i32) -> (i32, i32, i32, i32) {
    %c0_i32 = arith.constant 0 : i32
    %c0_i32_0 = arith.constant 0 : i32
    %c0_i32_1 = arith.constant 0 : i32
    %c0_i32_2 = arith.constant 0 : i32
    return %arg0, %c0_i32, %c0_i32_0, %c0_i32_1 : i32, i32, i32, i32
  }
}

module attributes {stable_mosaic.version = 11 : i64} {
  func.func @_head_kernel(%arg0: i32, %arg1: memref<2x1152xbf16, #tpu.memory_space<vmem>>, %arg2: memref<1152x512xbf16, #tpu.memory_space<vmem>>, %arg3: memref<1x512xf32, #tpu.memory_space<vmem>>, %arg4: memref<512x128xbf16, #tpu.memory_space<vmem>>, %arg5: memref<1x128xf32, #tpu.memory_space<vmem>>, %arg6: memref<2x128xf32, #tpu.memory_space<vmem>>) attributes {dimension_semantics = [#tpu.dimension_semantics<parallel>], iteration_bounds = array<i64: 1>, scalar_prefetch = 0 : i64, scratch_operands = 0 : i64, tpu.core_type = #tpu.core_type<tc>, window_params = [{transform_indices = @transform_0, window_bounds = array<i64: 2, 1152>}, {pipeline_mode = #tpu.pipeline_mode<synchronous>, transform_indices = @transform_1, window_bounds = array<i64: 1152, 512>}, {pipeline_mode = #tpu.pipeline_mode<synchronous>, transform_indices = @transform_2, window_bounds = array<i64: 1, 512>}, {pipeline_mode = #tpu.pipeline_mode<synchronous>, transform_indices = @transform_3, window_bounds = array<i64: 512, 128>}, {pipeline_mode = #tpu.pipeline_mode<synchronous>, transform_indices = @transform_4, window_bounds = array<i64: 1, 128>}, {transform_indices = @transform_5, window_bounds = array<i64: 2, 128>}]} {
    %c0 = arith.constant 0 : index
    %c0_0 = arith.constant 0 : index
    %0 = vector.load %arg1[%c0, %c0_0] : memref<2x1152xbf16, #tpu.memory_space<vmem>>, vector<2x1152xbf16>
    %c0_1 = arith.constant 0 : index
    %c0_2 = arith.constant 0 : index
    %1 = vector.load %arg2[%c0_1, %c0_2] : memref<1152x512xbf16, #tpu.memory_space<vmem>>, vector<1152x512xbf16>
    %cst = arith.constant dense<0.000000e+00> : vector<2x512xf32>
    %2 = tpu.matmul %0, %1, %cst {dimension_numbers = #tpu.dot_dimension_numbers<[1], [0], [0], [1], [0, 0, 1, 1], [], []>} : vector<2x1152xbf16>, vector<1152x512xbf16>, vector<2x512xf32> -> vector<2x512xf32>
    %c0_3 = arith.constant 0 : index
    %c0_4 = arith.constant 0 : index
    %3 = vector.load %arg3[%c0_3, %c0_4] : memref<1x512xf32, #tpu.memory_space<vmem>>, vector<1x512xf32>
    %4 = vector.broadcast %3 : vector<1x512xf32> to vector<2x512xf32>
    %5 = arith.addf %2, %4 : vector<2x512xf32>
    %cst_5 = arith.constant 0.000000e+00 : f32
    %6 = vector.broadcast %cst_5 : f32 to vector<2x512xf32>
    %7 = arith.maximumf %5, %6 : vector<2x512xf32>
    %8 = arith.truncf %7 : vector<2x512xf32> to vector<2x512xbf16>
    %c0_6 = arith.constant 0 : index
    %c0_7 = arith.constant 0 : index
    %9 = vector.load %arg4[%c0_6, %c0_7] : memref<512x128xbf16, #tpu.memory_space<vmem>>, vector<512x128xbf16>
    %cst_8 = arith.constant dense<0.000000e+00> : vector<2x128xf32>
    %10 = tpu.matmul %8, %9, %cst_8 {dimension_numbers = #tpu.dot_dimension_numbers<[1], [0], [0], [1], [0, 0, 1, 1], [], []>} : vector<2x512xbf16>, vector<512x128xbf16>, vector<2x128xf32> -> vector<2x128xf32>
    %c0_9 = arith.constant 0 : index
    %c0_10 = arith.constant 0 : index
    %11 = vector.load %arg5[%c0_9, %c0_10] : memref<1x128xf32, #tpu.memory_space<vmem>>, vector<1x128xf32>
    %12 = vector.broadcast %11 : vector<1x128xf32> to vector<2x128xf32>
    %13 = arith.addf %10, %12 : vector<2x128xf32>
    %c0_11 = arith.constant 0 : index
    %c0_12 = arith.constant 0 : index
    %14 = vector.load %arg6[%c0_11, %c0_12] : memref<2x128xf32, #tpu.memory_space<vmem>>, vector<2x128xf32>
    tpu.vector_store %arg6[%c0_11, %c0_12], %13 {strides = array<i32>} : memref<2x128xf32, #tpu.memory_space<vmem>>, vector<2x128xf32>,
    return
  }
  func.func @transform_0(%arg0: i32) -> (i32, i32) {
    %c0_i32 = arith.constant 0 : i32
    %c0_i32_0 = arith.constant 0 : i32
    return %arg0, %c0_i32 : i32, i32
  }
  func.func @transform_1(%arg0: i32) -> (i32, i32) {
    %c0_i32 = arith.constant 0 : i32
    %c0_i32_0 = arith.constant 0 : i32
    %c0_i32_1 = arith.constant 0 : i32
    return %c0_i32, %c0_i32_0 : i32, i32
  }
  func.func @transform_2(%arg0: i32) -> (i32, i32) {
    %c0_i32 = arith.constant 0 : i32
    %c0_i32_0 = arith.constant 0 : i32
    %c0_i32_1 = arith.constant 0 : i32
    return %c0_i32, %c0_i32_0 : i32, i32
  }
  func.func @transform_3(%arg0: i32) -> (i32, i32) {
    %c0_i32 = arith.constant 0 : i32
    %c0_i32_0 = arith.constant 0 : i32
    %c0_i32_1 = arith.constant 0 : i32
    return %c0_i32, %c0_i32_0 : i32, i32
  }
  func.func @transform_4(%arg0: i32) -> (i32, i32) {
    %c0_i32 = arith.constant 0 : i32
    %c0_i32_0 = arith.constant 0 : i32
    %c0_i32_1 = arith.constant 0 : i32
    return %c0_i32, %c0_i32_0 : i32, i32
  }
  func.func @transform_5(%arg0: i32) -> (i32, i32) {
    %c0_i32 = arith.constant 0 : i32
    %c0_i32_0 = arith.constant 0 : i32
    return %arg0, %c0_i32 : i32, i32
  }
}

</mosaic_0001>

<bundles_post_ra>
// kernel: dqn_forward.4
= control target key start
LH: loop header
LB: loop body
LE: loop exit
PB: predicated region body
PF: predicated region fallthrough
CT: control target
= control target key end

     0   :  { %s6381_s12 = smov 0   ;;  %s7468_s0 = inlined_call_operand.vmem [shape: bf16[2,13,13,64], index: 0, kind: input, shape index: {}]   ;;  %s7469_s1 = inlined_call_operand.vmem [shape: bf16[4,64,128], index: 1, kind: input, shape index: {}]   ;;  %s7470_s2 = inlined_call_operand.vmem [shape: f32[1,128], index: 2, kind: input, shape index: {}]   ;;  %s7471_s3 = inlined_call_operand.vmem [shape: bf16[2,12,12,128], index: 3, kind: output, shape index: {}]  }
   0x1 LB: > { %s4557_s13 = sadd.s32 4294967295, %s6357_s12   ;;  %p4561_p0 = scmp.ge.s32.totalorder %s6357_s12, 1  ;;  %s6357_s12 = sphi %s6381_s12, %s13_s12  }
   0x2   : > { %p137_p1 = scmp.lt.s32.totalorder %s6357_s12, 3 }
   0x4   : > { %p138_p2 = pnand %p4561_p0, %p137_p1 }
   0x5   : > { %p161_p3 = scmp.lt.s32.totalorder (!%p138_p2), %s4557_s13, 1 }
   0x6   : > { %141 = sbr.rel (%p138_p2) target bundleno = 604 (0x25c), region = 32 }
   0xb   : > { %v6110_v0 = vld [vmem:[%s7469_s1 + $0x38] sm:$0xff]   ;;  %v6359_v1 = vmov 0.0   ;;  %v6112_v3 = vld [vmem:[%s7469_s1 + $0x30] sm:$0xff]   ;;  %vm6360_vm0 = vmmov 0   ;;  %s7473_s13 = smov (!%p161_p3, %s4557_s13), 1  ;;  %v6114_v5 = vld [vmem:[%s7469_s1 + $0x28] sm:$0xff]  }
   0xc   : > { %5522 = vmatprep.subr.bf16.mxu0 %v6359_v1  ;;  %5534 = vmatprep.subr.bf16.mxu1 %v6359_v1  ;;  %v6111_v2 = vld [vmem:[%s7469_s1 + $0x18] sm:$0xff]   ;;  %v6113_v4 = vld [vmem:[%s7469_s1 + $0x10] sm:$0xff]   ;;  %s6098_s24 = smul.u32 104, %s7473_s13  ;;  %v6115_v6 = vld [vmem:[%s7469_s1 + $0x8] sm:$0xff]   ;;  %vm229_vm1 = vcmask 523264  }
   0xd   : > { %5523 = vmatpush3.bf16.msra.mxu0 %v6110_v0  ;;  %5530 = vmatprep.mubr.msk.bf16.mxu0 %vm6360_vm0, %v6359_v1  ;;  %v6116_v7 = vld [vmem:[%s7469_s1 + $0x20] sm:$0xff]   ;;  %v6120_v17 = vld [vmem:[%s7469_s1 + $0x58] sm:$0xff]   ;;  %v6122_v20 = vld [vmem:[%s7469_s1 + $0x50] sm:$0xff]   ;;  %s6099_s9 = smul.u32 96, %s7473_s13 }
   0xe   : > { %5535 = vmatpush3.bf16.msra.mxu1 %v6111_v2  ;;  %5524 = vmatprep.subr.bf16.mxu0 %v6359_v1  ;;  %s6423_s29 = scalar_lea.vmem %s7468_s0, %s6098_s24  ;;  %v6117_v10 = vld [vmem:[%s7469_s1] sm:$0xff]   ;;  %v6121_v18 = vld [vmem:[%s7469_s1 + $0x78] sm:$0xff]   ;;  %v6123_v23 = vld [vmem:[%s7469_s1 + $0x70] sm:$0xff]  }
   0xf   : > { %5536 = vmatprep.subr.bf16.mxu1 %v6359_v1  ;;  %5542 = vmatprep.mubr.msk.bf16.mxu1 %vm6360_vm0, %v6359_v1  ;;  %v173_v8 = vld [vmem:[%s6423_s29] sm:$0xf]  ;;  %v183_v9 = vld [vmem:[%s6423_s29 + $0x4] sm:$0x7]  ;;  %v4584_v21 = vld [vmem:[%s6423_s29 + $0x8] sm:$0xf]  ;;  %s7014_s17 = scalar_lea.vmem %s7471_s3, %s6099_s9 }
  0x10   : > { %v4572_v11 = vcombine.low %v173_v8, %v183_v9  ;;  %v174_v12 = vld [vmem:[%s6423_s29 + $0x4] sm:$0x3]  ;;  %v4600_v22 = vld [vmem:[%s6423_s29 + $0xc] sm:$0x7]  ;;  %v6130_v33 = vld [vmem:[%s7469_s1 + $0x38] sm:$0xff]  }
  0x11   : > { %5525 = vmatpush3.bf16.msra.mxu0 %v6112_v3  ;;  %v4578_v16 = vcombine.low %v173_v8, %v174_v12  ;;  %v4609_v24 = vcombine.low %v4584_v21, %v4600_v22  ;;  %v6124_v25 = vld [vmem:[%s7469_s1 + $0x48] sm:$0xff]   ;;  %v6126_v28 = vld [vmem:[%s7469_s1 + $0x40] sm:$0xff]   ;;  %v6131_v34 = vld [vmem:[%s7469_s1 + $0x18] sm:$0xff]  }
  0x12   : > { %5537 = vmatpush3.bf16.msra.mxu1 %v6113_v4  ;;  %5526 = vmatprep.subr.bf16.mxu0 %v6359_v1  ;;  %v199_v13 = vshrl.u32 %v4572_v11, 16  ;;  %v201_v14 = vshll.u32 %v4572_v11, 16  ;;  %v6125_v27 = vld [vmem:[%s7469_s1 + $0x68] sm:$0xff]   ;;  %v6127_v29 = vld [vmem:[%s7469_s1 + $0x60] sm:$0xff]   ;;  %v6132_v40 = vld [vmem:[%s7469_s1 + $0x30] sm:$0xff]  }
  0x13   : > { %5538 = vmatprep.subr.bf16.mxu1 %v6359_v1  ;;  %v448_v26 = vshll.u32 %v4609_v24, 16  ;;  %v446_v30 = vshrl.u32 %v4609_v24, 16  ;;  %v4585_v32 = vld [vmem:[%s6423_s29 + $0xc] sm:$0x3]  ;;  %v4618_v35 = vld [vmem:[%s6423_s29 + $0x8] sm:$0xf] }
  0x14   : > { %v203_v15 = vrot.slane %v201_v14, 1  ;;  %v4594_v36 = vcombine.low %v4584_v21, %v4585_v32  ;;  %v4620_v38 = vld [vmem:[%s6423_s29 + $0xc] sm:$0x7]  ;;  %v6133_v41 = vld [vmem:[%s7469_s1 + $0x10] sm:$0xff]   ;;  %v6136_v45 = vld [vmem:[%s7469_s1 + $0x20] sm:$0xff]  }
  0x15   : > { %5527 = vmatpush3.bf16.msra.mxu0 %v6114_v5  ;;  %v450_v31 = vrot.slane %v448_v26, 1  ;;  %v4629_v39 = vcombine.low %v4618_v35, %v4620_v38  ;;  %v6134_v43 = vld [vmem:[%s7469_s1 + $0x28] sm:$0xff]   ;;  %v6137_v46 = vld [vmem:[%s7469_s1] sm:$0xff]   ;;  %v4641_v50 = vld [vmem:[%s6423_s29 + $0x10] sm:$0xf] }
  0x16   : > { %5539 = vmatpush3.bf16.msra.mxu1 %v6115_v6  ;;  %5528 = vmatprep.subr.bf16.mxu0 %v6359_v1  ;;  %v204_v19 = vor.u32 %v203_v15, %v199_v13  ;;  %v6135_v44 = vld [vmem:[%s7469_s1 + $0x8] sm:$0xff]   ;;  %v4657_v53 = vld [vmem:[%s6423_s29 + $0x14] sm:$0x7]  ;;  %v6140_v54 = vld [vmem:[%s7469_s1 + $0x58] sm:$0xff]  }
  0x17   : > { %5540 = vmatprep.subr.bf16.mxu1 %v6359_v1  ;;  %v451_v37 = vor.u32 %v450_v31, %v446_v30  ;;  %v569_v42 = vshll.u32 %v4629_v39, 16  ;;  %v567_v47 = vshrl.u32 %v4629_v39, 16  ;;  %v4619_v49 = vld [vmem:[%s6423_s29 + $0xc] sm:$0x3]  ;;  %v6141_v55 = vld [vmem:[%s7469_s1 + $0x78] sm:$0xff]   ;;  %v4666_v56 = vcombine.low %v4641_v50, %v4657_v53  ;;  %v6142_v57 = vld [vmem:[%s7469_s1 + $0x50] sm:$0xff]  }
  0x18   : > { %v4635_v52 = vcombine.low %v4618_v35, %v4619_v49  ;;  %v6143_v58 = vld [vmem:[%s7469_s1 + $0x70] sm:$0xff]   ;;  %v6144_v60 = vld [vmem:[%s7469_s1 + $0x48] sm:$0xff]   ;;  %v6146_v62 = vld [vmem:[%s7469_s1 + $0x40] sm:$0xff]  }
  0x19   : > { %5529 = vmatpush3.bf16.msra.mxu0 %v6116_v7  ;;  %v571_v48 = vrot.slane %v569_v42, 1  ;;  %v813_v59 = vshll.u32 %v4666_v56, 16  ;;  %v6145_v61 = vld [vmem:[%s7469_s1 + $0x68] sm:$0xff]   ;;  %v6147_v63 = vld [vmem:[%s7469_s1 + $0x60] sm:$0xff]   ;;  %v811_v0 = vshrl.u32 %v4666_v56, 16  ;;  %v6150_v6 = vld [vmem:[%s7469_s1 + $0x38] sm:$0xff]  }
  0x1a   : > { %5541 = vmatpush3.bf16.msra.mxu1 %v6117_v10  ;;  %5546 = vmatprep.subr.bf16.mxu0 %v6359_v1  ;;  %v4642_v3 = vld [vmem:[%s6423_s29 + $0x14] sm:$0x3]  ;;  %v6151_v7 = vld [vmem:[%s7469_s1 + $0x18] sm:$0xff]   ;;  %v4676_v8 = vld [vmem:[%s6423_s29 + $0x10] sm:$0xf] }
  0x1b   : > { %5558 = vmatprep.subr.bf16.mxu1 %v6359_v1  ;;  %v572_v51 = vor.u32 %v571_v48, %v567_v47  ;;  %v815_v2 = vrot.slane %v813_v59, 1  ;;  %v4651_v4 = vcombine.low %v4641_v50, %v4642_v3  ;;  %v4678_v9 = vld [vmem:[%s6423_s29 + $0x14] sm:$0x7]  ;;  %v6154_v14 = vld [vmem:[%s7469_s1 + $0x28] sm:$0xff]   ;;  %v6160_v21 = vld [vmem:[%s7469_s1 + $0x58] sm:$0xff]  }
  0x1c   : > { %5531 = vmatmul.mubr.msk.bf16.vlgmr.msra.gmra.mxu0 %vm229_vm1, %v204_v19  ;;  %v6152_v10 = vld [vmem:[%s7469_s1 + $0x30] sm:$0xff]   ;;  %v4687_v11 = vcombine.low %v4676_v8, %v4678_v9  ;;  %v6155_v15 = vld [vmem:[%s7469_s1 + $0x8] sm:$0xff]   ;;  %v6157_v19 = vld [vmem:[%s7469_s1] sm:$0xff]  }
  0x1d   : > { %5543 = vmatmul.mubr.msk.bf16.vlgmr.msra.gmra.mxu1 %vm229_vm1, %v4578_v16  ;;  %5547 = vmatpush3.bf16.msra.mxu0 %v6120_v17  ;;  %v816_v5 = vor.u32 %v815_v2, %v811_v0  ;;  %v6153_v12 = vld [vmem:[%s7469_s1 + $0x10] sm:$0xff]   ;;  %v6156_v16 = vld [vmem:[%s7469_s1 + $0x20] sm:$0xff]   ;;  %v6161_v22 = vld [vmem:[%s7469_s1 + $0x78] sm:$0xff]  }
  0x1e   : > { %5559 = vmatpush3.bf16.msra.mxu1 %v6121_v18  ;;  %5548 = vmatprep.subr.bf16.mxu0 %v6359_v1  ;;  %v929_v13 = vshll.u32 %v4687_v11, 16  ;;  %v927_v17 = vshrl.u32 %v4687_v11, 16  ;;  %v4715_v26 = vld [vmem:[%s6423_s29 + $0x1c] sm:$0x7]  ;;  %v6164_v30 = vld [vmem:[%s7469_s1 + $0x48] sm:$0xff]   ;;  %v6177_v53 = vld [vmem:[%s7469_s1] sm:$0xff]  }
  0x1f   : > { %5560 = vmatprep.subr.bf16.mxu1 %v6359_v1  ;;  %5554 = vmatprep.mubr.msk.bf16.mxu0 %vm6360_vm0, %v6359_v1  ;;  %v6165_v32 = vld [vmem:[%s7469_s1 + $0x68] sm:$0xff]   ;;  %v6170_v38 = vld [vmem:[%s7469_s1 + $0x38] sm:$0xff]   ;;  %v4757_v59 = vld [vmem:[%s6423_s29 + $0x20] sm:$0xf] }
  0x20   : > { %5566 = vmatprep.mubr.msk.bf16.mxu1 %vm6360_vm0, %v6359_v1  ;;  %v931_v18 = vrot.slane %v929_v13, 1  ;;  %v4734_v39 = vld [vmem:[%s6423_s29 + $0x18] sm:$0xf]  ;;  %v6174_v47 = vld [vmem:[%s7469_s1 + $0x28] sm:$0xff]   ;;  %v4792_v13 = vld [vmem:[%s6423_s29 + $0x20] sm:$0xf] }
  0x21   : > { %5549 = vmatpush3.bf16.msra.mxu0 %v6122_v20  ;;  %v4677_v20 = vld [vmem:[%s6423_s29 + $0x14] sm:$0x3]  ;;  %v6175_v49 = vld [vmem:[%s7469_s1 + $0x8] sm:$0xff]   ;;  %v6190_v9 = vld [vmem:[%s7469_s1 + $0x38] sm:$0xff]  }
  0x22   : > { %5561 = vmatpush3.bf16.msra.mxu1 %v6123_v23  ;;  %5550 = vmatprep.subr.bf16.mxu0 %v6359_v1  ;;  %v932_v23 = vor.u32 %v931_v18, %v927_v17  ;;  %v4693_v24 = vcombine.low %v4676_v8, %v4677_v20  ;;  %v6184_v2 = vld [vmem:[%s7469_s1 + $0x48] sm:$0xff]   ;;  %v4758_v8 = vld [vmem:[%s6423_s29 + $0x24] sm:$0x3]  ;;  %v6193_v17 = vld [vmem:[%s7469_s1 + $0x10] sm:$0xff]  }
  0x23   : > { %5562 = vmatprep.subr.bf16.mxu1 %v6359_v1  ;;  %v6185_v3 = vld [vmem:[%s7469_s1 + $0x68] sm:$0xff]  }
  0x24   : > { %v6195_v20 = vld [vmem:[%s7469_s1 + $0x8] sm:$0xff]  }
  0x25   : > { %5551 = vmatpush3.bf16.msra.mxu0 %v6124_v25  ;;  %v4699_v25 = vld [vmem:[%s6423_s29 + $0x18] sm:$0xf] }
  0x26   : > { %5563 = vmatpush3.bf16.msra.mxu1 %v6125_v27  ;;  %5552 = vmatprep.subr.bf16.mxu0 %v6359_v1  ;;  %v4724_v27 = vcombine.low %v4699_v25, %v4715_v26  ;;  %v6200_v26 = vld [vmem:[%s7469_s1 + $0x58] sm:$0xff]  }
  0x27   : > { %5564 = vmatprep.subr.bf16.mxu1 %v6359_v1 }
  0x28   : > { %v1173_v31 = vshll.u32 %v4724_v27, 16  ;;  %v1171_v35 = vshrl.u32 %v4724_v27, 16 }
  0x29   : > { %5553 = vmatpush3.bf16.msra.mxu0 %v6126_v28  ;;  %v6162_v28 = vld [vmem:[%s7469_s1 + $0x50] sm:$0xff]  }
  0x2a   : > { %5565 = vmatpush3.bf16.msra.mxu1 %v6127_v29  ;;  %5570 = vmatprep.subr.bf16.mxu0 %v6359_v1  ;;  %v6163_v29 = vld [vmem:[%s7469_s1 + $0x70] sm:$0xff]  }
  0x2b   : > { %5582 = vmatprep.subr.bf16.mxu1 %v6359_v1 }
  0x2c   : > { %5555 = vmatmul.mubr.msk.bf16.vlgmr.msra.gmra.mxu0 %vm229_vm1, %v4594_v36  ;;  %v1175_v36 = vrot.slane %v1173_v31, 1  ;;  %v4831_v31 = vld [vmem:[%s6423_s29 + $0x2c] sm:$0x7] }
  0x2d   : > { %5567 = vmatmul.mubr.msk.bf16.vlgmr.msra.gmra.mxu1 %vm229_vm1, %v451_v37  ;;  %5571 = vmatpush3.bf16.msra.mxu0 %v6130_v33  ;;  %v6166_v33 = vld [vmem:[%s7469_s1 + $0x40] sm:$0xff]   ;;  %v4700_v37 = vld [vmem:[%s6423_s29 + $0x1c] sm:$0x3] }
  0x2e   : > { %5583 = vmatpush3.bf16.msra.mxu1 %v6131_v34  ;;  %5572 = vmatprep.subr.bf16.mxu0 %v6359_v1  ;;  %v6167_v34 = vld [vmem:[%s7469_s1 + $0x60] sm:$0xff]   ;;  %v1176_v42 = vor.u32 %v1175_v36, %v1171_v35  ;;  %v6204_v35 = vld [vmem:[%s7469_s1 + $0x48] sm:$0xff]  }
  0x2f   : > { %5584 = vmatprep.subr.bf16.mxu1 %v6359_v1  ;;  %5578 = vmatprep.mubr.msk.bf16.mxu0 %vm6360_vm0, %v6359_v1 }
  0x30   : > { %5590 = vmatprep.mubr.msk.bf16.mxu1 %vm6360_vm0, %v6359_v1 }
  0x31   : > { %5573 = vmatpush3.bf16.msra.mxu0 %v6132_v40  ;;  %v4736_v40 = vld [vmem:[%s6423_s29 + $0x1c] sm:$0x7] }
  0x32   : > { %5585 = vmatpush3.bf16.msra.mxu1 %v6133_v41  ;;  %5574 = vmatprep.subr.bf16.mxu0 %v6359_v1  ;;  %v4709_v41 = vcombine.low %v4699_v25, %v4700_v37  ;;  %v4793_v25 = vld [vmem:[%s6423_s29 + $0x24] sm:$0x3]  ;;  %v6205_v37 = vld [vmem:[%s7469_s1 + $0x68] sm:$0xff]  }
  0x33   : > { %5586 = vmatprep.subr.bf16.mxu1 %v6359_v1 }
  0x35   : > { %5575 = vmatpush3.bf16.msra.mxu0 %v6134_v43  ;;  %v6171_v43 = vld [vmem:[%s7469_s1 + $0x18] sm:$0xff]  }
  0x36   : > { %5587 = vmatpush3.bf16.msra.mxu1 %v6135_v44  ;;  %5576 = vmatprep.subr.bf16.mxu0 %v6359_v1  ;;  %v4745_v44 = vcombine.low %v4734_v39, %v4736_v40 }
  0x37   : > { %5588 = vmatprep.subr.bf16.mxu1 %v6359_v1 }
  0x38   : > { %v1289_v48 = vshll.u32 %v4745_v44, 16  ;;  %v1287_v50 = vshrl.u32 %v4745_v44, 16  ;;  %v6210_v44 = vld [vmem:[%s7469_s1 + $0x38] sm:$0xff]  }
  0x39   : > { %5577 = vmatpush3.bf16.msra.mxu0 %v6136_v45  ;;  %v6172_v45 = vld [vmem:[%s7469_s1 + $0x30] sm:$0xff]  }
  0x3a   : > { %5589 = vmatpush3.bf16.msra.mxu1 %v6137_v46  ;;  %5594 = vmatprep.subr.bf16.mxu0 %v6359_v1  ;;  %v6173_v46 = vld [vmem:[%s7469_s1 + $0x10] sm:$0xff]  }
  0x3b   : > { %5606 = vmatprep.subr.bf16.mxu1 %v6359_v1 }
  0x3c   : > { %5579 = vmatmul.mubr.msk.bf16.vlgmr.msra.gmra.mxu0 %vm229_vm1, %v572_v51  ;;  %v1291_v51 = vrot.slane %v1289_v48, 1  ;;  %v6211_v48 = vld [vmem:[%s7469_s1 + $0x18] sm:$0xff]  }
  0x3d   : > { %5591 = vmatmul.mubr.msk.bf16.vlgmr.msra.gmra.mxu1 %vm229_vm1, %v4635_v52  ;;  %5595 = vmatpush3.bf16.msra.mxu0 %v6140_v54  ;;  %v6176_v52 = vld [vmem:[%s7469_s1 + $0x20] sm:$0xff]   ;;  %v4735_v54 = vld [vmem:[%s6423_s29 + $0x1c] sm:$0x3] }
  0x3e   : > { %5607 = vmatpush3.bf16.msra.mxu1 %v6141_v55  ;;  %5596 = vmatprep.subr.bf16.mxu0 %v6359_v1  ;;  %v6180_v55 = vld [vmem:[%s7469_s1 + $0x58] sm:$0xff]   ;;  %v1292_v56 = vor.u32 %v1291_v51, %v1287_v50  ;;  %v6212_v50 = vld [vmem:[%s7469_s1 + $0x30] sm:$0xff]  }
  0x3f   : > { %5608 = vmatprep.subr.bf16.mxu1 %v6359_v1  ;;  %5602 = vmatprep.mubr.msk.bf16.mxu0 %vm6360_vm0, %v6359_v1  ;;  %v6213_v51 = vld [vmem:[%s7469_s1 + $0x10] sm:$0xff]  }
  0x40   : > { %5614 = vmatprep.mubr.msk.bf16.mxu1 %vm6360_vm0, %v6359_v1 }
  0x41   : > { %5597 = vmatpush3.bf16.msra.mxu0 %v6142_v57  ;;  %v4751_v57 = vcombine.low %v4734_v39, %v4735_v54  ;;  %v6207_v39 = vld [vmem:[%s7469_s1 + $0x60] sm:$0xff]   ;;  %v6215_v54 = vld [vmem:[%s7469_s1 + $0x8] sm:$0xff]  }
  0x42   : > { %5609 = vmatpush3.bf16.msra.mxu1 %v6143_v58  ;;  %5598 = vmatprep.subr.bf16.mxu0 %v6359_v1  ;;  %v6181_v58 = vld [vmem:[%s7469_s1 + $0x78] sm:$0xff]  }
  0x43   : > { %5610 = vmatprep.subr.bf16.mxu1 %v6359_v1 }
  0x45   : > { %5599 = vmatpush3.bf16.msra.mxu0 %v6144_v60  ;;  %v4773_v60 = vld [vmem:[%s6423_s29 + $0x24] sm:$0x7] }
  0x46   : > { %5611 = vmatpush3.bf16.msra.mxu1 %v6145_v61  ;;  %5600 = vmatprep.subr.bf16.mxu0 %v6359_v1  ;;  %v6182_v61 = vld [vmem:[%s7469_s1 + $0x50] sm:$0xff]  }
  0x47   : > { %5612 = vmatprep.subr.bf16.mxu1 %v6359_v1 }
  0x49   : > { %5601 = vmatpush3.bf16.msra.mxu0 %v6146_v62  ;;  %v4782_v62 = vcombine.low %v4757_v59, %v4773_v60  ;;  %v4873_v60 = vld [vmem:[%s6423_s29 + $0x30] sm:$0xf] }
  0x4a   : > { %5613 = vmatpush3.bf16.msra.mxu1 %v6147_v63  ;;  %5618 = vmatprep.subr.bf16.mxu0 %v6359_v1  ;;  %v6183_v63 = vld [vmem:[%s7469_s1 + $0x70] sm:$0xff]  }
  0x4b   : > { %5630 = vmatprep.subr.bf16.mxu1 %v6359_v1  ;;  %v1533_v0 = vshll.u32 %v4782_v62, 16 }
  0x4c   : > { %5603 = vmatmul.mubr.msk.bf16.vlgmr.msra.gmra.mxu0 %vm229_vm1, %v4651_v4  ;;  %v6186_v4 = vld [vmem:[%s7469_s1 + $0x40] sm:$0xff]  }
  0x4d   : > { %5615 = vmatmul.mubr.msk.bf16.vlgmr.msra.gmra.mxu1 %vm229_vm1, %v816_v5  ;;  %5619 = vmatpush3.bf16.msra.mxu0 %v6150_v6  ;;  %v6187_v5 = vld [vmem:[%s7469_s1 + $0x60] sm:$0xff]   ;;  %v1531_v6 = vshrl.u32 %v4782_v62, 16 }
  0x4e   : > { %5631 = vmatpush3.bf16.msra.mxu1 %v6151_v7  ;;  %5620 = vmatprep.subr.bf16.mxu0 %v6359_v1  ;;  %v1535_v7 = vrot.slane %v1533_v0, 1  ;;  %v6220_v0 = vld [vmem:[%s7469_s1 + $0x58] sm:$0xff]  }
  0x4f   : > { %5632 = vmatprep.subr.bf16.mxu1 %v6359_v1  ;;  %5626 = vmatprep.mubr.msk.bf16.mxu0 %vm6360_vm0, %v6359_v1 }
  0x50   : > { %5638 = vmatprep.mubr.msk.bf16.mxu1 %vm6360_vm0, %v6359_v1  ;;  %v1536_v11 = vor.u32 %v1535_v7, %v1531_v6  ;;  %v6224_v6 = vld [vmem:[%s7469_s1 + $0x48] sm:$0xff]  }
  0x51   : > { %5621 = vmatpush3.bf16.msra.mxu0 %v6152_v10  ;;  %v4767_v10 = vcombine.low %v4757_v59, %v4758_v8  ;;  %v4851_v59 = vld [vmem:[%s6423_s29 + $0x2c] sm:$0x3] }
  0x52   : > { %5633 = vmatpush3.bf16.msra.mxu1 %v6153_v12  ;;  %5622 = vmatprep.subr.bf16.mxu0 %v6359_v1  ;;  %v6191_v12 = vld [vmem:[%s7469_s1 + $0x18] sm:$0xff]   ;;  %v6225_v7 = vld [vmem:[%s7469_s1 + $0x68] sm:$0xff]  }
  0x53   : > { %5634 = vmatprep.subr.bf16.mxu1 %v6359_v1 }
  0x55   : > { %5623 = vmatpush3.bf16.msra.mxu0 %v6154_v14  ;;  %v4794_v14 = vld [vmem:[%s6423_s29 + $0x24] sm:$0x7] }
  0x56   : > { %5635 = vmatpush3.bf16.msra.mxu1 %v6155_v15  ;;  %5624 = vmatprep.subr.bf16.mxu0 %v6359_v1  ;;  %v6192_v15 = vld [vmem:[%s7469_s1 + $0x30] sm:$0xff]  }
  0x57   : > { %5636 = vmatprep.subr.bf16.mxu1 %v6359_v1 }
  0x59   : > { %5625 = vmatpush3.bf16.msra.mxu0 %v6156_v16  ;;  %v4803_v16 = vcombine.low %v4792_v13, %v4794_v14  ;;  %v6230_v14 = vld [vmem:[%s7469_s1 + $0x38] sm:$0xff]  }
  0x5a   : > { %5637 = vmatpush3.bf16.msra.mxu1 %v6157_v19  ;;  %5642 = vmatprep.subr.bf16.mxu0 %v6359_v1  ;;  %v6194_v19 = vld [vmem:[%s7469_s1 + $0x28] sm:$0xff]  }
  0x5b   : > { %5654 = vmatprep.subr.bf16.mxu1 %v6359_v1  ;;  %v1649_v18 = vshll.u32 %v4803_v16, 16 }
  0x5c   : > { %5627 = vmatmul.mubr.msk.bf16.vlgmr.msra.gmra.mxu0 %vm229_vm1, %v932_v23  ;;  %v1647_v23 = vshrl.u32 %v4803_v16, 16 }
  0x5d   : > { %5639 = vmatmul.mubr.msk.bf16.vlgmr.msra.gmra.mxu1 %vm229_vm1, %v4693_v24  ;;  %5643 = vmatpush3.bf16.msra.mxu0 %v6160_v21  ;;  %v6196_v21 = vld [vmem:[%s7469_s1 + $0x20] sm:$0xff]   ;;  %v1651_v24 = vrot.slane %v1649_v18, 1  ;;  %v4910_v18 = vld [vmem:[%s6423_s29 + $0x34] sm:$0x7] }
  0x5e   : > { %5655 = vmatpush3.bf16.msra.mxu1 %v6161_v22  ;;  %5644 = vmatprep.subr.bf16.mxu0 %v6359_v1  ;;  %v6197_v22 = vld [vmem:[%s7469_s1] sm:$0xff]  }
  0x5f   : > { %5656 = vmatprep.subr.bf16.mxu1 %v6359_v1  ;;  %5650 = vmatprep.mubr.msk.bf16.mxu0 %vm6360_vm0, %v6359_v1  ;;  %v1652_v27 = vor.u32 %v1651_v24, %v1647_v23  ;;  %v6234_v23 = vld [vmem:[%s7469_s1 + $0x28] sm:$0xff]  }
  0x60   : > { %5662 = vmatprep.mubr.msk.bf16.mxu1 %vm6360_vm0, %v6359_v1  ;;  %v6235_v24 = vld [vmem:[%s7469_s1 + $0x8] sm:$0xff]  }
  0x61   : > { %5645 = vmatpush3.bf16.msra.mxu0 %v6162_v28  ;;  %v4809_v28 = vcombine.low %v4792_v13, %v4793_v25 }
  0x62   : > { %5657 = vmatpush3.bf16.msra.mxu1 %v6163_v29  ;;  %5646 = vmatprep.subr.bf16.mxu0 %v6359_v1  ;;  %v6201_v29 = vld [vmem:[%s7469_s1 + $0x78] sm:$0xff]  }
  0x63   : > { %5658 = vmatprep.subr.bf16.mxu1 %v6359_v1 }
  0x65   : > { %5647 = vmatpush3.bf16.msra.mxu0 %v6164_v30  ;;  %v4815_v30 = vld [vmem:[%s6423_s29 + $0x28] sm:$0xf] }
  0x66   : > { %5659 = vmatpush3.bf16.msra.mxu1 %v6165_v32  ;;  %5648 = vmatprep.subr.bf16.mxu0 %v6359_v1  ;;  %v4840_v32 = vcombine.low %v4815_v30, %v4831_v31 }
  0x67   : > { %5660 = vmatprep.subr.bf16.mxu1 %v6359_v1 }
  0x68   : > { %v1893_v36 = vshll.u32 %v4840_v32, 16  ;;  %v1891_v40 = vshrl.u32 %v4840_v32, 16 }
  0x69   : > { %5649 = vmatpush3.bf16.msra.mxu0 %v6166_v33  ;;  %v6202_v33 = vld [vmem:[%s7469_s1 + $0x50] sm:$0xff]  }
  0x6a   : > { %5661 = vmatpush3.bf16.msra.mxu1 %v6167_v34  ;;  %5666 = vmatprep.subr.bf16.mxu0 %v6359_v1  ;;  %v6203_v34 = vld [vmem:[%s7469_s1 + $0x70] sm:$0xff]  }
  0x6b   : > { %5678 = vmatprep.subr.bf16.mxu1 %v6359_v1 }
  0x6c   : > { %5651 = vmatmul.mubr.msk.bf16.vlgmr.msra.gmra.mxu0 %vm229_vm1, %v4709_v41  ;;  %v1895_v41 = vrot.slane %v1893_v36, 1  ;;  %v4947_v36 = vld [vmem:[%s6423_s29 + $0x3c] sm:$0x7] }
  0x6d   : > { %5663 = vmatmul.mubr.msk.bf16.vlgmr.msra.gmra.mxu1 %vm229_vm1, %v1176_v42  ;;  %5667 = vmatpush3.bf16.msra.mxu0 %v6170_v38  ;;  %v6206_v38 = vld [vmem:[%s7469_s1 + $0x40] sm:$0xff]   ;;  %v4816_v42 = vld [vmem:[%s6423_s29 + $0x2c] sm:$0x3] }
  0x6e   : > { %5679 = vmatpush3.bf16.msra.mxu1 %v6171_v43  ;;  %5668 = vmatprep.subr.bf16.mxu0 %v6359_v1  ;;  %v4850_v43 = vld [vmem:[%s6423_s29 + $0x28] sm:$0xf] }
  0x6f   : > { %5680 = vmatprep.subr.bf16.mxu1 %v6359_v1  ;;  %5674 = vmatprep.mubr.msk.bf16.mxu0 %vm6360_vm0, %v6359_v1  ;;  %v4867_v62 = vcombine.low %v4850_v43, %v4851_v59  ;;  %v6251_v59 = vld [vmem:[%s7469_s1 + $0x18] sm:$0xff]  }
  0x70   : > { %5686 = vmatprep.mubr.msk.bf16.mxu1 %vm6360_vm0, %v6359_v1 }
  0x71   : > { %5669 = vmatpush3.bf16.msra.mxu0 %v6172_v45  ;;  %v4825_v45 = vcombine.low %v4815_v30, %v4816_v42 }
  0x72   : > { %5681 = vmatpush3.bf16.msra.mxu1 %v6173_v46  ;;  %5670 = vmatprep.subr.bf16.mxu0 %v6359_v1  ;;  %v1896_v46 = vor.u32 %v1895_v41, %v1891_v40  ;;  %v6242_v40 = vld [vmem:[%s7469_s1 + $0x50] sm:$0xff]  }
  0x73   : > { %5682 = vmatprep.subr.bf16.mxu1 %v6359_v1  ;;  %v6243_v41 = vld [vmem:[%s7469_s1 + $0x70] sm:$0xff]  }
  0x75   : > { %5671 = vmatpush3.bf16.msra.mxu0 %v6174_v47  ;;  %v4852_v47 = vld [vmem:[%s6423_s29 + $0x2c] sm:$0x7] }
  0x76   : > { %5683 = vmatpush3.bf16.msra.mxu1 %v6175_v49  ;;  %5672 = vmatprep.subr.bf16.mxu0 %v6359_v1  ;;  %v4861_v49 = vcombine.low %v4850_v43, %v4852_v47  ;;  %v6244_v47 = vld [vmem:[%s7469_s1 + $0x48] sm:$0xff]  }
  0x77   : > { %5684 = vmatprep.subr.bf16.mxu1 %v6359_v1 }
  0x79   : > { %5673 = vmatpush3.bf16.msra.mxu0 %v6176_v52  ;;  %v6214_v52 = vld [vmem:[%s7469_s1 + $0x28] sm:$0xff]  }
  0x7a   : > { %5685 = vmatpush3.bf16.msra.mxu1 %v6177_v53  ;;  %5690 = vmatprep.subr.bf16.mxu0 %v6359_v1  ;;  %v2009_v53 = vshll.u32 %v4861_v49, 16 }
  0x7b   : > { %5702 = vmatprep.subr.bf16.mxu1 %v6359_v1 }
  0x7c   : > { %5675 = vmatmul.mubr.msk.bf16.vlgmr.msra.gmra.mxu0 %vm229_vm1, %v1292_v56  ;;  %v6217_v56 = vld [vmem:[%s7469_s1] sm:$0xff]  }
  0x7d   : > { %5687 = vmatmul.mubr.msk.bf16.vlgmr.msra.gmra.mxu1 %vm229_vm1, %v4751_v57  ;;  %5691 = vmatpush3.bf16.msra.mxu0 %v6180_v55  ;;  %v6216_v55 = vld [vmem:[%s7469_s1 + $0x20] sm:$0xff]   ;;  %v2007_v57 = vshrl.u32 %v4861_v49, 16 }
  0x7e   : > { %5703 = vmatpush3.bf16.msra.mxu1 %v6181_v58  ;;  %5692 = vmatprep.subr.bf16.mxu0 %v6359_v1  ;;  %v2011_v58 = vrot.slane %v2009_v53, 1  ;;  %v6246_v53 = vld [vmem:[%s7469_s1 + $0x40] sm:$0xff]  }
  0x7f   : > { %5704 = vmatprep.subr.bf16.mxu1 %v6359_v1  ;;  %5698 = vmatprep.mubr.msk.bf16.mxu0 %vm6360_vm0, %v6359_v1 }
  0x80   : > { %5710 = vmatprep.mubr.msk.bf16.mxu1 %vm6360_vm0, %v6359_v1 }
  0x81   : > { %5693 = vmatpush3.bf16.msra.mxu0 %v6182_v61  ;;  %v2012_v61 = vor.u32 %v2011_v58, %v2007_v57  ;;  %v6250_v58 = vld [vmem:[%s7469_s1 + $0x38] sm:$0xff]  }
  0x82   : > { %5705 = vmatpush3.bf16.msra.mxu1 %v6183_v63  ;;  %5694 = vmatprep.subr.bf16.mxu0 %v6359_v1  ;;  %v4889_v63 = vld [vmem:[%s6423_s29 + $0x34] sm:$0x7] }
  0x83   : > { %5706 = vmatprep.subr.bf16.mxu1 %v6359_v1 }
  0x85   : > { %5695 = vmatpush3.bf16.msra.mxu0 %v6184_v2  ;;  %v6221_v2 = vld [vmem:[%s7469_s1 + $0x78] sm:$0xff]  }
  0x86   : > { %5707 = vmatpush3.bf16.msra.mxu1 %v6185_v3  ;;  %5696 = vmatprep.subr.bf16.mxu0 %v6359_v1  ;;  %v6222_v3 = vld [vmem:[%s7469_s1 + $0x50] sm:$0xff]  }
  0x87   : > { %5708 = vmatprep.subr.bf16.mxu1 %v6359_v1 }
  0x89   : > { %5697 = vmatpush3.bf16.msra.mxu0 %v6186_v4  ;;  %v6223_v4 = vld [vmem:[%s7469_s1 + $0x70] sm:$0xff]  }
  0x8a   : > { %5709 = vmatpush3.bf16.msra.mxu1 %v6187_v5  ;;  %5714 = vmatprep.subr.bf16.mxu0 %v6359_v1  ;;  %v4898_v5 = vcombine.low %v4873_v60, %v4889_v63 }
  0x8b   : > { %5726 = vmatprep.subr.bf16.mxu1 %v6359_v1 }
  0x8c   : > { %5699 = vmatmul.mubr.msk.bf16.vlgmr.msra.gmra.mxu0 %vm229_vm1, %v4767_v10  ;;  %v2253_v8 = vshll.u32 %v4898_v5, 16  ;;  %v6227_v10 = vld [vmem:[%s7469_s1 + $0x60] sm:$0xff]  }
  0x8d   : > { %5711 = vmatmul.mubr.msk.bf16.vlgmr.msra.gmra.mxu1 %vm229_vm1, %v1536_v11  ;;  %5715 = vmatpush3.bf16.msra.mxu0 %v6190_v9  ;;  %v6226_v9 = vld [vmem:[%s7469_s1 + $0x40] sm:$0xff]   ;;  %v4874_v11 = vld [vmem:[%s6423_s29 + $0x34] sm:$0x3] }
  0x8e   : > { %5727 = vmatpush3.bf16.msra.mxu1 %v6191_v12  ;;  %5716 = vmatprep.subr.bf16.mxu0 %v6359_v1  ;;  %v2251_v12 = vshrl.u32 %v4898_v5, 16  ;;  %v2255_v13 = vrot.slane %v2253_v8, 1  ;;  %v4883_v16 = vcombine.low %v4873_v60, %v4874_v11  ;;  %v6976_v60 = vld [vmem:[%s6423_s29 + $0x38] sm:$0xf]  ;;  %v6253_v5 = vld [vmem:[%s7469_s1 + $0x10] sm:$0xff]  }
  0x8f   : > { %5728 = vmatprep.subr.bf16.mxu1 %v6359_v1  ;;  %5722 = vmatprep.mubr.msk.bf16.mxu0 %vm6360_vm0, %v6359_v1 }
  0x90   : > { %5734 = vmatprep.mubr.msk.bf16.mxu1 %vm6360_vm0, %v6359_v1 }
  0x91   : > { %5717 = vmatpush3.bf16.msra.mxu0 %v6192_v15  ;;  %v4908_v15 = vld [vmem:[%s6423_s29 + $0x30] sm:$0xf] }
  0x92   : > { %5729 = vmatpush3.bf16.msra.mxu1 %v6193_v17  ;;  %5718 = vmatprep.subr.bf16.mxu0 %v6359_v1  ;;  %v2256_v17 = vor.u32 %v2255_v13, %v2251_v12 }
  0x93   : > { %5730 = vmatprep.subr.bf16.mxu1 %v6359_v1 }
  0x95   : > { %5719 = vmatpush3.bf16.msra.mxu0 %v6194_v19  ;;  %v6231_v19 = vld [vmem:[%s7469_s1 + $0x18] sm:$0xff]  }
  0x96   : > { %5731 = vmatpush3.bf16.msra.mxu1 %v6195_v20  ;;  %5720 = vmatprep.subr.bf16.mxu0 %v6359_v1  ;;  %v6232_v20 = vld [vmem:[%s7469_s1 + $0x30] sm:$0xff]  }
  0x97   : > { %5732 = vmatprep.subr.bf16.mxu1 %v6359_v1 }
  0x99   : > { %5721 = vmatpush3.bf16.msra.mxu0 %v6196_v21  ;;  %v6233_v21 = vld [vmem:[%s7469_s1 + $0x10] sm:$0xff]  }
  0x9a   : > { %5733 = vmatpush3.bf16.msra.mxu1 %v6197_v22  ;;  %5738 = vmatprep.subr.bf16.mxu0 %v6359_v1  ;;  %v4919_v22 = vcombine.low %v4908_v15, %v4910_v18 }
  0x9b   : > { %5750 = vmatprep.subr.bf16.mxu1 %v6359_v1 }
  0x9c   : > { %5723 = vmatmul.mubr.msk.bf16.vlgmr.msra.gmra.mxu0 %vm229_vm1, %v1652_v27  ;;  %v2369_v25 = vshll.u32 %v4919_v22, 16  ;;  %v6237_v27 = vld [vmem:[%s7469_s1] sm:$0xff]  }
  0x9d   : > { %5735 = vmatmul.mubr.msk.bf16.vlgmr.msra.gmra.mxu1 %vm229_vm1, %v4809_v28  ;;  %5739 = vmatpush3.bf16.msra.mxu0 %v6200_v26  ;;  %v6236_v26 = vld [vmem:[%s7469_s1 + $0x20] sm:$0xff]   ;;  %v4909_v28 = vld [vmem:[%s6423_s29 + $0x34] sm:$0x3] }
  0x9e   : > { %5751 = vmatpush3.bf16.msra.mxu1 %v6201_v29  ;;  %5740 = vmatprep.subr.bf16.mxu0 %v6359_v1  ;;  %v2367_v29 = vshrl.u32 %v4919_v22, 16  ;;  %v2371_v30 = vrot.slane %v2369_v25, 1  ;;  %v4925_v32 = vcombine.low %v4908_v15, %v4909_v28  ;;  %v4967_v28 = vld [vmem:[%s6423_s29 + $0x3c] sm:$0x3] }
  0x9f   : > { %5752 = vmatprep.subr.bf16.mxu1 %v6359_v1  ;;  %5746 = vmatprep.mubr.msk.bf16.mxu0 %vm6360_vm0, %v6359_v1 }
  0xa0   : > { %5758 = vmatprep.mubr.msk.bf16.mxu1 %vm6360_vm0, %v6359_v1  ;;  %v2372_v31 = vor.u32 %v2371_v30, %v2367_v29 }
  0xa1   : > { %5741 = vmatpush3.bf16.msra.mxu0 %v6202_v33  ;;  %v6240_v33 = vld [vmem:[%s7469_s1 + $0x58] sm:$0xff]  }
  0xa2   : > { %5753 = vmatpush3.bf16.msra.mxu1 %v6203_v34  ;;  %5742 = vmatprep.subr.bf16.mxu0 %v6359_v1  ;;  %v6241_v34 = vld [vmem:[%s7469_s1 + $0x78] sm:$0xff]  }
  0xa3   : > { %5754 = vmatprep.subr.bf16.mxu1 %v6359_v1 }
  0xa5   : > { %5743 = vmatpush3.bf16.msra.mxu0 %v6204_v35  ;;  %v4931_v35 = vld [vmem:[%s6423_s29 + $0x38] sm:$0xf] }
  0xa6   : > { %5755 = vmatpush3.bf16.msra.mxu1 %v6205_v37  ;;  %5744 = vmatprep.subr.bf16.mxu0 %v6359_v1 }
  0xa7   : > { %5756 = vmatprep.subr.bf16.mxu1 %v6359_v1 }
  0xa9   : > { %5745 = vmatpush3.bf16.msra.mxu0 %v6206_v38 }
  0xaa   : > { %5757 = vmatpush3.bf16.msra.mxu1 %v6207_v39  ;;  %5762 = vmatprep.subr.bf16.mxu0 %v6359_v1  ;;  %v4956_v39 = vcombine.low %v4931_v35, %v4947_v36  ;;  %v5005_v36 = vld [vmem:[%s6423_s29 + $0x44] sm:$0x7] }
  0xab   : > { %5774 = vmatprep.subr.bf16.mxu1 %v6359_v1 }
  0xac   : > { %5747 = vmatmul.mubr.msk.bf16.vlgmr.msra.gmra.mxu0 %vm229_vm1, %v4825_v45 }
  0xad   : > { %5759 = vmatmul.mubr.msk.bf16.vlgmr.msra.gmra.mxu1 %vm229_vm1, %v1896_v46  ;;  %5763 = vmatpush3.bf16.msra.mxu0 %v6210_v44  ;;  %v2613_v46 = vshll.u32 %v4956_v39, 16 }
  0xae   : > { %5775 = vmatpush3.bf16.msra.mxu1 %v6211_v48  ;;  %5764 = vmatprep.subr.bf16.mxu0 %v6359_v1  ;;  %v6245_v48 = vld [vmem:[%s7469_s1 + $0x68] sm:$0xff]  }
  0xaf   : > { %5776 = vmatprep.subr.bf16.mxu1 %v6359_v1  ;;  %5770 = vmatprep.mubr.msk.bf16.mxu0 %vm6360_vm0, %v6359_v1 }
  0xb0   : > { %5782 = vmatprep.mubr.msk.bf16.mxu1 %vm6360_vm0, %v6359_v1 }
  0xb1   : > { %5765 = vmatpush3.bf16.msra.mxu0 %v6212_v50 }
  0xb2   : > { %5777 = vmatpush3.bf16.msra.mxu1 %v6213_v51  ;;  %5766 = vmatprep.subr.bf16.mxu0 %v6359_v1  ;;  %v2611_v51 = vshrl.u32 %v4956_v39, 16 }
  0xb3   : > { %5778 = vmatprep.subr.bf16.mxu1 %v6359_v1 }
  0xb5   : > { %5767 = vmatpush3.bf16.msra.mxu0 %v6214_v52  ;;  %v2615_v52 = vrot.slane %v2613_v46, 1 }
  0xb6   : > { %5779 = vmatpush3.bf16.msra.mxu1 %v6215_v54  ;;  %5768 = vmatprep.subr.bf16.mxu0 %v6359_v1  ;;  %v6247_v54 = vld [vmem:[%s7469_s1 + $0x60] sm:$0xff]  }
  0xb7   : > { %5780 = vmatprep.subr.bf16.mxu1 %v6359_v1  ;;  %v2616_v57 = vor.u32 %v2615_v52, %v2611_v51 }
  0xb9   : > { %5769 = vmatpush3.bf16.msra.mxu0 %v6216_v55  ;;  %v4932_v55 = vld [vmem:[%s6423_s29 + $0x3c] sm:$0x3] }
  0xba   : > { %5781 = vmatpush3.bf16.msra.mxu1 %v6217_v56  ;;  %5786 = vmatprep.subr.bf16.mxu0 %v6359_v1  ;;  %v4941_v56 = vcombine.low %v4931_v35, %v4932_v55  ;;  %v4989_v35 = vld [vmem:[%s6423_s29 + $0x40] sm:$0xf]  ;;  %v4990_v55 = vld [vmem:[%s6423_s29 + $0x44] sm:$0x3] }
  0xbb   : > { %5798 = vmatprep.subr.bf16.mxu1 %v6359_v1  ;;  %v5014_v39 = vcombine.low %v4989_v35, %v5005_v36  ;;  %v5063_v36 = vld [vmem:[%s6423_s29 + $0x4c] sm:$0x7] }
  0xbc   : > { %5771 = vmatmul.mubr.msk.bf16.vlgmr.msra.gmra.mxu0 %vm229_vm1, %v2012_v61  ;;  %v4968_v61 = vld [vmem:[%s6423_s29 + $0x3c] sm:$0x7] }
  0xbd   : > { %5783 = vmatmul.mubr.msk.bf16.vlgmr.msra.gmra.mxu1 %vm229_vm1, %v4867_v62  ;;  %5787 = vmatpush3.bf16.msra.mxu0 %v6220_v0  ;;  %v2973_v46 = vshll.u32 %v5014_v39, 16  ;;  %v2971_v51 = vshrl.u32 %v5014_v39, 16 }
  0xbe   : > { %5799 = vmatpush3.bf16.msra.mxu1 %v6221_v2  ;;  %5788 = vmatprep.subr.bf16.mxu0 %v6359_v1  ;;  %v4977_v2 = vcombine.low %v6976_v60, %v4968_v61  ;;  %v5026_v61 = vld [vmem:[%s6423_s29 + $0x44] sm:$0x7] }
  0xbf   : > { %5800 = vmatprep.subr.bf16.mxu1 %v6359_v1  ;;  %5794 = vmatprep.mubr.msk.bf16.mxu0 %vm6360_vm0, %v6359_v1  ;;  %v2975_v52 = vrot.slane %v2973_v46, 1 }
  0xc0   : > { %5806 = vmatprep.mubr.msk.bf16.mxu1 %vm6360_vm0, %v6359_v1  ;;  %v2729_v13 = vshll.u32 %v4977_v2, 16  ;;  %v2727_v22 = vshrl.u32 %v4977_v2, 16 }
  0xc1   : > { %5789 = vmatpush3.bf16.msra.mxu0 %v6222_v3 }
  0xc2   : > { %5801 = vmatpush3.bf16.msra.mxu1 %v6223_v4  ;;  %5790 = vmatprep.subr.bf16.mxu0 %v6359_v1  ;;  %v6252_v4 = vld [vmem:[%s7469_s1 + $0x30] sm:$0xff]  }
  0xc3   : > { %5802 = vmatprep.subr.bf16.mxu1 %v6359_v1 }
  0xc5   : > { %5791 = vmatpush3.bf16.msra.mxu0 %v6224_v6  ;;  %v6993_v6 = vld [vmem:[%s7470_s2] ss:$0 sm:$0xff] }
  0xc6   : > { %5803 = vmatpush3.bf16.msra.mxu1 %v6225_v7  ;;  %5792 = vmatprep.subr.bf16.mxu0 %v6359_v1 }
  0xc7   : > { %5804 = vmatprep.subr.bf16.mxu1 %v6359_v1 }
  0xc9   : > { %5793 = vmatpush3.bf16.msra.mxu0 %v6226_v9 }
  0xca   : > { %5805 = vmatpush3.bf16.msra.mxu1 %v6227_v10  ;;  %5810 = vmatprep.subr.bf16.mxu0 %v6359_v1 }
  0xcb   : > { %5822 = vmatprep.subr.bf16.mxu1 %v6359_v1 }
  0xcc   : > { %5795 = vmatmul.mubr.msk.bf16.vlgmr.msra.gmra.mxu0 %vm229_vm1, %v4883_v16  ;;  %v6254_v16 = vld [vmem:[%s7469_s1 + $0x28] sm:$0xff]  }
  0xcd   : > { %5807 = vmatmul.mubr.msk.bf16.vlgmr.msra.gmra.mxu1 %vm229_vm1, %v2256_v17  ;;  %5811 = vmatpush3.bf16.msra.mxu0 %v6230_v14  ;;  %v6255_v17 = vld [vmem:[%s7469_s1 + $0x8] sm:$0xff]  }
  0xce   : > { %5823 = vmatpush3.bf16.msra.mxu1 %v6231_v19  ;;  %5812 = vmatprep.subr.bf16.mxu0 %v6359_v1 }
  0xcf   : > { %5824 = vmatprep.subr.bf16.mxu1 %v6359_v1  ;;  %5818 = vmatprep.mubr.msk.bf16.mxu0 %vm6360_vm0, %v6359_v1 }
  0xd0   : > { %5830 = vmatprep.mubr.msk.bf16.mxu1 %vm6360_vm0, %v6359_v1 }
  0xd1   : > { %5813 = vmatpush3.bf16.msra.mxu0 %v6232_v20 }
  0xd2   : > { %5825 = vmatpush3.bf16.msra.mxu1 %v6233_v21  ;;  %5814 = vmatprep.subr.bf16.mxu0 %v6359_v1 }
  0xd3   : > { %5826 = vmatprep.subr.bf16.mxu1 %v6359_v1 }
  0xd5   : > { %5815 = vmatpush3.bf16.msra.mxu0 %v6234_v23  ;;  %v2731_v23 = vrot.slane %v2729_v13, 1 }
  0xd6   : > { %5827 = vmatpush3.bf16.msra.mxu1 %v6235_v24  ;;  %5816 = vmatprep.subr.bf16.mxu0 %v6359_v1 }
  0xd7   : > { %5828 = vmatprep.subr.bf16.mxu1 %v6359_v1  ;;  %v2732_v30 = vor.u32 %v2731_v23, %v2727_v22 }
  0xd9   : > { %5817 = vmatpush3.bf16.msra.mxu0 %v6236_v26  ;;  %v6256_v26 = vld [vmem:[%s7469_s1 + $0x20] sm:$0xff]  }
  0xda   : > { %5829 = vmatpush3.bf16.msra.mxu1 %v6237_v27  ;;  %5834 = vmatprep.subr.bf16.mxu0 %v6359_v1  ;;  %v6257_v27 = vld [vmem:[%s7469_s1] sm:$0xff]  }
  0xdb   : > { %5846 = vmatprep.subr.bf16.mxu1 %v6359_v1 }
  0xdc   : > { %v267_v37 = vpop.f32.mrf.mxu0  ;;  %5819 = vmatmul.mubr.msk.bf16.vlgmr.msra.gmra.mxu0 %vm229_vm1, %v2372_v31  ;;  %v4983_v31 = vcombine.low %v6976_v60, %v4967_v28  ;;  %v7077_v60 = vld [vmem:[%s6423_s29 + $0x40] sm:$0xf]  ;;  %v5025_v28 = vld [vmem:[%s6423_s29 + $0x44] sm:$0x3] }
  0xdd   : > { %v338_v38 = vpop.f32.mrf.mxu1  ;;  %5831 = vmatmul.mubr.msk.bf16.vlgmr.msra.gmra.mxu1 %vm229_vm1, %v4925_v32  ;;  %5835 = vmatpush3.bf16.msra.mxu0 %v6240_v33  ;;  %v6260_v32 = vld [vmem:[%s7469_s1 + $0x58] sm:$0xff]   ;;  %v5035_v2 = vcombine.low %v7077_v60, %v5026_v61  ;;  %v5084_v61 = vld [vmem:[%s6423_s29 + $0x4c] sm:$0x7] }
  0xde   : > { %5847 = vmatpush3.bf16.msra.mxu1 %v6241_v34  ;;  %v5532_v42 = vpop.f32.mrf.mxu0  ;;  %5836 = vmatprep.subr.bf16.mxu0 %v6359_v1  ;;  %v339_v62 = vadd.f32 %v338_v38, %v267_v37  ;;  %v6261_v34 = vld [vmem:[%s7469_s1 + $0x78] sm:$0xff]  }
  0xdf   : > { %v5544_v43 = vpop.f32.mrf.mxu1  ;;  %5848 = vmatprep.subr.bf16.mxu1 %v6359_v1  ;;  %5842 = vmatprep.mubr.msk.bf16.mxu0 %vm6360_vm0, %v6359_v1  ;;  %v3089_v13 = vshll.u32 %v5035_v2, 16  ;;  %v3087_v22 = vshrl.u32 %v5035_v2, 16 }
  0xe0   : > { %5854 = vmatprep.mubr.msk.bf16.mxu1 %vm6360_vm0, %v6359_v1  ;;  %v270_v44 = vpop.f32.mrf.mxu0 }
  0xe1   : > { %v341_v45 = vpop.f32.mrf.mxu1  ;;  %5837 = vmatpush3.bf16.msra.mxu0 %v6242_v40  ;;  %v6262_v40 = vld [vmem:[%s7469_s1 + $0x50] sm:$0xff]   ;;  %v3091_v23 = vrot.slane %v3089_v13, 1 }
  0xe2   : > { %5849 = vmatpush3.bf16.msra.mxu1 %v6243_v41  ;;  %v5533_v49 = vpop.f32.mrf.mxu0  ;;  %5838 = vmatprep.subr.bf16.mxu0 %v6359_v1  ;;  %v342_v9 = vadd.f32 %v341_v45, %v270_v44  ;;  %v6263_v41 = vld [vmem:[%s7469_s1 + $0x70] sm:$0xff]  }
  0xe3   : > { %v5545_v50 = vpop.f32.mrf.mxu1  ;;  %5850 = vmatprep.subr.bf16.mxu1 %v6359_v1 }
  0xe5   : > { %5839 = vmatpush3.bf16.msra.mxu0 %v6244_v47  ;;  %v6264_v47 = vld [vmem:[%s7469_s1 + $0x48] sm:$0xff]  }
  0xe6   : > { %5851 = vmatpush3.bf16.msra.mxu1 %v6245_v48  ;;  %5840 = vmatprep.subr.bf16.mxu0 %v6359_v1  ;;  %v6265_v48 = vld [vmem:[%s7469_s1 + $0x68] sm:$0xff]  }
  0xe7   : > { %5852 = vmatprep.subr.bf16.mxu1 %v6359_v1 }
  0xe9   : > { %5841 = vmatpush3.bf16.msra.mxu0 %v6246_v53  ;;  %v6266_v53 = vld [vmem:[%s7469_s1 + $0x40] sm:$0xff]  }
  0xea   : > { %5853 = vmatpush3.bf16.msra.mxu1 %v6247_v54  ;;  %5858 = vmatprep.subr.bf16.mxu0 %v6359_v1  ;;  %v6267_v54 = vld [vmem:[%s7469_s1 + $0x60] sm:$0xff]  }
  0xeb   : > { %5870 = vmatprep.subr.bf16.mxu1 %v6359_v1 }
  0xec   : > { %v423_v63 = vpop.f32.mrf.mxu0  ;;  %5843 = vmatmul.mubr.msk.bf16.vlgmr.msra.gmra.mxu0 %vm229_vm1, %v4941_v56  ;;  %v4999_v56 = vcombine.low %v4989_v35, %v4990_v55  ;;  %v5047_v35 = vld [vmem:[%s6423_s29 + $0x48] sm:$0xf]  ;;  %v5048_v55 = vld [vmem:[%s6423_s29 + $0x4c] sm:$0x3] }
  0xed   : > { %v513_v0 = vpop.f32.mrf.mxu1  ;;  %5855 = vmatmul.mubr.msk.bf16.vlgmr.msra.gmra.mxu1 %vm229_vm1, %v2616_v57  ;;  %v430_v3 = vadd.f32 %v423_v63, %v339_v62  ;;  %5859 = vmatpush3.bf16.msra.mxu0 %v6250_v58  ;;  %v2976_v57 = vor.u32 %v2975_v52, %v2971_v51  ;;  %v6270_v58 = vld [vmem:[%s7469_s1 + $0x38] sm:$0xff]   ;;  %v5072_v39 = vcombine.low %v5047_v35, %v5063_v36  ;;  %v5121_v36 = vld [vmem:[%s6423_s29 + $0x54] sm:$0x7] }
  0xee   : > { %5871 = vmatpush3.bf16.msra.mxu1 %v6251_v59  ;;  %v5556_v7 = vpop.f32.mrf.mxu0  ;;  %5860 = vmatprep.subr.bf16.mxu0 %v6359_v1  ;;  %v6271_v59 = vld [vmem:[%s7469_s1 + $0x18] sm:$0xff]  }
  0xef   : > { %v5568_v8 = vpop.f32.mrf.mxu1  ;;  %5872 = vmatprep.subr.bf16.mxu1 %v6359_v1  ;;  %v520_v10 = vadd.f32 %v513_v0, %v430_v3  ;;  %5866 = vmatprep.mubr.msk.bf16.mxu0 %vm6360_vm0, %v6359_v1  ;;  %v3333_v46 = vshll.u32 %v5072_v39, 16  ;;  %v3331_v51 = vshrl.u32 %v5072_v39, 16 }
  0xf0   : > { %5878 = vmatprep.mubr.msk.bf16.mxu1 %vm6360_vm0, %v6359_v1  ;;  %v426_v11 = vpop.f32.mrf.mxu0 }
  0xf1   : > { %v516_v12 = vpop.f32.mrf.mxu1  ;;  %v528_v14 = vadd.f32 %v6993_v6, %v520_v10  ;;  %v431_v15 = vadd.f32 %v426_v11, %v342_v9  ;;  %5861 = vmatpush3.bf16.msra.mxu0 %v6252_v4  ;;  %v6272_v4 = vld [vmem:[%s7469_s1 + $0x30] sm:$0xff]   ;;  %v3335_v52 = vrot.slane %v3333_v46, 1 }
  0xf2   : > { %5873 = vmatpush3.bf16.msra.mxu1 %v6253_v5  ;;  %v5557_v18 = vpop.f32.mrf.mxu0  ;;  %5862 = vmatprep.subr.bf16.mxu0 %v6359_v1  ;;  %v6273_v5 = vld [vmem:[%s7469_s1 + $0x10] sm:$0xff]  }
  0xf3   : > { %v5569_v19 = vpop.f32.mrf.mxu1  ;;  %5874 = vmatprep.subr.bf16.mxu1 %v6359_v1  ;;  %v530_v20 = vmax.f32 %v528_v14, 0.0  ;;  %v521_v21 = vadd.f32 %v516_v12, %v431_v15 }
  0xf5   : > { %v5258_v24 = vpack.c.bf16 %v530_v20, %v530_v20  ;;  %v529_v25 = vadd.f32 %v6993_v6, %v521_v21  ;;  %5863 = vmatpush3.bf16.msra.mxu0 %v6254_v16  ;;  %v6274_v16 = vld [vmem:[%s7469_s1 + $0x28] sm:$0xff]  }
  0xf6   : > { %5875 = vmatpush3.bf16.msra.mxu1 %v6255_v17  ;;  %5864 = vmatprep.subr.bf16.mxu0 %v6359_v1  ;;  %v6275_v17 = vld [vmem:[%s7469_s1 + $0x8] sm:$0xff]  }
  0xf7   : > { %5876 = vmatprep.subr.bf16.mxu1 %v6359_v1  ;;  %540 = vst [vmem:[%s7014_s17] sm:$0xf] %v5258_v24  ;;  %v531_v29 = vmax.f32 %v529_v25, 0.0 }
  0xf9   : > { %v5259_v33 = vpack.c.bf16 %v531_v29, %v531_v29  ;;  %5865 = vmatpush3.bf16.msra.mxu0 %v6256_v26  ;;  %v6276_v26 = vld [vmem:[%s7469_s1 + $0x20] sm:$0xff]  }
  0xfa   : > { %5877 = vmatpush3.bf16.msra.mxu1 %v6257_v27  ;;  %5882 = vmatprep.subr.bf16.mxu0 %v6359_v1  ;;  %v6277_v27 = vld [vmem:[%s7469_s1] sm:$0xff]  }
  0xfb   : > { %5894 = vmatprep.subr.bf16.mxu1 %v6359_v1  ;;  %541 = vst [vmem:[%s7014_s17 + $0x4] sm:$0x3] %v5259_v33 }
  0xfc   : > { %v634_v37 = vpop.f32.mrf.mxu0  ;;  %5867 = vmatmul.mubr.msk.bf16.vlgmr.msra.gmra.mxu0 %vm229_vm1, %v2732_v30  ;;  %v3092_v30 = vor.u32 %v3091_v23, %v3087_v22 }
  0xfd   : > { %v705_v38 = vpop.f32.mrf.mxu1  ;;  %5879 = vmatmul.mubr.msk.bf16.vlgmr.msra.gmra.mxu1 %vm229_vm1, %v4983_v31  ;;  %5883 = vmatpush3.bf16.msra.mxu0 %v6260_v32  ;;  %v5041_v31 = vcombine.low %v7077_v60, %v5025_v28  ;;  %v6280_v32 = vld [vmem:[%s7469_s1 + $0x58] sm:$0xff]   ;;  %v7167_v60 = vld [vmem:[%s6423_s29 + $0x48] sm:$0xf]  ;;  %v5083_v28 = vld [vmem:[%s6423_s29 + $0x4c] sm:$0x3] }
  0xfe   : > { %5895 = vmatpush3.bf16.msra.mxu1 %v6261_v34  ;;  %v5580_v42 = vpop.f32.mrf.mxu0  ;;  %5884 = vmatprep.subr.bf16.mxu0 %v6359_v1  ;;  %v706_v62 = vadd.f32 %v705_v38, %v634_v37  ;;  %v6281_v34 = vld [vmem:[%s7469_s1 + $0x78] sm:$0xff]   ;;  %v5093_v2 = vcombine.low %v7167_v60, %v5084_v61  ;;  %v5142_v61 = vld [vmem:[%s6423_s29 + $0x54] sm:$0x7] }
  0xff   : > { %v5592_v43 = vpop.f32.mrf.mxu1  ;;  %5896 = vmatprep.subr.bf16.mxu1 %v6359_v1  ;;  %5890 = vmatprep.mubr.msk.bf16.mxu0 %vm6360_vm0, %v6359_v1 }
 0x100   : > { %5902 = vmatprep.mubr.msk.bf16.mxu1 %vm6360_vm0, %v6359_v1  ;;  %v637_v44 = vpop.f32.mrf.mxu0  ;;  %v3449_v13 = vshll.u32 %v5093_v2, 16  ;;  %v3447_v22 = vshrl.u32 %v5093_v2, 16 }
 0x101   : > { %v708_v45 = vpop.f32.mrf.mxu1  ;;  %5885 = vmatpush3.bf16.msra.mxu0 %v6262_v40  ;;  %v6282_v40 = vld [vmem:[%s7469_s1 + $0x50] sm:$0xff]  }
 0x102   : > { %5897 = vmatpush3.bf16.msra.mxu1 %v6263_v41  ;;  %v5581_v49 = vpop.f32.mrf.mxu0  ;;  %5886 = vmatprep.subr.bf16.mxu0 %v6359_v1  ;;  %v709_v9 = vadd.f32 %v708_v45, %v637_v44  ;;  %v6283_v41 = vld [vmem:[%s7469_s1 + $0x70] sm:$0xff]   ;;  %v3451_v23 = vrot.slane %v3449_v13, 1 }
 0x103   : > { %v5593_v50 = vpop.f32.mrf.mxu1  ;;  %5898 = vmatprep.subr.bf16.mxu1 %v6359_v1 }
 0x105   : > { %5887 = vmatpush3.bf16.msra.mxu0 %v6264_v47  ;;  %v6284_v47 = vld [vmem:[%s7469_s1 + $0x48] sm:$0xff]  }
 0x106   : > { %5899 = vmatpush3.bf16.msra.mxu1 %v6265_v48  ;;  %5888 = vmatprep.subr.bf16.mxu0 %v6359_v1  ;;  %v6285_v48 = vld [vmem:[%s7469_s1 + $0x68] sm:$0xff]  }
 0x107   : > { %5900 = vmatprep.subr.bf16.mxu1 %v6359_v1 }
 0x109   : > { %5889 = vmatpush3.bf16.msra.mxu0 %v6266_v53  ;;  %v6286_v53 = vld [vmem:[%s7469_s1 + $0x40] sm:$0xff]  }
 0x10a   : > { %5901 = vmatpush3.bf16.msra.mxu1 %v6267_v54  ;;  %5906 = vmatprep.subr.bf16.mxu0 %v6359_v1  ;;  %v6287_v54 = vld [vmem:[%s7469_s1 + $0x60] sm:$0xff]  }
 0x10b   : > { %5918 = vmatprep.subr.bf16.mxu1 %v6359_v1 }
 0x10c   : > { %v789_v63 = vpop.f32.mrf.mxu0  ;;  %5891 = vmatmul.mubr.msk.bf16.vlgmr.msra.gmra.mxu0 %vm229_vm1, %v4999_v56  ;;  %v5057_v56 = vcombine.low %v5047_v35, %v5048_v55  ;;  %v5105_v35 = vld [vmem:[%s6423_s29 + $0x50] sm:$0xf]  ;;  %v5106_v55 = vld [vmem:[%s6423_s29 + $0x54] sm:$0x3] }
 0x10d   : > { %v878_v0 = vpop.f32.mrf.mxu1  ;;  %5903 = vmatmul.mubr.msk.bf16.vlgmr.msra.gmra.mxu1 %vm229_vm1, %v2976_v57  ;;  %v796_v3 = vadd.f32 %v789_v63, %v706_v62  ;;  %5907 = vmatpush3.bf16.msra.mxu0 %v6270_v58  ;;  %v3336_v57 = vor.u32 %v3335_v52, %v3331_v51  ;;  %v6290_v58 = vld [vmem:[%s7469_s1 + $0x38] sm:$0xff]   ;;  %v5130_v39 = vcombine.low %v5105_v35, %v5121_v36 }
 0x10e   : > { %5919 = vmatpush3.bf16.msra.mxu1 %v6271_v59  ;;  %v5604_v7 = vpop.f32.mrf.mxu0  ;;  %5908 = vmatprep.subr.bf16.mxu0 %v6359_v1  ;;  %v6291_v59 = vld [vmem:[%s7469_s1 + $0x18] sm:$0xff]  }
 0x10f   : > { %v5616_v8 = vpop.f32.mrf.mxu1  ;;  %5920 = vmatprep.subr.bf16.mxu1 %v6359_v1  ;;  %v885_v10 = vadd.f32 %v878_v0, %v796_v3  ;;  %5914 = vmatprep.mubr.msk.bf16.mxu0 %vm6360_vm0, %v6359_v1  ;;  %v3693_v46 = vshll.u32 %v5130_v39, 16  ;;  %v3691_v51 = vshrl.u32 %v5130_v39, 16  ;;  %v5179_v36 = vld [vmem:[%s6423_s29 + $0x5c] sm:$0x7] }
 0x110   : > { %5926 = vmatprep.mubr.msk.bf16.mxu1 %vm6360_vm0, %v6359_v1  ;;  %v792_v11 = vpop.f32.mrf.mxu0 }
 0x111   : > { %v881_v12 = vpop.f32.mrf.mxu1  ;;  %v887_v14 = vadd.f32 %v6993_v6, %v885_v10  ;;  %v797_v15 = vadd.f32 %v792_v11, %v709_v9  ;;  %5909 = vmatpush3.bf16.msra.mxu0 %v6272_v4  ;;  %v6292_v4 = vld [vmem:[%s7469_s1 + $0x30] sm:$0xff]   ;;  %v3695_v52 = vrot.slane %v3693_v46, 1 }
 0x112   : > { %5921 = vmatpush3.bf16.msra.mxu1 %v6273_v5  ;;  %v5605_v18 = vpop.f32.mrf.mxu0  ;;  %5910 = vmatprep.subr.bf16.mxu0 %v6359_v1  ;;  %v6293_v5 = vld [vmem:[%s7469_s1 + $0x10] sm:$0xff]  }
 0x113   : > { %v5617_v19 = vpop.f32.mrf.mxu1  ;;  %5922 = vmatprep.subr.bf16.mxu1 %v6359_v1  ;;  %v889_v20 = vmax.f32 %v887_v14, 0.0  ;;  %v886_v21 = vadd.f32 %v881_v12, %v797_v15 }
 0x115   : > { %v5260_v24 = vpack.c.bf16 %v889_v20, %v889_v20  ;;  %v888_v25 = vadd.f32 %v6993_v6, %v886_v21  ;;  %5911 = vmatpush3.bf16.msra.mxu0 %v6274_v16  ;;  %v6294_v16 = vld [vmem:[%s7469_s1 + $0x28] sm:$0xff]  }
 0x116   : > { %5923 = vmatpush3.bf16.msra.mxu1 %v6275_v17  ;;  %5912 = vmatprep.subr.bf16.mxu0 %v6359_v1  ;;  %v6295_v17 = vld [vmem:[%s7469_s1 + $0x8] sm:$0xff]  }
 0x117   : > { %5924 = vmatprep.subr.bf16.mxu1 %v6359_v1  ;;  %4674 = vst [vmem:[%s7014_s17 + $0x8] sm:$0xf] %v5260_v24  ;;  %v890_v29 = vmax.f32 %v888_v25, 0.0 }
 0x119   : > { %v5261_v33 = vpack.c.bf16 %v890_v29, %v890_v29  ;;  %5913 = vmatpush3.bf16.msra.mxu0 %v6276_v26  ;;  %v6296_v26 = vld [vmem:[%s7469_s1 + $0x20] sm:$0xff]  }
 0x11a   : > { %5925 = vmatpush3.bf16.msra.mxu1 %v6277_v27  ;;  %5930 = vmatprep.subr.bf16.mxu0 %v6359_v1  ;;  %v6297_v27 = vld [vmem:[%s7469_s1] sm:$0xff]  }
 0x11b   : > { %5942 = vmatprep.subr.bf16.mxu1 %v6359_v1  ;;  %4675 = vst [vmem:[%s7014_s17 + $0xc] sm:$0x3] %v5261_v33 }
 0x11c   : > { %v994_v37 = vpop.f32.mrf.mxu0  ;;  %5915 = vmatmul.mubr.msk.bf16.vlgmr.msra.gmra.mxu0 %vm229_vm1, %v3092_v30  ;;  %v3452_v30 = vor.u32 %v3451_v23, %v3447_v22 }
 0x11d   : > { %v1065_v38 = vpop.f32.mrf.mxu1  ;;  %5927 = vmatmul.mubr.msk.bf16.vlgmr.msra.gmra.mxu1 %vm229_vm1, %v5041_v31  ;;  %5931 = vmatpush3.bf16.msra.mxu0 %v6280_v32  ;;  %v5099_v31 = vcombine.low %v7167_v60, %v5083_v28  ;;  %v6300_v32 = vld [vmem:[%s7469_s1 + $0x58] sm:$0xff]   ;;  %v7257_v60 = vld [vmem:[%s6423_s29 + $0x50] sm:$0xf]  ;;  %v5141_v28 = vld [vmem:[%s6423_s29 + $0x54] sm:$0x3] }
 0x11e   : > { %5943 = vmatpush3.bf16.msra.mxu1 %v6281_v34  ;;  %v5628_v42 = vpop.f32.mrf.mxu0  ;;  %5932 = vmatprep.subr.bf16.mxu0 %v6359_v1  ;;  %v1066_v62 = vadd.f32 %v1065_v38, %v994_v37  ;;  %v6301_v34 = vld [vmem:[%s7469_s1 + $0x78] sm:$0xff]   ;;  %v5151_v2 = vcombine.low %v7257_v60, %v5142_v61 }
 0x11f   : > { %v5640_v43 = vpop.f32.mrf.mxu1  ;;  %5944 = vmatprep.subr.bf16.mxu1 %v6359_v1  ;;  %5938 = vmatprep.mubr.msk.bf16.mxu0 %vm6360_vm0, %v6359_v1  ;;  %v5200_v61 = vld [vmem:[%s6423_s29 + $0x5c] sm:$0x7] }
 0x120   : > { %5950 = vmatprep.mubr.msk.bf16.mxu1 %vm6360_vm0, %v6359_v1  ;;  %v997_v44 = vpop.f32.mrf.mxu0  ;;  %v3809_v13 = vshll.u32 %v5151_v2, 16  ;;  %v3807_v22 = vshrl.u32 %v5151_v2, 16 }
 0x121   : > { %v1068_v45 = vpop.f32.mrf.mxu1  ;;  %5933 = vmatpush3.bf16.msra.mxu0 %v6282_v40  ;;  %v6302_v40 = vld [vmem:[%s7469_s1 + $0x50] sm:$0xff]  }
 0x122   : > { %5945 = vmatpush3.bf16.msra.mxu1 %v6283_v41  ;;  %v5629_v49 = vpop.f32.mrf.mxu0  ;;  %5934 = vmatprep.subr.bf16.mxu0 %v6359_v1  ;;  %v1069_v9 = vadd.f32 %v1068_v45, %v997_v44  ;;  %v6303_v41 = vld [vmem:[%s7469_s1 + $0x70] sm:$0xff]   ;;  %v3811_v23 = vrot.slane %v3809_v13, 1 }
 0x123   : > { %v5641_v50 = vpop.f32.mrf.mxu1  ;;  %5946 = vmatprep.subr.bf16.mxu1 %v6359_v1 }
 0x125   : > { %5935 = vmatpush3.bf16.msra.mxu0 %v6284_v47  ;;  %v6304_v47 = vld [vmem:[%s7469_s1 + $0x48] sm:$0xff]  }
 0x126   : > { %5947 = vmatpush3.bf16.msra.mxu1 %v6285_v48  ;;  %5936 = vmatprep.subr.bf16.mxu0 %v6359_v1  ;;  %v6305_v48 = vld [vmem:[%s7469_s1 + $0x68] sm:$0xff]  }
 0x127   : > { %5948 = vmatprep.subr.bf16.mxu1 %v6359_v1 }
 0x129   : > { %5937 = vmatpush3.bf16.msra.mxu0 %v6286_v53  ;;  %v6306_v53 = vld [vmem:[%s7469_s1 + $0x40] sm:$0xff]  }
 0x12a   : > { %5949 = vmatpush3.bf16.msra.mxu1 %v6287_v54  ;;  %5954 = vmatprep.subr.bf16.mxu0 %v6359_v1  ;;  %v6307_v54 = vld [vmem:[%s7469_s1 + $0x60] sm:$0xff]  }
 0x12b   : > { %5966 = vmatprep.subr.bf16.mxu1 %v6359_v1 }
 0x12c   : > { %v1149_v63 = vpop.f32.mrf.mxu0  ;;  %5939 = vmatmul.mubr.msk.bf16.vlgmr.msra.gmra.mxu0 %vm229_vm1, %v5057_v56  ;;  %v5115_v56 = vcombine.low %v5105_v35, %v5106_v55  ;;  %v5163_v35 = vld [vmem:[%s6423_s29 + $0x58] sm:$0xf]  ;;  %v5164_v55 = vld [vmem:[%s6423_s29 + $0x5c] sm:$0x3] }
 0x12d   : > { %v1238_v0 = vpop.f32.mrf.mxu1  ;;  %5951 = vmatmul.mubr.msk.bf16.vlgmr.msra.gmra.mxu1 %vm229_vm1, %v3336_v57  ;;  %v1156_v3 = vadd.f32 %v1149_v63, %v1066_v62  ;;  %5955 = vmatpush3.bf16.msra.mxu0 %v6290_v58  ;;  %v3696_v57 = vor.u32 %v3695_v52, %v3691_v51  ;;  %v6310_v58 = vld [vmem:[%s7469_s1 + $0x38] sm:$0xff]   ;;  %v5188_v39 = vcombine.low %v5163_v35, %v5179_v36 }
 0x12e   : > { %5967 = vmatpush3.bf16.msra.mxu1 %v6291_v59  ;;  %v5652_v7 = vpop.f32.mrf.mxu0  ;;  %5956 = vmatprep.subr.bf16.mxu0 %v6359_v1  ;;  %v6311_v59 = vld [vmem:[%s7469_s1 + $0x18] sm:$0xff]  }
 0x12f   : > { %v5664_v8 = vpop.f32.mrf.mxu1  ;;  %5968 = vmatprep.subr.bf16.mxu1 %v6359_v1  ;;  %v1245_v10 = vadd.f32 %v1238_v0, %v1156_v3  ;;  %5962 = vmatprep.mubr.msk.bf16.mxu0 %vm6360_vm0, %v6359_v1  ;;  %v4053_v46 = vshll.u32 %v5188_v39, 16  ;;  %v4051_v51 = vshrl.u32 %v5188_v39, 16  ;;  %v6342_v39 = vld [vmem:[%s7469_s1 + $0x50] sm:$0xff]  }
 0x130   : > { %5974 = vmatprep.mubr.msk.bf16.mxu1 %vm6360_vm0, %v6359_v1  ;;  %v1152_v11 = vpop.f32.mrf.mxu0 }
 0x131   : > { %v1241_v12 = vpop.f32.mrf.mxu1  ;;  %v1247_v14 = vadd.f32 %v6993_v6, %v1245_v10  ;;  %v1157_v15 = vadd.f32 %v1152_v11, %v1069_v9  ;;  %5957 = vmatpush3.bf16.msra.mxu0 %v6292_v4  ;;  %v6312_v4 = vld [vmem:[%s7469_s1 + $0x30] sm:$0xff]   ;;  %v4055_v52 = vrot.slane %v4053_v46, 1  ;;  %v6344_v46 = vld [vmem:[%s7469_s1 + $0x48] sm:$0xff]  }
 0x132   : > { %5969 = vmatpush3.bf16.msra.mxu1 %v6293_v5  ;;  %v5653_v18 = vpop.f32.mrf.mxu0  ;;  %5958 = vmatprep.subr.bf16.mxu0 %v6359_v1  ;;  %v6313_v5 = vld [vmem:[%s7469_s1 + $0x10] sm:$0xff]  }
 0x133   : > { %v5665_v19 = vpop.f32.mrf.mxu1  ;;  %5970 = vmatprep.subr.bf16.mxu1 %v6359_v1  ;;  %v1249_v20 = vmax.f32 %v1247_v14, 0.0  ;;  %v1246_v21 = vadd.f32 %v1241_v12, %v1157_v15 }
 0x135   : > { %v5262_v24 = vpack.c.bf16 %v1249_v20, %v1249_v20  ;;  %v1248_v25 = vadd.f32 %v6993_v6, %v1246_v21  ;;  %5959 = vmatpush3.bf16.msra.mxu0 %v6294_v16  ;;  %v6314_v16 = vld [vmem:[%s7469_s1 + $0x28] sm:$0xff]  }
 0x136   : > { %5971 = vmatpush3.bf16.msra.mxu1 %v6295_v17  ;;  %5960 = vmatprep.subr.bf16.mxu0 %v6359_v1  ;;  %v6315_v17 = vld [vmem:[%s7469_s1 + $0x8] sm:$0xff]  }
 0x137   : > { %5972 = vmatprep.subr.bf16.mxu1 %v6359_v1  ;;  %4732 = vst [vmem:[%s7014_s17 + $0x10] sm:$0xf] %v5262_v24  ;;  %v1250_v29 = vmax.f32 %v1248_v25, 0.0 }
 0x139   : > { %v5263_v33 = vpack.c.bf16 %v1250_v29, %v1250_v29  ;;  %5961 = vmatpush3.bf16.msra.mxu0 %v6296_v26  ;;  %v6316_v26 = vld [vmem:[%s7469_s1 + $0x20] sm:$0xff]  }
 0x13a   : > { %5973 = vmatpush3.bf16.msra.mxu1 %v6297_v27  ;;  %5978 = vmatprep.subr.bf16.mxu0 %v6359_v1  ;;  %v6317_v27 = vld [vmem:[%s7469_s1] sm:$0xff]  }
 0x13b   : > { %5990 = vmatprep.subr.bf16.mxu1 %v6359_v1  ;;  %4733 = vst [vmem:[%s7014_s17 + $0x14] sm:$0x3] %v5263_v33 }
 0x13c   : > { %v1354_v37 = vpop.f32.mrf.mxu0  ;;  %5963 = vmatmul.mubr.msk.bf16.vlgmr.msra.gmra.mxu0 %vm229_vm1, %v3452_v30  ;;  %v3812_v30 = vor.u32 %v3811_v23, %v3807_v22 }
 0x13d   : > { %v1425_v38 = vpop.f32.mrf.mxu1  ;;  %5975 = vmatmul.mubr.msk.bf16.vlgmr.msra.gmra.mxu1 %vm229_vm1, %v5099_v31  ;;  %5979 = vmatpush3.bf16.msra.mxu0 %v6300_v32  ;;  %v5157_v31 = vcombine.low %v7257_v60, %v5141_v28  ;;  %v6320_v32 = vld [vmem:[%s7469_s1 + $0x58] sm:$0xff]  }
 0x13e   : > { %5991 = vmatpush3.bf16.msra.mxu1 %v6301_v34  ;;  %v5676_v42 = vpop.f32.mrf.mxu0  ;;  %5980 = vmatprep.subr.bf16.mxu0 %v6359_v1  ;;  %v1426_v62 = vadd.f32 %v1425_v38, %v1354_v37  ;;  %v6321_v34 = vld [vmem:[%s7469_s1 + $0x78] sm:$0xff]  }
 0x13f   : > { %v5688_v43 = vpop.f32.mrf.mxu1  ;;  %5992 = vmatprep.subr.bf16.mxu1 %v6359_v1  ;;  %5986 = vmatprep.mubr.msk.bf16.mxu0 %vm6360_vm0, %v6359_v1  ;;  %v7347_v60 = vld [vmem:[%s6423_s29 + $0x58] sm:$0xf]  ;;  %v5199_v28 = vld [vmem:[%s6423_s29 + $0x5c] sm:$0x3] }
 0x140   : > { %5998 = vmatprep.mubr.msk.bf16.mxu1 %vm6360_vm0, %v6359_v1  ;;  %v1357_v44 = vpop.f32.mrf.mxu0  ;;  %v5209_v2 = vcombine.low %v7347_v60, %v5200_v61 }
 0x141   : > { %v1428_v45 = vpop.f32.mrf.mxu1  ;;  %5981 = vmatpush3.bf16.msra.mxu0 %v6302_v40  ;;  %v6322_v40 = vld [vmem:[%s7469_s1 + $0x50] sm:$0xff]  }
 0x142   : > { %5993 = vmatpush3.bf16.msra.mxu1 %v6303_v41  ;;  %v5677_v49 = vpop.f32.mrf.mxu0  ;;  %5982 = vmatprep.subr.bf16.mxu0 %v6359_v1  ;;  %v1429_v9 = vadd.f32 %v1428_v45, %v1357_v44  ;;  %v6323_v41 = vld [vmem:[%s7469_s1 + $0x70] sm:$0xff]   ;;  %v4169_v13 = vshll.u32 %v5209_v2, 16  ;;  %v4167_v22 = vshrl.u32 %v5209_v2, 16 }
 0x143   : > { %v5689_v50 = vpop.f32.mrf.mxu1  ;;  %5994 = vmatprep.subr.bf16.mxu1 %v6359_v1 }
 0x144   : > { %v4171_v23 = vrot.slane %v4169_v13, 1 }
 0x145   : > { %5983 = vmatpush3.bf16.msra.mxu0 %v6304_v47  ;;  %v6324_v47 = vld [vmem:[%s7469_s1 + $0x48] sm:$0xff]  }
 0x146   : > { %5995 = vmatpush3.bf16.msra.mxu1 %v6305_v48  ;;  %5984 = vmatprep.subr.bf16.mxu0 %v6359_v1  ;;  %v6325_v48 = vld [vmem:[%s7469_s1 + $0x68] sm:$0xff]  }
 0x147   : > { %5996 = vmatprep.subr.bf16.mxu1 %v6359_v1 }
 0x149   : > { %5985 = vmatpush3.bf16.msra.mxu0 %v6306_v53  ;;  %v6326_v53 = vld [vmem:[%s7469_s1 + $0x40] sm:$0xff]  }
 0x14a   : > { %5997 = vmatpush3.bf16.msra.mxu1 %v6307_v54  ;;  %6002 = vmatprep.subr.bf16.mxu0 %v6359_v1  ;;  %v6327_v54 = vld [vmem:[%s7469_s1 + $0x60] sm:$0xff]  }
 0x14b   : > { %6014 = vmatprep.subr.bf16.mxu1 %v6359_v1 }
 0x14c   : > { %v1509_v63 = vpop.f32.mrf.mxu0  ;;  %5987 = vmatmul.mubr.msk.bf16.vlgmr.msra.gmra.mxu0 %vm229_vm1, %v5115_v56  ;;  %v5173_v56 = vcombine.low %v5163_v35, %v5164_v55  ;;  %v5237_v35 = vld [vmem:[%s6423_s29 + $0x64] sm:$0x7] }
 0x14d   : > { %v1598_v0 = vpop.f32.mrf.mxu1  ;;  %5999 = vmatmul.mubr.msk.bf16.vlgmr.msra.gmra.mxu1 %vm229_vm1, %v3696_v57  ;;  %v1516_v3 = vadd.f32 %v1509_v63, %v1426_v62  ;;  %6003 = vmatpush3.bf16.msra.mxu0 %v6310_v58  ;;  %v4056_v57 = vor.u32 %v4055_v52, %v4051_v51  ;;  %v6330_v58 = vld [vmem:[%s7469_s1 + $0x38] sm:$0xff]   ;;  %v6346_v52 = vld [vmem:[%s7469_s1 + $0x40] sm:$0xff]  }
 0x14e   : > { %6015 = vmatpush3.bf16.msra.mxu1 %v6311_v59  ;;  %v5700_v7 = vpop.f32.mrf.mxu0  ;;  %6004 = vmatprep.subr.bf16.mxu0 %v6359_v1  ;;  %v6331_v59 = vld [vmem:[%s7469_s1 + $0x18] sm:$0xff]  }
 0x14f   : > { %v5712_v8 = vpop.f32.mrf.mxu1  ;;  %6016 = vmatprep.subr.bf16.mxu1 %v6359_v1  ;;  %v1605_v10 = vadd.f32 %v1598_v0, %v1516_v3  ;;  %6010 = vmatprep.mubr.msk.bf16.mxu0 %vm6360_vm0, %v6359_v1 }
 0x150   : > { %6022 = vmatprep.mubr.msk.bf16.mxu1 %vm6360_vm0, %v6359_v1  ;;  %v1512_v11 = vpop.f32.mrf.mxu0 }
 0x151   : > { %v1601_v12 = vpop.f32.mrf.mxu1  ;;  %v1607_v14 = vadd.f32 %v6993_v6, %v1605_v10  ;;  %v1517_v15 = vadd.f32 %v1512_v11, %v1429_v9  ;;  %6005 = vmatpush3.bf16.msra.mxu0 %v6312_v4  ;;  %v6332_v4 = vld [vmem:[%s7469_s1 + $0x30] sm:$0xff]  }
 0x152   : > { %6017 = vmatpush3.bf16.msra.mxu1 %v6313_v5  ;;  %v5701_v18 = vpop.f32.mrf.mxu0  ;;  %6006 = vmatprep.subr.bf16.mxu0 %v6359_v1  ;;  %v6333_v5 = vld [vmem:[%s7469_s1 + $0x10] sm:$0xff]  }
 0x153   : > { %v5713_v19 = vpop.f32.mrf.mxu1  ;;  %6018 = vmatprep.subr.bf16.mxu1 %v6359_v1  ;;  %v1609_v20 = vmax.f32 %v1607_v14, 0.0  ;;  %v1606_v21 = vadd.f32 %v1601_v12, %v1517_v15 }
 0x155   : > { %v5264_v24 = vpack.c.bf16 %v1609_v20, %v1609_v20  ;;  %v1608_v25 = vadd.f32 %v6993_v6, %v1606_v21  ;;  %6007 = vmatpush3.bf16.msra.mxu0 %v6314_v16  ;;  %v6334_v16 = vld [vmem:[%s7469_s1 + $0x28] sm:$0xff]  }
 0x156   : > { %6019 = vmatpush3.bf16.msra.mxu1 %v6315_v17  ;;  %6008 = vmatprep.subr.bf16.mxu0 %v6359_v1  ;;  %v6335_v17 = vld [vmem:[%s7469_s1 + $0x8] sm:$0xff]  }
 0x157   : > { %6020 = vmatprep.subr.bf16.mxu1 %v6359_v1  ;;  %4790 = vst [vmem:[%s7014_s17 + $0x18] sm:$0xf] %v5264_v24  ;;  %v1610_v29 = vmax.f32 %v1608_v25, 0.0 }
 0x159   : > { %v5265_v33 = vpack.c.bf16 %v1610_v29, %v1610_v29  ;;  %6009 = vmatpush3.bf16.msra.mxu0 %v6316_v26  ;;  %v6336_v26 = vld [vmem:[%s7469_s1 + $0x20] sm:$0xff]   ;;  %v4172_v29 = vor.u32 %v4171_v23, %v4167_v22 }
 0x15a   : > { %6021 = vmatpush3.bf16.msra.mxu1 %v6317_v27  ;;  %6026 = vmatprep.subr.bf16.mxu0 %v6359_v1  ;;  %v6337_v27 = vld [vmem:[%s7469_s1] sm:$0xff]  }
 0x15b   : > { %6038 = vmatprep.subr.bf16.mxu1 %v6359_v1  ;;  %4791 = vst [vmem:[%s7014_s17 + $0x1c] sm:$0x3] %v5265_v33  ;;  %v6341_v33 = vld [vmem:[%s7469_s1 + $0x78] sm:$0xff]  }
 0x15c   : > { %v1714_v37 = vpop.f32.mrf.mxu0  ;;  %6011 = vmatmul.mubr.msk.bf16.vlgmr.msra.gmra.mxu0 %vm229_vm1, %v3812_v30  ;;  %v5215_v30 = vcombine.low %v7347_v60, %v5199_v28 }
 0x15d   : > { %v1785_v38 = vpop.f32.mrf.mxu1  ;;  %6023 = vmatmul.mubr.msk.bf16.vlgmr.msra.gmra.mxu1 %vm229_vm1, %v5157_v31  ;;  %6027 = vmatpush3.bf16.msra.mxu0 %v6320_v32  ;;  %v6340_v31 = vld [vmem:[%s7469_s1 + $0x58] sm:$0xff]  }
 0x15e   : > { %6039 = vmatpush3.bf16.msra.mxu1 %v6321_v34  ;;  %v5724_v42 = vpop.f32.mrf.mxu0  ;;  %6028 = vmatprep.subr.bf16.mxu0 %v6359_v1  ;;  %v1786_v62 = vadd.f32 %v1785_v38, %v1714_v37  ;;  %v5221_v34 = vld [vmem:[%s6423_s29 + $0x60] sm:$0xf] }
 0x15f   : > { %v5736_v43 = vpop.f32.mrf.mxu1  ;;  %6040 = vmatprep.subr.bf16.mxu1 %v6359_v1  ;;  %6034 = vmatprep.mubr.msk.bf16.mxu0 %vm6360_vm0, %v6359_v1  ;;  %v5246_v38 = vcombine.low %v5221_v34, %v5237_v35 }
 0x160   : > { %6046 = vmatprep.mubr.msk.bf16.mxu1 %vm6360_vm0, %v6359_v1  ;;  %v1717_v44 = vpop.f32.mrf.mxu0 }
 0x161   : > { %v1788_v45 = vpop.f32.mrf.mxu1  ;;  %6029 = vmatpush3.bf16.msra.mxu0 %v6322_v40  ;;  %v6343_v40 = vld [vmem:[%s7469_s1 + $0x70] sm:$0xff]  }
 0x162   : > { %6041 = vmatpush3.bf16.msra.mxu1 %v6323_v41  ;;  %v5725_v49 = vpop.f32.mrf.mxu0  ;;  %6030 = vmatprep.subr.bf16.mxu0 %v6359_v1  ;;  %v1789_v9 = vadd.f32 %v1788_v45, %v1717_v44  ;;  %v4413_v45 = vshll.u32 %v5246_v38, 16 }
 0x163   : > { %v5737_v50 = vpop.f32.mrf.mxu1  ;;  %6042 = vmatprep.subr.bf16.mxu1 %v6359_v1 }
 0x164   : > { %v4411_v50 = vshrl.u32 %v5246_v38, 16  ;;  %v4415_v51 = vrot.slane %v4413_v45, 1 }
 0x165   : > { %6031 = vmatpush3.bf16.msra.mxu0 %v6324_v47  ;;  %v6345_v47 = vld [vmem:[%s7469_s1 + $0x68] sm:$0xff]  }
 0x166   : > { %6043 = vmatpush3.bf16.msra.mxu1 %v6325_v48  ;;  %6032 = vmatprep.subr.bf16.mxu0 %v6359_v1 }
 0x167   : > { %6044 = vmatprep.subr.bf16.mxu1 %v6359_v1 }
 0x169   : > { %6033 = vmatpush3.bf16.msra.mxu0 %v6326_v53  ;;  %v6347_v53 = vld [vmem:[%s7469_s1 + $0x60] sm:$0xff]  }
 0x16a   : > { %6045 = vmatpush3.bf16.msra.mxu1 %v6327_v54  ;;  %6050 = vmatprep.subr.bf16.mxu0 %v6359_v1  ;;  %v5222_v54 = vld [vmem:[%s6423_s29 + $0x64] sm:$0x3] }
 0x16b   : > { %6062 = vmatprep.subr.bf16.mxu1 %v6359_v1  ;;  %v5231_v55 = vcombine.low %v5221_v34, %v5222_v54 }
 0x16c   : > { %v1869_v63 = vpop.f32.mrf.mxu0  ;;  %6035 = vmatmul.mubr.msk.bf16.vlgmr.msra.gmra.mxu0 %vm229_vm1, %v5173_v56  ;;  %v4416_v56 = vor.u32 %v4415_v51, %v4411_v50 }
 0x16d   : > { %v1958_v0 = vpop.f32.mrf.mxu1  ;;  %6047 = vmatmul.mubr.msk.bf16.vlgmr.msra.gmra.mxu1 %vm229_vm1, %v4056_v57  ;;  %v1876_v3 = vadd.f32 %v1869_v63, %v1786_v62  ;;  %6051 = vmatpush3.bf16.msra.mxu0 %v6330_v58 }
 0x16e   : > { %6063 = vmatpush3.bf16.msra.mxu1 %v6331_v59  ;;  %v5748_v7 = vpop.f32.mrf.mxu0  ;;  %6052 = vmatprep.subr.bf16.mxu0 %v6359_v1 }
 0x16f   : > { %v5760_v8 = vpop.f32.mrf.mxu1  ;;  %6064 = vmatprep.subr.bf16.mxu1 %v6359_v1  ;;  %v1965_v10 = vadd.f32 %v1958_v0, %v1876_v3  ;;  %6058 = vmatprep.mubr.msk.bf16.mxu0 %vm6360_vm0, %v6359_v1  ;;  %v7435_v3 = vld [vmem:[%s7470_s2] ss:$0 sm:$0xff] }
 0x170   : > { %6070 = vmatprep.mubr.msk.bf16.mxu1 %vm6360_vm0, %v6359_v1  ;;  %v1872_v11 = vpop.f32.mrf.mxu0 }
 0x171   : > { %v1961_v12 = vpop.f32.mrf.mxu1  ;;  %v1967_v14 = vadd.f32 %v6993_v6, %v1965_v10  ;;  %v1877_v15 = vadd.f32 %v1872_v11, %v1789_v9  ;;  %6053 = vmatpush3.bf16.msra.mxu0 %v6332_v4 }
 0x172   : > { %6065 = vmatpush3.bf16.msra.mxu1 %v6333_v5  ;;  %v5749_v18 = vpop.f32.mrf.mxu0  ;;  %6054 = vmatprep.subr.bf16.mxu0 %v6359_v1 }
 0x173   : > { %v5761_v19 = vpop.f32.mrf.mxu1  ;;  %6066 = vmatprep.subr.bf16.mxu1 %v6359_v1  ;;  %v1969_v20 = vmax.f32 %v1967_v14, 0.0  ;;  %v1966_v21 = vadd.f32 %v1961_v12, %v1877_v15 }
 0x175   : > { %v5266_v24 = vpack.c.bf16 %v1969_v20, %v1969_v20  ;;  %v1968_v25 = vadd.f32 %v6993_v6, %v1966_v21  ;;  %6055 = vmatpush3.bf16.msra.mxu0 %v6334_v16 }
 0x176   : > { %6067 = vmatpush3.bf16.msra.mxu1 %v6335_v17  ;;  %6056 = vmatprep.subr.bf16.mxu0 %v6359_v1 }
 0x177   : > { %6068 = vmatprep.subr.bf16.mxu1 %v6359_v1  ;;  %4848 = vst [vmem:[%s7014_s17 + $0x20] sm:$0xf] %v5266_v24  ;;  %v1970_v6 = vmax.f32 %v1968_v25, 0.0 }
 0x179   : > { %v5267_v32 = vpack.c.bf16 %v1970_v6, %v1970_v6  ;;  %6057 = vmatpush3.bf16.msra.mxu0 %v6336_v26 }
 0x17a   : > { %6069 = vmatpush3.bf16.msra.mxu1 %v6337_v27  ;;  %6074 = vmatprep.subr.bf16.mxu0 %v6359_v1 }
 0x17b   : > { %6086 = vmatprep.subr.bf16.mxu1 %v6359_v1  ;;  %4849 = vst [vmem:[%s7014_s17 + $0x24] sm:$0x3] %v5267_v32 }
 0x17c   : > { %v2074_v36 = vpop.f32.mrf.mxu0  ;;  %6059 = vmatmul.mubr.msk.bf16.vlgmr.msra.gmra.mxu0 %vm229_vm1, %v4172_v29 }
 0x17d   : > { %v2145_v37 = vpop.f32.mrf.mxu1  ;;  %6071 = vmatmul.mubr.msk.bf16.vlgmr.msra.gmra.mxu1 %vm229_vm1, %v5215_v30  ;;  %6075 = vmatpush3.bf16.msra.mxu0 %v6340_v31 }
 0x17e   : > { %6087 = vmatpush3.bf16.msra.mxu1 %v6341_v33  ;;  %v5772_v41 = vpop.f32.mrf.mxu0  ;;  %6076 = vmatprep.subr.bf16.mxu0 %v6359_v1  ;;  %v2146_v57 = vadd.f32 %v2145_v37, %v2074_v36 }
 0x17f   : > { %v5784_v42 = vpop.f32.mrf.mxu1  ;;  %6088 = vmatprep.subr.bf16.mxu1 %v6359_v1  ;;  %6082 = vmatprep.mubr.msk.bf16.mxu0 %vm6360_vm0, %v6359_v1 }
 0x180   : > { %6094 = vmatprep.mubr.msk.bf16.mxu1 %vm6360_vm0, %v6359_v1  ;;  %v2077_v43 = vpop.f32.mrf.mxu0 }
 0x181   : > { %v2148_v44 = vpop.f32.mrf.mxu1  ;;  %6077 = vmatpush3.bf16.msra.mxu0 %v6342_v39 }
 0x182   : > { %6089 = vmatpush3.bf16.msra.mxu1 %v6343_v40  ;;  %v5773_v48 = vpop.f32.mrf.mxu0  ;;  %6078 = vmatprep.subr.bf16.mxu0 %v6359_v1  ;;  %v2149_v63 = vadd.f32 %v2148_v44, %v2077_v43 }
 0x183   : > { %v5785_v49 = vpop.f32.mrf.mxu1  ;;  %6090 = vmatprep.subr.bf16.mxu1 %v6359_v1 }
 0x185   : > { %6079 = vmatpush3.bf16.msra.mxu0 %v6344_v46 }
 0x186   : > { %6091 = vmatpush3.bf16.msra.mxu1 %v6345_v47  ;;  %6080 = vmatprep.subr.bf16.mxu0 %v6359_v1 }
 0x187   : > { %6092 = vmatprep.subr.bf16.mxu1 %v6359_v1 }
 0x189   : > { %6081 = vmatpush3.bf16.msra.mxu0 %v6346_v52 }
 0x18a   : > { %6093 = vmatpush3.bf16.msra.mxu1 %v6347_v53 }
 0x18c   : > { %v2229_v58 = vpop.f32.mrf.mxu0  ;;  %6083 = vmatmul.mubr.msk.bf16.vlgmr.msra.gmra.mxu0 %vm229_vm1, %v5231_v55 }
 0x18d   : > { %v2318_v59 = vpop.f32.mrf.mxu1  ;;  %6095 = vmatmul.mubr.msk.bf16.vlgmr.msra.gmra.mxu1 %vm229_vm1, %v4416_v56  ;;  %v2236_v60 = vadd.f32 %v2229_v58, %v2146_v57 }
 0x18e   : > { %v5796_v61 = vpop.f32.mrf.mxu0 }
 0x18f   : > { %v5808_v62 = vpop.f32.mrf.mxu1  ;;  %v2325_v0 = vadd.f32 %v2318_v59, %v2236_v60 }
 0x190   : > { %v2232_v2 = vpop.f32.mrf.mxu0 }
 0x191   : > { %v2321_v1 = vpop.f32.mrf.mxu1  ;;  %v2327_v4 = vadd.f32 %v7435_v3, %v2325_v0  ;;  %v2237_v5 = vadd.f32 %v2232_v2, %v2149_v63 }
 0x192   : > { %v5797_v7 = vpop.f32.mrf.mxu0 }
 0x193   : > { %v5809_v8 = vpop.f32.mrf.mxu1  ;;  %v2329_v9 = vmax.f32 %v2327_v4, 0.0  ;;  %v2326_v10 = vadd.f32 %v2321_v1, %v2237_v5 }
 0x195   : > { %v5268_v11 = vpack.c.bf16 %v2329_v9, %v2329_v9  ;;  %v2328_v12 = vadd.f32 %v7435_v3, %v2326_v10 }
 0x197   : > { %4906 = vst [vmem:[%s7014_s17 + $0x28] sm:$0xf] %v5268_v11  ;;  %v2330_v13 = vmax.f32 %v2328_v12, 0.0 }
 0x199   : > { %v5269_v14 = vpack.c.bf16 %v2330_v13, %v2330_v13 }
 0x19b   : > { %4907 = vst [vmem:[%s7014_s17 + $0x2c] sm:$0x3] %v5269_v14 }
 0x19c   : > { %v2434_v15 = vpop.f32.mrf.mxu0 }
 0x19d   : > { %v2505_v16 = vpop.f32.mrf.mxu1 }
 0x19e   : > { %v5820_v17 = vpop.f32.mrf.mxu0  ;;  %v2506_v23 = vadd.f32 %v2505_v16, %v2434_v15 }
 0x19f   : > { %v5832_v18 = vpop.f32.mrf.mxu1 }
 0x1a0   : > { %v2437_v19 = vpop.f32.mrf.mxu0 }
 0x1a1   : > { %v2508_v20 = vpop.f32.mrf.mxu1 }
 0x1a2   : > { %v5821_v21 = vpop.f32.mrf.mxu0  ;;  %v2509_v6 = vadd.f32 %v2508_v20, %v2437_v19 }
 0x1a3   : > { %v5833_v22 = vpop.f32.mrf.mxu1 }
 0x1ac   : > { %v2589_v24 = vpop.f32.mrf.mxu0 }
 0x1ad   : > { %v2678_v25 = vpop.f32.mrf.mxu1  ;;  %v2596_v26 = vadd.f32 %v2589_v24, %v2506_v23 }
 0x1ae   : > { %v5844_v27 = vpop.f32.mrf.mxu0 }
 0x1af   : > { %v5856_v28 = vpop.f32.mrf.mxu1  ;;  %v2685_v29 = vadd.f32 %v2678_v25, %v2596_v26 }
 0x1b0   : > { %v2592_v30 = vpop.f32.mrf.mxu0 }
 0x1b1   : > { %v2681_v31 = vpop.f32.mrf.mxu1  ;;  %v2687_v32 = vadd.f32 %v7435_v3, %v2685_v29  ;;  %v2597_v33 = vadd.f32 %v2592_v30, %v2509_v6 }
 0x1b2   : > { %v5845_v34 = vpop.f32.mrf.mxu0 }
 0x1b3   : > { %v5857_v35 = vpop.f32.mrf.mxu1  ;;  %v2689_v36 = vmax.f32 %v2687_v32, 0.0  ;;  %v2686_v37 = vadd.f32 %v2681_v31, %v2597_v33 }
 0x1b5   : > { %v5270_v38 = vpack.c.bf16 %v2689_v36, %v2689_v36  ;;  %v2688_v39 = vadd.f32 %v7435_v3, %v2686_v37 }
 0x1b7   : > { %4964 = vst [vmem:[%s7014_s17 + $0x30] sm:$0xf] %v5270_v38  ;;  %v2690_v40 = vmax.f32 %v2688_v39, 0.0 }
 0x1b9   : > { %v5271_v41 = vpack.c.bf16 %v2690_v40, %v2690_v40 }
 0x1bb   : > { %4965 = vst [vmem:[%s7014_s17 + $0x34] sm:$0x3] %v5271_v41 }
 0x1bc   : > { %v2794_v42 = vpop.f32.mrf.mxu0 }
 0x1bd   : > { %v2865_v43 = vpop.f32.mrf.mxu1 }
 0x1be   : > { %v5868_v44 = vpop.f32.mrf.mxu0  ;;  %v2866_v50 = vadd.f32 %v2865_v43, %v2794_v42 }
 0x1bf   : > { %v5880_v45 = vpop.f32.mrf.mxu1 }
 0x1c0   : > { %v2797_v46 = vpop.f32.mrf.mxu0 }
 0x1c1   : > { %v2868_v47 = vpop.f32.mrf.mxu1 }
 0x1c2   : > { %v5869_v48 = vpop.f32.mrf.mxu0  ;;  %v2869_v56 = vadd.f32 %v2868_v47, %v2797_v46 }
 0x1c3   : > { %v5881_v49 = vpop.f32.mrf.mxu1 }
 0x1cc   : > { %v2949_v51 = vpop.f32.mrf.mxu0 }
 0x1cd   : > { %v3038_v52 = vpop.f32.mrf.mxu1  ;;  %v2956_v53 = vadd.f32 %v2949_v51, %v2866_v50 }
 0x1ce   : > { %v5892_v54 = vpop.f32.mrf.mxu0 }
 0x1cf   : > { %v5904_v55 = vpop.f32.mrf.mxu1  ;;  %v3045_v57 = vadd.f32 %v3038_v52, %v2956_v53 }
 0x1d0   : > { %v2952_v58 = vpop.f32.mrf.mxu0 }
 0x1d1   : > { %v3041_v59 = vpop.f32.mrf.mxu1  ;;  %v3047_v60 = vadd.f32 %v7435_v3, %v3045_v57  ;;  %v2957_v61 = vadd.f32 %v2952_v58, %v2869_v56 }
 0x1d2   : > { %v5893_v62 = vpop.f32.mrf.mxu0 }
 0x1d3   : > { %v5905_v63 = vpop.f32.mrf.mxu1  ;;  %v3049_v0 = vmax.f32 %v3047_v60, 0.0  ;;  %v3046_v2 = vadd.f32 %v3041_v59, %v2957_v61 }
 0x1d5   : > { %v5272_v1 = vpack.c.bf16 %v3049_v0, %v3049_v0  ;;  %v3048_v4 = vadd.f32 %v7435_v3, %v3046_v2 }
 0x1d7   : > { %5022 = vst [vmem:[%s7014_s17 + $0x38] sm:$0xf] %v5272_v1  ;;  %v3050_v5 = vmax.f32 %v3048_v4, 0.0 }
 0x1d9   : > { %v5273_v7 = vpack.c.bf16 %v3050_v5, %v3050_v5 }
 0x1db   : > { %5023 = vst [vmem:[%s7014_s17 + $0x3c] sm:$0x3] %v5273_v7 }
 0x1dc   : > { %v3154_v8 = vpop.f32.mrf.mxu0 }
 0x1dd   : > { %v3225_v9 = vpop.f32.mrf.mxu1 }
 0x1de   : > { %v5916_v10 = vpop.f32.mrf.mxu0  ;;  %v3226_v16 = vadd.f32 %v3225_v9, %v3154_v8 }
 0x1df   : > { %v5928_v11 = vpop.f32.mrf.mxu1 }
 0x1e0   : > { %v3157_v12 = vpop.f32.mrf.mxu0 }
 0x1e1   : > { %v3228_v13 = vpop.f32.mrf.mxu1 }
 0x1e2   : > { %v5917_v14 = vpop.f32.mrf.mxu0  ;;  %v3229_v22 = vadd.f32 %v3228_v13, %v3157_v12 }
 0x1e3   : > { %v5929_v15 = vpop.f32.mrf.mxu1 }
 0x1ec   : > { %v3309_v17 = vpop.f32.mrf.mxu0 }
 0x1ed   : > { %v3398_v18 = vpop.f32.mrf.mxu1  ;;  %v3316_v19 = vadd.f32 %v3309_v17, %v3226_v16 }
 0x1ee   : > { %v5940_v20 = vpop.f32.mrf.mxu0 }
 0x1ef   : > { %v5952_v21 = vpop.f32.mrf.mxu1  ;;  %v3405_v23 = vadd.f32 %v3398_v18, %v3316_v19 }
 0x1f0   : > { %v3312_v24 = vpop.f32.mrf.mxu0 }
 0x1f1   : > { %v3401_v25 = vpop.f32.mrf.mxu1  ;;  %v3407_v26 = vadd.f32 %v7435_v3, %v3405_v23  ;;  %v3317_v27 = vadd.f32 %v3312_v24, %v3229_v22 }
 0x1f2   : > { %v5941_v28 = vpop.f32.mrf.mxu0 }
 0x1f3   : > { %v5953_v6 = vpop.f32.mrf.mxu1  ;;  %v3409_v29 = vmax.f32 %v3407_v26, 0.0  ;;  %v3406_v30 = vadd.f32 %v3401_v25, %v3317_v27 }
 0x1f5   : > { %v5274_v31 = vpack.c.bf16 %v3409_v29, %v3409_v29  ;;  %v3408_v32 = vadd.f32 %v7435_v3, %v3406_v30 }
 0x1f7   : > { %5080 = vst [vmem:[%s7014_s17 + $0x40] sm:$0xf] %v5274_v31  ;;  %v3410_v33 = vmax.f32 %v3408_v32, 0.0 }
 0x1f9   : > { %v5275_v34 = vpack.c.bf16 %v3410_v33, %v3410_v33 }
 0x1fb   : > { %5081 = vst [vmem:[%s7014_s17 + $0x44] sm:$0x3] %v5275_v34 }
 0x1fc   : > { %v3514_v35 = vpop.f32.mrf.mxu0 }
 0x1fd   : > { %v3585_v36 = vpop.f32.mrf.mxu1 }
 0x1fe   : > { %v5964_v37 = vpop.f32.mrf.mxu0  ;;  %v3586_v43 = vadd.f32 %v3585_v36, %v3514_v35 }
 0x1ff   : > { %v5976_v38 = vpop.f32.mrf.mxu1 }
 0x200   : > { %v3517_v39 = vpop.f32.mrf.mxu0 }
 0x201   : > { %v3588_v40 = vpop.f32.mrf.mxu1 }
 0x202   : > { %v5965_v41 = vpop.f32.mrf.mxu0  ;;  %v3589_v49 = vadd.f32 %v3588_v40, %v3517_v39 }
 0x203   : > { %v5977_v42 = vpop.f32.mrf.mxu1 }
 0x20c   : > { %v3669_v44 = vpop.f32.mrf.mxu0 }
 0x20d   : > { %v3758_v45 = vpop.f32.mrf.mxu1  ;;  %v3676_v46 = vadd.f32 %v3669_v44, %v3586_v43 }
 0x20e   : > { %v5988_v47 = vpop.f32.mrf.mxu0 }
 0x20f   : > { %v6000_v48 = vpop.f32.mrf.mxu1  ;;  %v3765_v50 = vadd.f32 %v3758_v45, %v3676_v46 }
 0x210   : > { %v3672_v51 = vpop.f32.mrf.mxu0 }
 0x211   : > { %v3761_v52 = vpop.f32.mrf.mxu1  ;;  %v3767_v53 = vadd.f32 %v7435_v3, %v3765_v50  ;;  %v3677_v54 = vadd.f32 %v3672_v51, %v3589_v49 }
 0x212   : > { %v5989_v55 = vpop.f32.mrf.mxu0 }
 0x213   : > { %v6001_v56 = vpop.f32.mrf.mxu1  ;;  %v3769_v57 = vmax.f32 %v3767_v53, 0.0  ;;  %v3766_v58 = vadd.f32 %v3761_v52, %v3677_v54 }
 0x215   : > { %v5276_v59 = vpack.c.bf16 %v3769_v57, %v3769_v57  ;;  %v3768_v60 = vadd.f32 %v7435_v3, %v3766_v58 }
 0x217   : > { %5138 = vst [vmem:[%s7014_s17 + $0x48] sm:$0xf] %v5276_v59  ;;  %v3770_v61 = vmax.f32 %v3768_v60, 0.0 }
 0x219   : > { %v5277_v62 = vpack.c.bf16 %v3770_v61, %v3770_v61 }
 0x21b   : > { %5139 = vst [vmem:[%s7014_s17 + $0x4c] sm:$0x3] %v5277_v62 }
 0x21c   : > { %v3874_v63 = vpop.f32.mrf.mxu0 }
 0x21d   : > { %v3945_v0 = vpop.f32.mrf.mxu1 }
 0x21e   : > { %v6012_v2 = vpop.f32.mrf.mxu0  ;;  %v3946_v9 = vadd.f32 %v3945_v0, %v3874_v63 }
 0x21f   : > { %v6024_v1 = vpop.f32.mrf.mxu1 }
 0x220   : > { %v3877_v4 = vpop.f32.mrf.mxu0 }
 0x221   : > { %v3948_v5 = vpop.f32.mrf.mxu1 }
 0x222   : > { %v6013_v7 = vpop.f32.mrf.mxu0  ;;  %v3949_v15 = vadd.f32 %v3948_v5, %v3877_v4 }
 0x223   : > { %v6025_v8 = vpop.f32.mrf.mxu1 }
 0x22c   : > { %v4029_v10 = vpop.f32.mrf.mxu0 }
 0x22d   : > { %v4118_v11 = vpop.f32.mrf.mxu1  ;;  %v4036_v12 = vadd.f32 %v4029_v10, %v3946_v9 }
 0x22e   : > { %v6036_v13 = vpop.f32.mrf.mxu0 }
 0x22f   : > { %v6048_v14 = vpop.f32.mrf.mxu1  ;;  %v4125_v16 = vadd.f32 %v4118_v11, %v4036_v12 }
 0x230   : > { %v4032_v17 = vpop.f32.mrf.mxu0 }
 0x231   : > { %v4121_v18 = vpop.f32.mrf.mxu1  ;;  %v4127_v19 = vadd.f32 %v7435_v3, %v4125_v16  ;;  %v4037_v20 = vadd.f32 %v4032_v17, %v3949_v15 }
 0x232   : > { %v6037_v21 = vpop.f32.mrf.mxu0 }
 0x233   : > { %v6049_v22 = vpop.f32.mrf.mxu1  ;;  %v4129_v23 = vmax.f32 %v4127_v19, 0.0  ;;  %v4126_v24 = vadd.f32 %v4121_v18, %v4037_v20 }
 0x235   : > { %v5278_v25 = vpack.c.bf16 %v4129_v23, %v4129_v23  ;;  %v4128_v26 = vadd.f32 %v7435_v3, %v4126_v24 }
 0x237   : > { %5196 = vst [vmem:[%s7014_s17 + $0x50] sm:$0xf] %v5278_v25  ;;  %v4130_v27 = vmax.f32 %v4128_v26, 0.0 }
 0x239   : > { %v5279_v28 = vpack.c.bf16 %v4130_v27, %v4130_v27 }
 0x23b   : > { %5197 = vst [vmem:[%s7014_s17 + $0x54] sm:$0x3] %v5279_v28 }
 0x23c   : > { %v4234_v6 = vpop.f32.mrf.mxu0 }
 0x23d   : > { %v4305_v29 = vpop.f32.mrf.mxu1 }
 0x23e   : > { %v6060_v30 = vpop.f32.mrf.mxu0  ;;  %v4306_v36 = vadd.f32 %v4305_v29, %v4234_v6 }
 0x23f   : > { %v6072_v31 = vpop.f32.mrf.mxu1 }
 0x240   : > { %v4237_v32 = vpop.f32.mrf.mxu0 }
 0x241   : > { %v4308_v33 = vpop.f32.mrf.mxu1 }
 0x242   : > { %v6061_v34 = vpop.f32.mrf.mxu0  ;;  %v4309_v42 = vadd.f32 %v4308_v33, %v4237_v32 }
 0x243   : > { %v6073_v35 = vpop.f32.mrf.mxu1 }
 0x24c   : > { %v4389_v37 = vpop.f32.mrf.mxu0 }
 0x24d   : > { %v4478_v38 = vpop.f32.mrf.mxu1  ;;  %v4396_v39 = vadd.f32 %v4389_v37, %v4306_v36 }
 0x24e   : > { %v6084_v40 = vpop.f32.mrf.mxu0 }
 0x24f   : > { %v6096_v41 = vpop.f32.mrf.mxu1  ;;  %v4485_v43 = vadd.f32 %v4478_v38, %v4396_v39 }
 0x250   : > { %v4392_v44 = vpop.f32.mrf.mxu0 }
 0x251   : > { %v4481_v45 = vpop.f32.mrf.mxu1  ;;  %v4487_v46 = vadd.f32 %v7435_v3, %v4485_v43  ;;  %v4397_v47 = vadd.f32 %v4392_v44, %v4309_v42 }
 0x252   : > { %v6085_v48 = vpop.f32.mrf.mxu0 }
 0x253   : > { %v6097_v49 = vpop.f32.mrf.mxu1  ;;  %v4489_v50 = vmax.f32 %v4487_v46, 0.0  ;;  %v4486_v51 = vadd.f32 %v4481_v45, %v4397_v47 }
 0x255   : > { %v5280_v52 = vpack.c.bf16 %v4489_v50, %v4489_v50  ;;  %v4488_v53 = vadd.f32 %v7435_v3, %v4486_v51 }
 0x257   : > { %5254 = vst [vmem:[%s7014_s17 + $0x58] sm:$0xf] %v5280_v52  ;;  %v4490_v54 = vmax.f32 %v4488_v53, 0.0 }
 0x259   : > { %v5281_v55 = vpack.c.bf16 %v4490_v54, %v4490_v54 }
 0x25b   : > { %5255 = vst [vmem:[%s7014_s17 + $0x5c] sm:$0x3] %v5281_v55 }
 0x25c PF: > { %s13_s12 = sadd.s32 1, %s6357_s12  }
 0x25d   : > { %p10_p4 = scmp.ge.s32.totalorder %s13_s12, 4  }
 0x25f   :  { %12 = sbr.rel (!%p10_p4) target bundleno = 1 (0x1), region = 88 }

// kernel: dqn_forward.6
= control target key start
LH: loop header
LB: loop body
LE: loop exit
PB: predicated region body
PF: predicated region fallthrough
CT: control target
= control target key end

     0   :  { %s4967_s12 = smov 0   ;;  %s5972_s0 = inlined_call_operand.vmem [shape: bf16[2,5,5,128], index: 0, kind: input, shape index: {}]   ;;  %s5973_s1 = inlined_call_operand.vmem [shape: bf16[9,128,128], index: 1, kind: input, shape index: {}]   ;;  %s5974_s2 = inlined_call_operand.vmem [shape: f32[1,128], index: 2, kind: input, shape index: {}]   ;;  %s5975_s3 = inlined_call_operand.vmem [shape: bf16[2,3,3,128], index: 3, kind: output, shape index: {}]  }
   0x1 LB: > { %s3260_s13 = sadd.s32 4294967295, %s4943_s12   ;;  %p3264_p0 = scmp.ge.s32.totalorder %s4943_s12, 1  ;;  %s4943_s12 = sphi %s4967_s12, %s13_s12  }
   0x2   : > { %p137_p1 = scmp.lt.s32.totalorder %s4943_s12, 3 }
   0x4   : > { %p138_p2 = pnand %p3264_p0, %p137_p1 }
   0x5   : > { %p161_p3 = scmp.lt.s32.totalorder (!%p138_p2), %s3260_s13, 1 }
   0x6   : > { %141 = sbr.rel (%p138_p2) target bundleno = 663 (0x297), region = 32 }
   0xb   : > { %v4703_v0 = vld [vmem:[%s5973_s1 + $0x78] sm:$0xff]   ;;  %v4945_v1 = vmov 0.0   ;;  %v4705_v3 = vld [vmem:[%s5973_s1 + $0x70] sm:$0xff]   ;;  %vm4946_vm0 = vmmov 0   ;;  %s5979_s13 = smov (!%p161_p3, %s3260_s13), 1  ;;  %v4707_v5 = vld [vmem:[%s5973_s1 + $0x68] sm:$0xff]  }
   0xc   : > { %4151 = vmatprep.subr.bf16.mxu0 %v4945_v1  ;;  %4171 = vmatprep.subr.bf16.mxu1 %v4945_v1  ;;  %v4704_v2 = vld [vmem:[%s5973_s1 + $0x38] sm:$0xff]   ;;  %v4706_v4 = vld [vmem:[%s5973_s1 + $0x30] sm:$0xff]   ;;  %v4708_v6 = vld [vmem:[%s5973_s1 + $0x28] sm:$0xff]   ;;  %s4691_s26 = smul.u32 20, %s5979_s13  ;;  %vm1189_vm1 = vcmask 1041408  }
   0xd   : > { %4152 = vmatpush3.bf16.msra.mxu0 %v4703_v0  ;;  %4167 = vmatprep.mubr.msk.bf16.mxu0 %vm4946_vm0, %v4945_v1  ;;  %v4709_v7 = vld [vmem:[%s5973_s1 + $0x60] sm:$0xff]   ;;  %v4711_v9 = vld [vmem:[%s5973_s1 + $0x58] sm:$0xff]   ;;  %v4713_v13 = vld [vmem:[%s5973_s1 + $0x50] sm:$0xff]   ;;  %s4692_s11 = smul.u32 6, %s5979_s13  ;;  %vm1190_vm2 = vsmask.f32 1280 }
   0xe   : > { %4172 = vmatpush3.bf16.msra.mxu1 %v4704_v2  ;;  %4153 = vmatprep.subr.bf16.mxu0 %v4945_v1  ;;  %v4710_v8 = vld [vmem:[%s5973_s1 + $0x20] sm:$0xff]   ;;  %s5017_s6 = scalar_lea.vmem %s5972_s0, %s4691_s26  ;;  %v4712_v10 = vld [vmem:[%s5973_s1 + $0x18] sm:$0xff]   ;;  %v4714_v14 = vld [vmem:[%s5973_s1 + $0x10] sm:$0xff]  }
   0xf   : > { %4173 = vmatprep.subr.bf16.mxu1 %v4945_v1  ;;  %4187 = vmatprep.mubr.msk.bf16.mxu1 %vm4946_vm0, %v4945_v1  ;;  %v173_v11 = vld [vmem:[%s5017_s6] sm:$0x3]  ;;  %v4715_v16 = vld [vmem:[%s5973_s1 + $0x48] sm:$0xff]   ;;  %v4720_v23 = vld [vmem:[%s5973_s1 + $0xb8] sm:$0xff]   ;;  %s5786_s21 = scalar_lea.vmem %s5975_s3, %s4692_s11 }
  0x10   : > { %v3283_v12 = vcombine.low %v173_v11, %v173_v11  ;;  %v4716_v17 = vld [vmem:[%s5973_s1 + $0x8] sm:$0xff]   ;;  %v4717_v20 = vld [vmem:[%s5973_s1 + $0x40] sm:$0xff]   ;;  %v4721_v24 = vld [vmem:[%s5973_s1 + $0xf8] sm:$0xff]  }
  0x11   : > { %4154 = vmatpush3.bf16.msra.mxu0 %v4705_v3  ;;  %v4718_v21 = vld [vmem:[%s5973_s1] sm:$0xff]   ;;  %v4722_v25 = vld [vmem:[%s5973_s1 + $0xb0] sm:$0xff]   ;;  %v4724_v27 = vld [vmem:[%s5973_s1 + $0xa8] sm:$0xff]  }
  0x12   : > { %4174 = vmatpush3.bf16.msra.mxu1 %v4706_v4  ;;  %4155 = vmatprep.subr.bf16.mxu0 %v4945_v1  ;;  %v213_v15 = vshll.u32 %v3283_v12, 16  ;;  %v211_v18 = vshrl.u32 %v3283_v12, 16  ;;  %v4723_v26 = vld [vmem:[%s5973_s1 + $0xf0] sm:$0xff]   ;;  %v4725_v28 = vld [vmem:[%s5973_s1 + $0xe8] sm:$0xff]   ;;  %v4726_v29 = vld [vmem:[%s5973_s1 + $0xa0] sm:$0xff]  }
  0x13   : > { %4175 = vmatprep.subr.bf16.mxu1 %v4945_v1  ;;  %v4727_v30 = vld [vmem:[%s5973_s1 + $0xe0] sm:$0xff]   ;;  %v4728_v31 = vld [vmem:[%s5973_s1 + $0x98] sm:$0xff]   ;;  %v4730_v33 = vld [vmem:[%s5973_s1 + $0x90] sm:$0xff]  }
  0x14   : > { %v215_v19 = vrot.slane %v213_v15, 1  ;;  %v4729_v32 = vld [vmem:[%s5973_s1 + $0xd8] sm:$0xff]   ;;  %v4731_v34 = vld [vmem:[%s5973_s1 + $0xd0] sm:$0xff]   ;;  %v4732_v35 = vld [vmem:[%s5973_s1 + $0x88] sm:$0xff]  }
  0x15   : > { %4156 = vmatpush3.bf16.msra.mxu0 %v4707_v5  ;;  %v4733_v36 = vld [vmem:[%s5973_s1 + $0xc8] sm:$0xff]   ;;  %v4736_v37 = vld [vmem:[%s5017_s6] ss:$0 sps:$4 sm:$0x66]   ;;  %v4737_v41 = vld [vmem:[%s5973_s1 + $0x138] sm:$0xff]  }
  0x16   : > { %4176 = vmatpush3.bf16.msra.mxu1 %v4708_v6  ;;  %4157 = vmatprep.subr.bf16.mxu0 %v4945_v1  ;;  %v216_v22 = vor.u32 %v215_v19, %v211_v18  ;;  %v4734_v38 = vld [vmem:[%s5973_s1 + $0x80] sm:$0xff]   ;;  %v415_v40 = vrot.slane %v4736_v37, 1  ;;  %v4739_v43 = vld [vmem:[%s5973_s1 + $0x178] sm:$0xff]   ;;  %v4740_v44 = vld [vmem:[%s5973_s1 + $0x130] sm:$0xff]  }
  0x17   : > { %4177 = vmatprep.subr.bf16.mxu1 %v4945_v1  ;;  %v4735_v39 = vld [vmem:[%s5973_s1 + $0xc0] sm:$0xff]   ;;  %v4741_v45 = vld [vmem:[%s5973_s1 + $0x170] sm:$0xff]   ;;  %v4742_v46 = vld [vmem:[%s5973_s1 + $0x128] sm:$0xff]  }
  0x18   : > { %v3325_v42 = vld [vmem:[%s5017_s6 + $0x4] sm:$0x3]  ;;  %v4743_v47 = vld [vmem:[%s5973_s1 + $0x168] sm:$0xff]   ;;  %v4746_v50 = vld [vmem:[%s5973_s1 + $0x118] sm:$0xff]  }
  0x19   : > { %4158 = vmatpush3.bf16.msra.mxu0 %v4709_v7  ;;  %v4744_v48 = vld [vmem:[%s5973_s1 + $0x120] sm:$0xff]   ;;  %v4747_v51 = vld [vmem:[%s5973_s1 + $0x158] sm:$0xff]   ;;  %v3366_v52 = vcombine.low %v3325_v42, %v3325_v42  ;;  %v4748_v53 = vld [vmem:[%s5973_s1 + $0x110] sm:$0xff]  }
  0x1a   : > { %4178 = vmatpush3.bf16.msra.mxu1 %v4710_v8  ;;  %4159 = vmatprep.subr.bf16.mxu0 %v4945_v1  ;;  %v4745_v49 = vld [vmem:[%s5973_s1 + $0x160] sm:$0xff]   ;;  %v4749_v54 = vld [vmem:[%s5973_s1 + $0x150] sm:$0xff]   ;;  %v4750_v56 = vld [vmem:[%s5973_s1 + $0x108] sm:$0xff]  }
  0x1b   : > { %4179 = vmatprep.subr.bf16.mxu1 %v4945_v1  ;;  %v637_v55 = vshll.u32 %v3366_v52, 16  ;;  %v4751_v57 = vld [vmem:[%s5973_s1 + $0x148] sm:$0xff]   ;;  %v4755_v58 = vld [vmem:[%s5017_s6 + $0x4] ss:$0 sps:$4 sm:$0x66]   ;;  %v635_v59 = vshrl.u32 %v3366_v52, 16  ;;  %vm5797_vm3 = vmand %vm1189_vm1, %vm1190_vm2 }
  0x1c   : > { %v4752_v61 = vld [vmem:[%s5973_s1 + $0x100] sm:$0xff]   ;;  %v4754_v0 = vld [vmem:[%s5973_s1 + $0x1b8] sm:$0xff]   ;;  %v752_v2 = vrot.slane %v4755_v58, 1  ;;  %v4757_v4 = vld [vmem:[%s5973_s1 + $0x1b0] sm:$0xff]  }
  0x1d   : > { %4160 = vmatpush3.bf16.msra.mxu0 %v4711_v9  ;;  %v639_v60 = vrot.slane %v637_v55, 1  ;;  %v4753_v62 = vld [vmem:[%s5973_s1 + $0x140] sm:$0xff]   ;;  %v4756_v3 = vld [vmem:[%s5973_s1 + $0x1f8] sm:$0xff]   ;;  %v4758_v5 = vld [vmem:[%s5973_s1 + $0x1f0] sm:$0xff]  }
  0x1e   : > { %4180 = vmatpush3.bf16.msra.mxu1 %v4712_v10  ;;  %4161 = vmatprep.subr.bf16.mxu0 %v4945_v1  ;;  %v4759_v6 = vld [vmem:[%s5973_s1 + $0x1a8] sm:$0xff]   ;;  %v4761_v8 = vld [vmem:[%s5973_s1 + $0x1a0] sm:$0xff]   ;;  %v4763_v10 = vld [vmem:[%s5973_s1 + $0x198] sm:$0xff]  }
  0x1f   : > { %4181 = vmatprep.subr.bf16.mxu1 %v4945_v1  ;;  %v640_v63 = vor.u32 %v639_v60, %v635_v59  ;;  %v4760_v7 = vld [vmem:[%s5973_s1 + $0x1e8] sm:$0xff]   ;;  %v4762_v9 = vld [vmem:[%s5973_s1 + $0x1e0] sm:$0xff]   ;;  %v4766_v15 = vld [vmem:[%s5973_s1 + $0x1d0] sm:$0xff]  }
  0x20   : > { %v3401_v12 = vld [vmem:[%s5017_s6 + $0x8] sm:$0x3]  ;;  %v4769_v19 = vld [vmem:[%s5973_s1 + $0x180] sm:$0xff]   ;;  %v4783_v37 = vld [vmem:[%s5973_s1 + $0x50] sm:$0xff]  }
  0x21   : > { %4162 = vmatpush3.bf16.msra.mxu0 %v4713_v13  ;;  %v4765_v13 = vld [vmem:[%s5973_s1 + $0x190] sm:$0xff]   ;;  %v4768_v18 = vld [vmem:[%s5973_s1 + $0x1c8] sm:$0xff]   ;;  %v4797_v55 = vld [vmem:[%s5973_s1 + $0xa0] sm:$0xff]  }
  0x22   : > { %4182 = vmatpush3.bf16.msra.mxu1 %v4714_v14  ;;  %4163 = vmatprep.subr.bf16.mxu0 %v4945_v1  ;;  %v3442_v14 = vcombine.low %v3401_v12, %v3401_v12  ;;  %v4794_v52 = vld [vmem:[%s5973_s1 + $0x28] sm:$0xff]   ;;  %v4800_v58 = vld [vmem:[%s5973_s1 + $0x10] sm:$0xff]  }
  0x23   : > { %4183 = vmatprep.subr.bf16.mxu1 %v4945_v1  ;;  %v4801_v59 = vld [vmem:[%s5973_s1 + $0x90] sm:$0xff]   ;;  %v4802_v60 = vld [vmem:[%s5973_s1 + $0x8] sm:$0xff]  }
  0x25   : > { %4164 = vmatpush3.bf16.msra.mxu0 %v4715_v16  ;;  %v4767_v16 = vld [vmem:[%s5973_s1 + $0x188] sm:$0xff]  }
  0x26   : > { %4184 = vmatpush3.bf16.msra.mxu1 %v4716_v17  ;;  %4165 = vmatprep.subr.bf16.mxu0 %v4945_v1  ;;  %v974_v17 = vshll.u32 %v3442_v14, 16 }
  0x27   : > { %4185 = vmatprep.subr.bf16.mxu1 %v4945_v1 }
  0x29   : > { %4166 = vmatpush3.bf16.msra.mxu0 %v4717_v20  ;;  %v972_v20 = vshrl.u32 %v3442_v14, 16  ;;  %v4817_v14 = vld [vmem:[%s5973_s1 + $0xd0] sm:$0xff]  }
  0x2a   : > { %4186 = vmatpush3.bf16.msra.mxu1 %v4718_v21  ;;  %4191 = vmatprep.subr.bf16.mxu0 %v4945_v1  ;;  %v976_v21 = vrot.slane %v974_v17, 1  ;;  %v4819_v17 = vld [vmem:[%s5973_s1 + $0xc8] sm:$0xff]  }
  0x2b   : > { %4211 = vmatprep.subr.bf16.mxu1 %v4945_v1 }
  0x2c   : > { %4168 = vmatmul.mubr.bf16.vlgmr.msra.gmra.mxu0 %v216_v22  ;;  %v4770_v22 = vld [vmem:[%s5973_s1 + $0x1c0] sm:$0xff]  }
  0x2d   : > { %4188 = vmatmul.mubr.bf16.vlgmr.msra.gmra.mxu1 %v173_v11  ;;  %4192 = vmatpush3.bf16.msra.mxu0 %v4720_v23  ;;  %v4764_v11 = vld [vmem:[%s5973_s1 + $0x1d8] sm:$0xff]  }
  0x2e   : > { %4212 = vmatpush3.bf16.msra.mxu1 %v4721_v24  ;;  %4193 = vmatprep.subr.bf16.mxu0 %v4945_v1  ;;  %v4772_v23 = vld [vmem:[%s5973_s1 + $0x238] sm:$0xff]   ;;  %v977_v24 = vor.u32 %v976_v21, %v972_v20  ;;  %v4821_v20 = vld [vmem:[%s5973_s1 + $0xc0] sm:$0xff]  }
  0x2f   : > { %4213 = vmatprep.subr.bf16.mxu1 %v4945_v1  ;;  %4207 = vmatprep.mubr.msk.bf16.mxu0 %vm4946_vm0, %v4945_v1 }
  0x30   : > { %4227 = vmatprep.mubr.msk.bf16.mxu1 %vm4946_vm0, %v4945_v1 }
  0x31   : > { %4194 = vmatpush3.bf16.msra.mxu0 %v4722_v25  ;;  %v4773_v25 = vld [vmem:[%s5973_s1 + $0x78] sm:$0xff]  }
  0x32   : > { %4214 = vmatpush3.bf16.msra.mxu1 %v4723_v26  ;;  %4195 = vmatprep.subr.bf16.mxu0 %v4945_v1  ;;  %v4774_v26 = vld [vmem:[%s5973_s1 + $0x230] sm:$0xff]  }
  0x33   : > { %4215 = vmatprep.subr.bf16.mxu1 %v4945_v1 }
  0x35   : > { %4196 = vmatpush3.bf16.msra.mxu0 %v4724_v27  ;;  %v4775_v27 = vld [vmem:[%s5973_s1 + $0x70] sm:$0xff]  }
  0x36   : > { %4216 = vmatpush3.bf16.msra.mxu1 %v4725_v28  ;;  %4197 = vmatprep.subr.bf16.mxu0 %v4945_v1  ;;  %v4776_v28 = vld [vmem:[%s5973_s1 + $0x228] sm:$0xff]  }
  0x37   : > { %4217 = vmatprep.subr.bf16.mxu1 %v4945_v1 }
  0x39   : > { %4198 = vmatpush3.bf16.msra.mxu0 %v4726_v29  ;;  %v4777_v29 = vld [vmem:[%s5973_s1 + $0x68] sm:$0xff]  }
  0x3a   : > { %4218 = vmatpush3.bf16.msra.mxu1 %v4727_v30  ;;  %4199 = vmatprep.subr.bf16.mxu0 %v4945_v1  ;;  %v4778_v30 = vld [vmem:[%s5973_s1 + $0x220] sm:$0xff]  }
  0x3b   : > { %4219 = vmatprep.subr.bf16.mxu1 %v4945_v1 }
  0x3d   : > { %4200 = vmatpush3.bf16.msra.mxu0 %v4728_v31  ;;  %v4779_v31 = vld [vmem:[%s5973_s1 + $0x60] sm:$0xff]  }
  0x3e   : > { %4220 = vmatpush3.bf16.msra.mxu1 %v4729_v32  ;;  %4201 = vmatprep.subr.bf16.mxu0 %v4945_v1  ;;  %v4780_v32 = vld [vmem:[%s5973_s1 + $0x218] sm:$0xff]  }
  0x3f   : > { %4221 = vmatprep.subr.bf16.mxu1 %v4945_v1 }
  0x41   : > { %4202 = vmatpush3.bf16.msra.mxu0 %v4730_v33  ;;  %v5300_v33 = vld [vmem:[%s5017_s6 + $0x4] sm:$0x3] }
  0x42   : > { %4222 = vmatpush3.bf16.msra.mxu1 %v4731_v34  ;;  %4203 = vmatprep.subr.bf16.mxu0 %v4945_v1  ;;  %v4781_v34 = vld [vmem:[%s5973_s1 + $0x58] sm:$0xff]  }
  0x43   : > { %4223 = vmatprep.subr.bf16.mxu1 %v4945_v1 }
  0x45   : > { %4204 = vmatpush3.bf16.msra.mxu0 %v4732_v35  ;;  %v4782_v35 = vld [vmem:[%s5973_s1 + $0x210] sm:$0xff]  }
  0x46   : > { %4224 = vmatpush3.bf16.msra.mxu1 %v4733_v36  ;;  %4205 = vmatprep.subr.bf16.mxu0 %v4945_v1  ;;  %v3495_v36 = vcombine.low %v5300_v33, %v5300_v33 }
  0x47   : > { %4225 = vmatprep.subr.bf16.mxu1 %v4945_v1 }
  0x49   : > { %4206 = vmatpush3.bf16.msra.mxu0 %v4734_v38  ;;  %v4784_v38 = vld [vmem:[%s5973_s1 + $0x208] sm:$0xff]  }
  0x4a   : > { %4226 = vmatpush3.bf16.msra.mxu1 %v4735_v39  ;;  %4231 = vmatprep.subr.bf16.mxu0 %v4945_v1  ;;  %v1234_v39 = vshll.u32 %v3495_v36, 16 }
  0x4b   : > { %4251 = vmatprep.subr.bf16.mxu1 %v4945_v1 }
  0x4c   : > { %4208 = vmatmul.mubr.bf16.vlgmr.msra.gmra.mxu0 %v415_v40  ;;  %v4785_v40 = vld [vmem:[%s5973_s1 + $0x48] sm:$0xff]  }
  0x4d   : > { %4232 = vmatpush3.bf16.msra.mxu0 %v4737_v41  ;;  %4228 = vmatmul.mubr.bf16.vlgmr.msra.gmra.mxu1 %v3325_v42  ;;  %v4788_v41 = vld [vmem:[%s5017_s6 + $0x8] ss:$0 sps:$4 sm:$0x66]   ;;  %v4786_v42 = vld [vmem:[%s5973_s1 + $0x200] sm:$0xff]  }
  0x4e   : > { %4252 = vmatpush3.bf16.msra.mxu1 %v4739_v43  ;;  %4233 = vmatprep.subr.bf16.mxu0 %v4945_v1  ;;  %v1232_v43 = vshrl.u32 %v3495_v36, 16 }
  0x4f   : > { %4253 = vmatprep.subr.bf16.mxu1 %v4945_v1  ;;  %4247 = vmatprep.mubr.msk.bf16.mxu0 %vm4946_vm0, %v4945_v1 }
  0x50   : > { %4267 = vmatprep.mubr.msk.bf16.mxu1 %vm4946_vm0, %v4945_v1 }
  0x51   : > { %4234 = vmatpush3.bf16.msra.mxu0 %v4740_v44  ;;  %v1236_v44 = vrot.slane %v1234_v39, 1 }
  0x52   : > { %4254 = vmatpush3.bf16.msra.mxu1 %v4741_v45  ;;  %4235 = vmatprep.subr.bf16.mxu0 %v4945_v1  ;;  %v4787_v45 = vld [vmem:[%s5973_s1 + $0x40] sm:$0xff]  }
  0x53   : > { %4255 = vmatprep.subr.bf16.mxu1 %v4945_v1 }
  0x55   : > { %4236 = vmatpush3.bf16.msra.mxu0 %v4742_v46  ;;  %v1089_v46 = vrot.slane %v4788_v41, 1  ;;  %v4831_v41 = vld [vmem:[%s5973_s1 + $0x1a0] sm:$0xff]  }
  0x56   : > { %4256 = vmatpush3.bf16.msra.mxu1 %v4743_v47  ;;  %4237 = vmatprep.subr.bf16.mxu0 %v4945_v1  ;;  %v4789_v47 = vld [vmem:[%s5973_s1 + $0x38] sm:$0xff]  }
  0x57   : > { %4257 = vmatprep.subr.bf16.mxu1 %v4945_v1 }
  0x59   : > { %4238 = vmatpush3.bf16.msra.mxu0 %v4744_v48  ;;  %v1237_v48 = vor.u32 %v1236_v44, %v1232_v43  ;;  %v4833_v43 = vld [vmem:[%s5973_s1 + $0x198] sm:$0xff]   ;;  %v4834_v44 = vld [vmem:[%s5973_s1 + $0x150] sm:$0xff]  }
  0x5a   : > { %4258 = vmatpush3.bf16.msra.mxu1 %v4745_v49  ;;  %4239 = vmatprep.subr.bf16.mxu0 %v4945_v1  ;;  %v4791_v49 = vld [vmem:[%s5973_s1 + $0xb8] sm:$0xff]  }
  0x5b   : > { %4259 = vmatprep.subr.bf16.mxu1 %v4945_v1 }
  0x5d   : > { %4240 = vmatpush3.bf16.msra.mxu0 %v4746_v50  ;;  %v4792_v50 = vld [vmem:[%s5973_s1 + $0x30] sm:$0xff]  }
  0x5e   : > { %4260 = vmatpush3.bf16.msra.mxu1 %v4747_v51  ;;  %4241 = vmatprep.subr.bf16.mxu0 %v4945_v1  ;;  %v4793_v51 = vld [vmem:[%s5973_s1 + $0xb0] sm:$0xff]  }
  0x5f   : > { %4261 = vmatprep.subr.bf16.mxu1 %v4945_v1 }
  0x61   : > { %4242 = vmatpush3.bf16.msra.mxu0 %v4748_v53  ;;  %v4795_v53 = vld [vmem:[%s5973_s1 + $0xa8] sm:$0xff]  }
  0x62   : > { %4262 = vmatpush3.bf16.msra.mxu1 %v4749_v54  ;;  %4243 = vmatprep.subr.bf16.mxu0 %v4945_v1  ;;  %v4796_v54 = vld [vmem:[%s5973_s1 + $0x20] sm:$0xff]  }
  0x63   : > { %4263 = vmatprep.subr.bf16.mxu1 %v4945_v1 }
  0x65   : > { %4244 = vmatpush3.bf16.msra.mxu0 %v4750_v56  ;;  %v4798_v56 = vld [vmem:[%s5973_s1 + $0x18] sm:$0xff]  }
  0x66   : > { %4264 = vmatpush3.bf16.msra.mxu1 %v4751_v57  ;;  %4245 = vmatprep.subr.bf16.mxu0 %v4945_v1  ;;  %v4799_v57 = vld [vmem:[%s5973_s1 + $0x98] sm:$0xff]  }
  0x67   : > { %4265 = vmatprep.subr.bf16.mxu1 %v4945_v1 }
  0x69   : > { %4246 = vmatpush3.bf16.msra.mxu0 %v4752_v61  ;;  %v4803_v61 = vld [vmem:[%s5973_s1 + $0x88] sm:$0xff]  }
  0x6a   : > { %4266 = vmatpush3.bf16.msra.mxu1 %v4753_v62  ;;  %4271 = vmatprep.subr.bf16.mxu0 %v4945_v1  ;;  %v4807_v62 = vld [vmem:[%s5017_s6 + $0x4] ss:$0 sps:$4 sm:$0x66]  }
  0x6b   : > { %4291 = vmatprep.subr.bf16.mxu1 %v4945_v1 }
  0x6c   : > { %4248 = vmatmul.mubr.bf16.vlgmr.msra.gmra.mxu0 %v640_v63  ;;  %v4804_v63 = vld [vmem:[%s5973_s1] sm:$0xff]  }
  0x6d   : > { %4272 = vmatpush3.bf16.msra.mxu0 %v4754_v0  ;;  %4268 = vmatmul.mubr.bf16.vlgmr.msra.gmra.mxu1 %v752_v2  ;;  %v4805_v0 = vld [vmem:[%s5973_s1 + $0x80] sm:$0xff]   ;;  %v4806_v2 = vld [vmem:[%s5973_s1 + $0xf8] sm:$0xff]  }
  0x6e   : > { %4292 = vmatpush3.bf16.msra.mxu1 %v4756_v3  ;;  %4273 = vmatprep.subr.bf16.mxu0 %v4945_v1  ;;  %v1435_v3 = vrot.slane %v4807_v62, 1 }
  0x6f   : > { %4293 = vmatprep.subr.bf16.mxu1 %v4945_v1  ;;  %4287 = vmatprep.mubr.msk.bf16.mxu0 %vm4946_vm0, %v4945_v1 }
  0x70   : > { %4307 = vmatprep.mubr.msk.bf16.mxu1 %vm4946_vm0, %v4945_v1 }
  0x71   : > { %4274 = vmatpush3.bf16.msra.mxu0 %v4757_v4  ;;  %v4808_v4 = vld [vmem:[%s5973_s1 + $0x138] sm:$0xff]  }
  0x72   : > { %4294 = vmatpush3.bf16.msra.mxu1 %v4758_v5  ;;  %4275 = vmatprep.subr.bf16.mxu0 %v4945_v1  ;;  %v4809_v5 = vld [vmem:[%s5973_s1 + $0xf0] sm:$0xff]  }
  0x73   : > { %4295 = vmatprep.subr.bf16.mxu1 %v4945_v1 }
  0x75   : > { %4276 = vmatpush3.bf16.msra.mxu0 %v4759_v6  ;;  %v4810_v6 = vld [vmem:[%s5973_s1 + $0x130] sm:$0xff]  }
  0x76   : > { %4296 = vmatpush3.bf16.msra.mxu1 %v4760_v7  ;;  %4277 = vmatprep.subr.bf16.mxu0 %v4945_v1  ;;  %v4811_v7 = vld [vmem:[%s5973_s1 + $0xe8] sm:$0xff]  }
  0x77   : > { %4297 = vmatprep.subr.bf16.mxu1 %v4945_v1 }
  0x79   : > { %4278 = vmatpush3.bf16.msra.mxu0 %v4761_v8  ;;  %v4812_v8 = vld [vmem:[%s5973_s1 + $0x128] sm:$0xff]  }
  0x7a   : > { %4298 = vmatpush3.bf16.msra.mxu1 %v4762_v9  ;;  %4279 = vmatprep.subr.bf16.mxu0 %v4945_v1  ;;  %v4813_v9 = vld [vmem:[%s5973_s1 + $0xe0] sm:$0xff]  }
  0x7b   : > { %4299 = vmatprep.subr.bf16.mxu1 %v4945_v1 }
  0x7d   : > { %4280 = vmatpush3.bf16.msra.mxu0 %v4763_v10  ;;  %v4814_v10 = vld [vmem:[%s5973_s1 + $0x120] sm:$0xff]  }
  0x7e   : > { %4300 = vmatpush3.bf16.msra.mxu1 %v4764_v11  ;;  %4281 = vmatprep.subr.bf16.mxu0 %v4945_v1  ;;  %v4815_v11 = vld [vmem:[%s5973_s1 + $0xd8] sm:$0xff]  }
  0x7f   : > { %4301 = vmatprep.subr.bf16.mxu1 %v4945_v1 }
  0x81   : > { %4282 = vmatpush3.bf16.msra.mxu0 %v4765_v13  ;;  %v3538_v13 = vld [vmem:[%s5017_s6 + $0x8] sm:$0x3] }
  0x82   : > { %4302 = vmatpush3.bf16.msra.mxu1 %v4766_v15  ;;  %4283 = vmatprep.subr.bf16.mxu0 %v4945_v1  ;;  %v3579_v15 = vcombine.low %v3538_v13, %v3538_v13 }
  0x83   : > { %4303 = vmatprep.subr.bf16.mxu1 %v4945_v1 }
  0x84   : > { %v1652_v21 = vshrl.u32 %v3579_v15, 16 }
  0x85   : > { %4284 = vmatpush3.bf16.msra.mxu0 %v4767_v16  ;;  %v4818_v16 = vld [vmem:[%s5973_s1 + $0x110] sm:$0xff]  }
  0x86   : > { %4304 = vmatpush3.bf16.msra.mxu1 %v4768_v18  ;;  %4285 = vmatprep.subr.bf16.mxu0 %v4945_v1  ;;  %v1654_v18 = vshll.u32 %v3579_v15, 16  ;;  %v4855_v15 = vld [vmem:[%s5973_s1 + $0x208] sm:$0xff]  }
  0x87   : > { %4305 = vmatprep.subr.bf16.mxu1 %v4945_v1 }
  0x89   : > { %4286 = vmatpush3.bf16.msra.mxu0 %v4769_v19  ;;  %v4820_v19 = vld [vmem:[%s5973_s1 + $0x108] sm:$0xff]  }
  0x8a   : > { %4306 = vmatpush3.bf16.msra.mxu1 %v4770_v22  ;;  %4311 = vmatprep.subr.bf16.mxu0 %v4945_v1  ;;  %v1656_v22 = vrot.slane %v1654_v18, 1  ;;  %v4856_v18 = vld [vmem:[%s5973_s1 + $0x1c0] sm:$0xff]  }
  0x8b   : > { %4331 = vmatprep.subr.bf16.mxu1 %v4945_v1 }
  0x8c   : > { %4288 = vmatmul.mubr.bf16.vlgmr.msra.gmra.mxu0 %v3401_v12  ;;  %v4816_v12 = vld [vmem:[%s5973_s1 + $0x118] sm:$0xff]  }
  0x8d   : > { %4312 = vmatpush3.bf16.msra.mxu0 %v4772_v23  ;;  %4308 = vmatmul.mubr.bf16.vlgmr.msra.gmra.mxu1 %v977_v24  ;;  %v4822_v23 = vld [vmem:[%s5973_s1 + $0x100] sm:$0xff]   ;;  %v4824_v24 = vld [vmem:[%s5973_s1 + $0x178] sm:$0xff]  }
  0x8e   : > { %4332 = vmatpush3.bf16.msra.mxu1 %v4773_v25  ;;  %4313 = vmatprep.subr.bf16.mxu0 %v4945_v1  ;;  %v1657_v25 = vor.u32 %v1656_v22, %v1652_v21  ;;  %v4858_v22 = vld [vmem:[%s5973_s1 + $0x78] sm:$0xff]  }
  0x8f   : > { %4333 = vmatprep.subr.bf16.mxu1 %v4945_v1  ;;  %4327 = vmatprep.mubr.msk.bf16.mxu0 %vm4946_vm0, %v4945_v1 }
  0x90   : > { %4347 = vmatprep.mubr.msk.bf16.mxu1 %vm4946_vm0, %v4945_v1 }
  0x91   : > { %4314 = vmatpush3.bf16.msra.mxu0 %v4774_v26  ;;  %v4825_v26 = vld [vmem:[%s5973_s1 + $0x1b8] sm:$0xff]  }
  0x92   : > { %4334 = vmatpush3.bf16.msra.mxu1 %v4775_v27  ;;  %4315 = vmatprep.subr.bf16.mxu0 %v4945_v1 }
  0x93   : > { %4335 = vmatprep.subr.bf16.mxu1 %v4945_v1 }
  0x95   : > { %4316 = vmatpush3.bf16.msra.mxu0 %v4776_v28 }
  0x96   : > { %4336 = vmatpush3.bf16.msra.mxu1 %v4777_v29  ;;  %4317 = vmatprep.subr.bf16.mxu0 %v4945_v1  ;;  %v4826_v29 = vld [vmem:[%s5973_s1 + $0x170] sm:$0xff]  }
  0x97   : > { %4337 = vmatprep.subr.bf16.mxu1 %v4945_v1 }
  0x99   : > { %4318 = vmatpush3.bf16.msra.mxu0 %v4778_v30 }
  0x9a   : > { %4338 = vmatpush3.bf16.msra.mxu1 %v4779_v31  ;;  %4319 = vmatprep.subr.bf16.mxu0 %v4945_v1 }
  0x9b   : > { %4339 = vmatprep.subr.bf16.mxu1 %v4945_v1 }
  0x9d   : > { %4320 = vmatpush3.bf16.msra.mxu0 %v4780_v32  ;;  %v4827_v32 = vld [vmem:[%s5973_s1 + $0x1b0] sm:$0xff]  }
  0x9e   : > { %4340 = vmatpush3.bf16.msra.mxu1 %v4781_v34  ;;  %4321 = vmatprep.subr.bf16.mxu0 %v4945_v1 }
  0x9f   : > { %4341 = vmatprep.subr.bf16.mxu1 %v4945_v1 }
  0xa1   : > { %4322 = vmatpush3.bf16.msra.mxu0 %v4782_v35  ;;  %v4828_v35 = vld [vmem:[%s5973_s1 + $0x168] sm:$0xff]  }
  0xa2   : > { %4342 = vmatpush3.bf16.msra.mxu1 %v4783_v37  ;;  %4323 = vmatprep.subr.bf16.mxu0 %v4945_v1 }
  0xa3   : > { %4343 = vmatprep.subr.bf16.mxu1 %v4945_v1 }
  0xa5   : > { %4324 = vmatpush3.bf16.msra.mxu0 %v4784_v38  ;;  %v4829_v38 = vld [vmem:[%s5973_s1 + $0x1a8] sm:$0xff]  }
  0xa6   : > { %4344 = vmatpush3.bf16.msra.mxu1 %v4785_v40  ;;  %4325 = vmatprep.subr.bf16.mxu0 %v4945_v1  ;;  %v4830_v40 = vld [vmem:[%s5973_s1 + $0x160] sm:$0xff]  }
  0xa7   : > { %4345 = vmatprep.subr.bf16.mxu1 %v4945_v1 }
  0xa9   : > { %4326 = vmatpush3.bf16.msra.mxu0 %v4786_v42  ;;  %v4832_v42 = vld [vmem:[%s5973_s1 + $0x158] sm:$0xff]  }
  0xaa   : > { %4346 = vmatpush3.bf16.msra.mxu1 %v4787_v45  ;;  %4351 = vmatprep.subr.bf16.mxu0 %v4945_v1  ;;  %v4835_v45 = vld [vmem:[%s5973_s1 + $0x190] sm:$0xff]  }
  0xab   : > { %4371 = vmatprep.subr.bf16.mxu1 %v4945_v1 }
  0xac   : > { %4328 = vmatmul.mubr.bf16.vlgmr.msra.gmra.mxu0 %v1089_v46  ;;  %v4836_v46 = vld [vmem:[%s5973_s1 + $0x148] sm:$0xff]  }
  0xad   : > { %4352 = vmatpush3.bf16.msra.mxu0 %v4789_v47  ;;  %4348 = vmatmul.mubr.bf16.vlgmr.msra.gmra.mxu1 %v1237_v48  ;;  %v4837_v47 = vld [vmem:[%s5973_s1 + $0x188] sm:$0xff]  }
  0xae   : > { %4372 = vmatpush3.bf16.msra.mxu1 %v4791_v49  ;;  %4353 = vmatprep.subr.bf16.mxu0 %v4945_v1  ;;  %v4840_v48 = vld [vmem:[%s5017_s6 + $0x8] ss:$0 sps:$4 sm:$0x66]   ;;  %v4838_v49 = vld [vmem:[%s5973_s1 + $0x140] sm:$0xff]  }
  0xaf   : > { %4373 = vmatprep.subr.bf16.mxu1 %v4945_v1  ;;  %4367 = vmatprep.mubr.msk.bf16.mxu0 %vm4946_vm0, %v4945_v1 }
  0xb0   : > { %4387 = vmatprep.mubr.msk.bf16.mxu1 %vm4946_vm0, %v4945_v1 }
  0xb1   : > { %4354 = vmatpush3.bf16.msra.mxu0 %v4792_v50  ;;  %v4839_v50 = vld [vmem:[%s5973_s1 + $0x180] sm:$0xff]  }
  0xb2   : > { %4374 = vmatpush3.bf16.msra.mxu1 %v4793_v51  ;;  %4355 = vmatprep.subr.bf16.mxu0 %v4945_v1  ;;  %v1768_v51 = vrot.slane %v4840_v48, 1 }
  0xb3   : > { %4375 = vmatprep.subr.bf16.mxu1 %v4945_v1 }
  0xb5   : > { %4356 = vmatpush3.bf16.msra.mxu0 %v4794_v52  ;;  %v4841_v52 = vld [vmem:[%s5973_s1 + $0x1f8] sm:$0xff]  }
  0xb6   : > { %4376 = vmatpush3.bf16.msra.mxu1 %v4795_v53  ;;  %4357 = vmatprep.subr.bf16.mxu0 %v4945_v1  ;;  %v3614_v53 = vld [vmem:[%s5017_s6 + $0xc] sm:$0x3] }
  0xb7   : > { %4377 = vmatprep.subr.bf16.mxu1 %v4945_v1 }
  0xb9   : > { %4358 = vmatpush3.bf16.msra.mxu0 %v4796_v54  ;;  %v4843_v54 = vld [vmem:[%s5973_s1 + $0x238] sm:$0xff]  }
  0xba   : > { %4378 = vmatpush3.bf16.msra.mxu1 %v4797_v55  ;;  %4359 = vmatprep.subr.bf16.mxu0 %v4945_v1 }
  0xbb   : > { %4379 = vmatprep.subr.bf16.mxu1 %v4945_v1 }
  0xbd   : > { %4360 = vmatpush3.bf16.msra.mxu0 %v4798_v56 }
  0xbe   : > { %4380 = vmatpush3.bf16.msra.mxu1 %v4799_v57  ;;  %4361 = vmatprep.subr.bf16.mxu0 %v4945_v1 }
  0xbf   : > { %4381 = vmatprep.subr.bf16.mxu1 %v4945_v1 }
  0xc1   : > { %4362 = vmatpush3.bf16.msra.mxu0 %v4800_v58  ;;  %v4844_v58 = vld [vmem:[%s5973_s1 + $0x1f0] sm:$0xff]  }
  0xc2   : > { %4382 = vmatpush3.bf16.msra.mxu1 %v4801_v59  ;;  %4363 = vmatprep.subr.bf16.mxu0 %v4945_v1 }
  0xc3   : > { %4383 = vmatprep.subr.bf16.mxu1 %v4945_v1 }
  0xc5   : > { %4364 = vmatpush3.bf16.msra.mxu0 %v4802_v60  ;;  %v4845_v60 = vld [vmem:[%s5973_s1 + $0x230] sm:$0xff]  }
  0xc6   : > { %4384 = vmatpush3.bf16.msra.mxu1 %v4803_v61  ;;  %4365 = vmatprep.subr.bf16.mxu0 %v4945_v1 }
  0xc7   : > { %4385 = vmatprep.subr.bf16.mxu1 %v4945_v1 }
  0xc9   : > { %4366 = vmatpush3.bf16.msra.mxu0 %v4804_v63 }
  0xca   : > { %4386 = vmatpush3.bf16.msra.mxu1 %v4805_v0  ;;  %4391 = vmatprep.subr.bf16.mxu0 %v4945_v1  ;;  %v4846_v0 = vld [vmem:[%s5973_s1 + $0x1e8] sm:$0xff]  }
  0xcb   : > { %4411 = vmatprep.subr.bf16.mxu1 %v4945_v1 }
  0xcc   : > { %4368 = vmatmul.mubr.bf16.vlgmr.msra.gmra.mxu0 %v5300_v33 }
  0xcd   : > { %4392 = vmatpush3.bf16.msra.mxu0 %v4806_v2  ;;  %4388 = vmatmul.mubr.bf16.vlgmr.msra.gmra.mxu1 %v1435_v3 }
  0xce   : > { %4412 = vmatpush3.bf16.msra.mxu1 %v4808_v4  ;;  %4393 = vmatprep.subr.bf16.mxu0 %v4945_v1  ;;  %v4847_v4 = vld [vmem:[%s5973_s1 + $0x228] sm:$0xff]  }
  0xcf   : > { %4413 = vmatprep.subr.bf16.mxu1 %v4945_v1  ;;  %4407 = vmatprep.mubr.msk.bf16.mxu0 %vm4946_vm0, %v4945_v1 }
  0xd0   : > { %4427 = vmatprep.mubr.msk.bf16.mxu1 %vm4946_vm0, %v4945_v1 }
  0xd1   : > { %4394 = vmatpush3.bf16.msra.mxu0 %v4809_v5 }
  0xd2   : > { %4414 = vmatpush3.bf16.msra.mxu1 %v4810_v6  ;;  %4395 = vmatprep.subr.bf16.mxu0 %v4945_v1  ;;  %v4848_v6 = vld [vmem:[%s5973_s1 + $0x1e0] sm:$0xff]  }
  0xd3   : > { %4415 = vmatprep.subr.bf16.mxu1 %v4945_v1 }
  0xd5   : > { %4396 = vmatpush3.bf16.msra.mxu0 %v4811_v7  ;;  %v4849_v7 = vld [vmem:[%s5973_s1 + $0x220] sm:$0xff]  }
  0xd6   : > { %4416 = vmatpush3.bf16.msra.mxu1 %v4812_v8  ;;  %4397 = vmatprep.subr.bf16.mxu0 %v4945_v1  ;;  %v4850_v8 = vld [vmem:[%s5973_s1 + $0x1d8] sm:$0xff]  }
  0xd7   : > { %4417 = vmatprep.subr.bf16.mxu1 %v4945_v1 }
  0xd9   : > { %4398 = vmatpush3.bf16.msra.mxu0 %v4813_v9  ;;  %v4851_v9 = vld [vmem:[%s5973_s1 + $0x218] sm:$0xff]  }
  0xda   : > { %4418 = vmatpush3.bf16.msra.mxu1 %v4814_v10  ;;  %4399 = vmatprep.subr.bf16.mxu0 %v4945_v1  ;;  %v3655_v10 = vcombine.low %v3614_v53, %v3614_v53 }
  0xdb   : > { %4419 = vmatprep.subr.bf16.mxu1 %v4945_v1 }
  0xdd   : > { %4400 = vmatpush3.bf16.msra.mxu0 %v4815_v11  ;;  %v4852_v11 = vld [vmem:[%s5973_s1 + $0x1d0] sm:$0xff]  }
  0xde   : > { %4420 = vmatpush3.bf16.msra.mxu1 %v4816_v12  ;;  %4401 = vmatprep.subr.bf16.mxu0 %v4945_v1  ;;  %v4853_v12 = vld [vmem:[%s5973_s1 + $0x210] sm:$0xff]  }
  0xdf   : > { %4421 = vmatprep.subr.bf16.mxu1 %v4945_v1 }
  0xe1   : > { %4402 = vmatpush3.bf16.msra.mxu0 %v4817_v14  ;;  %v4854_v14 = vld [vmem:[%s5973_s1 + $0x1c8] sm:$0xff]  }
  0xe2   : > { %4422 = vmatpush3.bf16.msra.mxu1 %v4818_v16  ;;  %4403 = vmatprep.subr.bf16.mxu0 %v4945_v1  ;;  %v1986_v16 = vshrl.u32 %v3655_v10, 16 }
  0xe3   : > { %4423 = vmatprep.subr.bf16.mxu1 %v4945_v1 }
  0xe5   : > { %4404 = vmatpush3.bf16.msra.mxu0 %v4819_v17 }
  0xe6   : > { %4424 = vmatpush3.bf16.msra.mxu1 %v4820_v19  ;;  %4405 = vmatprep.subr.bf16.mxu0 %v4945_v1  ;;  %v4859_v19 = vld [vmem:[%s5017_s6 + $0xc] ss:$0 sps:$4 sm:$0x66]  }
  0xe7   : > { %4425 = vmatprep.subr.bf16.mxu1 %v4945_v1 }
  0xe9   : > { %4406 = vmatpush3.bf16.msra.mxu0 %v4821_v20  ;;  %v4857_v20 = vld [vmem:[%s5973_s1 + $0x200] sm:$0xff]  }
  0xea   : > { %4426 = vmatpush3.bf16.msra.mxu1 %v4822_v23  ;;  %4431 = vmatprep.subr.bf16.mxu0 %v4945_v1  ;;  %v2102_v23 = vrot.slane %v4859_v19, 1  ;;  %v4893_v19 = vld [vmem:[%s5973_s1 + $0x138] sm:$0xff]  }
  0xeb   : > { %4451 = vmatprep.subr.bf16.mxu1 %v4945_v1 }
  0xec   : > { %v300_v27 = vpop.f32.mrf.mxu0  ;;  %4408 = vmatmul.mubr.bf16.vlgmr.msra.gmra.mxu0 %v3538_v13  ;;  %v1988_v13 = vshll.u32 %v3655_v10, 16  ;;  %v4887_v10 = vld [vmem:[%s5973_s1 + $0xd0] sm:$0xff]  }
  0xed   : > { %v388_v28 = vpop.f32.mrf.mxu1  ;;  %4432 = vmatpush3.bf16.msra.mxu0 %v4824_v24  ;;  %4428 = vmatmul.mubr.bf16.vlgmr.msra.gmra.mxu1 %v1657_v25  ;;  %v4860_v24 = vld [vmem:[%s5973_s1 + $0x38] sm:$0xff]  }
  0xee   : > { %v389_v30 = vadd.f32 %v388_v28, %v300_v27  ;;  %v4169_v31 = vpop.f32.mrf.mxu0  ;;  %4452 = vmatpush3.bf16.msra.mxu1 %v4825_v26  ;;  %4433 = vmatprep.subr.bf16.mxu0 %v4945_v1  ;;  %v1990_v17 = vrot.slane %v1988_v13, 1  ;;  %v4861_v27 = vld [vmem:[%s5973_s1 + $0x70] sm:$0xff]   ;;  %v4889_v13 = vld [vmem:[%s5973_s1 + $0xc8] sm:$0xff]  }
  0xef   : > { %4453 = vmatprep.subr.bf16.mxu1 %v4945_v1  ;;  %v4189_v33 = vpop.f32.mrf.mxu1  ;;  %4447 = vmatprep.mubr.msk.bf16.mxu0 %vm4946_vm0, %v4945_v1 }
  0xf0   : > { %v303_v34 = vpop.f32.mrf.mxu0  ;;  %4467 = vmatprep.mubr.msk.bf16.mxu1 %vm4946_vm0, %v4945_v1  ;;  %v1991_v21 = vor.u32 %v1990_v17, %v1986_v16  ;;  %v4891_v16 = vld [vmem:[%s5973_s1 + $0xc0] sm:$0xff]  }
  0xf1   : > { %4434 = vmatpush3.bf16.msra.mxu0 %v4826_v29  ;;  %v391_v36 = vpop.f32.mrf.mxu1  ;;  %v4862_v29 = vld [vmem:[%s5973_s1 + $0x30] sm:$0xff]  }
  0xf2   : > { %v4170_v37 = vpop.f32.mrf.mxu0  ;;  %4454 = vmatpush3.bf16.msra.mxu1 %v4827_v32  ;;  %4435 = vmatprep.subr.bf16.mxu0 %v4945_v1  ;;  %v4863_v32 = vld [vmem:[%s5973_s1 + $0x68] sm:$0xff]  }
  0xf3   : > { %4455 = vmatprep.subr.bf16.mxu1 %v4945_v1  ;;  %v4190_v39 = vpop.f32.mrf.mxu1  ;;  %v4865_v37 = vld [vmem:[%s5973_s1 + $0x60] sm:$0xff]  }
  0xf4   : > { %v4867_v39 = vld [vmem:[%s5973_s1 + $0x58] sm:$0xff]  }
  0xf5   : > { %4436 = vmatpush3.bf16.msra.mxu0 %v4828_v35  ;;  %v4864_v35 = vld [vmem:[%s5973_s1 + $0x28] sm:$0xff]  }
  0xf6   : > { %4456 = vmatpush3.bf16.msra.mxu1 %v4829_v38  ;;  %4437 = vmatprep.subr.bf16.mxu0 %v4945_v1  ;;  %v4866_v38 = vld [vmem:[%s5973_s1 + $0x20] sm:$0xff]  }
  0xf7   : > { %4457 = vmatprep.subr.bf16.mxu1 %v4945_v1 }
  0xf9   : > { %4438 = vmatpush3.bf16.msra.mxu0 %v4830_v40  ;;  %v3692_v40 = vld [vmem:[%s5017_s6 + $0x8] sm:$0x3] }
  0xfa   : > { %4458 = vmatpush3.bf16.msra.mxu1 %v4831_v41  ;;  %4439 = vmatprep.subr.bf16.mxu0 %v4945_v1  ;;  %v4868_v41 = vld [vmem:[%s5973_s1 + $0x18] sm:$0xff]  }
  0xfb   : > { %4459 = vmatprep.subr.bf16.mxu1 %v4945_v1 }
  0xfd   : > { %4440 = vmatpush3.bf16.msra.mxu0 %v4832_v42  ;;  %v3709_v42 = vcombine.low %v3692_v40, %v3692_v40 }
  0xfe   : > { %4460 = vmatpush3.bf16.msra.mxu1 %v4833_v43  ;;  %4441 = vmatprep.subr.bf16.mxu0 %v4945_v1  ;;  %v4869_v43 = vld [vmem:[%s5973_s1 + $0x50] sm:$0xff]  }
  0xff   : > { %4461 = vmatprep.subr.bf16.mxu1 %v4945_v1  ;;  %v2237_v48 = vshrl.u32 %v3709_v42, 16 }
 0x101   : > { %4442 = vmatpush3.bf16.msra.mxu0 %v4834_v44  ;;  %v4870_v44 = vld [vmem:[%s5973_s1 + $0x10] sm:$0xff]  }
 0x102   : > { %4462 = vmatpush3.bf16.msra.mxu1 %v4835_v45  ;;  %4443 = vmatprep.subr.bf16.mxu0 %v4945_v1  ;;  %v2239_v45 = vshll.u32 %v3709_v42, 16 }
 0x103   : > { %4463 = vmatprep.subr.bf16.mxu1 %v4945_v1 }
 0x105   : > { %4444 = vmatpush3.bf16.msra.mxu0 %v4836_v46  ;;  %v4871_v46 = vld [vmem:[%s5973_s1 + $0x48] sm:$0xff]  }
 0x106   : > { %4464 = vmatpush3.bf16.msra.mxu1 %v4837_v47  ;;  %4445 = vmatprep.subr.bf16.mxu0 %v4945_v1  ;;  %v4872_v47 = vld [vmem:[%s5973_s1 + $0x8] sm:$0xff]  }
 0x107   : > { %4465 = vmatprep.subr.bf16.mxu1 %v4945_v1 }
 0x109   : > { %4446 = vmatpush3.bf16.msra.mxu0 %v4838_v49  ;;  %v2241_v49 = vrot.slane %v2239_v45, 1  ;;  %v4902_v45 = vld [vmem:[%s5973_s1 + $0x118] sm:$0xff]  }
 0x10a   : > { %4466 = vmatpush3.bf16.msra.mxu1 %v4839_v50  ;;  %4471 = vmatprep.subr.bf16.mxu0 %v4945_v1  ;;  %v4873_v50 = vld [vmem:[%s5973_s1 + $0x40] sm:$0xff]  }
 0x10b   : > { %4491 = vmatprep.subr.bf16.mxu1 %v4945_v1 }
 0x10c   : > { %v499_v55 = vpop.f32.mrf.mxu0  ;;  %4448 = vmatmul.mubr.bf16.vlgmr.msra.gmra.mxu0 %v1768_v51  ;;  %v4874_v51 = vld [vmem:[%s5973_s1] sm:$0xff]  }
 0x10d   : > { %v505_v56 = vadd.f32 %v499_v55, %v389_v30  ;;  %4472 = vmatpush3.bf16.msra.mxu0 %v4841_v52  ;;  %v607_v57 = vpop.f32.mrf.mxu1  ;;  %4468 = vmatmul.mubr.bf16.vlgmr.msra.gmra.mxu1 %v3614_v53  ;;  %v2242_v52 = vor.u32 %v2241_v49, %v2237_v48  ;;  %v4876_v53 = vld [vmem:[%s5973_s1 + $0xb8] sm:$0xff]   ;;  %v4904_v48 = vld [vmem:[%s5973_s1 + $0x110] sm:$0xff]  }
 0x10e   : > { %v4209_v59 = vpop.f32.mrf.mxu0  ;;  %4492 = vmatpush3.bf16.msra.mxu1 %v4843_v54  ;;  %4473 = vmatprep.subr.bf16.mxu0 %v4945_v1  ;;  %v4877_v54 = vld [vmem:[%s5973_s1 + $0xf8] sm:$0xff]   ;;  %v4905_v49 = vld [vmem:[%s5973_s1 + $0x150] sm:$0xff]  }
 0x10f   : > { %v5558_v61 = vadd.f32 %v607_v57, %v505_v56  ;;  %4493 = vmatprep.subr.bf16.mxu1 %v4945_v1  ;;  %v4229_v62 = vpop.f32.mrf.mxu1  ;;  %4487 = vmatprep.mubr.msk.bf16.mxu0 %vm4946_vm0, %v4945_v1  ;;  %v4878_v57 = vld [vmem:[%s5973_s1 + $0xb0] sm:$0xff]  }
 0x110   : > { %v502_v63 = vpop.f32.mrf.mxu0  ;;  %4507 = vmatprep.mubr.msk.bf16.mxu1 %vm4946_vm0, %v4945_v1  ;;  %v4879_v59 = vld [vmem:[%s5973_s1 + $0xf0] sm:$0xff]  }
 0x111   : > { %4474 = vmatpush3.bf16.msra.mxu0 %v4844_v58  ;;  %v610_v2 = vpop.f32.mrf.mxu1  ;;  %v4880_v63 = vld [vmem:[%s5973_s1 + $0xa8] sm:$0xff]  }
 0x112   : > { %v4210_v3 = vpop.f32.mrf.mxu0  ;;  %4494 = vmatpush3.bf16.msra.mxu1 %v4845_v60  ;;  %4475 = vmatprep.subr.bf16.mxu0 %v4945_v1 }
 0x113   : > { %4495 = vmatprep.subr.bf16.mxu1 %v4945_v1  ;;  %v4230_v5 = vpop.f32.mrf.mxu1  ;;  %v4881_v3 = vld [vmem:[%s5973_s1 + $0xe8] sm:$0xff]  }
 0x114   : > { %v4882_v5 = vld [vmem:[%s5973_s1 + $0xa0] sm:$0xff]  }
 0x115   : > { %4476 = vmatpush3.bf16.msra.mxu0 %v4846_v0 }
 0x116   : > { %4496 = vmatpush3.bf16.msra.mxu1 %v4847_v4  ;;  %4477 = vmatprep.subr.bf16.mxu0 %v4945_v1 }
 0x117   : > { %4497 = vmatprep.subr.bf16.mxu1 %v4945_v1 }
 0x119   : > { %4478 = vmatpush3.bf16.msra.mxu0 %v4848_v6  ;;  %v4883_v6 = vld [vmem:[%s5973_s1 + $0xe0] sm:$0xff]  }
 0x11a   : > { %4498 = vmatpush3.bf16.msra.mxu1 %v4849_v7  ;;  %4479 = vmatprep.subr.bf16.mxu0 %v4945_v1  ;;  %v4884_v7 = vld [vmem:[%s5973_s1 + $0x98] sm:$0xff]  }
 0x11b   : > { %4499 = vmatprep.subr.bf16.mxu1 %v4945_v1 }
 0x11d   : > { %4480 = vmatpush3.bf16.msra.mxu0 %v4850_v8  ;;  %v4885_v8 = vld [vmem:[%s5973_s1 + $0xd8] sm:$0xff]  }
 0x11e   : > { %4500 = vmatpush3.bf16.msra.mxu1 %v4851_v9  ;;  %4481 = vmatprep.subr.bf16.mxu0 %v4945_v1  ;;  %v4886_v9 = vld [vmem:[%s5973_s1 + $0x90] sm:$0xff]  }
 0x11f   : > { %4501 = vmatprep.subr.bf16.mxu1 %v4945_v1 }
 0x121   : > { %4482 = vmatpush3.bf16.msra.mxu0 %v4852_v11 }
 0x122   : > { %4502 = vmatpush3.bf16.msra.mxu1 %v4853_v12  ;;  %4483 = vmatprep.subr.bf16.mxu0 %v4945_v1  ;;  %v4888_v12 = vld [vmem:[%s5973_s1 + $0x88] sm:$0xff]  }
 0x123   : > { %4503 = vmatprep.subr.bf16.mxu1 %v4945_v1 }
 0x125   : > { %4484 = vmatpush3.bf16.msra.mxu0 %v4854_v14  ;;  %v4892_v14 = vld [vmem:[%s5017_s6 + $0x8] ss:$0 sps:$4 sm:$0x66]  }
 0x126   : > { %4504 = vmatpush3.bf16.msra.mxu1 %v4855_v15  ;;  %4485 = vmatprep.subr.bf16.mxu0 %v4945_v1 }
 0x127   : > { %4505 = vmatprep.subr.bf16.mxu1 %v4945_v1 }
 0x129   : > { %4486 = vmatpush3.bf16.msra.mxu0 %v4856_v18  ;;  %v2440_v18 = vrot.slane %v4892_v14, 1  ;;  %v4917_v14 = vld [vmem:[%s5973_s1 + $0x1a0] sm:$0xff]  }
 0x12a   : > { %4506 = vmatpush3.bf16.msra.mxu1 %v4857_v20  ;;  %4511 = vmatprep.subr.bf16.mxu0 %v4945_v1  ;;  %v3752_v20 = vld [vmem:[%s5017_s6 + $0xc] sm:$0x3] }
 0x12b   : > { %4531 = vmatprep.subr.bf16.mxu1 %v4945_v1 }
 0x12c   : > { %v5622_v25 = vpop.f32.mrf.mxu0  ;;  %4488 = vmatmul.mubr.bf16.vlgmr.msra.gmra.mxu0 %v1991_v21  ;;  %v4895_v21 = vld [vmem:[%s5973_s1 + $0x178] sm:$0xff]  }
 0x12d   : > { %4512 = vmatpush3.bf16.msra.mxu0 %v4858_v22  ;;  %v5624_v26 = vpop.f32.mrf.mxu1  ;;  %4508 = vmatmul.mubr.bf16.vlgmr.msra.gmra.mxu1 %v2102_v23  ;;  %v730_v11 = vadd.f32 %v5622_v25, %v5558_v61  ;;  %v4890_v61 = vld [vmem:[%s5973_s1 + $0x80] sm:$0xff]  }
 0x12e   : > { %v4249_v28 = vpop.f32.mrf.mxu0  ;;  %4532 = vmatpush3.bf16.msra.mxu1 %v4860_v24  ;;  %4513 = vmatprep.subr.bf16.mxu0 %v4945_v1  ;;  %v5772_v23 = vld [vmem:[%s5974_s2] ss:$0 sm:$0xff] }
 0x12f   : > { %4533 = vmatprep.subr.bf16.mxu1 %v4945_v1  ;;  %v4269_v30 = vpop.f32.mrf.mxu1  ;;  %4527 = vmatprep.mubr.msk.bf16.mxu0 %vm4946_vm0, %v4945_v1  ;;  %v842_v15 = vadd.f32 %v5624_v26, %v730_v11  ;;  %v4896_v26 = vld [vmem:[%s5973_s1 + $0x130] sm:$0xff]  }
 0x130   : > { %v727_v31 = vpop.f32.mrf.mxu0  ;;  %4547 = vmatprep.mubr.msk.bf16.mxu1 %vm4946_vm0, %v4945_v1 }
 0x131   : > { %4514 = vmatpush3.bf16.msra.mxu0 %v4861_v27  ;;  %v839_v33 = vpop.f32.mrf.mxu1 }
 0x132   : > { %v4250_v34 = vpop.f32.mrf.mxu0  ;;  %4534 = vmatpush3.bf16.msra.mxu1 %v4862_v29  ;;  %4515 = vmatprep.subr.bf16.mxu0 %v4945_v1  ;;  %v4897_v29 = vld [vmem:[%s5973_s1 + $0x170] sm:$0xff]  }
 0x133   : > { %4535 = vmatprep.subr.bf16.mxu1 %v4945_v1  ;;  %v4270_v36 = vpop.f32.mrf.mxu1  ;;  %v4898_v34 = vld [vmem:[%s5973_s1 + $0x128] sm:$0xff]  }
 0x135   : > { %4516 = vmatpush3.bf16.msra.mxu0 %v4863_v32 }
 0x136   : > { %4536 = vmatpush3.bf16.msra.mxu1 %v4864_v35  ;;  %4517 = vmatprep.subr.bf16.mxu0 %v4945_v1 }
 0x137   : > { %4537 = vmatprep.subr.bf16.mxu1 %v4945_v1 }
 0x139   : > { %4518 = vmatpush3.bf16.msra.mxu0 %v4865_v37  ;;  %v1192_v37 = vld [vmem:[%s5786_s21] sm:$0x3] }
 0x13a   : > { %4538 = vmatpush3.bf16.msra.mxu1 %v4866_v38  ;;  %4519 = vmatprep.subr.bf16.mxu0 %v4945_v1 }
 0x13b   : > { %4539 = vmatprep.subr.bf16.mxu1 %v4945_v1 }
 0x13d   : > { %4520 = vmatpush3.bf16.msra.mxu0 %v4867_v39  ;;  %v4899_v39 = vld [vmem:[%s5973_s1 + $0x168] sm:$0xff]  }
 0x13e   : > { %4540 = vmatpush3.bf16.msra.mxu1 %v4868_v41  ;;  %4521 = vmatprep.subr.bf16.mxu0 %v4945_v1 }
 0x13f   : > { %4541 = vmatprep.subr.bf16.mxu1 %v4945_v1 }
 0x141   : > { %4522 = vmatpush3.bf16.msra.mxu0 %v4869_v43  ;;  %v4900_v43 = vld [vmem:[%s5973_s1 + $0x120] sm:$0xff]  }
 0x142   : > { %4542 = vmatpush3.bf16.msra.mxu1 %v4870_v44  ;;  %4523 = vmatprep.subr.bf16.mxu0 %v4945_v1  ;;  %v4901_v44 = vld [vmem:[%s5973_s1 + $0x160] sm:$0xff]  }
 0x143   : > { %4543 = vmatprep.subr.bf16.mxu1 %v4945_v1 }
 0x145   : > { %4524 = vmatpush3.bf16.msra.mxu0 %v4871_v46  ;;  %v4903_v46 = vld [vmem:[%s5973_s1 + $0x158] sm:$0xff]  }
 0x146   : > { %4544 = vmatpush3.bf16.msra.mxu1 %v4872_v47  ;;  %4525 = vmatprep.subr.bf16.mxu0 %v4945_v1  ;;  %v3793_v47 = vcombine.low %v3752_v20, %v3752_v20 }
 0x147   : > { %4545 = vmatprep.subr.bf16.mxu1 %v4945_v1 }
 0x149   : > { %4526 = vmatpush3.bf16.msra.mxu0 %v4873_v50  ;;  %v2659_v50 = vshll.u32 %v3793_v47, 16 }
 0x14a   : > { %4546 = vmatpush3.bf16.msra.mxu1 %v4874_v51  ;;  %4551 = vmatprep.subr.bf16.mxu0 %v4945_v1  ;;  %v4906_v51 = vld [vmem:[%s5973_s1 + $0x108] sm:$0xff]  }
 0x14b   : > { %4571 = vmatprep.subr.bf16.mxu1 %v4945_v1 }
 0x14c   : > { %v944_v55 = vpop.f32.mrf.mxu0  ;;  %4528 = vmatmul.mubr.bf16.vlgmr.msra.gmra.mxu0 %v2242_v52  ;;  %v4907_v52 = vld [vmem:[%s5973_s1 + $0x148] sm:$0xff]  }
 0x14d   : > { %4548 = vmatmul.mubr.bf16.vlgmr.msra.gmra.mxu1 %v3692_v40  ;;  %4552 = vmatpush3.bf16.msra.mxu0 %v4876_v53  ;;  %v1061_v56 = vpop.f32.mrf.mxu1  ;;  %v950_v17 = vadd.f32 %v944_v55, %v842_v15  ;;  %v2657_v53 = vshrl.u32 %v3793_v47, 16  ;;  %v4908_v55 = vld [vmem:[%s5973_s1 + $0x100] sm:$0xff]  }
 0x14e   : > { %v4289_v58 = vpop.f32.mrf.mxu0  ;;  %4572 = vmatpush3.bf16.msra.mxu1 %v4877_v54  ;;  %4553 = vmatprep.subr.bf16.mxu0 %v4945_v1  ;;  %v2661_v54 = vrot.slane %v2659_v50, 1  ;;  %v4918_v15 = vld [vmem:[%s5973_s1 + $0x1e0] sm:$0xff]  }
 0x14f   : > { %4573 = vmatprep.subr.bf16.mxu1 %v4945_v1  ;;  %v4309_v60 = vpop.f32.mrf.mxu1  ;;  %4567 = vmatprep.mubr.msk.bf16.mxu0 %vm4946_vm0, %v4945_v1  ;;  %v1067_v22 = vadd.f32 %v1061_v56, %v950_v17  ;;  %v4911_v56 = vld [vmem:[%s5017_s6 + $0xc] ss:$0 sps:$4 sm:$0x66]   ;;  %v3828_v17 = vld [vmem:[%s5017_s6 + $0x10] sm:$0x3]  ;;  %v4935_v47 = vld [vmem:[%s5973_s1 + $0x200] sm:$0xff]  }
 0x150   : > { %v947_v62 = vpop.f32.mrf.mxu0  ;;  %4587 = vmatprep.mubr.msk.bf16.mxu1 %vm4946_vm0, %v4945_v1  ;;  %v2662_v58 = vor.u32 %v2661_v54, %v2657_v53  ;;  %v2773_v60 = vrot.slane %v4911_v56, 1 }
 0x151   : > { %4554 = vmatpush3.bf16.msra.mxu0 %v4878_v57  ;;  %v1064_v0 = vpop.f32.mrf.mxu1  ;;  %v4909_v57 = vld [vmem:[%s5973_s1 + $0x140] sm:$0xff]   ;;  %v4912_v62 = vld [vmem:[%s5973_s1 + $0x1f8] sm:$0xff]  }
 0x152   : > { %v4290_v2 = vpop.f32.mrf.mxu0  ;;  %4574 = vmatpush3.bf16.msra.mxu1 %v4879_v59  ;;  %4555 = vmatprep.subr.bf16.mxu0 %v4945_v1  ;;  %v4910_v59 = vld [vmem:[%s5973_s1 + $0x1b8] sm:$0xff]  }
 0x153   : > { %4575 = vmatprep.subr.bf16.mxu1 %v4945_v1  ;;  %v4310_v4 = vpop.f32.mrf.mxu1 }
 0x155   : > { %4556 = vmatpush3.bf16.msra.mxu0 %v4880_v63 }
 0x156   : > { %4576 = vmatpush3.bf16.msra.mxu1 %v4881_v3  ;;  %4557 = vmatprep.subr.bf16.mxu0 %v4945_v1  ;;  %v4913_v3 = vld [vmem:[%s5973_s1 + $0x1b0] sm:$0xff]  }
 0x157   : > { %4577 = vmatprep.subr.bf16.mxu1 %v4945_v1 }
 0x159   : > { %4558 = vmatpush3.bf16.msra.mxu0 %v4882_v5  ;;  %v4914_v5 = vld [vmem:[%s5973_s1 + $0x1f0] sm:$0xff]  }
 0x15a   : > { %4578 = vmatpush3.bf16.msra.mxu1 %v4883_v6  ;;  %4559 = vmatprep.subr.bf16.mxu0 %v4945_v1 }
 0x15b   : > { %4579 = vmatprep.subr.bf16.mxu1 %v4945_v1 }
 0x15d   : > { %4560 = vmatpush3.bf16.msra.mxu0 %v4884_v7 }
 0x15e   : > { %4580 = vmatpush3.bf16.msra.mxu1 %v4885_v8  ;;  %4561 = vmatprep.subr.bf16.mxu0 %v4945_v1 }
 0x15f   : > { %4581 = vmatprep.subr.bf16.mxu1 %v4945_v1 }
 0x161   : > { %4562 = vmatpush3.bf16.msra.mxu0 %v4886_v9  ;;  %v4915_v9 = vld [vmem:[%s5973_s1 + $0x1a8] sm:$0xff]  }
 0x162   : > { %4582 = vmatpush3.bf16.msra.mxu1 %v4887_v10  ;;  %4563 = vmatprep.subr.bf16.mxu0 %v4945_v1 }
 0x163   : > { %4583 = vmatprep.subr.bf16.mxu1 %v4945_v1 }
 0x165   : > { %4564 = vmatpush3.bf16.msra.mxu0 %v4888_v12  ;;  %v4916_v12 = vld [vmem:[%s5973_s1 + $0x1e8] sm:$0xff]  }
 0x166   : > { %4584 = vmatpush3.bf16.msra.mxu1 %v4889_v13  ;;  %4565 = vmatprep.subr.bf16.mxu0 %v4945_v1 }
 0x167   : > { %4585 = vmatprep.subr.bf16.mxu1 %v4945_v1 }
 0x169   : > { %4566 = vmatpush3.bf16.msra.mxu0 %v4890_v61  ;;  %v4919_v61 = vld [vmem:[%s5973_s1 + $0x198] sm:$0xff]  }
 0x16a   : > { %4586 = vmatpush3.bf16.msra.mxu1 %v4891_v16  ;;  %4591 = vmatprep.subr.bf16.mxu0 %v4945_v1  ;;  %v4920_v16 = vld [vmem:[%s5973_s1 + $0x1d8] sm:$0xff]  }
 0x16b   : > { %4611 = vmatprep.subr.bf16.mxu1 %v4945_v1 }
 0x16c   : > { %v1173_v24 = vpop.f32.mrf.mxu0  ;;  %4568 = vmatmul.mubr.bf16.vlgmr.msra.gmra.mxu0 %v2440_v18  ;;  %v4921_v18 = vld [vmem:[%s5973_s1 + $0x190] sm:$0xff]  }
 0x16d   : > { %v1179_v25 = vadd.f32 %v1173_v24, %v1067_v22  ;;  %4592 = vmatpush3.bf16.msra.mxu0 %v4893_v19  ;;  %4588 = vmatmul.mubr.bf16.vlgmr.msra.gmra.mxu1 %v3752_v20  ;;  %v5777_v27 = vpop.f32.mrf.mxu1  ;;  %v3869_v19 = vcombine.low %v3828_v17, %v3828_v17  ;;  %v4922_v20 = vld [vmem:[%s5973_s1 + $0x1d0] sm:$0xff]   ;;  %v4924_v24 = vld [vmem:[%s5973_s1 + $0x1c8] sm:$0xff]  }
 0x16e   : > { %v4329_v28 = vpop.f32.mrf.mxu0  ;;  %4612 = vmatpush3.bf16.msra.mxu1 %v4895_v21  ;;  %4593 = vmatprep.subr.bf16.mxu0 %v4945_v1  ;;  %v4923_v21 = vld [vmem:[%s5973_s1 + $0x188] sm:$0xff]  }
 0x16f   : > { %v1186_v30 = vadd.f32 %v5772_v23, %v1179_v25  ;;  %4613 = vmatprep.subr.bf16.mxu1 %v4945_v1  ;;  %v4349_v31 = vpop.f32.mrf.mxu1  ;;  %4607 = vmatprep.mubr.msk.bf16.mxu0 %vm4946_vm0, %v4945_v1  ;;  %v2993_v22 = vshll.u32 %v3869_v19, 16  ;;  %v4925_v25 = vld [vmem:[%s5973_s1 + $0x180] sm:$0xff]  }
 0x170   : > { %v1176_v32 = vpop.f32.mrf.mxu0  ;;  %4627 = vmatprep.mubr.msk.bf16.mxu1 %vm4946_vm0, %v4945_v1  ;;  %v4926_v28 = vld [vmem:[%s5973_s1 + $0x1c0] sm:$0xff]  }
 0x171   : > { %v1187_v33 = vmax.f32 %v1186_v30, 0.0  ;;  %4594 = vmatpush3.bf16.msra.mxu0 %v4896_v26  ;;  %v1324_v35 = vpop.f32.mrf.mxu1  ;;  %v2991_v26 = vshrl.u32 %v3869_v19, 16 }
 0x172   : > { %v4330_v38 = vpop.f32.mrf.mxu0  ;;  %4614 = vmatpush3.bf16.msra.mxu1 %v4897_v29  ;;  %4595 = vmatprep.subr.bf16.mxu0 %v4945_v1  ;;  %v4928_v29 = vld [vmem:[%s5973_s1 + $0x238] sm:$0xff]  }
 0x173   : > { %v1188_v40 = vpack.c.bf16 %v1187_v33, %v1187_v33  ;;  %4615 = vmatprep.subr.bf16.mxu1 %v4945_v1  ;;  %v4350_v41 = vpop.f32.mrf.mxu1  ;;  %v4929_v33 = vld [vmem:[%s5973_s1 + $0x230] sm:$0xff]   ;;  %v4930_v38 = vld [vmem:[%s5973_s1 + $0x228] sm:$0xff]  }
 0x175   : > { %v1193_v42 = vsel %vm5797_vm3, %v1188_v40, %v1192_v37  ;;  %4596 = vmatpush3.bf16.msra.mxu0 %v4898_v34 }
 0x176   : > { %1194 = vst [vmem:[%s5786_s21] sm:$0x3] %v1193_v42  ;;  %4616 = vmatpush3.bf16.msra.mxu1 %v4899_v39  ;;  %4597 = vmatprep.subr.bf16.mxu0 %v4945_v1  ;;  %v4931_v42 = vld [vmem:[%s5973_s1 + $0x220] sm:$0xff]  }
 0x177   : > { %4617 = vmatprep.subr.bf16.mxu1 %v4945_v1 }
 0x179   : > { %4598 = vmatpush3.bf16.msra.mxu0 %v4900_v43  ;;  %v4932_v43 = vld [vmem:[%s5973_s1 + $0x218] sm:$0xff]  }
 0x17a   : > { %4618 = vmatpush3.bf16.msra.mxu1 %v4901_v44  ;;  %4599 = vmatprep.subr.bf16.mxu0 %v4945_v1  ;;  %v4933_v44 = vld [vmem:[%s5973_s1 + $0x210] sm:$0xff]  }
 0x17b   : > { %4619 = vmatprep.subr.bf16.mxu1 %v4945_v1 }
 0x17d   : > { %4600 = vmatpush3.bf16.msra.mxu0 %v4902_v45  ;;  %v4934_v45 = vld [vmem:[%s5973_s1 + $0x208] sm:$0xff]  }
 0x17e   : > { %4620 = vmatpush3.bf16.msra.mxu1 %v4903_v46  ;;  %4601 = vmatprep.subr.bf16.mxu0 %v4945_v1  ;;  %v4936_v46 = vld [vmem:[%s5017_s6 + $0x10] ss:$0 sps:$4 sm:$0x66]  }
 0x17f   : > { %4621 = vmatprep.subr.bf16.mxu1 %v4945_v1 }
 0x181   : > { %4602 = vmatpush3.bf16.msra.mxu0 %v4904_v48  ;;  %v3107_v48 = vrot.slane %v4936_v46, 1 }
 0x182   : > { %4622 = vmatpush3.bf16.msra.mxu1 %v4905_v49  ;;  %4603 = vmatprep.subr.bf16.mxu0 %v4945_v1 }
 0x183   : > { %4623 = vmatprep.subr.bf16.mxu1 %v4945_v1 }
 0x185   : > { %4604 = vmatpush3.bf16.msra.mxu0 %v4906_v51 }
 0x186   : > { %4624 = vmatpush3.bf16.msra.mxu1 %v4907_v52  ;;  %4605 = vmatprep.subr.bf16.mxu0 %v4945_v1 }
 0x187   : > { %4625 = vmatprep.subr.bf16.mxu1 %v4945_v1 }
 0x189   : > { %4606 = vmatpush3.bf16.msra.mxu0 %v4908_v55 }
 0x18a   : > { %4626 = vmatpush3.bf16.msra.mxu1 %v4909_v57  ;;  %4631 = vmatprep.subr.bf16.mxu0 %v4945_v1 }
 0x18b   : > { %4651 = vmatprep.subr.bf16.mxu1 %v4945_v1 }
 0x18c   : > { %v1409_v63 = vpop.f32.mrf.mxu0  ;;  %4608 = vmatmul.mubr.bf16.vlgmr.msra.gmra.mxu0 %v2662_v58 }
 0x18d   : > { %v1410_v0 = vadd.f32 %v1409_v63, %v5777_v27  ;;  %4632 = vmatpush3.bf16.msra.mxu0 %v4910_v59  ;;  %v1519_v2 = vpop.f32.mrf.mxu1  ;;  %4628 = vmatmul.mubr.bf16.vlgmr.msra.gmra.mxu1 %v2773_v60  ;;  %v2995_v27 = vrot.slane %v2993_v22, 1 }
 0x18e   : > { %v4369_v4 = vpop.f32.mrf.mxu0  ;;  %4652 = vmatpush3.bf16.msra.mxu1 %v4912_v62  ;;  %4633 = vmatprep.subr.bf16.mxu0 %v4945_v1 }
 0x18f   : > { %v5867_v6 = vadd.f32 %v1519_v2, %v1410_v0  ;;  %4653 = vmatprep.subr.bf16.mxu1 %v4945_v1  ;;  %v4389_v7 = vpop.f32.mrf.mxu1  ;;  %4647 = vmatprep.mubr.msk.bf16.mxu0 %vm4946_vm0, %v4945_v1  ;;  %v2996_v30 = vor.u32 %v2995_v27, %v2991_v26 }
 0x190   : > { %v1412_v8 = vpop.f32.mrf.mxu0  ;;  %4667 = vmatprep.mubr.msk.bf16.mxu1 %vm4946_vm0, %v4945_v1 }
 0x191   : > { %4634 = vmatpush3.bf16.msra.mxu0 %v4913_v3  ;;  %v1522_v10 = vpop.f32.mrf.mxu1 }
 0x192   : > { %v4370_v11 = vpop.f32.mrf.mxu0  ;;  %4654 = vmatpush3.bf16.msra.mxu1 %v4914_v5  ;;  %4635 = vmatprep.subr.bf16.mxu0 %v4945_v1 }
 0x193   : > { %4655 = vmatprep.subr.bf16.mxu1 %v4945_v1  ;;  %v4390_v13 = vpop.f32.mrf.mxu1  ;;  %v3690_v11 = vld [vmem:[%s5786_s21 + $0x2] sm:$0x3] }
 0x195   : > { %4636 = vmatpush3.bf16.msra.mxu0 %v4915_v9 }
 0x196   : > { %4656 = vmatpush3.bf16.msra.mxu1 %v4916_v12  ;;  %4637 = vmatprep.subr.bf16.mxu0 %v4945_v1 }
 0x197   : > { %4657 = vmatprep.subr.bf16.mxu1 %v4945_v1 }
 0x199   : > { %4638 = vmatpush3.bf16.msra.mxu0 %v4917_v14 }
 0x19a   : > { %4658 = vmatpush3.bf16.msra.mxu1 %v4918_v15  ;;  %4639 = vmatprep.subr.bf16.mxu0 %v4945_v1 }
 0x19b   : > { %4659 = vmatprep.subr.bf16.mxu1 %v4945_v1 }
 0x19d   : > { %4640 = vmatpush3.bf16.msra.mxu0 %v4919_v61 }
 0x19e   : > { %4660 = vmatpush3.bf16.msra.mxu1 %v4920_v16  ;;  %4641 = vmatprep.subr.bf16.mxu0 %v4945_v1 }
 0x19f   : > { %4661 = vmatprep.subr.bf16.mxu1 %v4945_v1 }
 0x1a1   : > { %4642 = vmatpush3.bf16.msra.mxu0 %v4921_v18 }
 0x1a2   : > { %4662 = vmatpush3.bf16.msra.mxu1 %v4922_v20  ;;  %4643 = vmatprep.subr.bf16.mxu0 %v4945_v1 }
 0x1a3   : > { %4663 = vmatprep.subr.bf16.mxu1 %v4945_v1 }
 0x1a5   : > { %4644 = vmatpush3.bf16.msra.mxu0 %v4923_v21 }
 0x1a6   : > { %4664 = vmatpush3.bf16.msra.mxu1 %v4924_v24  ;;  %4645 = vmatprep.subr.bf16.mxu0 %v4945_v1 }
 0x1a7   : > { %4665 = vmatprep.subr.bf16.mxu1 %v4945_v1 }
 0x1a9   : > { %4646 = vmatpush3.bf16.msra.mxu0 %v4925_v25 }
 0x1aa   : > { %4666 = vmatpush3.bf16.msra.mxu1 %v4926_v28  ;;  %4671 = vmatprep.subr.bf16.mxu0 %v4945_v1 }
 0x1ac   : > { %v1625_v31 = vpop.f32.mrf.mxu0  ;;  %4648 = vmatmul.mubr.bf16.vlgmr.msra.gmra.mxu0 %v3828_v17 }
 0x1ad   : > { %4672 = vmatpush3.bf16.msra.mxu0 %v4928_v29  ;;  %v1741_v32 = vpop.f32.mrf.mxu1  ;;  %4668 = vmatmul.mubr.bf16.vlgmr.msra.gmra.mxu1 %v2996_v30  ;;  %v1631_v57 = vadd.f32 %v1625_v31, %v5867_v6 }
 0x1ae   : > { %v4409_v34 = vpop.f32.mrf.mxu0  ;;  %4673 = vmatprep.subr.bf16.mxu0 %v4945_v1  ;;  %4687 = vmatprep.mubr.msk.bf16.mxu0 %vm4946_vm0, %v4945_v1 }
 0x1af   : > { %v4429_v35 = vpop.f32.mrf.mxu1  ;;  %v1747_v58 = vadd.f32 %v1741_v32, %v1631_v57 }
 0x1b0   : > { %v1628_v37 = vpop.f32.mrf.mxu0 }
 0x1b1   : > { %4674 = vmatpush3.bf16.msra.mxu0 %v4929_v33  ;;  %v1744_v39 = vpop.f32.mrf.mxu1 }
 0x1b2   : > { %v4410_v40 = vpop.f32.mrf.mxu0  ;;  %4675 = vmatprep.subr.bf16.mxu0 %v4945_v1 }
 0x1b3   : > { %v4430_v41 = vpop.f32.mrf.mxu1 }
 0x1b5   : > { %4676 = vmatpush3.bf16.msra.mxu0 %v4930_v38 }
 0x1b6   : > { %4677 = vmatprep.subr.bf16.mxu0 %v4945_v1 }
 0x1b9   : > { %4678 = vmatpush3.bf16.msra.mxu0 %v4931_v42 }
 0x1ba   : > { %4679 = vmatprep.subr.bf16.mxu0 %v4945_v1 }
 0x1bd   : > { %4680 = vmatpush3.bf16.msra.mxu0 %v4932_v43 }
 0x1be   : > { %4681 = vmatprep.subr.bf16.mxu0 %v4945_v1 }
 0x1c1   : > { %4682 = vmatpush3.bf16.msra.mxu0 %v4933_v44 }
 0x1c2   : > { %4683 = vmatprep.subr.bf16.mxu0 %v4945_v1 }
 0x1c5   : > { %4684 = vmatpush3.bf16.msra.mxu0 %v4934_v45 }
 0x1c6   : > { %4685 = vmatprep.subr.bf16.mxu0 %v4945_v1 }
 0x1c9   : > { %4686 = vmatpush3.bf16.msra.mxu0 %v4935_v47 }
 0x1cc   : > { %v1852_v49 = vpop.f32.mrf.mxu0  ;;  %4688 = vmatmul.mubr.bf16.vlgmr.msra.gmra.mxu0 %v3107_v48 }
 0x1cd   : > { %v1959_v50 = vpop.f32.mrf.mxu1  ;;  %v1858_v59 = vadd.f32 %v1852_v49, %v1747_v58 }
 0x1ce   : > { %v4449_v51 = vpop.f32.mrf.mxu0 }
 0x1cf   : > { %v4469_v52 = vpop.f32.mrf.mxu1  ;;  %v1965_v60 = vadd.f32 %v1959_v50, %v1858_v59  ;;  %v3904_v59 = vld [vmem:[%s5786_s21 + $0x4] sm:$0x3] }
 0x1d0   : > { %v1855_v53 = vpop.f32.mrf.mxu0 }
 0x1d1   : > { %v1962_v54 = vpop.f32.mrf.mxu1 }
 0x1d2   : > { %v4450_v55 = vpop.f32.mrf.mxu0 }
 0x1d3   : > { %v4470_v56 = vpop.f32.mrf.mxu1 }
 0x1ec   : > { %v2075_v62 = vpop.f32.mrf.mxu0 }
 0x1ed   : > { %v2081_v1 = vadd.f32 %v2075_v62, %v1965_v60  ;;  %v2186_v63 = vpop.f32.mrf.mxu1 }
 0x1ee   : > { %v4489_v0 = vpop.f32.mrf.mxu0 }
 0x1ef   : > { %v2192_v2 = vadd.f32 %v2186_v63, %v2081_v1  ;;  %v4509_v3 = vpop.f32.mrf.mxu1 }
 0x1f0   : > { %v2078_v4 = vpop.f32.mrf.mxu0 }
 0x1f1   : > { %v2193_v5 = vadd.f32 %v5772_v23, %v2192_v2  ;;  %v2189_v7 = vpop.f32.mrf.mxu1 }
 0x1f2   : > { %v4490_v8 = vpop.f32.mrf.mxu0 }
 0x1f3   : > { %v2194_v9 = vmax.f32 %v2193_v5, 0.0  ;;  %v4510_v10 = vpop.f32.mrf.mxu1 }
 0x1f5   : > { %v2195_v6 = vpack.c.bf16 %v2194_v9, %v2194_v9 }
 0x1f7   : > { %v2198_v12 = vsel %vm5797_vm3, %v2195_v6, %v3690_v11 }
 0x1f8   : > { %3691 = vst [vmem:[%s5786_s21 + $0x2] sm:$0x3] %v2198_v12 }
 0x20c   : > { %v2326_v13 = vpop.f32.mrf.mxu0 }
 0x20d   : > { %v2414_v14 = vpop.f32.mrf.mxu1 }
 0x20e   : > { %v2415_v15 = vadd.f32 %v2414_v14, %v2326_v13  ;;  %v4529_v61 = vpop.f32.mrf.mxu0 }
 0x20f   : > { %v4549_v16 = vpop.f32.mrf.mxu1 }
 0x210   : > { %v2329_v17 = vpop.f32.mrf.mxu0 }
 0x211   : > { %v2417_v18 = vpop.f32.mrf.mxu1 }
 0x212   : > { %v4530_v19 = vpop.f32.mrf.mxu0 }
 0x213   : > { %v4550_v20 = vpop.f32.mrf.mxu1 }
 0x22c   : > { %v2524_v21 = vpop.f32.mrf.mxu0 }
 0x22d   : > { %v2530_v22 = vadd.f32 %v2524_v21, %v2415_v15  ;;  %v2630_v24 = vpop.f32.mrf.mxu1 }
 0x22e   : > { %v4569_v25 = vpop.f32.mrf.mxu0 }
 0x22f   : > { %v2636_v26 = vadd.f32 %v2630_v24, %v2530_v22  ;;  %v4589_v27 = vpop.f32.mrf.mxu1 }
 0x230   : > { %v2527_v28 = vpop.f32.mrf.mxu0 }
 0x231   : > { %v2633_v29 = vpop.f32.mrf.mxu1 }
 0x232   : > { %v4570_v30 = vpop.f32.mrf.mxu0 }
 0x233   : > { %v4590_v31 = vpop.f32.mrf.mxu1 }
 0x24c   : > { %v2746_v32 = vpop.f32.mrf.mxu0 }
 0x24d   : > { %v2857_v33 = vpop.f32.mrf.mxu1  ;;  %v2752_v49 = vadd.f32 %v2746_v32, %v2636_v26 }
 0x24e   : > { %v4609_v34 = vpop.f32.mrf.mxu0 }
 0x24f   : > { %v4629_v35 = vpop.f32.mrf.mxu1  ;;  %v2863_v50 = vadd.f32 %v2857_v33, %v2752_v49 }
 0x250   : > { %v2749_v37 = vpop.f32.mrf.mxu0 }
 0x251   : > { %v2860_v38 = vpop.f32.mrf.mxu1 }
 0x252   : > { %v4610_v39 = vpop.f32.mrf.mxu0 }
 0x253   : > { %v4630_v40 = vpop.f32.mrf.mxu1 }
 0x26c   : > { %v2964_v41 = vpop.f32.mrf.mxu0 }
 0x26d   : > { %v3080_v42 = vpop.f32.mrf.mxu1  ;;  %v2970_v51 = vadd.f32 %v2964_v41, %v2863_v50 }
 0x26e   : > { %v4649_v43 = vpop.f32.mrf.mxu0 }
 0x26f   : > { %v4669_v44 = vpop.f32.mrf.mxu1  ;;  %v3086_v52 = vadd.f32 %v3080_v42, %v2970_v51 }
 0x270   : > { %v2967_v45 = vpop.f32.mrf.mxu0 }
 0x271   : > { %v3083_v46 = vpop.f32.mrf.mxu1 }
 0x272   : > { %v4650_v47 = vpop.f32.mrf.mxu0 }
 0x273   : > { %v4670_v48 = vpop.f32.mrf.mxu1 }
 0x28c   : > { %v3191_v53 = vpop.f32.mrf.mxu0 }
 0x28d   : > { %v3197_v54 = vadd.f32 %v3191_v53, %v3086_v52 }
 0x28e   : > { %v4689_v55 = vpop.f32.mrf.mxu0 }
 0x28f   : > { %v3198_v56 = vadd.f32 %v5772_v23, %v3197_v54 }
 0x290   : > { %v3194_v57 = vpop.f32.mrf.mxu0 }
 0x291   : > { %v3199_v58 = vmax.f32 %v3198_v56, 0.0 }
 0x292   : > { %v4690_v60 = vpop.f32.mrf.mxu0 }
 0x293   : > { %v3200_v62 = vpack.c.bf16 %v3199_v58, %v3199_v58 }
 0x295   : > { %v3203_v1 = vsel %vm5797_vm3, %v3200_v62, %v3904_v59 }
 0x296   : > { %3905 = vst [vmem:[%s5786_s21 + $0x4] sm:$0x3] %v3203_v1 }
 0x297 PF: > { %s13_s12 = sadd.s32 1, %s4943_s12  }
 0x298   : > { %p10_p4 = scmp.ge.s32.totalorder %s13_s12, 4  }
 0x29a   :  { %12 = sbr.rel (!%p10_p4) target bundleno = 1 (0x1), region = 76 }

// kernel: dqn_forward.7
= control target key start
LH: loop header
LB: loop body
LE: loop exit
PB: predicated region body
PF: predicated region fallthrough
CT: control target
= control target key end

     0   :  { %v314_v36 = vlaneseq  ;;  %v3480_v37 = vmov 1966171168   ;;  %s4567_s0 = inlined_call_operand.vmem [shape: bf16[2,1152], index: 0, kind: input, shape index: {}]   ;;  %s4568_s1 = inlined_call_operand.vmem [shape: bf16[1152,512], index: 1, kind: input, shape index: {}]   ;;  %s4569_s2 = inlined_call_operand.vmem [shape: f32[1,512], index: 2, kind: input, shape index: {}]   ;;  %s4570_s3 = inlined_call_operand.vmem [shape: bf16[512,128], index: 3, kind: input, shape index: {}]   ;;  %s4571_s4 = inlined_call_operand.vmem [shape: f32[1,128], index: 4, kind: input, shape index: {}]   ;;  %s4572_s5 = inlined_call_operand.hbm [shape: f32[2,128], index: 5, kind: output, shape index: {}]  }
   0x1   :  { %v2993_v0 = vld [vmem:[%s4568_s1 + $0xe4] ss:$16 sps:$4 sm:$0xff]   ;;  %v2997_v2 = vld [vmem:[%s4568_s1 + $0xe0] ss:$16 sps:$4 sm:$0xff]   ;;  %v338_v38 = vunpack.c.l.s4 %v3480_v37 }
   0x2   :  { %v2995_v1 = vld [vmem:[%s4568_s1 + $0x2e4] ss:$16 sps:$4 sm:$0xff]   ;;  %1848 = vmatprep.subr.bf16.mxu0 %v2993_v0  ;;  %v2998_v3 = vld [vmem:[%s4568_s1 + $0x2e0] ss:$16 sps:$4 sm:$0xff]   ;;  %v3630_v42 = vshrl.u32 %v314_v36, 7 }
   0x3   :  { %1889 = vmatprep.subr.bf16.mxu1 %v2995_v1  ;;  %v2999_v4 = vld [vmem:[%s4568_s1 + $0xc4] ss:$16 sps:$4 sm:$0xff]   ;;  %1849 = vmatpush1.bf16.msra.mxu0 %v2997_v2  ;;  %v3003_v6 = vld [vmem:[%s4568_s1 + $0xc0] ss:$16 sps:$4 sm:$0xff]   ;;  %v339_v43 = vunpack.c.0.s8 %v338_v38 }
   0x4   :  { %1890 = vmatpush1.bf16.msra.mxu1 %v2998_v3  ;;  %v3001_v5 = vld [vmem:[%s4568_s1 + $0x2c4] ss:$16 sps:$4 sm:$0xff]   ;;  %1850 = vmatprep.subr.bf16.mxu0 %v2999_v4  ;;  %v3004_v7 = vld [vmem:[%s4568_s1 + $0x2c0] ss:$16 sps:$4 sm:$0xff]  }
   0x5   :  { %1891 = vmatprep.subr.bf16.mxu1 %v3001_v5  ;;  %v3005_v8 = vld [vmem:[%s4568_s1 + $0xa4] ss:$16 sps:$4 sm:$0xff]   ;;  %v3009_v10 = vld [vmem:[%s4568_s1 + $0xa0] ss:$16 sps:$4 sm:$0xff]   ;;  %v3648_v49 = vsub.s32 %v339_v43, %v3630_v42 }
   0x6   :  { %v3007_v9 = vld [vmem:[%s4568_s1 + $0x2a4] ss:$16 sps:$4 sm:$0xff]   ;;  %v3010_v11 = vld [vmem:[%s4568_s1 + $0x2a0] ss:$16 sps:$4 sm:$0xff]  }
   0x7   :  { %1851 = vmatpush1.bf16.msra.mxu0 %v3003_v6  ;;  %v3011_v12 = vld [vmem:[%s4568_s1 + $0x84] ss:$16 sps:$4 sm:$0xff]   ;;  %v3015_v14 = vld [vmem:[%s4568_s1 + $0x80] ss:$16 sps:$4 sm:$0xff]  }
   0x8   :  { %1892 = vmatpush1.bf16.msra.mxu1 %v3004_v7  ;;  %1852 = vmatprep.subr.bf16.mxu0 %v3005_v8  ;;  %v3013_v13 = vld [vmem:[%s4568_s1 + $0x284] ss:$16 sps:$4 sm:$0xff]   ;;  %v3016_v15 = vld [vmem:[%s4568_s1 + $0x280] ss:$16 sps:$4 sm:$0xff]  }
   0x9   :  { %1893 = vmatprep.subr.bf16.mxu1 %v3007_v9  ;;  %v3017_v16 = vld [vmem:[%s4568_s1 + $0x64] ss:$16 sps:$4 sm:$0xff]   ;;  %v3021_v18 = vld [vmem:[%s4568_s1 + $0x60] ss:$16 sps:$4 sm:$0xff]  }
   0xa   :  { %v3019_v17 = vld [vmem:[%s4568_s1 + $0x264] ss:$16 sps:$4 sm:$0xff]   ;;  %v3022_v19 = vld [vmem:[%s4568_s1 + $0x260] ss:$16 sps:$4 sm:$0xff]  }
   0xb   :  { %1853 = vmatpush1.bf16.msra.mxu0 %v3009_v10  ;;  %v3023_v20 = vld [vmem:[%s4568_s1 + $0x44] ss:$16 sps:$4 sm:$0xff]   ;;  %v3027_v22 = vld [vmem:[%s4568_s1 + $0x40] ss:$16 sps:$4 sm:$0xff]  }
   0xc   :  { %1894 = vmatpush1.bf16.msra.mxu1 %v3010_v11  ;;  %1854 = vmatprep.subr.bf16.mxu0 %v3011_v12  ;;  %v3025_v21 = vld [vmem:[%s4568_s1 + $0x244] ss:$16 sps:$4 sm:$0xff]   ;;  %v3028_v23 = vld [vmem:[%s4568_s1 + $0x240] ss:$16 sps:$4 sm:$0xff]  }
   0xd   :  { %1895 = vmatprep.subr.bf16.mxu1 %v3013_v13  ;;  %v3029_v24 = vld [vmem:[%s4568_s1 + $0x24] ss:$16 sps:$4 sm:$0xff]   ;;  %v3033_v26 = vld [vmem:[%s4568_s1 + $0x20] ss:$16 sps:$4 sm:$0xff]  }
   0xe   :  { %v3031_v25 = vld [vmem:[%s4568_s1 + $0x224] ss:$16 sps:$4 sm:$0xff]   ;;  %v3034_v27 = vld [vmem:[%s4568_s1 + $0x220] ss:$16 sps:$4 sm:$0xff]  }
   0xf   :  { %1855 = vmatpush1.bf16.msra.mxu0 %v3015_v14  ;;  %v3035_v28 = vld [vmem:[%s4568_s1 + $0x4] ss:$16 sps:$4 sm:$0xff]   ;;  %v3039_v30 = vld [vmem:[%s4568_s1] ss:$16 sps:$4 sm:$0xff]  }
  0x10   :  { %1896 = vmatpush1.bf16.msra.mxu1 %v3016_v15  ;;  %1856 = vmatprep.subr.bf16.mxu0 %v3017_v16  ;;  %v3037_v29 = vld [vmem:[%s4568_s1 + $0x204] ss:$16 sps:$4 sm:$0xff]   ;;  %v3040_v31 = vld [vmem:[%s4568_s1 + $0x200] ss:$16 sps:$4 sm:$0xff]  }
  0x11   :  { %1897 = vmatprep.subr.bf16.mxu1 %v3019_v17  ;;  %v3041_v32 = vld [vmem:[%s4568_s1 + $0x1e4] ss:$16 sps:$4 sm:$0xff]   ;;  %v3045_v34 = vld [vmem:[%s4568_s1 + $0x1e0] ss:$16 sps:$4 sm:$0xff]  }
  0x12   :  { %v3043_v33 = vld [vmem:[%s4568_s1 + $0x3e4] ss:$16 sps:$4 sm:$0xff]   ;;  %v3046_v35 = vld [vmem:[%s4568_s1 + $0x3e0] ss:$16 sps:$4 sm:$0xff]  }
  0x13   :  { %1857 = vmatpush1.bf16.msra.mxu0 %v3021_v18  ;;  %v3047_v39 = vld [vmem:[%s4568_s1 + $0x1c4] ss:$16 sps:$4 sm:$0xff]   ;;  %v3051_v41 = vld [vmem:[%s4568_s1 + $0x1c0] ss:$16 sps:$4 sm:$0xff]  }
  0x14   :  { %1898 = vmatpush1.bf16.msra.mxu1 %v3022_v19  ;;  %1858 = vmatprep.subr.bf16.mxu0 %v3023_v20  ;;  %v3049_v40 = vld [vmem:[%s4568_s1 + $0x3c4] ss:$16 sps:$4 sm:$0xff]   ;;  %v3052_v44 = vld [vmem:[%s4568_s1 + $0x3c0] ss:$16 sps:$4 sm:$0xff]  }
  0x15   :  { %1899 = vmatprep.subr.bf16.mxu1 %v3025_v21  ;;  %v3053_v45 = vld [vmem:[%s4568_s1 + $0x1a4] ss:$16 sps:$4 sm:$0xff]   ;;  %v3057_v47 = vld [vmem:[%s4568_s1 + $0x1a0] ss:$16 sps:$4 sm:$0xff]  }
  0x16   :  { %v3055_v46 = vld [vmem:[%s4568_s1 + $0x3a4] ss:$16 sps:$4 sm:$0xff]   ;;  %v3058_v48 = vld [vmem:[%s4568_s1 + $0x3a0] ss:$16 sps:$4 sm:$0xff]  }
  0x17   :  { %1859 = vmatpush1.bf16.msra.mxu0 %v3027_v22  ;;  %v3059_v50 = vld [vmem:[%s4568_s1 + $0x184] ss:$16 sps:$4 sm:$0xff]   ;;  %v3063_v53 = vld [vmem:[%s4568_s1 + $0x180] ss:$16 sps:$4 sm:$0xff]  }
  0x18   :  { %1900 = vmatpush1.bf16.msra.mxu1 %v3028_v23  ;;  %1860 = vmatprep.subr.bf16.mxu0 %v3029_v24  ;;  %v3061_v51 = vld [vmem:[%s4568_s1 + $0x384] ss:$16 sps:$4 sm:$0xff]   ;;  %v3064_v55 = vld [vmem:[%s4568_s1 + $0x380] ss:$16 sps:$4 sm:$0xff]  }
  0x19   :  { %1901 = vmatprep.subr.bf16.mxu1 %v3031_v25  ;;  %v22_v52 = vld [vmem:[%s4567_s0] sm:$0xff] }
  0x1a   :  { %v343_v54 = vrot.slane %v22_v52, %v3648_v49  ;;  %v3065_v56 = vld [vmem:[%s4568_s1 + $0x164] ss:$16 sps:$4 sm:$0xff]   ;;  %v3069_v59 = vld [vmem:[%s4568_s1 + $0x160] ss:$16 sps:$4 sm:$0xff]   ;;  %v336_v1 = vcombine.high %v22_v52, %v22_v52 }
  0x1b   :  { %1861 = vmatpush1.bf16.msra.mxu0 %v3033_v26  ;;  %v3067_v57 = vld [vmem:[%s4568_s1 + $0x364] ss:$16 sps:$4 sm:$0xff]   ;;  %v3070_v61 = vld [vmem:[%s4568_s1 + $0x360] ss:$16 sps:$4 sm:$0xff]  }
  0x1c   :  { %1902 = vmatpush1.bf16.msra.mxu1 %v3034_v27  ;;  %1862 = vmatprep.subr.bf16.mxu0 %v3035_v28  ;;  %v351_v58 = vcombine.high %v343_v54, %v343_v54  ;;  %v3071_v62 = vld [vmem:[%s4568_s1 + $0x144] ss:$16 sps:$4 sm:$0xff]   ;;  %v3075_v2 = vld [vmem:[%s4568_s1 + $0x140] ss:$16 sps:$4 sm:$0xff]   ;;  %v3706_v6 = vrot.slane %v336_v1, %v3648_v49  ;;  %v3726_v13 = vrot.slane %v343_v54, %v3648_v49 }
  0x1d   :  { %1903 = vmatprep.subr.bf16.mxu1 %v3037_v29  ;;  %v3073_v63 = vld [vmem:[%s4568_s1 + $0x344] ss:$16 sps:$4 sm:$0xff]   ;;  %v3076_v3 = vld [vmem:[%s4568_s1 + $0x340] ss:$16 sps:$4 sm:$0xff]  }
  0x1e   :  { %v3676_v60 = vrot.slane %v351_v58, %v3648_v49  ;;  %v3077_v4 = vld [vmem:[%s4568_s1 + $0x124] ss:$16 sps:$4 sm:$0xff]   ;;  %v3081_v7 = vld [vmem:[%s4568_s1 + $0x120] ss:$16 sps:$4 sm:$0xff]   ;;  %v352_v11 = vcombine.high %v3706_v6, %v3706_v6  ;;  %v3742_v18 = vcombine.high %v3726_v13, %v3726_v13 }
  0x1f   :  { %1863 = vmatpush1.bf16.msra.mxu0 %v3039_v30  ;;  %v3079_v5 = vld [vmem:[%s4568_s1 + $0x324] ss:$16 sps:$4 sm:$0xff]   ;;  %v3082_v8 = vld [vmem:[%s4568_s1 + $0x320] ss:$16 sps:$4 sm:$0xff]  }
  0x20   :  { %1904 = vmatpush1.bf16.msra.mxu1 %v3040_v31  ;;  %1864 = vmatprep.subr.bf16.mxu0 %v3041_v32  ;;  %v3689_v0 = vcombine.high %v3676_v60, %v3676_v60  ;;  %v3083_v9 = vld [vmem:[%s4568_s1 + $0x104] ss:$16 sps:$4 sm:$0xff]   ;;  %v3087_v12 = vld [vmem:[%s4568_s1 + $0x100] ss:$16 sps:$4 sm:$0xff]   ;;  %v3738_v17 = vrot.slane %v352_v11, %v3648_v49 }
  0x21   :  { %1905 = vmatprep.subr.bf16.mxu1 %v3043_v33  ;;  %1880 = vmatprep.mubr.bf16.mxu0 %v3676_v60  ;;  %v3085_v10 = vld [vmem:[%s4568_s1 + $0x304] ss:$16 sps:$4 sm:$0xff]   ;;  %v3088_v14 = vld [vmem:[%s4568_s1 + $0x300] ss:$16 sps:$4 sm:$0xff]  }
  0x22   :  { %1921 = vmatprep.mubr.bf16.mxu1 %v3689_v0  ;;  %v3091_v15 = vld [vmem:[%s4568_s1 + $0x4e4] ss:$16 sps:$4 sm:$0xff]   ;;  %v3089_v19 = vld [vmem:[%s4568_s1 + $0x4e0] ss:$16 sps:$4 sm:$0xff]   ;;  %v3758_v23 = vcombine.high %v3738_v17, %v3738_v17 }
  0x23   :  { %1865 = vmatpush2.bf16.msra.mxu0 %v3045_v34  ;;  %v3094_v16 = vld [vmem:[%s4568_s1 + $0x6e4] ss:$16 sps:$4 sm:$0xff]   ;;  %v3092_v20 = vld [vmem:[%s4568_s1 + $0x6e0] ss:$16 sps:$4 sm:$0xff]  }
  0x24   :  { %1906 = vmatpush2.bf16.msra.mxu1 %v3046_v35  ;;  %1866 = vmatprep.subr.bf16.mxu0 %v3047_v39  ;;  %v3097_v21 = vld [vmem:[%s4568_s1 + $0x4c4] ss:$16 sps:$4 sm:$0xff]   ;;  %v3095_v24 = vld [vmem:[%s4568_s1 + $0x4c0] ss:$16 sps:$4 sm:$0xff]  }
  0x25   :  { %1907 = vmatprep.subr.bf16.mxu1 %v3049_v40  ;;  %v3100_v22 = vld [vmem:[%s4568_s1 + $0x6c4] ss:$16 sps:$4 sm:$0xff]   ;;  %v3098_v25 = vld [vmem:[%s4568_s1 + $0x6c0] ss:$16 sps:$4 sm:$0xff]  }
  0x26   :  { %v3103_v26 = vld [vmem:[%s4568_s1 + $0x4a4] ss:$16 sps:$4 sm:$0xff]   ;;  %v3101_v28 = vld [vmem:[%s4568_s1 + $0x4a0] ss:$16 sps:$4 sm:$0xff]  }
  0x27   :  { %1867 = vmatpush2.bf16.msra.mxu0 %v3051_v41  ;;  %v3106_v27 = vld [vmem:[%s4568_s1 + $0x6a4] ss:$16 sps:$4 sm:$0xff]   ;;  %v3104_v29 = vld [vmem:[%s4568_s1 + $0x6a0] ss:$16 sps:$4 sm:$0xff]  }
  0x28   :  { %1908 = vmatpush2.bf16.msra.mxu1 %v3052_v44  ;;  %1868 = vmatprep.subr.bf16.mxu0 %v3053_v45  ;;  %v3109_v30 = vld [vmem:[%s4568_s1 + $0x484] ss:$16 sps:$4 sm:$0xff]   ;;  %v3107_v32 = vld [vmem:[%s4568_s1 + $0x480] ss:$16 sps:$4 sm:$0xff]  }
  0x29   :  { %1909 = vmatprep.subr.bf16.mxu1 %v3055_v46  ;;  %v3112_v31 = vld [vmem:[%s4568_s1 + $0x684] ss:$16 sps:$4 sm:$0xff]   ;;  %v3110_v33 = vld [vmem:[%s4568_s1 + $0x680] ss:$16 sps:$4 sm:$0xff]  }
  0x2a   :  { %v3115_v34 = vld [vmem:[%s4568_s1 + $0x464] ss:$16 sps:$4 sm:$0xff]   ;;  %v3113_v36 = vld [vmem:[%s4568_s1 + $0x460] ss:$16 sps:$4 sm:$0xff]  }
  0x2b   :  { %1869 = vmatpush2.bf16.msra.mxu0 %v3057_v47  ;;  %v3118_v35 = vld [vmem:[%s4568_s1 + $0x664] ss:$16 sps:$4 sm:$0xff]   ;;  %v3116_v37 = vld [vmem:[%s4568_s1 + $0x660] ss:$16 sps:$4 sm:$0xff]  }
  0x2c   :  { %1910 = vmatpush2.bf16.msra.mxu1 %v3058_v48  ;;  %1870 = vmatprep.subr.bf16.mxu0 %v3059_v50  ;;  %v3121_v38 = vld [vmem:[%s4568_s1 + $0x444] ss:$16 sps:$4 sm:$0xff]   ;;  %v3119_v40 = vld [vmem:[%s4568_s1 + $0x440] ss:$16 sps:$4 sm:$0xff]  }
  0x2d   :  { %1911 = vmatprep.subr.bf16.mxu1 %v3061_v51  ;;  %v3124_v39 = vld [vmem:[%s4568_s1 + $0x644] ss:$16 sps:$4 sm:$0xff]   ;;  %v3122_v41 = vld [vmem:[%s4568_s1 + $0x640] ss:$16 sps:$4 sm:$0xff]  }
  0x2e   :  { %v3127_v43 = vld [vmem:[%s4568_s1 + $0x424] ss:$16 sps:$4 sm:$0xff]   ;;  %v3125_v45 = vld [vmem:[%s4568_s1 + $0x420] ss:$16 sps:$4 sm:$0xff]  }
  0x2f   :  { %1871 = vmatpush2.bf16.msra.mxu0 %v3063_v53  ;;  %v3130_v44 = vld [vmem:[%s4568_s1 + $0x624] ss:$16 sps:$4 sm:$0xff]   ;;  %v3128_v46 = vld [vmem:[%s4568_s1 + $0x620] ss:$16 sps:$4 sm:$0xff]  }
  0x30   :  { %1912 = vmatpush2.bf16.msra.mxu1 %v3064_v55  ;;  %1872 = vmatprep.subr.bf16.mxu0 %v3065_v56  ;;  %v3133_v47 = vld [vmem:[%s4568_s1 + $0x404] ss:$16 sps:$4 sm:$0xff]   ;;  %v3131_v50 = vld [vmem:[%s4568_s1 + $0x400] ss:$16 sps:$4 sm:$0xff]  }
  0x31   :  { %1913 = vmatprep.subr.bf16.mxu1 %v3067_v57  ;;  %v3136_v48 = vld [vmem:[%s4568_s1 + $0x604] ss:$16 sps:$4 sm:$0xff]   ;;  %v3134_v51 = vld [vmem:[%s4568_s1 + $0x600] ss:$16 sps:$4 sm:$0xff]  }
  0x32   :  { %v3139_v52 = vld [vmem:[%s4568_s1 + $0x5e4] ss:$16 sps:$4 sm:$0xff]   ;;  %v3137_v54 = vld [vmem:[%s4568_s1 + $0x5e0] ss:$16 sps:$4 sm:$0xff]  }
  0x33   :  { %1873 = vmatpush2.bf16.msra.mxu0 %v3069_v59  ;;  %v3142_v53 = vld [vmem:[%s4568_s1 + $0x7e4] ss:$16 sps:$4 sm:$0xff]   ;;  %v3140_v55 = vld [vmem:[%s4568_s1 + $0x7e0] ss:$16 sps:$4 sm:$0xff]  }
  0x34   :  { %1914 = vmatpush2.bf16.msra.mxu1 %v3070_v61  ;;  %1874 = vmatprep.subr.bf16.mxu0 %v3071_v62  ;;  %v3145_v56 = vld [vmem:[%s4568_s1 + $0x5c4] ss:$16 sps:$4 sm:$0xff]   ;;  %v3143_v58 = vld [vmem:[%s4568_s1 + $0x5c0] ss:$16 sps:$4 sm:$0xff]  }
  0x35   :  { %1915 = vmatprep.subr.bf16.mxu1 %v3073_v63  ;;  %v3148_v57 = vld [vmem:[%s4568_s1 + $0x7c4] ss:$16 sps:$4 sm:$0xff]   ;;  %v3146_v59 = vld [vmem:[%s4568_s1 + $0x7c0] ss:$16 sps:$4 sm:$0xff]  }
  0x36   :  { %v3151_v61 = vld [vmem:[%s4568_s1 + $0x5a4] ss:$16 sps:$4 sm:$0xff]   ;;  %v3149_v63 = vld [vmem:[%s4568_s1 + $0x5a0] ss:$16 sps:$4 sm:$0xff]  }
  0x37   :  { %1875 = vmatpush2.bf16.msra.mxu0 %v3075_v2  ;;  %v3154_v62 = vld [vmem:[%s4568_s1 + $0x7a4] ss:$16 sps:$4 sm:$0xff]   ;;  %v3152_v1 = vld [vmem:[%s4568_s1 + $0x7a0] ss:$16 sps:$4 sm:$0xff]  }
  0x38   :  { %1916 = vmatpush2.bf16.msra.mxu1 %v3076_v3  ;;  %1876 = vmatprep.subr.bf16.mxu0 %v3077_v4  ;;  %v3157_v2 = vld [vmem:[%s4568_s1 + $0x584] ss:$16 sps:$4 sm:$0xff]   ;;  %v3155_v4 = vld [vmem:[%s4568_s1 + $0x580] ss:$16 sps:$4 sm:$0xff]  }
  0x39   :  { %1917 = vmatprep.subr.bf16.mxu1 %v3079_v5  ;;  %v3160_v3 = vld [vmem:[%s4568_s1 + $0x784] ss:$16 sps:$4 sm:$0xff]   ;;  %v3158_v5 = vld [vmem:[%s4568_s1 + $0x780] ss:$16 sps:$4 sm:$0xff]  }
  0x3a   :  { %v3169_v11 = vld [vmem:[%s4568_s1 + $0x544] ss:$16 sps:$4 sm:$0xff]  }
  0x3b   :  { %1877 = vmatpush2.bf16.msra.mxu0 %v3081_v7  ;;  %v3163_v7 = vld [vmem:[%s4568_s1 + $0x564] ss:$16 sps:$4 sm:$0xff]  }
  0x3c   :  { %1918 = vmatpush2.bf16.msra.mxu1 %v3082_v8  ;;  %1878 = vmatprep.subr.bf16.mxu0 %v3083_v9  ;;  %v3166_v8 = vld [vmem:[%s4568_s1 + $0x764] ss:$16 sps:$4 sm:$0xff]   ;;  %v3161_v9 = vld [vmem:[%s4568_s1 + $0x560] ss:$16 sps:$4 sm:$0xff]  }
  0x3d   :  { %1919 = vmatprep.subr.bf16.mxu1 %v3085_v10  ;;  %v3164_v10 = vld [vmem:[%s4568_s1 + $0x760] ss:$16 sps:$4 sm:$0xff]  }
  0x3f   :  { %1879 = vmatpush2.bf16.msra.mxu0 %v3087_v12  ;;  %v3172_v12 = vld [vmem:[%s4568_s1 + $0x744] ss:$16 sps:$4 sm:$0xff]  }
  0x40   :  { %1920 = vmatpush2.bf16.msra.mxu1 %v3088_v14  ;;  %1930 = vmatprep.subr.bf16.mxu0 %v3091_v15  ;;  %v3167_v14 = vld [vmem:[%s4568_s1 + $0x540] ss:$16 sps:$4 sm:$0xff]  }
  0x41   :  { %1971 = vmatprep.subr.bf16.mxu1 %v3094_v16  ;;  %v3170_v15 = vld [vmem:[%s4568_s1 + $0x740] ss:$16 sps:$4 sm:$0xff]   ;;  %v3175_v16 = vld [vmem:[%s4568_s1 + $0x524] ss:$16 sps:$4 sm:$0xff]  }
  0x42   :  { %1881 = vmatmul.mubr.bf16.vlgmr.msra.gmra.mxu0 %v3726_v13 }
  0x43   :  { %1922 = vmatmul.mubr.bf16.vlgmr.msra.gmra.mxu1 %v3742_v18  ;;  %1931 = vmatpush1.bf16.msra.mxu0 %v3089_v19  ;;  %v3178_v19 = vld [vmem:[%s4568_s1 + $0x724] ss:$16 sps:$4 sm:$0xff]  }
  0x44   :  { %1972 = vmatpush1.bf16.msra.mxu1 %v3092_v20  ;;  %1932 = vmatprep.subr.bf16.mxu0 %v3097_v21  ;;  %v3173_v20 = vld [vmem:[%s4568_s1 + $0x520] ss:$16 sps:$4 sm:$0xff]  }
  0x45   :  { %1973 = vmatprep.subr.bf16.mxu1 %v3100_v22  ;;  %1962 = vmatprep.mubr.bf16.mxu0 %v3738_v17  ;;  %v3176_v21 = vld [vmem:[%s4568_s1 + $0x720] ss:$16 sps:$4 sm:$0xff]   ;;  %v3181_v22 = vld [vmem:[%s4568_s1 + $0x504] ss:$16 sps:$4 sm:$0xff]  }
  0x46   :  { %2003 = vmatprep.mubr.bf16.mxu1 %v3758_v23 }
  0x47   :  { %1933 = vmatpush1.bf16.msra.mxu0 %v3095_v24  ;;  %v3184_v24 = vld [vmem:[%s4568_s1 + $0x704] ss:$16 sps:$4 sm:$0xff]  }
  0x48   :  { %1974 = vmatpush1.bf16.msra.mxu1 %v3098_v25  ;;  %1934 = vmatprep.subr.bf16.mxu0 %v3103_v26  ;;  %v3934_v25 = vrot.slane %v3706_v6, %v3648_v49  ;;  %v3179_v26 = vld [vmem:[%s4568_s1 + $0x500] ss:$16 sps:$4 sm:$0xff]   ;;  %v3191_v6 = vld [vmem:[%s4568_s1 + $0xec] ss:$16 sps:$4 sm:$0xff]  }
  0x49   :  { %1975 = vmatprep.subr.bf16.mxu1 %v3106_v27  ;;  %v3182_v27 = vld [vmem:[%s4568_s1 + $0x700] ss:$16 sps:$4 sm:$0xff]  }
  0x4b   :  { %1935 = vmatpush1.bf16.msra.mxu0 %v3101_v28  ;;  %v3188_v28 = vld [vmem:[%s4568_s1 + $0x8e4] ss:$16 sps:$4 sm:$0xff]  }
  0x4c   :  { %1976 = vmatpush1.bf16.msra.mxu1 %v3104_v29  ;;  %1936 = vmatprep.subr.bf16.mxu0 %v3109_v30  ;;  %v3950_v29 = vcombine.high %v3934_v25, %v3934_v25  ;;  %v3186_v30 = vld [vmem:[%s4568_s1 + $0x8e0] ss:$16 sps:$4 sm:$0xff]  }
  0x4d   :  { %1977 = vmatprep.subr.bf16.mxu1 %v3112_v31  ;;  %v3189_v31 = vld [vmem:[%s4568_s1 + $0xe8] ss:$16 sps:$4 sm:$0xff]  }
  0x4f   :  { %1937 = vmatpush1.bf16.msra.mxu0 %v3107_v32  ;;  %v3194_v32 = vld [vmem:[%s4568_s1 + $0x8c4] ss:$16 sps:$4 sm:$0xff]  }
  0x50   :  { %1978 = vmatpush1.bf16.msra.mxu1 %v3110_v33  ;;  %1938 = vmatprep.subr.bf16.mxu0 %v3115_v34  ;;  %v3197_v33 = vld [vmem:[%s4568_s1 + $0xcc] ss:$16 sps:$4 sm:$0xff]   ;;  %v3192_v34 = vld [vmem:[%s4568_s1 + $0x8c0] ss:$16 sps:$4 sm:$0xff]  }
  0x51   :  { %1979 = vmatprep.subr.bf16.mxu1 %v3118_v35  ;;  %v3195_v35 = vld [vmem:[%s4568_s1 + $0xc8] ss:$16 sps:$4 sm:$0xff]  }
  0x53   :  { %1939 = vmatpush1.bf16.msra.mxu0 %v3113_v36  ;;  %v3200_v36 = vld [vmem:[%s4568_s1 + $0x8a4] ss:$16 sps:$4 sm:$0xff]  }
  0x54   :  { %1980 = vmatpush1.bf16.msra.mxu1 %v3116_v37  ;;  %1940 = vmatprep.subr.bf16.mxu0 %v3121_v38  ;;  %v3203_v37 = vld [vmem:[%s4568_s1 + $0xac] ss:$16 sps:$4 sm:$0xff]   ;;  %v3481_v38 = vmov 0  }
  0x55   :  { %1981 = vmatprep.subr.bf16.mxu1 %v3124_v39  ;;  %v3198_v39 = vld [vmem:[%s4568_s1 + $0x8a0] ss:$16 sps:$4 sm:$0xff]  }
  0x57   :  { %1941 = vmatpush1.bf16.msra.mxu0 %v3119_v40  ;;  %v3201_v40 = vld [vmem:[%s4568_s1 + $0xa8] ss:$16 sps:$4 sm:$0xff]  }
  0x58   :  { %1982 = vmatpush1.bf16.msra.mxu1 %v3122_v41  ;;  %1942 = vmatprep.subr.bf16.mxu0 %v3127_v43  ;;  %v3206_v41 = vld [vmem:[%s4568_s1 + $0x884] ss:$16 sps:$4 sm:$0xff]   ;;  %v3204_v43 = vld [vmem:[%s4568_s1 + $0x880] ss:$16 sps:$4 sm:$0xff]  }
  0x59   :  { %1983 = vmatprep.subr.bf16.mxu1 %v3130_v44  ;;  %v3207_v44 = vld [vmem:[%s4568_s1 + $0x88] ss:$16 sps:$4 sm:$0xff]  }
  0x5b   :  { %1943 = vmatpush1.bf16.msra.mxu0 %v3125_v45  ;;  %v3212_v45 = vld [vmem:[%s4568_s1 + $0x864] ss:$16 sps:$4 sm:$0xff]  }
  0x5c   :  { %1984 = vmatpush1.bf16.msra.mxu1 %v3128_v46  ;;  %1944 = vmatprep.subr.bf16.mxu0 %v3133_v47  ;;  %v3215_v46 = vld [vmem:[%s4568_s1 + $0x6c] ss:$16 sps:$4 sm:$0xff]   ;;  %v3210_v47 = vld [vmem:[%s4568_s1 + $0x860] ss:$16 sps:$4 sm:$0xff]  }
  0x5d   :  { %1985 = vmatprep.subr.bf16.mxu1 %v3136_v48  ;;  %v3213_v48 = vld [vmem:[%s4568_s1 + $0x68] ss:$16 sps:$4 sm:$0xff]  }
  0x5f   :  { %1945 = vmatpush1.bf16.msra.mxu0 %v3131_v50  ;;  %v3218_v50 = vld [vmem:[%s4568_s1 + $0x844] ss:$16 sps:$4 sm:$0xff]  }
  0x60   :  { %1986 = vmatpush1.bf16.msra.mxu1 %v3134_v51  ;;  %1946 = vmatprep.subr.bf16.mxu0 %v3139_v52  ;;  %v3221_v51 = vld [vmem:[%s4568_s1 + $0x4c] ss:$16 sps:$4 sm:$0xff]   ;;  %v3216_v52 = vld [vmem:[%s4568_s1 + $0x840] ss:$16 sps:$4 sm:$0xff]  }
  0x61   :  { %1987 = vmatprep.subr.bf16.mxu1 %v3142_v53  ;;  %v3219_v53 = vld [vmem:[%s4568_s1 + $0x48] ss:$16 sps:$4 sm:$0xff]  }
  0x63   :  { %1947 = vmatpush2.bf16.msra.mxu0 %v3137_v54  ;;  %v3224_v54 = vld [vmem:[%s4568_s1 + $0x824] ss:$16 sps:$4 sm:$0xff]  }
  0x64   :  { %1988 = vmatpush2.bf16.msra.mxu1 %v3140_v55  ;;  %1948 = vmatprep.subr.bf16.mxu0 %v3145_v56  ;;  %v3227_v55 = vld [vmem:[%s4568_s1 + $0x2c] ss:$16 sps:$4 sm:$0xff]   ;;  %v3222_v56 = vld [vmem:[%s4568_s1 + $0x820] ss:$16 sps:$4 sm:$0xff]  }
  0x65   :  { %1989 = vmatprep.subr.bf16.mxu1 %v3148_v57  ;;  %v3225_v57 = vld [vmem:[%s4568_s1 + $0x28] ss:$16 sps:$4 sm:$0xff]  }
  0x67   :  { %1949 = vmatpush2.bf16.msra.mxu0 %v3143_v58  ;;  %v3230_v58 = vld [vmem:[%s4568_s1 + $0x804] ss:$16 sps:$4 sm:$0xff]  }
  0x68   :  { %1990 = vmatpush2.bf16.msra.mxu1 %v3146_v59  ;;  %1950 = vmatprep.subr.bf16.mxu0 %v3151_v61  ;;  %v3233_v59 = vld [vmem:[%s4568_s1 + $0xc] ss:$16 sps:$4 sm:$0xff]   ;;  %v3228_v61 = vld [vmem:[%s4568_s1 + $0x800] ss:$16 sps:$4 sm:$0xff]  }
  0x69   :  { %1991 = vmatprep.subr.bf16.mxu1 %v3154_v62  ;;  %v3231_v62 = vld [vmem:[%s4568_s1 + $0x8] ss:$16 sps:$4 sm:$0xff]  }
  0x6b   :  { %1951 = vmatpush2.bf16.msra.mxu0 %v3149_v63  ;;  %v2624_v63 = vld.sshfl [vmem:[%s4567_s0 + $0x8] sm:$0x1 pattern:$0x75316420] }
  0x6c   :  { %1992 = vmatpush2.bf16.msra.mxu1 %v3152_v1  ;;  %1952 = vmatprep.subr.bf16.mxu0 %v3157_v2  ;;  %v3236_v1 = vld [vmem:[%s4568_s1 + $0x1ec] ss:$16 sps:$4 sm:$0xff]  }
  0x6d   :  { %1993 = vmatprep.subr.bf16.mxu1 %v3160_v3  ;;  %v3239_v2 = vld [vmem:[%s4568_s1 + $0x2ec] ss:$16 sps:$4 sm:$0xff]   ;;  %v4056_v3 = vrot.slane %v2624_v63, %v3648_v49 }
  0x6e   :  { %v3245_v49 = vld [vmem:[%s4568_s1 + $0x2cc] ss:$16 sps:$4 sm:$0xff]  }
  0x6f   :  { %1953 = vmatpush2.bf16.msra.mxu0 %v3155_v4  ;;  %v3234_v4 = vld [vmem:[%s4568_s1 + $0x1e8] ss:$16 sps:$4 sm:$0xff]   ;;  %v3320_v63 = vld [vmem:[%s4568_s1 + $0x32c] ss:$16 sps:$4 sm:$0xff]  }
  0x70   :  { %1994 = vmatpush2.bf16.msra.mxu1 %v3158_v5  ;;  %1954 = vmatprep.subr.bf16.mxu0 %v3163_v7  ;;  %v3237_v5 = vld [vmem:[%s4568_s1 + $0x2e8] ss:$16 sps:$4 sm:$0xff]   ;;  %v3242_v7 = vld [vmem:[%s4568_s1 + $0x1cc] ss:$16 sps:$4 sm:$0xff]  }
  0x71   :  { %1995 = vmatprep.subr.bf16.mxu1 %v3166_v8  ;;  %v3240_v8 = vld [vmem:[%s4568_s1 + $0x1c8] ss:$16 sps:$4 sm:$0xff]  }
  0x73   :  { %1955 = vmatpush2.bf16.msra.mxu0 %v3161_v9  ;;  %v3243_v9 = vld [vmem:[%s4568_s1 + $0x2c8] ss:$16 sps:$4 sm:$0xff]  }
  0x74   :  { %1996 = vmatpush2.bf16.msra.mxu1 %v3164_v10  ;;  %1956 = vmatprep.subr.bf16.mxu0 %v3169_v11  ;;  %v3248_v10 = vld [vmem:[%s4568_s1 + $0x1ac] ss:$16 sps:$4 sm:$0xff]  }
  0x75   :  { %1997 = vmatprep.subr.bf16.mxu1 %v3172_v12  ;;  %v3251_v11 = vld [vmem:[%s4568_s1 + $0x2ac] ss:$16 sps:$4 sm:$0xff]   ;;  %v3246_v12 = vld [vmem:[%s4568_s1 + $0x1a8] ss:$16 sps:$4 sm:$0xff]  }
  0x77   :  { %1957 = vmatpush2.bf16.msra.mxu0 %v3167_v14  ;;  %v3249_v14 = vld [vmem:[%s4568_s1 + $0x2a8] ss:$16 sps:$4 sm:$0xff]  }
  0x78   :  { %1998 = vmatpush2.bf16.msra.mxu1 %v3170_v15  ;;  %1958 = vmatprep.subr.bf16.mxu0 %v3175_v16  ;;  %v3254_v15 = vld [vmem:[%s4568_s1 + $0x18c] ss:$16 sps:$4 sm:$0xff]   ;;  %v3252_v16 = vld [vmem:[%s4568_s1 + $0x188] ss:$16 sps:$4 sm:$0xff]  }
  0x79   :  { %1999 = vmatprep.subr.bf16.mxu1 %v3178_v19  ;;  %v3255_v19 = vld [vmem:[%s4568_s1 + $0x288] ss:$16 sps:$4 sm:$0xff]  }
  0x7b   :  { %1959 = vmatpush2.bf16.msra.mxu0 %v3173_v20  ;;  %v3260_v20 = vld [vmem:[%s4568_s1 + $0x16c] ss:$16 sps:$4 sm:$0xff]  }
  0x7c   :  { %2000 = vmatpush2.bf16.msra.mxu1 %v3176_v21  ;;  %1960 = vmatprep.subr.bf16.mxu0 %v3181_v22  ;;  %v3263_v21 = vld [vmem:[%s4568_s1 + $0x26c] ss:$16 sps:$4 sm:$0xff]   ;;  %v3258_v22 = vld [vmem:[%s4568_s1 + $0x168] ss:$16 sps:$4 sm:$0xff]  }
  0x7d   :  { %2001 = vmatprep.subr.bf16.mxu1 %v3184_v24  ;;  %v3261_v24 = vld [vmem:[%s4568_s1 + $0x268] ss:$16 sps:$4 sm:$0xff]  }
  0x7f   :  { %1961 = vmatpush2.bf16.msra.mxu0 %v3179_v26  ;;  %v3266_v26 = vld [vmem:[%s4568_s1 + $0x14c] ss:$16 sps:$4 sm:$0xff]  }
  0x80   :  { %2002 = vmatpush2.bf16.msra.mxu1 %v3182_v27  ;;  %2012 = vmatprep.subr.bf16.mxu0 %v3188_v28  ;;  %v3269_v27 = vld [vmem:[%s4568_s1 + $0x24c] ss:$16 sps:$4 sm:$0xff]   ;;  %v3264_v28 = vld [vmem:[%s4568_s1 + $0x148] ss:$16 sps:$4 sm:$0xff]  }
  0x81   :  { %2053 = vmatprep.subr.bf16.mxu1 %v3191_v6  ;;  %v3267_v6 = vld [vmem:[%s4568_s1 + $0x248] ss:$16 sps:$4 sm:$0xff]  }
  0x82   :  { %1963 = vmatmul.mubr.bf16.vlgmr.msra.gmra.mxu0 %v3934_v25 }
  0x83   :  { %2004 = vmatmul.mubr.bf16.vlgmr.msra.gmra.mxu1 %v3950_v29  ;;  %2013 = vmatpush1.bf16.msra.mxu0 %v3186_v30  ;;  %v3272_v30 = vld [vmem:[%s4568_s1 + $0x12c] ss:$16 sps:$4 sm:$0xff]  }
  0x84   :  { %2054 = vmatpush1.bf16.msra.mxu1 %v3189_v31  ;;  %2014 = vmatprep.subr.bf16.mxu0 %v3194_v32  ;;  %v3275_v31 = vld [vmem:[%s4568_s1 + $0x22c] ss:$16 sps:$4 sm:$0xff]   ;;  %v3270_v32 = vld [vmem:[%s4568_s1 + $0x128] ss:$16 sps:$4 sm:$0xff]  }
  0x85   :  { %2055 = vmatprep.subr.bf16.mxu1 %v3197_v33  ;;  %2044 = vmatprep.mubr.bf16.mxu0 %v3481_v38  ;;  %v3273_v33 = vld [vmem:[%s4568_s1 + $0x228] ss:$16 sps:$4 sm:$0xff]  }
  0x86   :  { %2085 = vmatprep.mubr.bf16.mxu1 %v3676_v60  ;;  %v3209_v60 = vld [vmem:[%s4568_s1 + $0x8c] ss:$16 sps:$4 sm:$0xff]  }
  0x87   :  { %2015 = vmatpush1.bf16.msra.mxu0 %v3192_v34  ;;  %v3278_v34 = vld [vmem:[%s4568_s1 + $0x10c] ss:$16 sps:$4 sm:$0xff]  }
  0x88   :  { %2056 = vmatpush1.bf16.msra.mxu1 %v3195_v35  ;;  %2016 = vmatprep.subr.bf16.mxu0 %v3200_v36  ;;  %v3281_v35 = vld [vmem:[%s4568_s1 + $0x20c] ss:$16 sps:$4 sm:$0xff]   ;;  %v3276_v36 = vld [vmem:[%s4568_s1 + $0x108] ss:$16 sps:$4 sm:$0xff]  }
  0x89   :  { %2057 = vmatprep.subr.bf16.mxu1 %v3203_v37  ;;  %v3279_v37 = vld [vmem:[%s4568_s1 + $0x208] ss:$16 sps:$4 sm:$0xff]  }
  0x8b   :  { %2017 = vmatpush1.bf16.msra.mxu0 %v3198_v39  ;;  %v3284_v39 = vld [vmem:[%s4568_s1 + $0x3ec] ss:$16 sps:$4 sm:$0xff]  }
  0x8c   :  { %2058 = vmatpush1.bf16.msra.mxu1 %v3201_v40  ;;  %2018 = vmatprep.subr.bf16.mxu0 %v3206_v41  ;;  %v3287_v40 = vld [vmem:[%s4568_s1 + $0x4ec] ss:$16 sps:$4 sm:$0xff]   ;;  %v3282_v41 = vld [vmem:[%s4568_s1 + $0x3e8] ss:$16 sps:$4 sm:$0xff]  }
  0x8d   :  { %2059 = vmatprep.subr.bf16.mxu1 %v3209_v60  ;;  %v3285_v60 = vld [vmem:[%s4568_s1 + $0x4e8] ss:$16 sps:$4 sm:$0xff]  }
  0x8f   :  { %2019 = vmatpush1.bf16.msra.mxu0 %v3204_v43  ;;  %v3290_v43 = vld [vmem:[%s4568_s1 + $0x3cc] ss:$16 sps:$4 sm:$0xff]  }
  0x90   :  { %2060 = vmatpush1.bf16.msra.mxu1 %v3207_v44  ;;  %2020 = vmatprep.subr.bf16.mxu0 %v3212_v45  ;;  %v3293_v44 = vld [vmem:[%s4568_s1 + $0x4cc] ss:$16 sps:$4 sm:$0xff]   ;;  %v3288_v45 = vld [vmem:[%s4568_s1 + $0x3c8] ss:$16 sps:$4 sm:$0xff]  }
  0x91   :  { %2061 = vmatprep.subr.bf16.mxu1 %v3215_v46  ;;  %v3291_v46 = vld [vmem:[%s4568_s1 + $0x4c8] ss:$16 sps:$4 sm:$0xff]  }
  0x93   :  { %2021 = vmatpush1.bf16.msra.mxu0 %v3210_v47  ;;  %v3296_v47 = vld [vmem:[%s4568_s1 + $0x3ac] ss:$16 sps:$4 sm:$0xff]  }
  0x94   :  { %2062 = vmatpush1.bf16.msra.mxu1 %v3213_v48  ;;  %2022 = vmatprep.subr.bf16.mxu0 %v3218_v50  ;;  %v3299_v48 = vld [vmem:[%s4568_s1 + $0x4ac] ss:$16 sps:$4 sm:$0xff]   ;;  %v3294_v50 = vld [vmem:[%s4568_s1 + $0x3a8] ss:$16 sps:$4 sm:$0xff]  }
  0x95   :  { %2063 = vmatprep.subr.bf16.mxu1 %v3221_v51  ;;  %v3302_v51 = vld [vmem:[%s4568_s1 + $0x38c] ss:$16 sps:$4 sm:$0xff]  }
  0x97   :  { %2023 = vmatpush1.bf16.msra.mxu0 %v3216_v52  ;;  %v3305_v52 = vld [vmem:[%s4568_s1 + $0x48c] ss:$16 sps:$4 sm:$0xff]  }
  0x98   :  { %2064 = vmatpush1.bf16.msra.mxu1 %v3219_v53  ;;  %2024 = vmatprep.subr.bf16.mxu0 %v3224_v54  ;;  %v3300_v53 = vld [vmem:[%s4568_s1 + $0x388] ss:$16 sps:$4 sm:$0xff]   ;;  %v3308_v54 = vld [vmem:[%s4568_s1 + $0x36c] ss:$16 sps:$4 sm:$0xff]  }
  0x99   :  { %2065 = vmatprep.subr.bf16.mxu1 %v3227_v55  ;;  %v3311_v55 = vld [vmem:[%s4568_s1 + $0x46c] ss:$16 sps:$4 sm:$0xff]  }
  0x9b   :  { %2025 = vmatpush1.bf16.msra.mxu0 %v3222_v56  ;;  %v3306_v56 = vld [vmem:[%s4568_s1 + $0x368] ss:$16 sps:$4 sm:$0xff]  }
  0x9c   :  { %2066 = vmatpush1.bf16.msra.mxu1 %v3225_v57  ;;  %2026 = vmatprep.subr.bf16.mxu0 %v3230_v58  ;;  %v3309_v57 = vld [vmem:[%s4568_s1 + $0x468] ss:$16 sps:$4 sm:$0xff]   ;;  %v3314_v58 = vld [vmem:[%s4568_s1 + $0x34c] ss:$16 sps:$4 sm:$0xff]  }
  0x9d   :  { %2067 = vmatprep.subr.bf16.mxu1 %v3233_v59  ;;  %v3317_v59 = vld [vmem:[%s4568_s1 + $0x44c] ss:$16 sps:$4 sm:$0xff]  }
  0x9f   :  { %2027 = vmatpush1.bf16.msra.mxu0 %v3228_v61  ;;  %v3312_v61 = vld [vmem:[%s4568_s1 + $0x348] ss:$16 sps:$4 sm:$0xff]  }
  0xa0   :  { %2068 = vmatpush1.bf16.msra.mxu1 %v3231_v62  ;;  %2094 = vmatprep.subr.bf16.mxu0 %v3239_v2  ;;  %v3315_v62 = vld [vmem:[%s4568_s1 + $0x448] ss:$16 sps:$4 sm:$0xff]  }
  0xa1   :  { %2069 = vmatprep.subr.bf16.mxu1 %v3236_v1  ;;  %v3323_v1 = vld [vmem:[%s4568_s1 + $0x42c] ss:$16 sps:$4 sm:$0xff]   ;;  %v3318_v2 = vld [vmem:[%s4568_s1 + $0x328] ss:$16 sps:$4 sm:$0xff]  }
  0xa2   :  { %2045 = vmatmul.mubr.bf16.vlgmr.msra.gmra.mxu0 %v4056_v3 }
  0xa3   :  { %2095 = vmatpush1.bf16.msra.mxu0 %v3237_v5  ;;  %2126 = vmatprep.mubr.bf16.mxu0 %v3689_v0  ;;  %v3257_v0 = vld [vmem:[%s4568_s1 + $0x28c] ss:$16 sps:$4 sm:$0xff]  }
  0xa4   :  { %2070 = vmatpush2.bf16.msra.mxu1 %v3234_v4  ;;  %2096 = vmatprep.subr.bf16.mxu0 %v3245_v49  ;;  %v3321_v4 = vld [vmem:[%s4568_s1 + $0x428] ss:$16 sps:$4 sm:$0xff]   ;;  %v3326_v5 = vld [vmem:[%s4568_s1 + $0x30c] ss:$16 sps:$4 sm:$0xff]  }
  0xa5   :  { %2071 = vmatprep.subr.bf16.mxu1 %v3242_v7  ;;  %v3329_v7 = vld [vmem:[%s4568_s1 + $0x40c] ss:$16 sps:$4 sm:$0xff]  }
  0xa7   :  { %2097 = vmatpush1.bf16.msra.mxu0 %v3243_v9 }
  0xa8   :  { %2072 = vmatpush2.bf16.msra.mxu1 %v3240_v8  ;;  %2098 = vmatprep.subr.bf16.mxu0 %v3251_v11 }
  0xa9   :  { %2073 = vmatprep.subr.bf16.mxu1 %v3248_v10 }
  0xab   :  { %2099 = vmatpush1.bf16.msra.mxu0 %v3249_v14 }
  0xac   :  { %2074 = vmatpush2.bf16.msra.mxu1 %v3246_v12  ;;  %2100 = vmatprep.subr.bf16.mxu0 %v3257_v0 }
  0xad   :  { %2075 = vmatprep.subr.bf16.mxu1 %v3254_v15 }
  0xaf   :  { %2101 = vmatpush1.bf16.msra.mxu0 %v3255_v19 }
  0xb0   :  { %2076 = vmatpush2.bf16.msra.mxu1 %v3252_v16  ;;  %2102 = vmatprep.subr.bf16.mxu0 %v3263_v21 }
  0xb1   :  { %2077 = vmatprep.subr.bf16.mxu1 %v3260_v20 }
  0xb3   :  { %2103 = vmatpush1.bf16.msra.mxu0 %v3261_v24 }
  0xb4   :  { %2078 = vmatpush2.bf16.msra.mxu1 %v3258_v22  ;;  %2104 = vmatprep.subr.bf16.mxu0 %v3269_v27 }
  0xb5   :  { %2079 = vmatprep.subr.bf16.mxu1 %v3266_v26 }
  0xb7   :  { %2105 = vmatpush1.bf16.msra.mxu0 %v3267_v6 }
  0xb8   :  { %2080 = vmatpush2.bf16.msra.mxu1 %v3264_v28  ;;  %2106 = vmatprep.subr.bf16.mxu0 %v3275_v31 }
  0xb9   :  { %2081 = vmatprep.subr.bf16.mxu1 %v3272_v30 }
  0xbb   :  { %2107 = vmatpush1.bf16.msra.mxu0 %v3273_v33 }
  0xbc   :  { %2082 = vmatpush2.bf16.msra.mxu1 %v3270_v32  ;;  %2108 = vmatprep.subr.bf16.mxu0 %v3281_v35 }
  0xbd   :  { %2083 = vmatprep.subr.bf16.mxu1 %v3278_v34 }
  0xbf   :  { %2109 = vmatpush1.bf16.msra.mxu0 %v3279_v37 }
  0xc0   :  { %2084 = vmatpush2.bf16.msra.mxu1 %v3276_v36  ;;  %2110 = vmatprep.subr.bf16.mxu0 %v3284_v39 }
  0xc1   :  { %2135 = vmatprep.subr.bf16.mxu1 %v3287_v40 }
  0xc3   :  { %2086 = vmatmul.mubr.bf16.vlgmr.msra.gmra.mxu1 %v3726_v13  ;;  %2111 = vmatpush2.bf16.msra.mxu0 %v3282_v41  ;;  %v3297_v13 = vld [vmem:[%s4568_s1 + $0x4a8] ss:$16 sps:$4 sm:$0xff]  }
  0xc4   :  { %2136 = vmatpush1.bf16.msra.mxu1 %v3285_v60  ;;  %2112 = vmatprep.subr.bf16.mxu0 %v3290_v43 }
  0xc5   :  { %2137 = vmatprep.subr.bf16.mxu1 %v3293_v44  ;;  %2167 = vmatprep.mubr.bf16.mxu1 %v3738_v17  ;;  %v3303_v17 = vld [vmem:[%s4568_s1 + $0x488] ss:$16 sps:$4 sm:$0xff]  }
  0xc7   :  { %2113 = vmatpush2.bf16.msra.mxu0 %v3288_v45 }
  0xc8   :  { %2138 = vmatpush1.bf16.msra.mxu1 %v3291_v46  ;;  %2114 = vmatprep.subr.bf16.mxu0 %v3296_v47 }
  0xc9   :  { %2139 = vmatprep.subr.bf16.mxu1 %v3299_v48 }
  0xcb   :  { %2115 = vmatpush2.bf16.msra.mxu0 %v3294_v50 }
  0xcc   :  { %2140 = vmatpush1.bf16.msra.mxu1 %v3297_v13  ;;  %2116 = vmatprep.subr.bf16.mxu0 %v3302_v51 }
  0xcd   :  { %2141 = vmatprep.subr.bf16.mxu1 %v3305_v52 }
  0xcf   :  { %2117 = vmatpush2.bf16.msra.mxu0 %v3300_v53 }
  0xd0   :  { %2142 = vmatpush1.bf16.msra.mxu1 %v3303_v17  ;;  %2118 = vmatprep.subr.bf16.mxu0 %v3308_v54 }
  0xd1   :  { %2143 = vmatprep.subr.bf16.mxu1 %v3311_v55 }
  0xd3   :  { %2119 = vmatpush2.bf16.msra.mxu0 %v3306_v56 }
  0xd4   :  { %2144 = vmatpush1.bf16.msra.mxu1 %v3309_v57  ;;  %2120 = vmatprep.subr.bf16.mxu0 %v3314_v58 }
  0xd5   :  { %2145 = vmatprep.subr.bf16.mxu1 %v3317_v59 }
  0xd7   :  { %2121 = vmatpush2.bf16.msra.mxu0 %v3312_v61 }
  0xd8   :  { %2146 = vmatpush1.bf16.msra.mxu1 %v3315_v62  ;;  %2122 = vmatprep.subr.bf16.mxu0 %v3320_v63 }
  0xd9   :  { %2147 = vmatprep.subr.bf16.mxu1 %v3323_v1 }
  0xda   :  { %10 = vsyncpa [#allocation3], 0  ;;  %v3324_v49 = vld [vmem:[%s4568_s1 + $0x308] ss:$16 sps:$4 sm:$0xff]   ;;  %v3332_v9 = vld [vmem:[%s4568_s1 + $0x5ec] ss:$16 sps:$4 sm:$0xff]  }
  0xdb   :  { %2123 = vmatpush2.bf16.msra.mxu0 %v3318_v2  ;;  %v3327_v8 = vld [vmem:[%s4568_s1 + $0x408] ss:$16 sps:$4 sm:$0xff]   ;;  %v3335_v10 = vld [vmem:[%s4568_s1 + $0x6ec] ss:$16 sps:$4 sm:$0xff]   ;;  %v316_v44 = vsub.s32 0, %v3630_v42  ;;  %v320_v48 = vsub.s32 1, %v3630_v42 }
  0xdc   :  { %2148 = vmatpush1.bf16.msra.mxu1 %v3321_v4  ;;  %2124 = vmatprep.subr.bf16.mxu0 %v3326_v5  ;;  %v3330_v11 = vld [vmem:[%s4568_s1 + $0x5e8] ss:$16 sps:$4 sm:$0xff]   ;;  %v3338_v14 = vld [vmem:[%s4568_s1 + $0x5cc] ss:$16 sps:$4 sm:$0xff]   ;;  %v4350_v45 = vld [vmem:[%s4569_s2] sm:$0xf] }
  0xdd   :  { %2149 = vmatprep.subr.bf16.mxu1 %v3329_v7  ;;  %v3333_v12 = vld [vmem:[%s4568_s1 + $0x6e8] ss:$16 sps:$4 sm:$0xff]   ;;  %v3341_v15 = vld [vmem:[%s4568_s1 + $0x6cc] ss:$16 sps:$4 sm:$0xff]   ;;  %v317_v50 = vrot.slane %v4350_v45, %v316_v44  ;;  %v321_v17 = vrot.slane %v4350_v45, %v320_v48  ;;  %v3440_v44 = vld [vmem:[%s4570_s3 + $0x40] sm:$0xff]   ;;  %s3482_s20 = smov [#allocation2]  }
  0xde   :  { %v3336_v0 = vld [vmem:[%s4568_s1 + $0x5c8] ss:$16 sps:$4 sm:$0xff]   ;;  %v3344_v19 = vld [vmem:[%s4568_s1 + $0x5ac] ss:$16 sps:$4 sm:$0xff]   ;;  %s2616_s21 = sshll.u32 %s3482_s20, 4  ;;  %s2617_s21 = int_to_ptr.vmem [resolvable:$true] %s2616_s21 }
  0xdf   :  { %2125 = vmatpush2.bf16.msra.mxu0 %v3324_v49  ;;  %v3339_v16 = vld [vmem:[%s4568_s1 + $0x6c8] ss:$16 sps:$4 sm:$0xff]   ;;  %v3350_v22 = vld [vmem:[%s4568_s1 + $0x58c] ss:$16 sps:$4 sm:$0xff]   ;;  %s3458_s22 = scalar_lea.vmem %s2617_s21, 32  ;;  %p3463_p1 = scmp.lt.s32.totalorder %s2617_s21, %s2617_s21 }
  0xe0   :  { %2150 = vmatpush1.bf16.msra.mxu1 %v3327_v8  ;;  %2176 = vmatprep.subr.bf16.mxu0 %v3335_v10  ;;  %v3342_v20 = vld [vmem:[%s4568_s1 + $0x5a8] ss:$16 sps:$4 sm:$0xff]   ;;  %v3356_v27 = vld [vmem:[%s4568_s1 + $0x56c] ss:$16 sps:$4 sm:$0xff]   ;;  %p3459_p0 = scmp.ne.s32.totalorder %s2617_s21, %s3458_s22  ;;  %p3464_p2 = scmp.lt.s32.totalorder %s3458_s22, %s3458_s22 }
  0xe1   :  { %2151 = vmatprep.subr.bf16.mxu1 %v3332_v9  ;;  %v3345_v21 = vld [vmem:[%s4568_s1 + $0x6a8] ss:$16 sps:$4 sm:$0xff]   ;;  %v3359_v28 = vld [vmem:[%s4568_s1 + $0x66c] ss:$16 sps:$4 sm:$0xff]  }
  0xe2   :  { %2127 = vmatmul.mubr.bf16.vlgmr.msra.gmra.mxu0 %v3742_v18  ;;  %v3347_v18 = vld [vmem:[%s4568_s1 + $0x6ac] ss:$16 sps:$4 sm:$0xff]   ;;  %v3348_v24 = vld [vmem:[%s4568_s1 + $0x588] ss:$16 sps:$4 sm:$0xff]   ;;  %p3465_p3 = por %p3464_p2, %p3463_p1 }
  0xe3   :  { %2177 = vmatpush1.bf16.msra.mxu0 %v3333_v12  ;;  %2208 = vmatprep.mubr.bf16.mxu0 %v3758_v23  ;;  %v3353_v23 = vld [vmem:[%s4568_s1 + $0x68c] ss:$16 sps:$4 sm:$0xff]   ;;  %v3351_v26 = vld [vmem:[%s4568_s1 + $0x688] ss:$16 sps:$4 sm:$0xff]  }
  0xe4   :  { %2152 = vmatpush2.bf16.msra.mxu1 %v3330_v11  ;;  %2178 = vmatprep.subr.bf16.mxu0 %v3341_v15  ;;  %v3354_v6 = vld [vmem:[%s4568_s1 + $0x568] ss:$16 sps:$4 sm:$0xff]   ;;  %v3362_v31 = vld [vmem:[%s4568_s1 + $0x54c] ss:$16 sps:$4 sm:$0xff]   ;;  %p3466_p4 = pnand %p3465_p3, %p3459_p0 }
  0xe5   :  { %2153 = vmatprep.subr.bf16.mxu1 %v3338_v14  ;;  %v3357_v30 = vld [vmem:[%s4568_s1 + $0x668] ss:$16 sps:$4 sm:$0xff]   ;;  %v3365_v32 = vld [vmem:[%s4568_s1 + $0x64c] ss:$16 sps:$4 sm:$0xff]  }
  0xe6   :  { %v3360_v33 = vld [vmem:[%s4568_s1 + $0x548] ss:$16 sps:$4 sm:$0xff]   ;;  %v3368_v35 = vld [vmem:[%s4568_s1 + $0x52c] ss:$16 sps:$4 sm:$0xff]  }
  0xe7   :  { %2179 = vmatpush1.bf16.msra.mxu0 %v3339_v16  ;;  %v3363_v34 = vld [vmem:[%s4568_s1 + $0x648] ss:$16 sps:$4 sm:$0xff]   ;;  %v3371_v36 = vld [vmem:[%s4568_s1 + $0x62c] ss:$16 sps:$4 sm:$0xff]  }
  0xe8   :  { %2154 = vmatpush2.bf16.msra.mxu1 %v3336_v0  ;;  %2180 = vmatprep.subr.bf16.mxu0 %v3347_v18  ;;  %v3366_v37 = vld [vmem:[%s4568_s1 + $0x528] ss:$16 sps:$4 sm:$0xff]   ;;  %v3374_v40 = vld [vmem:[%s4568_s1 + $0x50c] ss:$16 sps:$4 sm:$0xff]  }
  0xe9   :  { %2155 = vmatprep.subr.bf16.mxu1 %v3344_v19  ;;  %v3369_v39 = vld [vmem:[%s4568_s1 + $0x628] ss:$16 sps:$4 sm:$0xff]   ;;  %v3377_v41 = vld [vmem:[%s4568_s1 + $0x60c] ss:$16 sps:$4 sm:$0xff]  }
  0xea   :  { %v3372_v60 = vld [vmem:[%s4568_s1 + $0x508] ss:$16 sps:$4 sm:$0xff]   ;;  %v3380_v46 = vld [vmem:[%s4568_s1 + $0x7ec] ss:$16 sps:$4 sm:$0xff]  }
  0xeb   :  { %2181 = vmatpush1.bf16.msra.mxu0 %v3345_v21  ;;  %v3375_v43 = vld [vmem:[%s4568_s1 + $0x608] ss:$16 sps:$4 sm:$0xff]   ;;  %v3383_v47 = vld [vmem:[%s4568_s1 + $0x8ec] ss:$16 sps:$4 sm:$0xff]  }
  0xec   :  { %2156 = vmatpush2.bf16.msra.mxu1 %v3342_v20  ;;  %2182 = vmatprep.subr.bf16.mxu0 %v3353_v23  ;;  %v3378_v13 = vld [vmem:[%s4568_s1 + $0x7e8] ss:$16 sps:$4 sm:$0xff]   ;;  %v3386_v52 = vld [vmem:[%s4568_s1 + $0x7cc] ss:$16 sps:$4 sm:$0xff]  }
  0xed   :  { %2157 = vmatprep.subr.bf16.mxu1 %v3350_v22  ;;  %v3381_v51 = vld [vmem:[%s4568_s1 + $0x8e8] ss:$16 sps:$4 sm:$0xff]   ;;  %v3389_v53 = vld [vmem:[%s4568_s1 + $0x8cc] ss:$16 sps:$4 sm:$0xff]  }
  0xee   :  { %v3384_v57 = vld [vmem:[%s4568_s1 + $0x7c8] ss:$16 sps:$4 sm:$0xff]   ;;  %v3392_v62 = vld [vmem:[%s4568_s1 + $0x7ac] ss:$16 sps:$4 sm:$0xff]  }
  0xef   :  { %2183 = vmatpush1.bf16.msra.mxu0 %v3351_v26  ;;  %v3387_v58 = vld [vmem:[%s4568_s1 + $0x8c8] ss:$16 sps:$4 sm:$0xff]   ;;  %v3401_v10 = vld [vmem:[%s4568_s1 + $0x88c] ss:$16 sps:$4 sm:$0xff]  }
  0xf0   :  { %2158 = vmatpush2.bf16.msra.mxu1 %v3348_v24  ;;  %2184 = vmatprep.subr.bf16.mxu0 %v3359_v28  ;;  %v3390_v7 = vld [vmem:[%s4568_s1 + $0x7a8] ss:$16 sps:$4 sm:$0xff]   ;;  %v3404_v14 = vld [vmem:[%s4568_s1 + $0x76c] ss:$16 sps:$4 sm:$0xff]  }
  0xf1   :  { %2159 = vmatprep.subr.bf16.mxu1 %v3356_v27  ;;  %v3393_v49 = vld [vmem:[%s4568_s1 + $0x8a8] ss:$16 sps:$4 sm:$0xff]   ;;  %v3407_v15 = vld [vmem:[%s4568_s1 + $0x86c] ss:$16 sps:$4 sm:$0xff]  }
  0xf2   :  { %v3396_v11 = vld [vmem:[%s4568_s1 + $0x788] ss:$16 sps:$4 sm:$0xff]   ;;  %v3410_v19 = vld [vmem:[%s4568_s1 + $0x74c] ss:$16 sps:$4 sm:$0xff]  }
  0xf3   :  { %2185 = vmatpush1.bf16.msra.mxu0 %v3357_v30  ;;  %v3399_v12 = vld [vmem:[%s4568_s1 + $0x888] ss:$16 sps:$4 sm:$0xff]   ;;  %v3413_v18 = vld [vmem:[%s4568_s1 + $0x84c] ss:$16 sps:$4 sm:$0xff]  }
  0xf4   :  { %2160 = vmatpush2.bf16.msra.mxu1 %v3354_v6  ;;  %2186 = vmatprep.subr.bf16.mxu0 %v3365_v32  ;;  %v3402_v0 = vld [vmem:[%s4568_s1 + $0x768] ss:$16 sps:$4 sm:$0xff]   ;;  %v3416_v22 = vld [vmem:[%s4568_s1 + $0x72c] ss:$16 sps:$4 sm:$0xff]  }
  0xf5   :  { %2161 = vmatprep.subr.bf16.mxu1 %v3362_v31  ;;  %v3405_v16 = vld [vmem:[%s4568_s1 + $0x868] ss:$16 sps:$4 sm:$0xff]   ;;  %v3419_v23 = vld [vmem:[%s4568_s1 + $0x82c] ss:$16 sps:$4 sm:$0xff]  }
  0xf6   :  { %v3408_v20 = vld [vmem:[%s4568_s1 + $0x748] ss:$16 sps:$4 sm:$0xff]   ;;  %v3422_v27 = vld [vmem:[%s4568_s1 + $0x70c] ss:$16 sps:$4 sm:$0xff]  }
  0xf7   :  { %2187 = vmatpush1.bf16.msra.mxu0 %v3363_v34  ;;  %v3411_v21 = vld [vmem:[%s4568_s1 + $0x848] ss:$16 sps:$4 sm:$0xff]   ;;  %v3425_v28 = vld [vmem:[%s4568_s1 + $0x80c] ss:$16 sps:$4 sm:$0xff]   ;;  %v3429_v34 = vld [vmem:[%s4570_s3 + $0x30] sm:$0xff]  }
  0xf8   :  { %2162 = vmatpush2.bf16.msra.mxu1 %v3360_v33  ;;  %2188 = vmatprep.subr.bf16.mxu0 %v3371_v36  ;;  %v3414_v24 = vld [vmem:[%s4568_s1 + $0x728] ss:$16 sps:$4 sm:$0xff]   ;;  %v3428_v33 = vld [vmem:[%s4570_s3 + $0x70] sm:$0xff]  }
  0xf9   :  { %2163 = vmatprep.subr.bf16.mxu1 %v3368_v35  ;;  %v3417_v26 = vld [vmem:[%s4568_s1 + $0x828] ss:$16 sps:$4 sm:$0xff]  }
  0xfa   :  { %v3420_v6 = vld [vmem:[%s4568_s1 + $0x708] ss:$16 sps:$4 sm:$0xff]  }
  0xfb   :  { %2189 = vmatpush1.bf16.msra.mxu0 %v3369_v39  ;;  %v3423_v30 = vld [vmem:[%s4568_s1 + $0x808] ss:$16 sps:$4 sm:$0xff]  }
  0xfc   :  { %2164 = vmatpush2.bf16.msra.mxu1 %v3366_v37  ;;  %2190 = vmatprep.subr.bf16.mxu0 %v3377_v41  ;;  %v3426_v31 = vld [vmem:[%s4570_s3 + $0x78] sm:$0xff]   ;;  %v3430_v35 = vld [vmem:[%s4570_s3 + $0x68] sm:$0xff]   ;;  %v3437_v41 = vld [vmem:[%s4570_s3 + $0x10] sm:$0xff]  }
  0xfd   :  { %2165 = vmatprep.subr.bf16.mxu1 %v3374_v40  ;;  %v3427_v32 = vld [vmem:[%s4570_s3 + $0x38] sm:$0xff]   ;;  %v3431_v36 = vld [vmem:[%s4570_s3 + $0x28] sm:$0xff]   ;;  %v3436_v40 = vld [vmem:[%s4570_s3 + $0x50] sm:$0xff]  }
  0xfe   :  { %v3434_v37 = vld [vmem:[%s4570_s3 + $0x58] sm:$0xff]  }
  0xff   :  { %2191 = vmatpush1.bf16.msra.mxu0 %v3375_v43  ;;  %v3435_v39 = vld [vmem:[%s4570_s3 + $0x18] sm:$0xff]   ;;  %v3439_v43 = vld [vmem:[%s4570_s3 + $0x8] sm:$0xff]  }
 0x100   :  { %2166 = vmatpush2.bf16.msra.mxu1 %v3372_v60  ;;  %2192 = vmatprep.subr.bf16.mxu0 %v3380_v46  ;;  %v3438_v60 = vld [vmem:[%s4570_s3 + $0x48] sm:$0xff]   ;;  %v3441_v46 = vld [vmem:[%s4570_s3] sm:$0xff]  }
 0x101   :  { %2217 = vmatprep.subr.bf16.mxu1 %v3383_v47 }
 0x102   :  { %v1882_v54 = vpop.f32.mrf.mxu0 }
 0x103   :  { %v1923_v55 = vpop.f32.mrf.mxu1  ;;  %2168 = vmatmul.mubr.bf16.vlgmr.msra.gmra.mxu1 %v3934_v25  ;;  %v1883_v56 = vadd.f32 %v1882_v54, %v317_v50  ;;  %2193 = vmatpush2.bf16.msra.mxu0 %v3378_v13  ;;  %v3395_v25 = vld [vmem:[%s4568_s1 + $0x8ac] ss:$16 sps:$4 sm:$0xff]  }
 0x104   :  { %2218 = vmatpush1.bf16.msra.mxu1 %v3381_v51  ;;  %v1884_v59 = vpop.f32.mrf.mxu0  ;;  %2194 = vmatprep.subr.bf16.mxu0 %v3386_v52  ;;  %v3442_v54 = vld [vmem:[%s4570_s3 + $0xf8] sm:$0xff]  }
 0x105   :  { %v1925_v61 = vpop.f32.mrf.mxu1  ;;  %2219 = vmatprep.subr.bf16.mxu1 %v3389_v53  ;;  %v4386_v63 = vadd.f32 %v1923_v55, %v1883_v56  ;;  %v1885_v1 = vadd.f32 %v1884_v59, %v321_v17  ;;  %2249 = vmatprep.mubr.bf16.mxu1 %v3481_v38  ;;  %v3398_v38 = vld [vmem:[%s4568_s1 + $0x78c] ss:$16 sps:$4 sm:$0xff]   ;;  %v3444_v56 = vld [vmem:[%s4570_s3 + $0xf0] sm:$0xff]  }
 0x106   :  { %v1886_v2 = vpop.f32.mrf.mxu0  ;;  %v3443_v55 = vld [vmem:[%s4570_s3 + $0xb8] sm:$0xff]   ;;  %v3447_v59 = vld [vmem:[%s4570_s3 + $0xa8] sm:$0xff]  }
 0x107   :  { %v1927_v4 = vpop.f32.mrf.mxu1  ;;  %v4389_v5 = vadd.f32 %v1925_v61, %v1885_v1  ;;  %2195 = vmatpush2.bf16.msra.mxu0 %v3384_v57  ;;  %v3445_v57 = vld [vmem:[%s4570_s3 + $0xb0] sm:$0xff]   ;;  %v3448_v61 = vld [vmem:[%s4570_s3 + $0xe0] sm:$0xff]   ;;  %v3451_v1 = vld [vmem:[%s4570_s3 + $0x98] sm:$0xff]  }
 0x108   :  { %2220 = vmatpush1.bf16.msra.mxu1 %v3387_v58  ;;  %v1887_v8 = vpop.f32.mrf.mxu0  ;;  %2196 = vmatprep.subr.bf16.mxu0 %v3392_v62  ;;  %v3446_v58 = vld [vmem:[%s4570_s3 + $0xe8] sm:$0xff]   ;;  %v3449_v62 = vld [vmem:[%s4570_s3 + $0xa0] sm:$0xff]  }
 0x109   :  { %v1928_v9 = vpop.f32.mrf.mxu1  ;;  %2221 = vmatprep.subr.bf16.mxu1 %v3395_v25  ;;  %v3450_v25 = vld [vmem:[%s4570_s3 + $0xd8] sm:$0xff]   ;;  %v3453_v8 = vld [vmem:[%s4570_s3 + $0x90] sm:$0xff]  }
 0x10b   :  { %2197 = vmatpush2.bf16.msra.mxu0 %v3390_v7  ;;  %v3452_v7 = vld [vmem:[%s4570_s3 + $0xd0] sm:$0xff]  }
 0x10c   :  { %2222 = vmatpush1.bf16.msra.mxu1 %v3393_v49  ;;  %2198 = vmatprep.subr.bf16.mxu0 %v3398_v38 }
 0x10d   :  { %2223 = vmatprep.subr.bf16.mxu1 %v3401_v10 }
 0x10f   :  { %2199 = vmatpush2.bf16.msra.mxu0 %v3396_v11 }
 0x110   :  { %2224 = vmatpush1.bf16.msra.mxu1 %v3399_v12  ;;  %2200 = vmatprep.subr.bf16.mxu0 %v3404_v14  ;;  %v3455_v12 = vld [vmem:[%s4570_s3 + $0x88] sm:$0xff]  }
 0x111   :  { %2225 = vmatprep.subr.bf16.mxu1 %v3407_v15 }
 0x113   :  { %2201 = vmatpush2.bf16.msra.mxu0 %v3402_v0 }
 0x114   :  { %2226 = vmatpush1.bf16.msra.mxu1 %v3405_v16  ;;  %2202 = vmatprep.subr.bf16.mxu0 %v3410_v19  ;;  %v3456_v19 = vld [vmem:[%s4570_s3 + $0xc0] sm:$0xff]  }
 0x115   :  { %2227 = vmatprep.subr.bf16.mxu1 %v3413_v18 }
 0x117   :  { %2203 = vmatpush2.bf16.msra.mxu0 %v3408_v20  ;;  %v3457_v20 = vld [vmem:[%s4570_s3 + $0x80] sm:$0xff]  }
 0x118   :  { %2228 = vmatpush1.bf16.msra.mxu1 %v3411_v21  ;;  %2204 = vmatprep.subr.bf16.mxu0 %v3416_v22 }
 0x119   :  { %2229 = vmatprep.subr.bf16.mxu1 %v3419_v23 }
 0x11b   :  { %2205 = vmatpush2.bf16.msra.mxu0 %v3414_v24 }
 0x11c   :  { %2230 = vmatpush1.bf16.msra.mxu1 %v3417_v26  ;;  %2206 = vmatprep.subr.bf16.mxu0 %v3422_v27 }
 0x11d   :  { %2231 = vmatprep.subr.bf16.mxu1 %v3425_v28 }
 0x11f   :  { %2207 = vmatpush2.bf16.msra.mxu0 %v3420_v6 }
 0x120   :  { %2232 = vmatpush1.bf16.msra.mxu1 %v3423_v30  ;;  %2946 = vmatprep.subr.bf16.mxu0 %v3426_v31 }
 0x121   :  { %2968 = vmatprep.subr.bf16.mxu1 %v3442_v54 }
 0x122   :  { %2209 = vmatmul.mubr.bf16.vlgmr.msra.gmra.mxu0 %v3950_v29  ;;  %v3432_v29 = vld [vmem:[%s4570_s3 + $0x60] sm:$0xff]  }
 0x123   :  { %2250 = vmatmul.mubr.bf16.vlgmr.msra.gmra.mxu1 %v4056_v3  ;;  %2947 = vmatpush3.bf16.msra.mxu0 %v3427_v32  ;;  %v3433_v3 = vld [vmem:[%s4570_s3 + $0x20] sm:$0xff]  }
 0x124   :  { %2948 = vmatprep.subr.bf16.mxu0 %v3428_v33  ;;  %2969 = vmatpush3.bf16.msra.mxu1 %v3443_v55 }
 0x125   :  { %2970 = vmatprep.subr.bf16.mxu1 %v3444_v56 }
 0x127   :  { %2949 = vmatpush3.bf16.msra.mxu0 %v3429_v34 }
 0x128   :  { %2950 = vmatprep.subr.bf16.mxu0 %v3430_v35  ;;  %2971 = vmatpush3.bf16.msra.mxu1 %v3445_v57  ;;  %v324_v35 = vsub.s32 2, %v3630_v42 }
 0x129   :  { %2972 = vmatprep.subr.bf16.mxu1 %v3446_v58 }
 0x12b   :  { %2951 = vmatpush3.bf16.msra.mxu0 %v3431_v36  ;;  %v328_v36 = vsub.s32 3, %v3630_v42 }
 0x12c   :  { %2952 = vmatprep.subr.bf16.mxu0 %v3432_v29  ;;  %2973 = vmatpush3.bf16.msra.mxu1 %v3447_v59  ;;  %v325_v29 = vrot.slane %v4350_v45, %v324_v35 }
 0x12d   :  { %2974 = vmatprep.subr.bf16.mxu1 %v3448_v61 }
 0x12f   :  { %2953 = vmatpush3.bf16.msra.mxu0 %v3433_v3  ;;  %v329_v3 = vrot.slane %v4350_v45, %v328_v36 }
 0x130   :  { %2954 = vmatprep.subr.bf16.mxu0 %v3434_v37  ;;  %2975 = vmatpush3.bf16.msra.mxu1 %v3449_v62 }
 0x131   :  { %2976 = vmatprep.subr.bf16.mxu1 %v3450_v25 }
 0x133   :  { %2955 = vmatpush3.bf16.msra.mxu0 %v3435_v39 }
 0x134   :  { %2956 = vmatprep.subr.bf16.mxu0 %v3436_v40  ;;  %2977 = vmatpush3.bf16.msra.mxu1 %v3451_v1  ;;  %v2913_v1 = vld [vmem:[%s4571_s4] ss:$0 sm:$0xff] }
 0x135   :  { %2978 = vmatprep.subr.bf16.mxu1 %v3452_v7 }
 0x137   :  { %2957 = vmatpush3.bf16.msra.mxu0 %v3437_v41 }
 0x138   :  { %2958 = vmatprep.subr.bf16.mxu0 %v3438_v60  ;;  %2979 = vmatpush3.bf16.msra.mxu1 %v3453_v8 }
 0x13b   :  { %2959 = vmatpush3.bf16.msra.mxu0 %v3439_v43 }
 0x13c   :  { %2960 = vmatprep.subr.bf16.mxu0 %v3440_v44 }
 0x13f   :  { %2961 = vmatpush3.bf16.msra.mxu0 %v3441_v46 }
 0x142   :  { %v1964_v47 = vpop.f32.mrf.mxu0 }
 0x143   :  { %v2005_v48 = vpop.f32.mrf.mxu1  ;;  %v1965_v2 = vadd.f32 %v1964_v47, %v4386_v63  ;;  %v3454_v63 = vld [vmem:[%s4570_s3 + $0xc8] sm:$0xff]  }
 0x144   :  { %v1966_v50 = vpop.f32.mrf.mxu0  ;;  %2980 = vmatprep.subr.bf16.mxu1 %v3454_v63 }
 0x145   :  { %v2007_v13 = vpop.f32.mrf.mxu1  ;;  %v1967_v4 = vadd.f32 %v1966_v50, %v4389_v5  ;;  %v2006_v49 = vadd.f32 %v2005_v48, %v1965_v2  ;;  %2981 = vmatpush3.bf16.msra.mxu1 %v3455_v12 }
 0x146   :  { %v1968_v51 = vpop.f32.mrf.mxu0  ;;  %2982 = vmatprep.subr.bf16.mxu1 %v3456_v19 }
 0x147   :  { %v2009_v52 = vpop.f32.mrf.mxu1  ;;  %v2008_v38 = vadd.f32 %v2007_v13, %v1967_v4 }
 0x148   :  { %v1969_v53 = vpop.f32.mrf.mxu0 }
 0x149   :  { %v2010_v17 = vpop.f32.mrf.mxu1  ;;  %2983 = vmatpush3.bf16.msra.mxu1 %v3457_v20 }
 0x162   :  { %v2046_v9 = vpop.f32.mrf.mxu0 }
 0x163   :  { %v2047_v10 = vadd.f32 %v2046_v9, %v2006_v49 }
 0x164   :  { %v2048_v11 = vpop.f32.mrf.mxu0 }
 0x165   :  { %v2049_v5 = vadd.f32 %v2048_v11, %v2008_v38  ;;  %v2258_v14 = vmax.f32 %v2047_v10, 0.0 }
 0x166   :  { %v2050_v15 = vpop.f32.mrf.mxu0 }
 0x167   :  { %v2259_v0 = vmax.f32 %v2049_v5, 0.0  ;;  %v2262_v21 = vpack.c.bf16 %v2258_v14, %v2258_v14 }
 0x168   :  { %v2051_v16 = vpop.f32.mrf.mxu0 }
 0x169   :  { %v2263_v18 = vpack.c.bf16 %v2259_v0, %v2259_v0 }
 0x16b   :  { %2561 = vmatprep.mubr.bf16.mxu0 %v2263_v18 }
 0x16c   :  { %2562 = vmatmul.mubr.bf16.vlgmr.msra.gmra.mxu0 %v2262_v21 }
 0x183   :  { %v2087_v22 = vpop.f32.mrf.mxu1 }
 0x184   :  { %v2088_v37 = vadd.f32 %v2087_v22, %v325_v29 }
 0x185   :  { %v2089_v23 = vpop.f32.mrf.mxu1 }
 0x186   :  { %v2090_v39 = vadd.f32 %v2089_v23, %v329_v3 }
 0x187   :  { %v2091_v24 = vpop.f32.mrf.mxu1 }
 0x189   :  { %v2092_v26 = vpop.f32.mrf.mxu1 }
 0x1a2   :  { %v2128_v27 = vpop.f32.mrf.mxu0 }
 0x1a3   :  { %v2129_v40 = vadd.f32 %v2128_v27, %v2088_v37 }
 0x1a4   :  { %v2130_v28 = vpop.f32.mrf.mxu0 }
 0x1a5   :  { %v2131_v41 = vadd.f32 %v2130_v28, %v2090_v39 }
 0x1a6   :  { %v2132_v6 = vpop.f32.mrf.mxu0 }
 0x1a8   :  { %v2133_v30 = vpop.f32.mrf.mxu0 }
 0x1c3   :  { %v2169_v31 = vpop.f32.mrf.mxu1 }
 0x1c4   :  { %v2170_v60 = vadd.f32 %v2169_v31, %v2129_v40 }
 0x1c5   :  { %v2171_v32 = vpop.f32.mrf.mxu1 }
 0x1c6   :  { %v2172_v46 = vadd.f32 %v2171_v32, %v2131_v41 }
 0x1c7   :  { %v2173_v33 = vpop.f32.mrf.mxu1 }
 0x1c9   :  { %v2174_v34 = vpop.f32.mrf.mxu1 }
 0x1e2   :  { %v2210_v43 = vpop.f32.mrf.mxu0 }
 0x1e3   :  { %v2251_v44 = vpop.f32.mrf.mxu1  ;;  %v2211_v47 = vadd.f32 %v2210_v43, %v2170_v60 }
 0x1e4   :  { %v2212_v48 = vpop.f32.mrf.mxu0 }
 0x1e5   :  { %v2253_v50 = vpop.f32.mrf.mxu1  ;;  %v2252_v13 = vadd.f32 %v2251_v44, %v2211_v47  ;;  %v2213_v51 = vadd.f32 %v2212_v48, %v2172_v46 }
 0x1e6   :  { %v2214_v52 = vpop.f32.mrf.mxu0 }
 0x1e7   :  { %v2255_v53 = vpop.f32.mrf.mxu1  ;;  %v2254_v42 = vadd.f32 %v2253_v50, %v2213_v51  ;;  %v2260_v17 = vmax.f32 %v2252_v13, 0.0 }
 0x1e8   :  { %v2215_v54 = vpop.f32.mrf.mxu0 }
 0x1e9   :  { %v2256_v55 = vpop.f32.mrf.mxu1  ;;  %v2261_v45 = vmax.f32 %v2254_v42, 0.0  ;;  %v2264_v57 = vpack.c.bf16 %v2260_v17, %v2260_v17 }
 0x1eb   :  { %v2265_v56 = vpack.c.bf16 %v2261_v45, %v2261_v45 }
 0x1ed   :  { %2601 = vmatprep.mubr.bf16.mxu1 %v2265_v56 }
 0x1ee   :  { %2602 = vmatmul.mubr.bf16.vlgmr.msra.gmra.mxu1 %v2264_v57 }
 0x22c   :  { %v2962_v58 = vpop.f32.mrf.mxu0 }
 0x22e   :  { %v2963_v59 = vpop.f32.mrf.mxu0 }
 0x22f   :  { %v2964_v61 = vadd.f32 %v2963_v59, %v2962_v58 }
 0x230   :  { %v2965_v62 = vpop.f32.mrf.mxu0 }
 0x231   :  { %v2564_v7 = vadd.f32 %v2964_v61, %v2913_v1 }
 0x232   :  { %v2966_v25 = vpop.f32.mrf.mxu0 }
 0x2ae   :  { %v2984_v2 = vpop.f32.mrf.mxu1 }
 0x2b0   :  { %v2985_v4 = vpop.f32.mrf.mxu1 }
 0x2b1   :  { %v2986_v49 = vadd.f32 %v2985_v4, %v2984_v2 }
 0x2b2   :  { %v2987_v8 = vpop.f32.mrf.mxu1 }
 0x2b3   :  { %v2604_v9 = vadd.f32 %v2986_v49, %v2564_v7 }
 0x2b4   :  { %v2988_v38 = vpop.f32.mrf.mxu1 }
 0x2b5   :  { %2609 = vst [vmem:[#allocation2] sm:$0x3] %v2604_v9 }
 0x2b6   :  { %3469 = shalt.err (!%p3466_p4)
}
 0x2b7   :  { %2619 = dma.vmem_to_hbm [thread:$0]  %s2617_s21, 32, %s4572_s5, [#allocation3]  }
 0x2b8   :  { %3478 = dma.done.wait [#allocation3], 32  }
 0x2b9   :  { %3479 = vsyncadd [#allocation3], 4294967264 }
 0x2ba   :  { %2623 = vsyncpa [#allocation3], 1 }

// kernel: dqn_forward.5
= control target key start
LH: loop header
LB: loop body
LE: loop exit
PB: predicated region body
PF: predicated region fallthrough
CT: control target
= control target key end

     0   :  { %s10765_s12 = smov 0   ;;  %s12929_s0 = inlined_call_operand.vmem [shape: bf16[2,6,6,512], index: 0, kind: input, shape index: {}]   ;;  %s12930_s1 = inlined_call_operand.vmem [shape: bf16[4,512,128], index: 1, kind: input, shape index: {}]   ;;  %s12931_s2 = inlined_call_operand.vmem [shape: f32[1,128], index: 2, kind: input, shape index: {}]   ;;  %s12932_s3 = inlined_call_operand.vmem [shape: bf16[2,5,5,128], index: 3, kind: output, shape index: {}]  }
   0x1 LB: > { %s7489_s13 = sadd.s32 4294967295, %s10743_s12   ;;  %p7493_p0 = scmp.ge.s32.totalorder %s10743_s12, 1  ;;  %s10743_s12 = sphi %s10765_s12, %s13_s12  }
   0x2   : > { %p137_p1 = scmp.lt.s32.totalorder %s10743_s12, 3 }
   0x4   : > { %p138_p2 = pnand %p7493_p0, %p137_p1 }
   0x5   : > { %p161_p3 = scmp.lt.s32.totalorder (!%p138_p2), %s7489_s13, 1 }
   0x6   : > { %141 = sbr.rel (%p138_p2) target bundleno = 863 (0x35f), region = 32 }
   0xb   : > { %v10055_v0 = vld [vmem:[%s12930_s1 + $0x178] sm:$0xff]   ;;  %v10059_v4 = vld [vmem:[%s12930_s1 + $0x170] sm:$0xff]   ;;  %v10063_v8 = vld [vmem:[%s12930_s1 + $0x168] sm:$0xff]   ;;  %s12936_s13 = smov (!%p161_p3, %s7489_s13), 1  ;;  %vm1628_vm0 = vcmask 1042432  }
   0xc   : > { %v10056_v1 = vld [vmem:[%s12930_s1 + $0x1f8] sm:$0xff]   ;;  %9165 = vmatprep.subr.bf16.mxu0 %v10055_v0  ;;  %v10060_v5 = vld [vmem:[%s12930_s1 + $0x1f0] sm:$0xff]   ;;  %v10064_v9 = vld [vmem:[%s12930_s1 + $0x1e8] sm:$0xff]   ;;  %s10045_s16 = smul.u32 96, %s12936_s13  ;;  %vm1629_vm1 = vsmask.f32 2304 }
   0xd   : > { %v10057_v2 = vld [vmem:[%s12930_s1 + $0x138] sm:$0xff]   ;;  %9187 = vmatprep.subr.bf16.mxu1 %v10056_v1  ;;  %v10061_v6 = vld [vmem:[%s12930_s1 + $0x130] sm:$0xff]   ;;  %v10065_v10 = vld [vmem:[%s12930_s1 + $0x128] sm:$0xff]   ;;  %s10046_s15 = smul.u32 20, %s12936_s13 }
   0xe   : > { %v10058_v3 = vld [vmem:[%s12930_s1 + $0x1b8] sm:$0xff]   ;;  %9166 = vmatpush3.bf16.msra.mxu0 %v10057_v2  ;;  %v10062_v7 = vld [vmem:[%s12930_s1 + $0x1b0] sm:$0xff]   ;;  %v10066_v11 = vld [vmem:[%s12930_s1 + $0x1a8] sm:$0xff]   ;;  %s10873_s27 = scalar_lea.vmem %s12929_s0, %s10045_s16 }
   0xf   : > { %9188 = vmatpush3.bf16.msra.mxu1 %v10058_v3  ;;  %9167 = vmatprep.subr.bf16.mxu0 %v10059_v4  ;;  %v10067_v12 = vld [vmem:[%s12930_s1 + $0x160] sm:$0xff]   ;;  %v10071_v16 = vld [vmem:[%s12930_s1 + $0x158] sm:$0xff]   ;;  %v10075_v20 = vld [vmem:[%s12930_s1 + $0x150] sm:$0xff]   ;;  %s11855_s25 = scalar_lea.vmem %s12932_s3, %s10046_s15 }
  0x10   : > { %9189 = vmatprep.subr.bf16.mxu1 %v10060_v5  ;;  %v10068_v13 = vld [vmem:[%s12930_s1 + $0x1e0] sm:$0xff]   ;;  %v10072_v17 = vld [vmem:[%s12930_s1 + $0x1d8] sm:$0xff]   ;;  %v10076_v21 = vld [vmem:[%s12930_s1 + $0x1d0] sm:$0xff]  }
  0x11   : > { %v10069_v14 = vld [vmem:[%s12930_s1 + $0x120] sm:$0xff]   ;;  %v10073_v18 = vld [vmem:[%s12930_s1 + $0x118] sm:$0xff]   ;;  %v10077_v22 = vld [vmem:[%s12930_s1 + $0x110] sm:$0xff]  }
  0x12   : > { %9168 = vmatpush3.bf16.msra.mxu0 %v10061_v6  ;;  %v10070_v15 = vld [vmem:[%s12930_s1 + $0x1a0] sm:$0xff]   ;;  %v10074_v19 = vld [vmem:[%s12930_s1 + $0x198] sm:$0xff]   ;;  %v10078_v23 = vld [vmem:[%s12930_s1 + $0x190] sm:$0xff]  }
  0x13   : > { %9190 = vmatpush3.bf16.msra.mxu1 %v10062_v7  ;;  %9169 = vmatprep.subr.bf16.mxu0 %v10063_v8  ;;  %v10079_v24 = vld [vmem:[%s12930_s1 + $0x148] sm:$0xff]   ;;  %v10083_v28 = vld [vmem:[%s12930_s1 + $0x140] sm:$0xff]   ;;  %v10091_v38 = vld [vmem:[%s12930_s1 + $0x78] sm:$0xff]  }
  0x14   : > { %9191 = vmatprep.subr.bf16.mxu1 %v10064_v9  ;;  %v10080_v25 = vld [vmem:[%s12930_s1 + $0x1c8] sm:$0xff]   ;;  %v10084_v29 = vld [vmem:[%s12930_s1 + $0x1c0] sm:$0xff]   ;;  %v10092_v39 = vld [vmem:[%s12930_s1 + $0xf8] sm:$0xff]  }
  0x15   : > { %v10081_v26 = vld [vmem:[%s12930_s1 + $0x108] sm:$0xff]   ;;  %v10085_v30 = vld [vmem:[%s12930_s1 + $0x100] sm:$0xff]   ;;  %v10093_v50 = vld [vmem:[%s12930_s1 + $0x38] sm:$0xff]  }
  0x16   : > { %9170 = vmatpush3.bf16.msra.mxu0 %v10065_v10  ;;  %v10082_v27 = vld [vmem:[%s12930_s1 + $0x188] sm:$0xff]   ;;  %v10086_v31 = vld [vmem:[%s12930_s1 + $0x180] sm:$0xff]   ;;  %v10094_v51 = vld [vmem:[%s12930_s1 + $0xb8] sm:$0xff]  }
  0x17   : > { %9192 = vmatpush3.bf16.msra.mxu1 %v10066_v11  ;;  %9171 = vmatprep.subr.bf16.mxu0 %v10067_v12  ;;  %v173_v32 = vld [vmem:[%s10873_s27] sm:$0x77]  ;;  %v174_v33 = vld [vmem:[%s10873_s27 + $0x8] sm:$0x77]  ;;  %v10095_v56 = vld [vmem:[%s12930_s1 + $0x70] sm:$0xff]  }
  0x18   : > { %9193 = vmatprep.subr.bf16.mxu1 %v10068_v13  ;;  %v10883_v34 = vcombine.low %v173_v32, %v173_v32  ;;  %v7561_v35 = vcombine.high %v173_v32, %v173_v32  ;;  %v10885_v36 = vcombine.low %v174_v33, %v174_v33  ;;  %v7563_v37 = vcombine.high %v174_v33, %v174_v33  ;;  %v10096_v59 = vld [vmem:[%s12930_s1 + $0xf0] sm:$0xff]   ;;  %v10099_v62 = vld [vmem:[%s12930_s1 + $0x68] sm:$0xff]   ;;  %v10103_v2 = vld [vmem:[%s12930_s1 + $0x60] sm:$0xff]  }
  0x19   : > { %v10097_v60 = vld [vmem:[%s12930_s1 + $0x30] sm:$0xff]   ;;  %v10100_v63 = vld [vmem:[%s12930_s1 + $0xe8] sm:$0xff]   ;;  %v10104_v3 = vld [vmem:[%s12930_s1 + $0xe0] sm:$0xff]  }
  0x1a   : > { %9172 = vmatpush3.bf16.msra.mxu0 %v10069_v14  ;;  %v322_v40 = vshrl.u32 %v7561_v35, 16  ;;  %v324_v41 = vshll.u32 %v7561_v35, 16  ;;  %v336_v42 = vshrl.u32 %v7563_v37, 16  ;;  %v338_v43 = vshll.u32 %v7563_v37, 16  ;;  %v10098_v61 = vld [vmem:[%s12930_s1 + $0xb0] sm:$0xff]   ;;  %v10101_v0 = vld [vmem:[%s12930_s1 + $0x28] sm:$0xff]   ;;  %vm11839_vm2 = vmand %vm1628_vm0, %vm1629_vm1 }
  0x1b   : > { %9194 = vmatpush3.bf16.msra.mxu1 %v10070_v15  ;;  %9173 = vmatprep.subr.bf16.mxu0 %v10071_v16  ;;  %v315_v44 = vshrl.u32 %v10883_v34, 16  ;;  %v317_v45 = vshll.u32 %v10883_v34, 16  ;;  %v329_v46 = vshrl.u32 %v10885_v36, 16  ;;  %v331_v47 = vshll.u32 %v10885_v36, 16  ;;  %v10102_v1 = vld [vmem:[%s12930_s1 + $0xa8] sm:$0xff]   ;;  %v10105_v4 = vld [vmem:[%s12930_s1 + $0x20] sm:$0xff]  }
  0x1c   : > { %9195 = vmatprep.subr.bf16.mxu1 %v10072_v17  ;;  %v326_v48 = vrot.slane %v324_v41, 1  ;;  %v340_v49 = vrot.slane %v338_v43, 1  ;;  %v10106_v5 = vld [vmem:[%s12930_s1 + $0xa0] sm:$0xff]   ;;  %v10107_v6 = vld [vmem:[%s12930_s1 + $0x58] sm:$0xff]   ;;  %v10111_v10 = vld [vmem:[%s12930_s1 + $0x50] sm:$0xff]  }
  0x1d   : > { %v319_v52 = vrot.slane %v317_v45, 1  ;;  %v333_v53 = vrot.slane %v331_v47, 1  ;;  %v10108_v7 = vld [vmem:[%s12930_s1 + $0xd8] sm:$0xff]   ;;  %v10112_v11 = vld [vmem:[%s12930_s1 + $0xd0] sm:$0xff]   ;;  %v10115_v14 = vld [vmem:[%s12930_s1 + $0x48] sm:$0xff]  }
  0x1e   : > { %9174 = vmatpush3.bf16.msra.mxu0 %v10073_v18  ;;  %v327_v54 = vor.u32 %v326_v48, %v322_v40  ;;  %v341_v55 = vor.u32 %v340_v49, %v336_v42  ;;  %v10109_v8 = vld [vmem:[%s12930_s1 + $0x18] sm:$0xff]   ;;  %v10113_v12 = vld [vmem:[%s12930_s1 + $0x10] sm:$0xff]   ;;  %v10116_v15 = vld [vmem:[%s12930_s1 + $0xc8] sm:$0xff]  }
  0x1f   : > { %9196 = vmatpush3.bf16.msra.mxu1 %v10074_v19  ;;  %9175 = vmatprep.subr.bf16.mxu0 %v10075_v20  ;;  %v320_v57 = vor.u32 %v319_v52, %v315_v44  ;;  %v334_v58 = vor.u32 %v333_v53, %v329_v46  ;;  %v10110_v9 = vld [vmem:[%s12930_s1 + $0x98] sm:$0xff]   ;;  %v10114_v13 = vld [vmem:[%s12930_s1 + $0x90] sm:$0xff]   ;;  %v10117_v16 = vld [vmem:[%s12930_s1 + $0x8] sm:$0xff]  }
  0x20   : > { %9197 = vmatprep.subr.bf16.mxu1 %v10076_v21  ;;  %570 = vmatprep.mubr.bf16.mxu0 %v327_v54  ;;  %v10118_v17 = vld [vmem:[%s12930_s1 + $0x88] sm:$0xff]   ;;  %v10119_v18 = vld [vmem:[%s12930_s1 + $0x40] sm:$0xff]   ;;  %v10141_v40 = vld [vmem:[%s12930_s1 + $0x218] sm:$0xff]  }
  0x21   : > { %610 = vmatprep.mubr.bf16.mxu1 %v341_v55  ;;  %v10120_v19 = vld [vmem:[%s12930_s1 + $0xc0] sm:$0xff]   ;;  %v10133_v32 = vld [vmem:[%s12930_s1 + $0x228] sm:$0xff]   ;;  %v10142_v41 = vld [vmem:[%s12930_s1 + $0x298] sm:$0xff]  }
  0x22   : > { %9176 = vmatpush3.bf16.msra.mxu0 %v10077_v22  ;;  %v10121_v20 = vld [vmem:[%s12930_s1] sm:$0xff]   ;;  %v10123_v22 = vld [vmem:[%s12930_s1 + $0x278] sm:$0xff]   ;;  %v10134_v33 = vld [vmem:[%s12930_s1 + $0x2a8] sm:$0xff]  }
  0x23   : > { %9198 = vmatpush3.bf16.msra.mxu1 %v10078_v23  ;;  %9177 = vmatprep.subr.bf16.mxu0 %v10079_v24  ;;  %v10122_v21 = vld [vmem:[%s12930_s1 + $0x80] sm:$0xff]   ;;  %v10124_v23 = vld [vmem:[%s12930_s1 + $0x2f8] sm:$0xff]   ;;  %v10143_v42 = vld [vmem:[%s12930_s1 + $0x250] sm:$0xff]  }
  0x24   : > { %9199 = vmatprep.subr.bf16.mxu1 %v10080_v25  ;;  %v10125_v24 = vld [vmem:[%s12930_s1 + $0x238] sm:$0xff]   ;;  %v10144_v43 = vld [vmem:[%s12930_s1 + $0x2d0] sm:$0xff]   ;;  %v10147_v46 = vld [vmem:[%s12930_s1 + $0x248] sm:$0xff]  }
  0x25   : > { %v10126_v25 = vld [vmem:[%s12930_s1 + $0x2b8] sm:$0xff]   ;;  %v10145_v44 = vld [vmem:[%s12930_s1 + $0x210] sm:$0xff]   ;;  %v10148_v47 = vld [vmem:[%s12930_s1 + $0x2c8] sm:$0xff]  }
  0x26   : > { %9178 = vmatpush3.bf16.msra.mxu0 %v10081_v26  ;;  %v10127_v26 = vld [vmem:[%s12930_s1 + $0x270] sm:$0xff]   ;;  %v10149_v48 = vld [vmem:[%s12930_s1 + $0x208] sm:$0xff]   ;;  %v10153_v52 = vld [vmem:[%s12930_s1 + $0x200] sm:$0xff]  }
  0x27   : > { %9200 = vmatpush3.bf16.msra.mxu1 %v10082_v27  ;;  %9179 = vmatprep.subr.bf16.mxu0 %v10083_v28  ;;  %v10128_v27 = vld [vmem:[%s12930_s1 + $0x2f0] sm:$0xff]   ;;  %v10150_v49 = vld [vmem:[%s12930_s1 + $0x288] sm:$0xff]   ;;  %v10154_v53 = vld [vmem:[%s12930_s1 + $0x280] sm:$0xff]  }
  0x28   : > { %9201 = vmatprep.subr.bf16.mxu1 %v10084_v29  ;;  %v10129_v28 = vld [vmem:[%s12930_s1 + $0x230] sm:$0xff]   ;;  %v7629_v55 = vld [vmem:[%s10873_s27 + $0x18] sm:$0x77] }
  0x29   : > { %v10130_v29 = vld [vmem:[%s12930_s1 + $0x2b0] sm:$0xff]  }
  0x2a   : > { %9180 = vmatpush3.bf16.msra.mxu0 %v10085_v30  ;;  %v10131_v30 = vld [vmem:[%s12930_s1 + $0x268] sm:$0xff]   ;;  %v10146_v45 = vld [vmem:[%s12930_s1 + $0x290] sm:$0xff]  }
  0x2b   : > { %9202 = vmatpush3.bf16.msra.mxu1 %v10086_v31  ;;  %9209 = vmatprep.subr.bf16.mxu0 %v10091_v38  ;;  %v10132_v31 = vld [vmem:[%s12930_s1 + $0x2e8] sm:$0xff]   ;;  %v10139_v38 = vld [vmem:[%s12930_s1 + $0x258] sm:$0xff]   ;;  %v7628_v54 = vld [vmem:[%s10873_s27 + $0x10] sm:$0x77] }
  0x2c   : > { %9231 = vmatprep.subr.bf16.mxu1 %v10092_v39  ;;  %v10140_v39 = vld [vmem:[%s12930_s1 + $0x2d8] sm:$0xff]  }
  0x2d   : > { %571 = vmatmul.mubr.bf16.vlgmr.msra.gmra.mxu0 %v320_v57  ;;  %v10159_v57 = vld [vmem:[%s12930_s1 + $0x378] sm:$0xff]  }
  0x2e   : > { %611 = vmatmul.mubr.bf16.vlgmr.msra.gmra.mxu1 %v334_v58  ;;  %9210 = vmatpush3.bf16.msra.mxu0 %v10093_v50  ;;  %v10151_v50 = vld [vmem:[%s12930_s1 + $0x240] sm:$0xff]   ;;  %v7697_v58 = vcombine.high %v7629_v55, %v7629_v55 }
  0x2f   : > { %9232 = vmatpush3.bf16.msra.mxu1 %v10094_v51  ;;  %9211 = vmatprep.subr.bf16.mxu0 %v10095_v56  ;;  %v10152_v51 = vld [vmem:[%s12930_s1 + $0x2c0] sm:$0xff]   ;;  %v7695_v56 = vcombine.high %v7628_v54, %v7628_v54 }
  0x30   : > { %9233 = vmatprep.subr.bf16.mxu1 %v10096_v59  ;;  %846 = vmatprep.mubr.bf16.mxu0 %v7561_v35  ;;  %v10136_v35 = vld [vmem:[%s12930_s1 + $0x2e0] sm:$0xff]   ;;  %v10160_v59 = vld [vmem:[%s12930_s1 + $0x3f8] sm:$0xff]  }
  0x31   : > { %886 = vmatprep.mubr.bf16.mxu1 %v7563_v37  ;;  %v10138_v37 = vld [vmem:[%s12930_s1 + $0x2a0] sm:$0xff]  }
  0x32   : > { %9212 = vmatpush3.bf16.msra.mxu0 %v10097_v60  ;;  %v10161_v60 = vld [vmem:[%s12930_s1 + $0x338] sm:$0xff]  }
  0x33   : > { %9234 = vmatpush3.bf16.msra.mxu1 %v10098_v61  ;;  %9213 = vmatprep.subr.bf16.mxu0 %v10099_v62  ;;  %v1322_v61 = vshrl.u32 %v7695_v56, 16  ;;  %v11096_v62 = vcombine.low %v7628_v54, %v7628_v54  ;;  %v10201_v54 = vld [vmem:[%s12930_s1 + $0x128] sm:$0xff]  }
  0x34   : > { %9235 = vmatprep.subr.bf16.mxu1 %v10100_v63  ;;  %v11098_v63 = vcombine.low %v7629_v55, %v7629_v55  ;;  %v10202_v55 = vld [vmem:[%s12930_s1 + $0x1a8] sm:$0xff]  }
  0x36   : > { %9214 = vmatpush3.bf16.msra.mxu0 %v10101_v0  ;;  %v10162_v0 = vld [vmem:[%s12930_s1 + $0x3b8] sm:$0xff]  }
  0x37   : > { %9236 = vmatpush3.bf16.msra.mxu1 %v10102_v1  ;;  %9215 = vmatprep.subr.bf16.mxu0 %v10103_v2  ;;  %v1324_v1 = vshll.u32 %v7695_v56, 16  ;;  %v10163_v2 = vld [vmem:[%s12930_s1 + $0x370] sm:$0xff]  }
  0x38   : > { %9237 = vmatprep.subr.bf16.mxu1 %v10104_v3  ;;  %v1336_v3 = vshrl.u32 %v7697_v58, 16 }
  0x3a   : > { %9216 = vmatpush3.bf16.msra.mxu0 %v10105_v4  ;;  %v10164_v4 = vld [vmem:[%s12930_s1 + $0x3f0] sm:$0xff]  }
  0x3b   : > { %9238 = vmatpush3.bf16.msra.mxu1 %v10106_v5  ;;  %9217 = vmatprep.subr.bf16.mxu0 %v10107_v6  ;;  %v1326_v5 = vrot.slane %v1324_v1, 1  ;;  %v10165_v6 = vld [vmem:[%s12930_s1 + $0x330] sm:$0xff]  }
  0x3c   : > { %9239 = vmatprep.subr.bf16.mxu1 %v10108_v7  ;;  %v1338_v7 = vshll.u32 %v7697_v58, 16  ;;  %v10212_v1 = vld [vmem:[%s12930_s1 + $0x1d0] sm:$0xff]  }
  0x3e   : > { %9218 = vmatpush3.bf16.msra.mxu0 %v10109_v8  ;;  %v10166_v8 = vld [vmem:[%s12930_s1 + $0x3b0] sm:$0xff]  }
  0x3f   : > { %9240 = vmatpush3.bf16.msra.mxu1 %v10110_v9  ;;  %9219 = vmatprep.subr.bf16.mxu0 %v10111_v10  ;;  %v1327_v9 = vor.u32 %v1326_v5, %v1322_v61  ;;  %v10167_v10 = vld [vmem:[%s12930_s1 + $0x368] sm:$0xff]   ;;  %v10208_v61 = vld [vmem:[%s12930_s1 + $0x1d8] sm:$0xff]  }
  0x40   : > { %9241 = vmatprep.subr.bf16.mxu1 %v10112_v11  ;;  %v1340_v11 = vrot.slane %v1338_v7, 1  ;;  %v10216_v5 = vld [vmem:[%s12930_s1 + $0x1c8] sm:$0xff]  }
  0x41   : > { %v10218_v7 = vld [vmem:[%s12930_s1 + $0x188] sm:$0xff]  }
  0x42   : > { %9220 = vmatpush3.bf16.msra.mxu0 %v10113_v12  ;;  %v10168_v12 = vld [vmem:[%s12930_s1 + $0x3e8] sm:$0xff]  }
  0x43   : > { %9242 = vmatpush3.bf16.msra.mxu1 %v10114_v13  ;;  %9221 = vmatprep.subr.bf16.mxu0 %v10115_v14  ;;  %v10169_v13 = vld [vmem:[%s12930_s1 + $0x328] sm:$0xff]   ;;  %v1341_v14 = vor.u32 %v1340_v11, %v1336_v3  ;;  %v10214_v3 = vld [vmem:[%s12930_s1 + $0x190] sm:$0xff]   ;;  %v10222_v11 = vld [vmem:[%s12930_s1 + $0x180] sm:$0xff]  }
  0x44   : > { %9243 = vmatprep.subr.bf16.mxu1 %v10116_v15  ;;  %v10170_v15 = vld [vmem:[%s12930_s1 + $0x3a8] sm:$0xff]  }
  0x46   : > { %9222 = vmatpush3.bf16.msra.mxu0 %v10117_v16  ;;  %v10171_v16 = vld [vmem:[%s12930_s1 + $0x360] sm:$0xff]  }
  0x47   : > { %9244 = vmatpush3.bf16.msra.mxu1 %v10118_v17  ;;  %9223 = vmatprep.subr.bf16.mxu0 %v10119_v18  ;;  %v10172_v17 = vld [vmem:[%s12930_s1 + $0x3e0] sm:$0xff]  }
  0x48   : > { %9245 = vmatprep.subr.bf16.mxu1 %v10120_v19  ;;  %v10173_v18 = vld [vmem:[%s12930_s1 + $0x320] sm:$0xff]  }
  0x49   : > { %v10174_v19 = vld [vmem:[%s12930_s1 + $0x3a0] sm:$0xff]  }
  0x4a   : > { %9224 = vmatpush3.bf16.msra.mxu0 %v10121_v20  ;;  %v10175_v20 = vld [vmem:[%s12930_s1 + $0x358] sm:$0xff]  }
  0x4b   : > { %9246 = vmatpush3.bf16.msra.mxu1 %v10122_v21  ;;  %9253 = vmatprep.subr.bf16.mxu0 %v10123_v22  ;;  %v10176_v21 = vld [vmem:[%s12930_s1 + $0x3d8] sm:$0xff]  }
  0x4c   : > { %9275 = vmatprep.subr.bf16.mxu1 %v10124_v23  ;;  %v10177_v22 = vld [vmem:[%s12930_s1 + $0x318] sm:$0xff]  }
  0x4d   : > { %847 = vmatmul.mubr.bf16.vlgmr.msra.gmra.mxu0 %v10883_v34  ;;  %v10135_v34 = vld [vmem:[%s12930_s1 + $0x260] sm:$0xff]   ;;  %v10178_v23 = vld [vmem:[%s12930_s1 + $0x398] sm:$0xff]  }
  0x4e   : > { %887 = vmatmul.mubr.bf16.vlgmr.msra.gmra.mxu1 %v10885_v36  ;;  %9254 = vmatpush3.bf16.msra.mxu0 %v10125_v24  ;;  %v10137_v36 = vld [vmem:[%s12930_s1 + $0x220] sm:$0xff]   ;;  %v10179_v24 = vld [vmem:[%s12930_s1 + $0x350] sm:$0xff]  }
  0x4f   : > { %9276 = vmatpush3.bf16.msra.mxu1 %v10126_v25  ;;  %9255 = vmatprep.subr.bf16.mxu0 %v10127_v26  ;;  %v10180_v25 = vld [vmem:[%s12930_s1 + $0x3d0] sm:$0xff]  }
  0x50   : > { %9277 = vmatprep.subr.bf16.mxu1 %v10128_v27  ;;  %1200 = vmatprep.mubr.bf16.mxu0 %v7695_v56  ;;  %v10181_v26 = vld [vmem:[%s12930_s1 + $0x310] sm:$0xff]   ;;  %v10203_v56 = vld [vmem:[%s12930_s1 + $0x160] sm:$0xff]  }
  0x51   : > { %1240 = vmatprep.mubr.bf16.mxu1 %v7697_v58  ;;  %v10182_v27 = vld [vmem:[%s12930_s1 + $0x390] sm:$0xff]   ;;  %v10205_v58 = vld [vmem:[%s12930_s1 + $0x120] sm:$0xff]  }
  0x52   : > { %9256 = vmatpush3.bf16.msra.mxu0 %v10129_v28  ;;  %v10183_v28 = vld [vmem:[%s12930_s1 + $0x348] sm:$0xff]  }
  0x53   : > { %9278 = vmatpush3.bf16.msra.mxu1 %v10130_v29  ;;  %9257 = vmatprep.subr.bf16.mxu0 %v10131_v30  ;;  %v10184_v29 = vld [vmem:[%s12930_s1 + $0x3c8] sm:$0xff]  }
  0x54   : > { %9279 = vmatprep.subr.bf16.mxu1 %v10132_v31  ;;  %v10185_v30 = vld [vmem:[%s12930_s1 + $0x308] sm:$0xff]   ;;  %v1317_v31 = vshll.u32 %v11096_v62, 16 }
  0x56   : > { %9258 = vmatpush3.bf16.msra.mxu0 %v10133_v32  ;;  %v10186_v32 = vld [vmem:[%s12930_s1 + $0x388] sm:$0xff]  }
  0x57   : > { %9280 = vmatpush3.bf16.msra.mxu1 %v10134_v33  ;;  %9259 = vmatprep.subr.bf16.mxu0 %v10135_v34  ;;  %v1331_v33 = vshll.u32 %v11098_v63, 16  ;;  %v10187_v34 = vld [vmem:[%s12930_s1 + $0x340] sm:$0xff]  }
  0x58   : > { %9281 = vmatprep.subr.bf16.mxu1 %v10136_v35  ;;  %v1315_v35 = vshrl.u32 %v11096_v62, 16 }
  0x5a   : > { %9260 = vmatpush3.bf16.msra.mxu0 %v10137_v36  ;;  %v10188_v36 = vld [vmem:[%s12930_s1 + $0x3c0] sm:$0xff]  }
  0x5b   : > { %9282 = vmatpush3.bf16.msra.mxu1 %v10138_v37  ;;  %9261 = vmatprep.subr.bf16.mxu0 %v10139_v38  ;;  %v1329_v37 = vshrl.u32 %v11098_v63, 16  ;;  %v10189_v38 = vld [vmem:[%s12930_s1 + $0x300] sm:$0xff]  }
  0x5c   : > { %9283 = vmatprep.subr.bf16.mxu1 %v10140_v39  ;;  %v1319_v39 = vrot.slane %v1317_v31, 1 }
  0x5e   : > { %9262 = vmatpush3.bf16.msra.mxu0 %v10141_v40  ;;  %v10190_v40 = vld [vmem:[%s12930_s1 + $0x380] sm:$0xff]  }
  0x5f   : > { %9284 = vmatpush3.bf16.msra.mxu1 %v10142_v41  ;;  %9263 = vmatprep.subr.bf16.mxu0 %v10143_v42  ;;  %v1333_v41 = vrot.slane %v1331_v33, 1  ;;  %v10191_v42 = vld [vmem:[%s12930_s1 + $0x178] sm:$0xff]  }
  0x60   : > { %9285 = vmatprep.subr.bf16.mxu1 %v10144_v43  ;;  %v10192_v43 = vld [vmem:[%s12930_s1 + $0x1f8] sm:$0xff]  }
  0x61   : > { %v10230_v33 = vld [vmem:[%s12930_s1 + $0xb8] sm:$0xff]  }
  0x62   : > { %9264 = vmatpush3.bf16.msra.mxu0 %v10145_v44  ;;  %v10193_v44 = vld [vmem:[%s12930_s1 + $0x138] sm:$0xff]  }
  0x63   : > { %9286 = vmatpush3.bf16.msra.mxu1 %v10146_v45  ;;  %9265 = vmatprep.subr.bf16.mxu0 %v10147_v46  ;;  %v1320_v45 = vor.u32 %v1319_v39, %v1315_v35  ;;  %v1334_v46 = vor.u32 %v1333_v41, %v1329_v37  ;;  %v10232_v39 = vld [vmem:[%s12930_s1 + $0xf0] sm:$0xff]  }
  0x64   : > { %9287 = vmatprep.subr.bf16.mxu1 %v10148_v47  ;;  %v10194_v47 = vld [vmem:[%s12930_s1 + $0x1b8] sm:$0xff]   ;;  %v10234_v41 = vld [vmem:[%s12930_s1 + $0xb0] sm:$0xff]  }
  0x66   : > { %9266 = vmatpush3.bf16.msra.mxu0 %v10149_v48  ;;  %v10195_v48 = vld [vmem:[%s12930_s1 + $0x170] sm:$0xff]  }
  0x67   : > { %9288 = vmatpush3.bf16.msra.mxu1 %v10150_v49  ;;  %9267 = vmatprep.subr.bf16.mxu0 %v10151_v50  ;;  %v10196_v49 = vld [vmem:[%s12930_s1 + $0x1f0] sm:$0xff]  }
  0x68   : > { %9289 = vmatprep.subr.bf16.mxu1 %v10152_v51  ;;  %v10197_v50 = vld [vmem:[%s12930_s1 + $0x130] sm:$0xff]  }
  0x69   : > { %v10198_v51 = vld [vmem:[%s12930_s1 + $0x1b0] sm:$0xff]  }
  0x6a   : > { %9268 = vmatpush3.bf16.msra.mxu0 %v10153_v52  ;;  %v10199_v52 = vld [vmem:[%s12930_s1 + $0x168] sm:$0xff]  }
  0x6b   : > { %9290 = vmatpush3.bf16.msra.mxu1 %v10154_v53  ;;  %9297 = vmatprep.subr.bf16.mxu0 %v10159_v57  ;;  %v10200_v53 = vld [vmem:[%s12930_s1 + $0x1e8] sm:$0xff]   ;;  %v10204_v57 = vld [vmem:[%s12930_s1 + $0x1e0] sm:$0xff]  }
  0x6c   : > { %9319 = vmatprep.subr.bf16.mxu1 %v10160_v59  ;;  %v10206_v59 = vld [vmem:[%s12930_s1 + $0x1a0] sm:$0xff]  }
  0x6d   : > { %1201 = vmatmul.mubr.bf16.vlgmr.msra.gmra.mxu0 %v11096_v62  ;;  %v10209_v62 = vld [vmem:[%s12930_s1 + $0x118] sm:$0xff]  }
  0x6e   : > { %1241 = vmatmul.mubr.bf16.vlgmr.msra.gmra.mxu1 %v11098_v63  ;;  %9298 = vmatpush3.bf16.msra.mxu0 %v10161_v60  ;;  %v10207_v60 = vld [vmem:[%s12930_s1 + $0x158] sm:$0xff]  }
  0x6f   : > { %9320 = vmatpush3.bf16.msra.mxu1 %v10162_v0  ;;  %9299 = vmatprep.subr.bf16.mxu0 %v10163_v2  ;;  %v10210_v63 = vld [vmem:[%s12930_s1 + $0x198] sm:$0xff]   ;;  %v10211_v0 = vld [vmem:[%s12930_s1 + $0x150] sm:$0xff]  }
  0x70   : > { %9321 = vmatprep.subr.bf16.mxu1 %v10164_v4  ;;  %1570 = vmatprep.mubr.bf16.mxu0 %v1327_v9  ;;  %v10213_v2 = vld [vmem:[%s12930_s1 + $0x110] sm:$0xff]   ;;  %v10215_v4 = vld [vmem:[%s12930_s1 + $0x148] sm:$0xff]   ;;  %v10220_v9 = vld [vmem:[%s12930_s1 + $0x1c0] sm:$0xff]  }
  0x71   : > { %1610 = vmatprep.mubr.bf16.mxu1 %v1341_v14 }
  0x72   : > { %9300 = vmatpush3.bf16.msra.mxu0 %v10165_v6  ;;  %v10217_v6 = vld [vmem:[%s12930_s1 + $0x108] sm:$0xff]  }
  0x73   : > { %9322 = vmatpush3.bf16.msra.mxu1 %v10166_v8  ;;  %9301 = vmatprep.subr.bf16.mxu0 %v10167_v10  ;;  %v10219_v8 = vld [vmem:[%s12930_s1 + $0x140] sm:$0xff]  }
  0x74   : > { %9323 = vmatprep.subr.bf16.mxu1 %v10168_v12  ;;  %v10221_v10 = vld [vmem:[%s12930_s1 + $0x100] sm:$0xff]   ;;  %v7827_v12 = vld [vmem:[%s10873_s27 + $0x10] sm:$0x77] }
  0x75   : > { %v11291_v14 = vcombine.low %v7827_v12, %v7827_v12 }
  0x76   : > { %9302 = vmatpush3.bf16.msra.mxu0 %v10169_v13  ;;  %v7828_v13 = vld [vmem:[%s10873_s27 + $0x18] sm:$0x77] }
  0x77   : > { %9324 = vmatpush3.bf16.msra.mxu1 %v10170_v15  ;;  %9303 = vmatprep.subr.bf16.mxu0 %v10171_v16  ;;  %v7894_v15 = vcombine.high %v7827_v12, %v7827_v12  ;;  %v11293_v16 = vcombine.low %v7828_v13, %v7828_v13  ;;  %v10269_v12 = vld [vmem:[%s12930_s1 + $0x228] sm:$0xff]  }
  0x78   : > { %9325 = vmatprep.subr.bf16.mxu1 %v10172_v17  ;;  %v10227_v17 = vld [vmem:[%s12930_s1 + $0x78] sm:$0xff]  }
  0x7a   : > { %9304 = vmatpush3.bf16.msra.mxu0 %v10173_v18  ;;  %v7896_v18 = vcombine.high %v7828_v13, %v7828_v13  ;;  %v10270_v13 = vld [vmem:[%s12930_s1 + $0x2a8] sm:$0xff]  }
  0x7b   : > { %9326 = vmatpush3.bf16.msra.mxu1 %v10174_v19  ;;  %9305 = vmatprep.subr.bf16.mxu0 %v10175_v20  ;;  %v10228_v19 = vld [vmem:[%s12930_s1 + $0xf8] sm:$0xff]   ;;  %v1782_v20 = vshrl.u32 %v7894_v15, 16 }
  0x7c   : > { %9327 = vmatprep.subr.bf16.mxu1 %v10176_v21  ;;  %v1784_v21 = vshll.u32 %v7894_v15, 16 }
  0x7e   : > { %9306 = vmatpush3.bf16.msra.mxu0 %v10177_v22  ;;  %v1775_v22 = vshrl.u32 %v11291_v14, 16 }
  0x7f   : > { %9328 = vmatpush3.bf16.msra.mxu1 %v10178_v23  ;;  %9307 = vmatprep.subr.bf16.mxu0 %v10179_v24  ;;  %v1777_v23 = vshll.u32 %v11291_v14, 16  ;;  %v1796_v24 = vshrl.u32 %v7896_v18, 16 }
  0x80   : > { %9329 = vmatprep.subr.bf16.mxu1 %v10180_v25  ;;  %v1798_v25 = vshll.u32 %v7896_v18, 16 }
  0x82   : > { %9308 = vmatpush3.bf16.msra.mxu0 %v10181_v26  ;;  %v1789_v26 = vshrl.u32 %v11293_v16, 16  ;;  %v1800_v31 = vrot.slane %v1798_v25, 1  ;;  %v10282_v25 = vld [vmem:[%s12930_s1 + $0x290] sm:$0xff]  }
  0x83   : > { %9330 = vmatpush3.bf16.msra.mxu1 %v10182_v27  ;;  %9309 = vmatprep.subr.bf16.mxu0 %v10183_v28  ;;  %v1791_v27 = vshll.u32 %v11293_v16, 16  ;;  %v1786_v28 = vrot.slane %v1784_v21, 1  ;;  %v10278_v21 = vld [vmem:[%s12930_s1 + $0x298] sm:$0xff]  }
  0x84   : > { %9331 = vmatprep.subr.bf16.mxu1 %v10184_v29  ;;  %v1779_v29 = vrot.slane %v1777_v23, 1  ;;  %v1801_v37 = vor.u32 %v1800_v31, %v1796_v24  ;;  %v10280_v23 = vld [vmem:[%s12930_s1 + $0x2d0] sm:$0xff]   ;;  %v10288_v31 = vld [vmem:[%s12930_s1 + $0x2c0] sm:$0xff]  }
  0x85   : > { %v10281_v24 = vld [vmem:[%s12930_s1 + $0x210] sm:$0xff]  }
  0x86   : > { %9310 = vmatpush3.bf16.msra.mxu0 %v10185_v30  ;;  %v10229_v30 = vld [vmem:[%s12930_s1 + $0x38] sm:$0xff]   ;;  %v1780_v35 = vor.u32 %v1779_v29, %v1775_v22  ;;  %v10279_v22 = vld [vmem:[%s12930_s1 + $0x250] sm:$0xff]   ;;  %v10286_v29 = vld [vmem:[%s12930_s1 + $0x288] sm:$0xff]  }
  0x87   : > { %9332 = vmatpush3.bf16.msra.mxu1 %v10186_v32  ;;  %9311 = vmatprep.subr.bf16.mxu0 %v10187_v34  ;;  %v1793_v32 = vrot.slane %v1791_v27, 1  ;;  %v1787_v34 = vor.u32 %v1786_v28, %v1782_v20  ;;  %v10277_v20 = vld [vmem:[%s12930_s1 + $0x218] sm:$0xff]   ;;  %v10284_v27 = vld [vmem:[%s12930_s1 + $0x2c8] sm:$0xff]  }
  0x88   : > { %9333 = vmatprep.subr.bf16.mxu1 %v10188_v36  ;;  %v10231_v36 = vld [vmem:[%s12930_s1 + $0x70] sm:$0xff]   ;;  %v10285_v28 = vld [vmem:[%s12930_s1 + $0x208] sm:$0xff]  }
  0x8a   : > { %9312 = vmatpush3.bf16.msra.mxu0 %v10189_v38  ;;  %v1794_v38 = vor.u32 %v1793_v32, %v1789_v26  ;;  %v10283_v26 = vld [vmem:[%s12930_s1 + $0x248] sm:$0xff]   ;;  %v10289_v32 = vld [vmem:[%s12930_s1 + $0x200] sm:$0xff]  }
  0x8b   : > { %9334 = vmatpush3.bf16.msra.mxu1 %v10190_v40  ;;  %9341 = vmatprep.subr.bf16.mxu0 %v10191_v42  ;;  %v10233_v40 = vld [vmem:[%s12930_s1 + $0x30] sm:$0xff]   ;;  %v10235_v42 = vld [vmem:[%s12930_s1 + $0x68] sm:$0xff]  }
  0x8c   : > { %9363 = vmatprep.subr.bf16.mxu1 %v10192_v43  ;;  %v10236_v43 = vld [vmem:[%s12930_s1 + $0xe8] sm:$0xff]  }
  0x8d   : > { %1571 = vmatmul.mubr.bf16.vlgmr.msra.gmra.mxu0 %v1320_v45  ;;  %v10238_v45 = vld [vmem:[%s12930_s1 + $0xa8] sm:$0xff]  }
  0x8e   : > { %1611 = vmatmul.mubr.bf16.vlgmr.msra.gmra.mxu1 %v1334_v46  ;;  %9342 = vmatpush3.bf16.msra.mxu0 %v10193_v44  ;;  %v10237_v44 = vld [vmem:[%s12930_s1 + $0x28] sm:$0xff]   ;;  %v10239_v46 = vld [vmem:[%s12930_s1 + $0x60] sm:$0xff]  }
  0x8f   : > { %9364 = vmatpush3.bf16.msra.mxu1 %v10194_v47  ;;  %9343 = vmatprep.subr.bf16.mxu0 %v10195_v48  ;;  %v10240_v47 = vld [vmem:[%s12930_s1 + $0xe0] sm:$0xff]  }
  0x90   : > { %9365 = vmatprep.subr.bf16.mxu1 %v10196_v49  ;;  %2030 = vmatprep.mubr.bf16.mxu0 %v1787_v34  ;;  %v10241_v48 = vld [vmem:[%s12930_s1 + $0x20] sm:$0xff]  }
  0x91   : > { %2070 = vmatprep.mubr.bf16.mxu1 %v1801_v37  ;;  %v10242_v49 = vld [vmem:[%s12930_s1 + $0xa0] sm:$0xff]  }
  0x92   : > { %9344 = vmatpush3.bf16.msra.mxu0 %v10197_v50  ;;  %v10243_v50 = vld [vmem:[%s12930_s1 + $0x58] sm:$0xff]   ;;  %v7961_v34 = vld [vmem:[%s10873_s27 + $0x20] sm:$0x77] }
  0x93   : > { %9366 = vmatpush3.bf16.msra.mxu1 %v10198_v51  ;;  %9345 = vmatprep.subr.bf16.mxu0 %v10199_v52  ;;  %v10244_v51 = vld [vmem:[%s12930_s1 + $0xd8] sm:$0xff]  }
  0x94   : > { %9367 = vmatprep.subr.bf16.mxu1 %v10200_v53  ;;  %v10245_v52 = vld [vmem:[%s12930_s1 + $0x18] sm:$0xff]  }
  0x95   : > { %v10246_v53 = vld [vmem:[%s12930_s1 + $0x98] sm:$0xff]  }
  0x96   : > { %9346 = vmatpush3.bf16.msra.mxu0 %v10201_v54  ;;  %v10247_v54 = vld [vmem:[%s12930_s1 + $0x50] sm:$0xff]  }
  0x97   : > { %9368 = vmatpush3.bf16.msra.mxu1 %v10202_v55  ;;  %9347 = vmatprep.subr.bf16.mxu0 %v10203_v56  ;;  %v10248_v55 = vld [vmem:[%s12930_s1 + $0xd0] sm:$0xff]  }
  0x98   : > { %9369 = vmatprep.subr.bf16.mxu1 %v10204_v57  ;;  %v10249_v56 = vld [vmem:[%s12930_s1 + $0x10] sm:$0xff]  }
  0x99   : > { %v10250_v57 = vld [vmem:[%s12930_s1 + $0x90] sm:$0xff]  }
  0x9a   : > { %9348 = vmatpush3.bf16.msra.mxu0 %v10205_v58  ;;  %v10251_v58 = vld [vmem:[%s12930_s1 + $0x48] sm:$0xff]  }
  0x9b   : > { %9370 = vmatpush3.bf16.msra.mxu1 %v10206_v59  ;;  %9349 = vmatprep.subr.bf16.mxu0 %v10207_v60  ;;  %v10252_v59 = vld [vmem:[%s12930_s1 + $0xc8] sm:$0xff]  }
  0x9c   : > { %9371 = vmatprep.subr.bf16.mxu1 %v10208_v61  ;;  %v10253_v60 = vld [vmem:[%s12930_s1 + $0x8] sm:$0xff]  }
  0x9d   : > { %v10254_v61 = vld [vmem:[%s12930_s1 + $0x88] sm:$0xff]  }
  0x9e   : > { %9350 = vmatpush3.bf16.msra.mxu0 %v10209_v62  ;;  %v10255_v62 = vld [vmem:[%s12930_s1 + $0x40] sm:$0xff]  }
  0x9f   : > { %9372 = vmatpush3.bf16.msra.mxu1 %v10210_v63  ;;  %9351 = vmatprep.subr.bf16.mxu0 %v10211_v0  ;;  %v10256_v63 = vld [vmem:[%s12930_s1 + $0xc0] sm:$0xff]  }
  0xa0   : > { %9373 = vmatprep.subr.bf16.mxu1 %v10212_v1  ;;  %v10257_v0 = vld [vmem:[%s12930_s1] sm:$0xff]  }
  0xa1   : > { %v10258_v1 = vld [vmem:[%s12930_s1 + $0x80] sm:$0xff]  }
  0xa2   : > { %9352 = vmatpush3.bf16.msra.mxu0 %v10213_v2  ;;  %v10259_v2 = vld [vmem:[%s12930_s1 + $0x278] sm:$0xff]  }
  0xa3   : > { %9374 = vmatpush3.bf16.msra.mxu1 %v10214_v3  ;;  %9353 = vmatprep.subr.bf16.mxu0 %v10215_v4  ;;  %v10260_v3 = vld [vmem:[%s12930_s1 + $0x2f8] sm:$0xff]  }
  0xa4   : > { %9375 = vmatprep.subr.bf16.mxu1 %v10216_v5  ;;  %v10261_v4 = vld [vmem:[%s12930_s1 + $0x238] sm:$0xff]  }
  0xa5   : > { %v10262_v5 = vld [vmem:[%s12930_s1 + $0x2b8] sm:$0xff]  }
  0xa6   : > { %9354 = vmatpush3.bf16.msra.mxu0 %v10217_v6  ;;  %v10263_v6 = vld [vmem:[%s12930_s1 + $0x270] sm:$0xff]  }
  0xa7   : > { %9376 = vmatpush3.bf16.msra.mxu1 %v10218_v7  ;;  %9355 = vmatprep.subr.bf16.mxu0 %v10219_v8  ;;  %v10264_v7 = vld [vmem:[%s12930_s1 + $0x2f0] sm:$0xff]  }
  0xa8   : > { %9377 = vmatprep.subr.bf16.mxu1 %v10220_v9  ;;  %v10265_v8 = vld [vmem:[%s12930_s1 + $0x230] sm:$0xff]  }
  0xa9   : > { %v10266_v9 = vld [vmem:[%s12930_s1 + $0x2b0] sm:$0xff]  }
  0xaa   : > { %9356 = vmatpush3.bf16.msra.mxu0 %v10221_v10  ;;  %v10267_v10 = vld [vmem:[%s12930_s1 + $0x268] sm:$0xff]  }
  0xab   : > { %9378 = vmatpush3.bf16.msra.mxu1 %v10222_v11  ;;  %9385 = vmatprep.subr.bf16.mxu0 %v10227_v17  ;;  %v10268_v11 = vld [vmem:[%s12930_s1 + $0x2e8] sm:$0xff]   ;;  %v10274_v17 = vld [vmem:[%s12930_s1 + $0x2a0] sm:$0xff]  }
  0xac   : > { %9407 = vmatprep.subr.bf16.mxu1 %v10228_v19  ;;  %v10276_v19 = vld [vmem:[%s12930_s1 + $0x2d8] sm:$0xff]  }
  0xad   : > { %2031 = vmatmul.mubr.bf16.vlgmr.msra.gmra.mxu0 %v1780_v35  ;;  %v7962_v35 = vld [vmem:[%s10873_s27 + $0x28] sm:$0x77] }
  0xae   : > { %2071 = vmatmul.mubr.bf16.vlgmr.msra.gmra.mxu1 %v1794_v38  ;;  %9386 = vmatpush3.bf16.msra.mxu0 %v10229_v30  ;;  %v10287_v30 = vld [vmem:[%s12930_s1 + $0x240] sm:$0xff]   ;;  %v8030_v37 = vcombine.high %v7962_v35, %v7962_v35  ;;  %v10295_v38 = vld [vmem:[%s12930_s1 + $0x378] sm:$0xff]  }
  0xaf   : > { %9408 = vmatpush3.bf16.msra.mxu1 %v10230_v33  ;;  %9387 = vmatprep.subr.bf16.mxu0 %v10231_v36  ;;  %v10290_v33 = vld [vmem:[%s12930_s1 + $0x280] sm:$0xff]   ;;  %v8028_v36 = vcombine.high %v7961_v34, %v7961_v34 }
  0xb0   : > { %9409 = vmatprep.subr.bf16.mxu1 %v10232_v39  ;;  %2306 = vmatprep.mubr.bf16.mxu0 %v7894_v15  ;;  %v10272_v15 = vld [vmem:[%s12930_s1 + $0x2e0] sm:$0xff]   ;;  %v10296_v39 = vld [vmem:[%s12930_s1 + $0x3f8] sm:$0xff]  }
  0xb1   : > { %2346 = vmatprep.mubr.bf16.mxu1 %v7896_v18  ;;  %v10275_v18 = vld [vmem:[%s12930_s1 + $0x258] sm:$0xff]  }
  0xb2   : > { %9388 = vmatpush3.bf16.msra.mxu0 %v10233_v40  ;;  %v10297_v40 = vld [vmem:[%s12930_s1 + $0x338] sm:$0xff]  }
  0xb3   : > { %9410 = vmatpush3.bf16.msra.mxu1 %v10234_v41  ;;  %9389 = vmatprep.subr.bf16.mxu0 %v10235_v42  ;;  %v2780_v41 = vshrl.u32 %v8028_v36, 16  ;;  %v11504_v42 = vcombine.low %v7961_v34, %v7961_v34  ;;  %v10328_v34 = vld [vmem:[%s12930_s1 + $0x1f8] sm:$0xff]  }
  0xb4   : > { %9411 = vmatprep.subr.bf16.mxu1 %v10236_v43  ;;  %v10298_v43 = vld [vmem:[%s12930_s1 + $0x3b8] sm:$0xff]  }
  0xb6   : > { %9390 = vmatpush3.bf16.msra.mxu0 %v10237_v44  ;;  %v2782_v44 = vshll.u32 %v8028_v36, 16 }
  0xb7   : > { %9412 = vmatpush3.bf16.msra.mxu1 %v10238_v45  ;;  %9391 = vmatprep.subr.bf16.mxu0 %v10239_v46  ;;  %v11509_v45 = vcombine.low %v7962_v35, %v7962_v35  ;;  %v10329_v35 = vld [vmem:[%s12930_s1 + $0x138] sm:$0xff]  }
  0xb8   : > { %9413 = vmatprep.subr.bf16.mxu1 %v10240_v47 }
  0xba   : > { %9392 = vmatpush3.bf16.msra.mxu0 %v10241_v48  ;;  %v10299_v48 = vld [vmem:[%s12930_s1 + $0x370] sm:$0xff]  }
  0xbb   : > { %9414 = vmatpush3.bf16.msra.mxu1 %v10242_v49  ;;  %9393 = vmatprep.subr.bf16.mxu0 %v10243_v50  ;;  %v2794_v49 = vshrl.u32 %v8030_v37, 16  ;;  %v10300_v50 = vld [vmem:[%s12930_s1 + $0x3f0] sm:$0xff]  }
  0xbc   : > { %9415 = vmatprep.subr.bf16.mxu1 %v10244_v51  ;;  %v2784_v51 = vrot.slane %v2782_v44, 1 }
  0xbe   : > { %9394 = vmatpush3.bf16.msra.mxu0 %v10245_v52 }
  0xbf   : > { %9416 = vmatpush3.bf16.msra.mxu1 %v10246_v53  ;;  %9395 = vmatprep.subr.bf16.mxu0 %v10247_v54  ;;  %v10301_v54 = vld [vmem:[%s12930_s1 + $0x330] sm:$0xff]  }
  0xc0   : > { %9417 = vmatprep.subr.bf16.mxu1 %v10248_v55  ;;  %v2796_v55 = vshll.u32 %v8030_v37, 16 }
  0xc2   : > { %9396 = vmatpush3.bf16.msra.mxu0 %v10249_v56 }
  0xc3   : > { %9418 = vmatpush3.bf16.msra.mxu1 %v10250_v57  ;;  %9397 = vmatprep.subr.bf16.mxu0 %v10251_v58  ;;  %v10302_v58 = vld [vmem:[%s12930_s1 + $0x3b0] sm:$0xff]  }
  0xc4   : > { %9419 = vmatprep.subr.bf16.mxu1 %v10252_v59  ;;  %v2785_v59 = vor.u32 %v2784_v51, %v2780_v41  ;;  %v10331_v41 = vld [vmem:[%s12930_s1 + $0x170] sm:$0xff]  }
  0xc6   : > { %9398 = vmatpush3.bf16.msra.mxu0 %v10253_v60 }
  0xc7   : > { %9420 = vmatpush3.bf16.msra.mxu1 %v10254_v61  ;;  %9399 = vmatprep.subr.bf16.mxu0 %v10255_v62  ;;  %v10303_v62 = vld [vmem:[%s12930_s1 + $0x368] sm:$0xff]  }
  0xc8   : > { %9421 = vmatprep.subr.bf16.mxu1 %v10256_v63  ;;  %v2798_v63 = vrot.slane %v2796_v55, 1 }
  0xca   : > { %9400 = vmatpush3.bf16.msra.mxu0 %v10257_v0 }
  0xcb   : > { %9422 = vmatpush3.bf16.msra.mxu1 %v10258_v1  ;;  %9429 = vmatprep.subr.bf16.mxu0 %v10259_v2  ;;  %v10304_v1 = vld [vmem:[%s12930_s1 + $0x3e8] sm:$0xff]  }
  0xcc   : > { %9451 = vmatprep.subr.bf16.mxu1 %v10260_v3 }
  0xcd   : > { %2307 = vmatmul.mubr.bf16.vlgmr.msra.gmra.mxu0 %v11291_v14  ;;  %v10271_v14 = vld [vmem:[%s12930_s1 + $0x260] sm:$0xff]  }
  0xce   : > { %2347 = vmatmul.mubr.bf16.vlgmr.msra.gmra.mxu1 %v11293_v16  ;;  %9430 = vmatpush3.bf16.msra.mxu0 %v10261_v4  ;;  %v10273_v16 = vld [vmem:[%s12930_s1 + $0x220] sm:$0xff]   ;;  %v10305_v4 = vld [vmem:[%s12930_s1 + $0x328] sm:$0xff]  }
  0xcf   : > { %9452 = vmatpush3.bf16.msra.mxu1 %v10262_v5  ;;  %9431 = vmatprep.subr.bf16.mxu0 %v10263_v6  ;;  %v2799_v5 = vor.u32 %v2798_v63, %v2794_v49  ;;  %v10306_v6 = vld [vmem:[%s12930_s1 + $0x3a8] sm:$0xff]   ;;  %v10343_v63 = vld [vmem:[%s12930_s1 + $0x158] sm:$0xff]  }
  0xd0   : > { %9453 = vmatprep.subr.bf16.mxu1 %v10264_v7  ;;  %2659 = vmatprep.mubr.bf16.mxu0 %v8028_v36  ;;  %v10307_v7 = vld [vmem:[%s12930_s1 + $0x360] sm:$0xff]  }
  0xd1   : > { %2699 = vmatprep.mubr.bf16.mxu1 %v8030_v37  ;;  %v10330_v37 = vld [vmem:[%s12930_s1 + $0x1b8] sm:$0xff]  }
  0xd2   : > { %9432 = vmatpush3.bf16.msra.mxu0 %v10265_v8  ;;  %v10308_v8 = vld [vmem:[%s12930_s1 + $0x3e0] sm:$0xff]  }
  0xd3   : > { %9454 = vmatpush3.bf16.msra.mxu1 %v10266_v9  ;;  %9433 = vmatprep.subr.bf16.mxu0 %v10267_v10  ;;  %v10309_v9 = vld [vmem:[%s12930_s1 + $0x320] sm:$0xff]  }
  0xd4   : > { %9455 = vmatprep.subr.bf16.mxu1 %v10268_v11  ;;  %v10310_v10 = vld [vmem:[%s12930_s1 + $0x3a0] sm:$0xff]   ;;  %v10311_v11 = vld [vmem:[%s12930_s1 + $0x358] sm:$0xff]  }
  0xd6   : > { %9434 = vmatpush3.bf16.msra.mxu0 %v10269_v12  ;;  %v10312_v12 = vld [vmem:[%s12930_s1 + $0x3d8] sm:$0xff]  }
  0xd7   : > { %9456 = vmatpush3.bf16.msra.mxu1 %v10270_v13  ;;  %9435 = vmatprep.subr.bf16.mxu0 %v10271_v14  ;;  %v10313_v13 = vld [vmem:[%s12930_s1 + $0x318] sm:$0xff]  }
  0xd8   : > { %9457 = vmatprep.subr.bf16.mxu1 %v10272_v15  ;;  %v10314_v14 = vld [vmem:[%s12930_s1 + $0x398] sm:$0xff]   ;;  %v10315_v15 = vld [vmem:[%s12930_s1 + $0x350] sm:$0xff]  }
  0xda   : > { %9436 = vmatpush3.bf16.msra.mxu0 %v10273_v16  ;;  %v10316_v16 = vld [vmem:[%s12930_s1 + $0x3d0] sm:$0xff]  }
  0xdb   : > { %9458 = vmatpush3.bf16.msra.mxu1 %v10274_v17  ;;  %9437 = vmatprep.subr.bf16.mxu0 %v10275_v18  ;;  %v10317_v17 = vld [vmem:[%s12930_s1 + $0x310] sm:$0xff]  }
  0xdc   : > { %9459 = vmatprep.subr.bf16.mxu1 %v10276_v19  ;;  %v10318_v18 = vld [vmem:[%s12930_s1 + $0x390] sm:$0xff]   ;;  %v10319_v19 = vld [vmem:[%s12930_s1 + $0x348] sm:$0xff]  }
  0xde   : > { %9438 = vmatpush3.bf16.msra.mxu0 %v10277_v20  ;;  %v10320_v20 = vld [vmem:[%s12930_s1 + $0x3c8] sm:$0xff]  }
  0xdf   : > { %9460 = vmatpush3.bf16.msra.mxu1 %v10278_v21  ;;  %9439 = vmatprep.subr.bf16.mxu0 %v10279_v22  ;;  %v10321_v21 = vld [vmem:[%s12930_s1 + $0x308] sm:$0xff]  }
  0xe0   : > { %9461 = vmatprep.subr.bf16.mxu1 %v10280_v23  ;;  %v10322_v22 = vld [vmem:[%s12930_s1 + $0x388] sm:$0xff]   ;;  %v2775_v23 = vshll.u32 %v11504_v42, 16 }
  0xe2   : > { %9440 = vmatpush3.bf16.msra.mxu0 %v10281_v24  ;;  %v10323_v24 = vld [vmem:[%s12930_s1 + $0x340] sm:$0xff]  }
  0xe3   : > { %9462 = vmatpush3.bf16.msra.mxu1 %v10282_v25  ;;  %9441 = vmatprep.subr.bf16.mxu0 %v10283_v26  ;;  %v2789_v25 = vshll.u32 %v11509_v45, 16  ;;  %v10324_v26 = vld [vmem:[%s12930_s1 + $0x3c0] sm:$0xff]  }
  0xe4   : > { %9463 = vmatprep.subr.bf16.mxu1 %v10284_v27  ;;  %v2773_v27 = vshrl.u32 %v11504_v42, 16 }
  0xe6   : > { %9442 = vmatpush3.bf16.msra.mxu0 %v10285_v28  ;;  %v10325_v28 = vld [vmem:[%s12930_s1 + $0x300] sm:$0xff]  }
  0xe7   : > { %9464 = vmatpush3.bf16.msra.mxu1 %v10286_v29  ;;  %9443 = vmatprep.subr.bf16.mxu0 %v10287_v30  ;;  %v2787_v29 = vshrl.u32 %v11509_v45, 16  ;;  %v10326_v30 = vld [vmem:[%s12930_s1 + $0x380] sm:$0xff]  }
  0xe8   : > { %9465 = vmatprep.subr.bf16.mxu1 %v10288_v31  ;;  %v2777_v31 = vrot.slane %v2775_v23, 1 }
  0xea   : > { %9444 = vmatpush3.bf16.msra.mxu0 %v10289_v32  ;;  %v2791_v32 = vrot.slane %v2789_v25, 1  ;;  %v2778_v36 = vor.u32 %v2777_v31, %v2773_v27 }
  0xeb   : > { %9466 = vmatpush3.bf16.msra.mxu1 %v10290_v33  ;;  %9473 = vmatprep.subr.bf16.mxu0 %v10295_v38  ;;  %v10327_v33 = vld [vmem:[%s12930_s1 + $0x178] sm:$0xff]  }
  0xec   : > { %9495 = vmatprep.subr.bf16.mxu1 %v10296_v39 }
  0xed   : > { %v9181_v46 = vpop.f32.mrf.mxu0  ;;  %2660 = vmatmul.mubr.bf16.vlgmr.msra.gmra.mxu0 %v11504_v42  ;;  %v10332_v42 = vld [vmem:[%s12930_s1 + $0x1f0] sm:$0xff]  }
  0xee   : > { %v9203_v47 = vpop.f32.mrf.mxu1  ;;  %2700 = vmatmul.mubr.bf16.vlgmr.msra.gmra.mxu1 %v11509_v45  ;;  %9474 = vmatpush3.bf16.msra.mxu0 %v10297_v40  ;;  %v2792_v40 = vor.u32 %v2791_v32, %v2787_v29  ;;  %v10333_v45 = vld [vmem:[%s12930_s1 + $0x130] sm:$0xff]  }
  0xef   : > { %v9182_v52 = vpop.f32.mrf.mxu0  ;;  %9496 = vmatpush3.bf16.msra.mxu1 %v10298_v43  ;;  %9475 = vmatprep.subr.bf16.mxu0 %v10299_v48 }
  0xf0   : > { %v9204_v53 = vpop.f32.mrf.mxu1  ;;  %v9183_v56 = vadd.f32 %v9182_v52, %v9181_v46  ;;  %9497 = vmatprep.subr.bf16.mxu1 %v10300_v50  ;;  %3028 = vmatprep.mubr.bf16.mxu0 %v2785_v59  ;;  %v10335_v50 = vld [vmem:[%s12930_s1 + $0x168] sm:$0xff]   ;;  %v10339_v59 = vld [vmem:[%s12930_s1 + $0x160] sm:$0xff]  }
  0xf1   : > { %v9205_v57 = vadd.f32 %v9204_v53, %v9203_v47  ;;  %v9184_v60 = vpop.f32.mrf.mxu0  ;;  %3068 = vmatprep.mubr.bf16.mxu1 %v2799_v5  ;;  %v10334_v47 = vld [vmem:[%s12930_s1 + $0x1b0] sm:$0xff]   ;;  %v10336_v53 = vld [vmem:[%s12930_s1 + $0x1e8] sm:$0xff]  }
  0xf2   : > { %v9206_v61 = vpop.f32.mrf.mxu1  ;;  %9476 = vmatpush3.bf16.msra.mxu0 %v10301_v54  ;;  %v10340_v60 = vld [vmem:[%s12930_s1 + $0x1e0] sm:$0xff]   ;;  %v10349_v5 = vld [vmem:[%s12930_s1 + $0x110] sm:$0xff]  }
  0xf3   : > { %v11528_v0 = vadd.f32 %v9205_v57, %v9183_v56  ;;  %v9185_v2 = vpop.f32.mrf.mxu0  ;;  %9498 = vmatpush3.bf16.msra.mxu1 %v10302_v58  ;;  %9477 = vmatprep.subr.bf16.mxu0 %v10303_v62  ;;  %v10337_v56 = vld [vmem:[%s12930_s1 + $0x128] sm:$0xff]   ;;  %v10341_v61 = vld [vmem:[%s12930_s1 + $0x120] sm:$0xff]  }
  0xf4   : > { %v9207_v3 = vpop.f32.mrf.mxu1  ;;  %9499 = vmatprep.subr.bf16.mxu1 %v10304_v1  ;;  %v10338_v58 = vld [vmem:[%s12930_s1 + $0x1a8] sm:$0xff]   ;;  %v10342_v62 = vld [vmem:[%s12930_s1 + $0x1a0] sm:$0xff]   ;;  %v10345_v1 = vld [vmem:[%s12930_s1 + $0x118] sm:$0xff]  }
  0xf5   : > { %v10346_v2 = vld [vmem:[%s12930_s1 + $0x198] sm:$0xff]   ;;  %v10347_v3 = vld [vmem:[%s12930_s1 + $0x150] sm:$0xff]  }
  0xf6   : > { %9478 = vmatpush3.bf16.msra.mxu0 %v10305_v4  ;;  %v10348_v4 = vld [vmem:[%s12930_s1 + $0x1d0] sm:$0xff]  }
  0xf7   : > { %9500 = vmatpush3.bf16.msra.mxu1 %v10306_v6  ;;  %9479 = vmatprep.subr.bf16.mxu0 %v10307_v7  ;;  %v10350_v6 = vld [vmem:[%s12930_s1 + $0x190] sm:$0xff]   ;;  %v10351_v7 = vld [vmem:[%s12930_s1 + $0x148] sm:$0xff]  }
  0xf8   : > { %9501 = vmatprep.subr.bf16.mxu1 %v10308_v8  ;;  %v10352_v8 = vld [vmem:[%s12930_s1 + $0x1c8] sm:$0xff]  }
  0xfa   : > { %9480 = vmatpush3.bf16.msra.mxu0 %v10309_v9  ;;  %v10353_v9 = vld [vmem:[%s12930_s1 + $0x108] sm:$0xff]  }
  0xfb   : > { %9502 = vmatpush3.bf16.msra.mxu1 %v10310_v10  ;;  %9481 = vmatprep.subr.bf16.mxu0 %v10311_v11  ;;  %v10354_v10 = vld [vmem:[%s12930_s1 + $0x188] sm:$0xff]   ;;  %v10355_v11 = vld [vmem:[%s12930_s1 + $0x140] sm:$0xff]  }
  0xfc   : > { %9503 = vmatprep.subr.bf16.mxu1 %v10312_v12  ;;  %v10356_v12 = vld [vmem:[%s12930_s1 + $0x1c0] sm:$0xff]  }
  0xfe   : > { %9482 = vmatpush3.bf16.msra.mxu0 %v10313_v13  ;;  %v10357_v13 = vld [vmem:[%s12930_s1 + $0x100] sm:$0xff]  }
  0xff   : > { %9504 = vmatpush3.bf16.msra.mxu1 %v10314_v14  ;;  %9483 = vmatprep.subr.bf16.mxu0 %v10315_v15  ;;  %v10358_v14 = vld [vmem:[%s12930_s1 + $0x180] sm:$0xff]  }
 0x100   : > { %9505 = vmatprep.subr.bf16.mxu1 %v10316_v16  ;;  %v8161_v15 = vld [vmem:[%s10873_s27 + $0x20] sm:$0x77]  ;;  %v8162_v16 = vld [vmem:[%s10873_s27 + $0x28] sm:$0x77] }
 0x102   : > { %9484 = vmatpush3.bf16.msra.mxu0 %v10317_v17  ;;  %v11704_v17 = vcombine.low %v8161_v15, %v8161_v15 }
 0x103   : > { %9506 = vmatpush3.bf16.msra.mxu1 %v10318_v18  ;;  %9485 = vmatprep.subr.bf16.mxu0 %v10319_v19  ;;  %v8228_v18 = vcombine.high %v8161_v15, %v8161_v15  ;;  %v11706_v19 = vcombine.low %v8162_v16, %v8162_v16  ;;  %v10394_v15 = vld [vmem:[%s12930_s1 + $0x80] sm:$0xff]  }
 0x104   : > { %9507 = vmatprep.subr.bf16.mxu1 %v10320_v20  ;;  %v10363_v20 = vld [vmem:[%s12930_s1 + $0x78] sm:$0xff]   ;;  %v3225_v25 = vshrl.u32 %v11704_v17, 16 }
 0x105   : > { %v3232_v23 = vshrl.u32 %v8228_v18, 16  ;;  %v3239_v31 = vshrl.u32 %v11706_v19, 16  ;;  %v3241_v32 = vshll.u32 %v11706_v19, 16 }
 0x106   : > { %9486 = vmatpush3.bf16.msra.mxu0 %v10321_v21  ;;  %v8230_v21 = vcombine.high %v8162_v16, %v8162_v16 }
 0x107   : > { %9508 = vmatpush3.bf16.msra.mxu1 %v10322_v22  ;;  %9487 = vmatprep.subr.bf16.mxu0 %v10323_v24  ;;  %v10364_v22 = vld [vmem:[%s12930_s1 + $0xf8] sm:$0xff]   ;;  %v3234_v24 = vshll.u32 %v8228_v18, 16 }
 0x108   : > { %9509 = vmatprep.subr.bf16.mxu1 %v10324_v26  ;;  %v3227_v26 = vshll.u32 %v11704_v17, 16  ;;  %v3246_v27 = vshrl.u32 %v8230_v21, 16 }
 0x10a   : > { %9488 = vmatpush3.bf16.msra.mxu0 %v10325_v28  ;;  %v3248_v28 = vshll.u32 %v8230_v21, 16 }
 0x10b   : > { %9510 = vmatpush3.bf16.msra.mxu1 %v10326_v30  ;;  %9517 = vmatprep.subr.bf16.mxu0 %v10327_v33  ;;  %v3236_v33 = vrot.slane %v3234_v24, 1 }
 0x10c   : > { %9539 = vmatprep.subr.bf16.mxu1 %v10328_v34  ;;  %v3229_v34 = vrot.slane %v3227_v26, 1  ;;  %v10398_v26 = vld [vmem:[%s12930_s1 + $0x2b8] sm:$0xff]  }
 0x10d   : > { %v9225_v38 = vpop.f32.mrf.mxu0  ;;  %3029 = vmatmul.mubr.bf16.vlgmr.msra.gmra.mxu0 %v2778_v36  ;;  %v3250_v36 = vrot.slane %v3248_v28, 1 }
 0x10e   : > { %v9247_v39 = vpop.f32.mrf.mxu1  ;;  %3069 = vmatmul.mubr.bf16.vlgmr.msra.gmra.mxu1 %v2792_v40  ;;  %9518 = vmatpush3.bf16.msra.mxu0 %v10329_v35  ;;  %v10365_v35 = vld [vmem:[%s12930_s1 + $0x38] sm:$0xff]   ;;  %v3237_v40 = vor.u32 %v3236_v33, %v3232_v23 }
 0x10f   : > { %v9226_v43 = vpop.f32.mrf.mxu0  ;;  %9540 = vmatpush3.bf16.msra.mxu1 %v10330_v37  ;;  %9519 = vmatprep.subr.bf16.mxu0 %v10331_v41  ;;  %v3243_v37 = vrot.slane %v3241_v32, 1  ;;  %v3230_v41 = vor.u32 %v3229_v34, %v3225_v25  ;;  %v10397_v23 = vld [vmem:[%s12930_s1 + $0x238] sm:$0xff]  }
 0x110   : > { %v9248_v44 = vpop.f32.mrf.mxu1  ;;  %v9227_v46 = vadd.f32 %v9226_v43, %v9225_v38  ;;  %9541 = vmatprep.subr.bf16.mxu1 %v10332_v42  ;;  %v10366_v42 = vld [vmem:[%s12930_s1 + $0xb8] sm:$0xff]   ;;  %v3251_v43 = vor.u32 %v3250_v36, %v3246_v27  ;;  %3480 = vmatprep.mubr.bf16.mxu0 %v3237_v40  ;;  %v10400_v36 = vld [vmem:[%s12930_s1 + $0x2f0] sm:$0xff]   ;;  %v10403_v40 = vld [vmem:[%s12930_s1 + $0x268] sm:$0xff]  }
 0x111   : > { %v9228_v48 = vpop.f32.mrf.mxu0  ;;  %v9249_v52 = vadd.f32 %v9248_v44, %v9247_v39  ;;  %v3244_v44 = vor.u32 %v3243_v37, %v3239_v31  ;;  %v10401_v37 = vld [vmem:[%s12930_s1 + $0x230] sm:$0xff]  }
 0x112   : > { %v9250_v49 = vpop.f32.mrf.mxu1  ;;  %v849_v51 = vadd.f32 %v9227_v46, %v11528_v0  ;;  %9520 = vmatpush3.bf16.msra.mxu0 %v10333_v45  ;;  %v10344_v0 = vld [vmem:[%s12930_s1 + $0x1d8] sm:$0xff]   ;;  %v10368_v48 = vld [vmem:[%s12930_s1 + $0xf0] sm:$0xff]   ;;  %3520 = vmatprep.mubr.bf16.mxu1 %v3251_v43  ;;  %v10405_v43 = vld [vmem:[%s12930_s1 + $0x228] sm:$0xff]  }
 0x113   : > { %v9229_v54 = vpop.f32.mrf.mxu0  ;;  %9542 = vmatpush3.bf16.msra.mxu1 %v10334_v47  ;;  %9521 = vmatprep.subr.bf16.mxu0 %v10335_v50  ;;  %v10367_v47 = vld [vmem:[%s12930_s1 + $0x70] sm:$0xff]  }
 0x114   : > { %v9251_v55 = vpop.f32.mrf.mxu1  ;;  %v11637_v57 = vadd.f32 %v9249_v52, %v849_v51  ;;  %9543 = vmatprep.subr.bf16.mxu1 %v10336_v53  ;;  %v10369_v49 = vld [vmem:[%s12930_s1 + $0x30] sm:$0xff]   ;;  %v10371_v53 = vld [vmem:[%s12930_s1 + $0x68] sm:$0xff]  }
 0x115   : > { %v10370_v52 = vld [vmem:[%s12930_s1 + $0xb0] sm:$0xff]   ;;  %v10372_v54 = vld [vmem:[%s12930_s1 + $0xe8] sm:$0xff]  }
 0x116   : > { %9522 = vmatpush3.bf16.msra.mxu0 %v10337_v56  ;;  %v10373_v55 = vld [vmem:[%s12930_s1 + $0x28] sm:$0xff]  }
 0x117   : > { %9544 = vmatpush3.bf16.msra.mxu1 %v10338_v58  ;;  %9523 = vmatprep.subr.bf16.mxu0 %v10339_v59  ;;  %v10374_v56 = vld [vmem:[%s12930_s1 + $0xa8] sm:$0xff]   ;;  %v10375_v58 = vld [vmem:[%s12930_s1 + $0x60] sm:$0xff]  }
 0x118   : > { %9545 = vmatprep.subr.bf16.mxu1 %v10340_v60  ;;  %v10376_v59 = vld [vmem:[%s12930_s1 + $0xe0] sm:$0xff]  }
 0x119   : > { %v10377_v60 = vld [vmem:[%s12930_s1 + $0x20] sm:$0xff]  }
 0x11a   : > { %9524 = vmatpush3.bf16.msra.mxu0 %v10341_v61  ;;  %v10378_v61 = vld [vmem:[%s12930_s1 + $0xa0] sm:$0xff]  }
 0x11b   : > { %9546 = vmatpush3.bf16.msra.mxu1 %v10342_v62  ;;  %9525 = vmatprep.subr.bf16.mxu0 %v10343_v63  ;;  %v10379_v62 = vld [vmem:[%s12930_s1 + $0x58] sm:$0xff]  }
 0x11c   : > { %9547 = vmatprep.subr.bf16.mxu1 %v10344_v0  ;;  %v10380_v63 = vld [vmem:[%s12930_s1 + $0xd8] sm:$0xff]  }
 0x11d   : > { %v10381_v0 = vld [vmem:[%s12930_s1 + $0x18] sm:$0xff]  }
 0x11e   : > { %9526 = vmatpush3.bf16.msra.mxu0 %v10345_v1  ;;  %v10382_v1 = vld [vmem:[%s12930_s1 + $0x98] sm:$0xff]  }
 0x11f   : > { %9548 = vmatpush3.bf16.msra.mxu1 %v10346_v2  ;;  %9527 = vmatprep.subr.bf16.mxu0 %v10347_v3  ;;  %v10383_v2 = vld [vmem:[%s12930_s1 + $0x50] sm:$0xff]  }
 0x120   : > { %9549 = vmatprep.subr.bf16.mxu1 %v10348_v4  ;;  %v10384_v3 = vld [vmem:[%s12930_s1 + $0xd0] sm:$0xff]  }
 0x121   : > { %v10385_v4 = vld [vmem:[%s12930_s1 + $0x10] sm:$0xff]  }
 0x122   : > { %9528 = vmatpush3.bf16.msra.mxu0 %v10349_v5  ;;  %v10386_v5 = vld [vmem:[%s12930_s1 + $0x90] sm:$0xff]  }
 0x123   : > { %9550 = vmatpush3.bf16.msra.mxu1 %v10350_v6  ;;  %9529 = vmatprep.subr.bf16.mxu0 %v10351_v7  ;;  %v10387_v6 = vld [vmem:[%s12930_s1 + $0x48] sm:$0xff]  }
 0x124   : > { %9551 = vmatprep.subr.bf16.mxu1 %v10352_v8  ;;  %v10388_v7 = vld [vmem:[%s12930_s1 + $0xc8] sm:$0xff]  }
 0x125   : > { %v10389_v8 = vld [vmem:[%s12930_s1 + $0x8] sm:$0xff]  }
 0x126   : > { %9530 = vmatpush3.bf16.msra.mxu0 %v10353_v9  ;;  %v10390_v9 = vld [vmem:[%s12930_s1 + $0x88] sm:$0xff]  }
 0x127   : > { %9552 = vmatpush3.bf16.msra.mxu1 %v10354_v10  ;;  %9531 = vmatprep.subr.bf16.mxu0 %v10355_v11  ;;  %v10391_v10 = vld [vmem:[%s12930_s1 + $0x40] sm:$0xff]  }
 0x128   : > { %9553 = vmatprep.subr.bf16.mxu1 %v10356_v12 }
 0x12a   : > { %9532 = vmatpush3.bf16.msra.mxu0 %v10357_v13  ;;  %v10392_v13 = vld [vmem:[%s12930_s1 + $0xc0] sm:$0xff]  }
 0x12b   : > { %9554 = vmatpush3.bf16.msra.mxu1 %v10358_v14  ;;  %9561 = vmatprep.subr.bf16.mxu0 %v10363_v20  ;;  %v10393_v14 = vld [vmem:[%s12930_s1] sm:$0xff]   ;;  %v10395_v20 = vld [vmem:[%s12930_s1 + $0x278] sm:$0xff]  }
 0x12c   : > { %9583 = vmatprep.subr.bf16.mxu1 %v10364_v22  ;;  %v10396_v22 = vld [vmem:[%s12930_s1 + $0x2f8] sm:$0xff]  }
 0x12d   : > { %v11716_v29 = vpop.f32.mrf.mxu0  ;;  %3481 = vmatmul.mubr.bf16.vlgmr.msra.gmra.mxu0 %v3230_v41 }
 0x12e   : > { %v11718_v30 = vpop.f32.mrf.mxu1  ;;  %3521 = vmatmul.mubr.bf16.vlgmr.msra.gmra.mxu1 %v3244_v44  ;;  %9562 = vmatpush3.bf16.msra.mxu0 %v10365_v35 }
 0x12f   : > { %v11725_v38 = vpop.f32.mrf.mxu0  ;;  %9584 = vmatpush3.bf16.msra.mxu1 %v10366_v42  ;;  %9563 = vmatprep.subr.bf16.mxu0 %v10367_v47  ;;  %v1631_v42 = vld [vmem:[%s11855_s25] sm:$0x7] }
 0x130   : > { %v11727_v39 = vpop.f32.mrf.mxu1  ;;  %9585 = vmatprep.subr.bf16.mxu1 %v10368_v48  ;;  %3756 = vmatprep.mubr.bf16.mxu0 %v8228_v18  ;;  %v9271_v11 = vadd.f32 %v11725_v38, %v11716_v29  ;;  %v10399_v29 = vld [vmem:[%s12930_s1 + $0x270] sm:$0xff]   ;;  %v10408_v48 = vld [vmem:[%s12930_s1 + $0x2e0] sm:$0xff]  }
 0x131   : > { %v9272_v45 = vpop.f32.mrf.mxu0  ;;  %3796 = vmatprep.mubr.bf16.mxu1 %v8230_v21  ;;  %v9293_v12 = vadd.f32 %v11727_v39, %v11718_v30  ;;  %v7826_v30 = vld [vmem:[%s12931_s2] ss:$0 sm:$0xff] }
 0x132   : > { %v9294_v46 = vpop.f32.mrf.mxu1  ;;  %9564 = vmatpush3.bf16.msra.mxu0 %v10369_v49  ;;  %v10406_v45 = vld [vmem:[%s12930_s1 + $0x2a8] sm:$0xff]   ;;  %v10409_v49 = vld [vmem:[%s12930_s1 + $0x220] sm:$0xff]  }
 0x133   : > { %v9273_v50 = vpop.f32.mrf.mxu0  ;;  %9586 = vmatpush3.bf16.msra.mxu1 %v10370_v52  ;;  %9565 = vmatprep.subr.bf16.mxu0 %v10371_v53  ;;  %v1243_v21 = vadd.f32 %v9293_v12, %v9271_v11  ;;  %v10407_v46 = vld [vmem:[%s12930_s1 + $0x260] sm:$0xff]   ;;  %v10411_v52 = vld [vmem:[%s12930_s1 + $0x258] sm:$0xff]  }
 0x134   : > { %v9295_v51 = vpop.f32.mrf.mxu1  ;;  %9587 = vmatprep.subr.bf16.mxu1 %v10372_v54  ;;  %v10412_v53 = vld [vmem:[%s12930_s1 + $0x2d8] sm:$0xff]  }
 0x135   : > { %v1248_v34 = vadd.f32 %v1243_v21, %v11637_v57  ;;  %v10410_v51 = vld [vmem:[%s12930_s1 + $0x2a0] sm:$0xff]   ;;  %v10413_v54 = vld [vmem:[%s12930_s1 + $0x218] sm:$0xff]   ;;  %v10435_v21 = vld [vmem:[%s12930_s1 + $0x370] sm:$0xff]  }
 0x136   : > { %9566 = vmatpush3.bf16.msra.mxu0 %v10373_v55  ;;  %v10414_v55 = vld [vmem:[%s12930_s1 + $0x298] sm:$0xff]  }
 0x137   : > { %9588 = vmatpush3.bf16.msra.mxu1 %v10374_v56  ;;  %9567 = vmatprep.subr.bf16.mxu0 %v10375_v58  ;;  %v10415_v56 = vld [vmem:[%s12930_s1 + $0x250] sm:$0xff]   ;;  %v10433_v12 = vld [vmem:[%s12930_s1 + $0x338] sm:$0xff]  }
 0x138   : > { %9589 = vmatprep.subr.bf16.mxu1 %v10376_v59  ;;  %v10416_v58 = vld [vmem:[%s12930_s1 + $0x2d0] sm:$0xff]  }
 0x139   : > { %v10417_v59 = vld [vmem:[%s12930_s1 + $0x210] sm:$0xff]  }
 0x13a   : > { %9568 = vmatpush3.bf16.msra.mxu0 %v10377_v60  ;;  %v10418_v60 = vld [vmem:[%s12930_s1 + $0x290] sm:$0xff]  }
 0x13b   : > { %9590 = vmatpush3.bf16.msra.mxu1 %v10378_v61  ;;  %9569 = vmatprep.subr.bf16.mxu0 %v10379_v62  ;;  %v10419_v61 = vld [vmem:[%s12930_s1 + $0x248] sm:$0xff]  }
 0x13c   : > { %9591 = vmatprep.subr.bf16.mxu1 %v10380_v63  ;;  %v10420_v62 = vld [vmem:[%s12930_s1 + $0x2c8] sm:$0xff]  }
 0x13d   : > { %v10421_v63 = vld [vmem:[%s12930_s1 + $0x208] sm:$0xff]  }
 0x13e   : > { %9570 = vmatpush3.bf16.msra.mxu0 %v10381_v0  ;;  %v10422_v0 = vld [vmem:[%s12930_s1 + $0x288] sm:$0xff]  }
 0x13f   : > { %9592 = vmatpush3.bf16.msra.mxu1 %v10382_v1  ;;  %9571 = vmatprep.subr.bf16.mxu0 %v10383_v2  ;;  %v10423_v1 = vld [vmem:[%s12930_s1 + $0x240] sm:$0xff]  }
 0x140   : > { %9593 = vmatprep.subr.bf16.mxu1 %v10384_v3  ;;  %v10424_v2 = vld [vmem:[%s12930_s1 + $0x2c0] sm:$0xff]  }
 0x141   : > { %v10425_v3 = vld [vmem:[%s12930_s1 + $0x200] sm:$0xff]  }
 0x142   : > { %9572 = vmatpush3.bf16.msra.mxu0 %v10385_v4  ;;  %v10426_v4 = vld [vmem:[%s12930_s1 + $0x280] sm:$0xff]  }
 0x143   : > { %9594 = vmatpush3.bf16.msra.mxu1 %v10386_v5  ;;  %9573 = vmatprep.subr.bf16.mxu0 %v10387_v6  ;;  %v8295_v5 = vld [vmem:[%s10873_s27 + $0x30] sm:$0x77]  ;;  %v8296_v6 = vld [vmem:[%s10873_s27 + $0x38] sm:$0x77] }
 0x144   : > { %9595 = vmatprep.subr.bf16.mxu1 %v10388_v7  ;;  %v8362_v7 = vcombine.high %v8295_v5, %v8295_v5  ;;  %v11944_v11 = vcombine.low %v8295_v5, %v8295_v5  ;;  %v10463_v5 = vld [vmem:[%s12930_s1 + $0x178] sm:$0xff]  }
 0x146   : > { %9574 = vmatpush3.bf16.msra.mxu0 %v10389_v8  ;;  %v10431_v8 = vld [vmem:[%s12930_s1 + $0x378] sm:$0xff]  }
 0x147   : > { %9596 = vmatpush3.bf16.msra.mxu1 %v10390_v9  ;;  %9575 = vmatprep.subr.bf16.mxu0 %v10391_v10  ;;  %v8364_v9 = vcombine.high %v8296_v6, %v8296_v6  ;;  %v10432_v10 = vld [vmem:[%s12930_s1 + $0x3f8] sm:$0xff]  }
 0x148   : > { %9597 = vmatprep.subr.bf16.mxu1 %v10392_v13  ;;  %v4230_v13 = vshrl.u32 %v8362_v7, 16 }
 0x14a   : > { %9576 = vmatpush3.bf16.msra.mxu0 %v10393_v14  ;;  %v11949_v14 = vcombine.low %v8296_v6, %v8296_v6  ;;  %v10464_v6 = vld [vmem:[%s12930_s1 + $0x1f8] sm:$0xff]  }
 0x14b   : > { %9598 = vmatpush3.bf16.msra.mxu1 %v10394_v15  ;;  %9605 = vmatprep.subr.bf16.mxu0 %v10395_v20 }
 0x14c   : > { %9627 = vmatprep.subr.bf16.mxu1 %v10396_v22  ;;  %v4244_v22 = vshrl.u32 %v8364_v9, 16 }
 0x14d   : > { %v9313_v16 = vpop.f32.mrf.mxu0  ;;  %3757 = vmatmul.mubr.bf16.vlgmr.msra.gmra.mxu0 %v11704_v17  ;;  %v10402_v17 = vld [vmem:[%s12930_s1 + $0x2b0] sm:$0xff]  }
 0x14e   : > { %v9335_v18 = vpop.f32.mrf.mxu1  ;;  %3797 = vmatmul.mubr.bf16.vlgmr.msra.gmra.mxu1 %v11706_v19  ;;  %9606 = vmatpush3.bf16.msra.mxu0 %v10397_v23  ;;  %v10404_v19 = vld [vmem:[%s12930_s1 + $0x2e8] sm:$0xff]  }
 0x14f   : > { %v9314_v24 = vpop.f32.mrf.mxu0  ;;  %9628 = vmatpush3.bf16.msra.mxu1 %v10398_v26  ;;  %9607 = vmatprep.subr.bf16.mxu0 %v10399_v29  ;;  %v4246_v29 = vshll.u32 %v8364_v9, 16 }
 0x150   : > { %v9336_v25 = vpop.f32.mrf.mxu1  ;;  %v9315_v27 = vadd.f32 %v9314_v24, %v9313_v16  ;;  %9629 = vmatprep.subr.bf16.mxu1 %v10400_v36  ;;  %4109 = vmatprep.mubr.bf16.mxu0 %v8362_v7  ;;  %v10434_v16 = vld [vmem:[%s12930_s1 + $0x3b8] sm:$0xff]   ;;  %v10436_v24 = vld [vmem:[%s12930_s1 + $0x3f0] sm:$0xff]   ;;  %v10439_v36 = vld [vmem:[%s12930_s1 + $0x368] sm:$0xff]  }
 0x151   : > { %v9337_v28 = vadd.f32 %v9336_v25, %v9335_v18  ;;  %v9316_v32 = vpop.f32.mrf.mxu0  ;;  %4149 = vmatprep.mubr.bf16.mxu1 %v8364_v9  ;;  %v4232_v18 = vshll.u32 %v8362_v7, 16 }
 0x152   : > { %v9338_v33 = vpop.f32.mrf.mxu1  ;;  %9608 = vmatpush3.bf16.msra.mxu0 %v10401_v37  ;;  %v4248_v37 = vrot.slane %v4246_v29, 1 }
 0x153   : > { %v1613_v35 = vadd.f32 %v9337_v28, %v9315_v27  ;;  %v9317_v38 = vpop.f32.mrf.mxu0  ;;  %9630 = vmatpush3.bf16.msra.mxu1 %v10402_v17  ;;  %9609 = vmatprep.subr.bf16.mxu0 %v10403_v40  ;;  %v4234_v25 = vrot.slane %v4232_v18, 1  ;;  %v10437_v28 = vld [vmem:[%s12930_s1 + $0x330] sm:$0xff]   ;;  %v10441_v40 = vld [vmem:[%s12930_s1 + $0x328] sm:$0xff]  }
 0x154   : > { %v9339_v39 = vpop.f32.mrf.mxu1  ;;  %9631 = vmatprep.subr.bf16.mxu1 %v10404_v19  ;;  %v10438_v33 = vld [vmem:[%s12930_s1 + $0x3b0] sm:$0xff]   ;;  %v10442_v19 = vld [vmem:[%s12930_s1 + $0x3a8] sm:$0xff]  }
 0x155   : > { %v1618_v57 = vadd.f32 %v1613_v35, %v1248_v34  ;;  %v4235_v34 = vor.u32 %v4234_v25, %v4230_v13  ;;  %v10467_v13 = vld [vmem:[%s12930_s1 + $0x170] sm:$0xff]  }
 0x156   : > { %9610 = vmatpush3.bf16.msra.mxu0 %v10405_v43  ;;  %v10444_v43 = vld [vmem:[%s12930_s1 + $0x3e0] sm:$0xff]  }
 0x157   : > { %v1625_v41 = vadd.f32 %v7826_v30, %v1618_v57  ;;  %9632 = vmatpush3.bf16.msra.mxu1 %v10406_v45  ;;  %9611 = vmatprep.subr.bf16.mxu0 %v10407_v46  ;;  %v10440_v57 = vld [vmem:[%s12930_s1 + $0x3e8] sm:$0xff]   ;;  %v10446_v45 = vld [vmem:[%s12930_s1 + $0x3a0] sm:$0xff]   ;;  %v10447_v46 = vld [vmem:[%s12930_s1 + $0x358] sm:$0xff]  }
 0x158   : > { %9633 = vmatprep.subr.bf16.mxu1 %v10408_v48  ;;  %v10449_v48 = vld [vmem:[%s12930_s1 + $0x318] sm:$0xff]  }
 0x159   : > { %v1626_v44 = vmax.f32 %v1625_v41, 0.0  ;;  %v4249_v41 = vor.u32 %v4248_v37, %v4244_v22  ;;  %v10470_v22 = vld [vmem:[%s12930_s1 + $0x1b0] sm:$0xff]   ;;  %v10478_v37 = vld [vmem:[%s12930_s1 + $0x1a0] sm:$0xff]  }
 0x15a   : > { %9612 = vmatpush3.bf16.msra.mxu0 %v10409_v49  ;;  %v10450_v49 = vld [vmem:[%s12930_s1 + $0x398] sm:$0xff]  }
 0x15b   : > { %v1627_v47 = vpack.c.bf16 %v1626_v44, %v1626_v44  ;;  %9634 = vmatpush3.bf16.msra.mxu1 %v10410_v51  ;;  %9613 = vmatprep.subr.bf16.mxu0 %v10411_v52  ;;  %v10445_v44 = vld [vmem:[%s12930_s1 + $0x320] sm:$0xff]   ;;  %v10452_v51 = vld [vmem:[%s12930_s1 + $0x3d0] sm:$0xff]  }
 0x15c   : > { %9635 = vmatprep.subr.bf16.mxu1 %v10412_v53  ;;  %v10453_v52 = vld [vmem:[%s12930_s1 + $0x310] sm:$0xff]  }
 0x15d   : > { %v1632_v50 = vsel %vm11839_vm2, %v1627_v47, %v1631_v42  ;;  %v10443_v42 = vld [vmem:[%s12930_s1 + $0x360] sm:$0xff]   ;;  %v10448_v47 = vld [vmem:[%s12930_s1 + $0x3d8] sm:$0xff]   ;;  %v10454_v53 = vld [vmem:[%s12930_s1 + $0x390] sm:$0xff]  }
 0x15e   : > { %1633 = vst [vmem:[%s11855_s25] sm:$0x7] %v1632_v50  ;;  %9614 = vmatpush3.bf16.msra.mxu0 %v10413_v54  ;;  %v10451_v50 = vld [vmem:[%s12930_s1 + $0x350] sm:$0xff]   ;;  %v10455_v54 = vld [vmem:[%s12930_s1 + $0x348] sm:$0xff]  }
 0x15f   : > { %9636 = vmatpush3.bf16.msra.mxu1 %v10414_v55  ;;  %9615 = vmatprep.subr.bf16.mxu0 %v10415_v56  ;;  %v10456_v55 = vld [vmem:[%s12930_s1 + $0x3c8] sm:$0xff]  }
 0x160   : > { %9637 = vmatprep.subr.bf16.mxu1 %v10416_v58  ;;  %v10457_v56 = vld [vmem:[%s12930_s1 + $0x308] sm:$0xff]   ;;  %v4225_v58 = vshll.u32 %v11944_v11, 16 }
 0x162   : > { %9616 = vmatpush3.bf16.msra.mxu0 %v10417_v59  ;;  %v10458_v59 = vld [vmem:[%s12930_s1 + $0x388] sm:$0xff]  }
 0x163   : > { %9638 = vmatpush3.bf16.msra.mxu1 %v10418_v60  ;;  %9617 = vmatprep.subr.bf16.mxu0 %v10419_v61  ;;  %v4239_v60 = vshll.u32 %v11949_v14, 16  ;;  %v10459_v61 = vld [vmem:[%s12930_s1 + $0x340] sm:$0xff]  }
 0x164   : > { %9639 = vmatprep.subr.bf16.mxu1 %v10420_v62  ;;  %v4223_v62 = vshrl.u32 %v11944_v11, 16 }
 0x166   : > { %9618 = vmatpush3.bf16.msra.mxu0 %v10421_v63  ;;  %v10460_v63 = vld [vmem:[%s12930_s1 + $0x3c0] sm:$0xff]  }
 0x167   : > { %9640 = vmatpush3.bf16.msra.mxu1 %v10422_v0  ;;  %9619 = vmatprep.subr.bf16.mxu0 %v10423_v1  ;;  %v4237_v0 = vshrl.u32 %v11949_v14, 16  ;;  %v10461_v1 = vld [vmem:[%s12930_s1 + $0x300] sm:$0xff]  }
 0x168   : > { %9641 = vmatprep.subr.bf16.mxu1 %v10424_v2  ;;  %v4227_v2 = vrot.slane %v4225_v58, 1  ;;  %v10499_v58 = vld [vmem:[%s12930_s1 + $0x78] sm:$0xff]  }
 0x16a   : > { %9620 = vmatpush3.bf16.msra.mxu0 %v10425_v3  ;;  %v10462_v3 = vld [vmem:[%s12930_s1 + $0x380] sm:$0xff]   ;;  %v4228_v7 = vor.u32 %v4227_v2, %v4223_v62 }
 0x16b   : > { %9642 = vmatpush3.bf16.msra.mxu1 %v10426_v4  ;;  %9649 = vmatprep.subr.bf16.mxu0 %v10431_v8  ;;  %v4241_v4 = vrot.slane %v4239_v60, 1  ;;  %v10465_v8 = vld [vmem:[%s12930_s1 + $0x138] sm:$0xff]  }
 0x16c   : > { %9671 = vmatprep.subr.bf16.mxu1 %v10432_v10 }
 0x16d   : > { %v9357_v15 = vpop.f32.mrf.mxu0  ;;  %4110 = vmatmul.mubr.bf16.vlgmr.msra.gmra.mxu0 %v11944_v11  ;;  %v4242_v10 = vor.u32 %v4241_v4, %v4237_v0  ;;  %v10466_v11 = vld [vmem:[%s12930_s1 + $0x1b8] sm:$0xff]  }
 0x16e   : > { %v9379_v20 = vpop.f32.mrf.mxu1  ;;  %4150 = vmatmul.mubr.bf16.vlgmr.msra.gmra.mxu1 %v11949_v14  ;;  %9650 = vmatpush3.bf16.msra.mxu0 %v10433_v12 }
 0x16f   : > { %v9358_v23 = vpop.f32.mrf.mxu0  ;;  %9672 = vmatpush3.bf16.msra.mxu1 %v10434_v16  ;;  %9651 = vmatprep.subr.bf16.mxu0 %v10435_v21 }
 0x170   : > { %v9359_v26 = vadd.f32 %v9358_v23, %v9357_v15  ;;  %v9380_v27 = vpop.f32.mrf.mxu1  ;;  %9673 = vmatprep.subr.bf16.mxu1 %v10436_v24  ;;  %4478 = vmatprep.mubr.bf16.mxu0 %v4235_v34  ;;  %v10468_v15 = vld [vmem:[%s12930_s1 + $0x1f0] sm:$0xff]   ;;  %v10475_v34 = vld [vmem:[%s12930_s1 + $0x160] sm:$0xff]  }
 0x171   : > { %v9381_v30 = vadd.f32 %v9380_v27, %v9379_v20  ;;  %v9360_v32 = vpop.f32.mrf.mxu0  ;;  %4518 = vmatprep.mubr.bf16.mxu1 %v4249_v41  ;;  %v10469_v20 = vld [vmem:[%s12930_s1 + $0x130] sm:$0xff]  }
 0x172   : > { %v9382_v35 = vpop.f32.mrf.mxu1  ;;  %9652 = vmatpush3.bf16.msra.mxu0 %v10437_v28  ;;  %v10472_v28 = vld [vmem:[%s12930_s1 + $0x1e8] sm:$0xff]   ;;  %v10484_v41 = vld [vmem:[%s12930_s1 + $0x1d0] sm:$0xff]  }
 0x173   : > { %v11971_v38 = vadd.f32 %v9381_v30, %v9359_v26  ;;  %v9361_v39 = vpop.f32.mrf.mxu0  ;;  %9674 = vmatpush3.bf16.msra.mxu1 %v10438_v33  ;;  %9653 = vmatprep.subr.bf16.mxu0 %v10439_v36  ;;  %v10471_v26 = vld [vmem:[%s12930_s1 + $0x168] sm:$0xff]   ;;  %v10476_v35 = vld [vmem:[%s12930_s1 + $0x1e0] sm:$0xff]  }
 0x174   : > { %v9383_v17 = vpop.f32.mrf.mxu1  ;;  %9675 = vmatprep.subr.bf16.mxu1 %v10440_v57  ;;  %v10473_v32 = vld [vmem:[%s12930_s1 + $0x128] sm:$0xff]   ;;  %v10477_v36 = vld [vmem:[%s12930_s1 + $0x120] sm:$0xff]   ;;  %v10480_v39 = vld [vmem:[%s12930_s1 + $0x1d8] sm:$0xff]  }
 0x175   : > { %v10474_v33 = vld [vmem:[%s12930_s1 + $0x1a8] sm:$0xff]   ;;  %v10481_v57 = vld [vmem:[%s12930_s1 + $0x118] sm:$0xff]  }
 0x176   : > { %9654 = vmatpush3.bf16.msra.mxu0 %v10441_v40  ;;  %v10482_v17 = vld [vmem:[%s12930_s1 + $0x198] sm:$0xff]   ;;  %v10483_v40 = vld [vmem:[%s12930_s1 + $0x150] sm:$0xff]  }
 0x177   : > { %9676 = vmatpush3.bf16.msra.mxu1 %v10442_v19  ;;  %9655 = vmatprep.subr.bf16.mxu0 %v10443_v42  ;;  %v10485_v19 = vld [vmem:[%s12930_s1 + $0x110] sm:$0xff]  }
 0x178   : > { %9677 = vmatprep.subr.bf16.mxu1 %v10444_v43  ;;  %v10486_v42 = vld [vmem:[%s12930_s1 + $0x190] sm:$0xff]   ;;  %v10487_v43 = vld [vmem:[%s12930_s1 + $0x148] sm:$0xff]  }
 0x17a   : > { %9656 = vmatpush3.bf16.msra.mxu0 %v10445_v44  ;;  %v10488_v44 = vld [vmem:[%s12930_s1 + $0x1c8] sm:$0xff]  }
 0x17b   : > { %9678 = vmatpush3.bf16.msra.mxu1 %v10446_v45  ;;  %9657 = vmatprep.subr.bf16.mxu0 %v10447_v46  ;;  %v10489_v45 = vld [vmem:[%s12930_s1 + $0x108] sm:$0xff]  }
 0x17c   : > { %9679 = vmatprep.subr.bf16.mxu1 %v10448_v47  ;;  %v10490_v46 = vld [vmem:[%s12930_s1 + $0x188] sm:$0xff]   ;;  %v10491_v47 = vld [vmem:[%s12930_s1 + $0x140] sm:$0xff]  }
 0x17e   : > { %9658 = vmatpush3.bf16.msra.mxu0 %v10449_v48  ;;  %v10492_v48 = vld [vmem:[%s12930_s1 + $0x1c0] sm:$0xff]  }
 0x17f   : > { %9680 = vmatpush3.bf16.msra.mxu1 %v10450_v49  ;;  %9659 = vmatprep.subr.bf16.mxu0 %v10451_v50  ;;  %v10493_v49 = vld [vmem:[%s12930_s1 + $0x100] sm:$0xff]  }
 0x180   : > { %9681 = vmatprep.subr.bf16.mxu1 %v10452_v51  ;;  %v10494_v50 = vld [vmem:[%s12930_s1 + $0x180] sm:$0xff]   ;;  %v8495_v51 = vld [vmem:[%s10873_s27 + $0x30] sm:$0x77] }
 0x182   : > { %9660 = vmatpush3.bf16.msra.mxu0 %v10453_v52  ;;  %v8496_v52 = vld [vmem:[%s10873_s27 + $0x38] sm:$0x77] }
 0x183   : > { %9682 = vmatpush3.bf16.msra.mxu1 %v10454_v53  ;;  %9661 = vmatprep.subr.bf16.mxu0 %v10455_v54  ;;  %v12147_v53 = vcombine.low %v8495_v51, %v8495_v51  ;;  %v8562_v54 = vcombine.high %v8495_v51, %v8495_v51  ;;  %v10529_v51 = vld [vmem:[%s12930_s1] sm:$0xff]  }
 0x184   : > { %9683 = vmatprep.subr.bf16.mxu1 %v10456_v55  ;;  %v12149_v55 = vcombine.low %v8496_v52, %v8496_v52 }
 0x185   : > { %v4682_v60 = vshrl.u32 %v8562_v54, 16  ;;  %v4675_v2 = vshrl.u32 %v12147_v53, 16 }
 0x186   : > { %9662 = vmatpush3.bf16.msra.mxu0 %v10457_v56  ;;  %v8564_v56 = vcombine.high %v8496_v52, %v8496_v52  ;;  %v4689_v4 = vshrl.u32 %v12149_v55, 16  ;;  %v10530_v52 = vld [vmem:[%s12930_s1 + $0x80] sm:$0xff]  }
 0x187   : > { %9684 = vmatpush3.bf16.msra.mxu1 %v10458_v59  ;;  %9663 = vmatprep.subr.bf16.mxu0 %v10459_v61  ;;  %v10500_v59 = vld [vmem:[%s12930_s1 + $0xf8] sm:$0xff]   ;;  %v4684_v61 = vshll.u32 %v8562_v54, 16 }
 0x188   : > { %9685 = vmatprep.subr.bf16.mxu1 %v10460_v63  ;;  %v4696_v62 = vshrl.u32 %v8564_v56, 16  ;;  %v4698_v63 = vshll.u32 %v8564_v56, 16 }
 0x18a   : > { %9664 = vmatpush3.bf16.msra.mxu0 %v10461_v1 }
 0x18b   : > { %9686 = vmatpush3.bf16.msra.mxu1 %v10462_v3  ;;  %9693 = vmatprep.subr.bf16.mxu0 %v10463_v5  ;;  %v4677_v3 = vshll.u32 %v12147_v53, 16  ;;  %v4691_v5 = vshll.u32 %v12149_v55, 16 }
 0x18c   : > { %9715 = vmatprep.subr.bf16.mxu1 %v10464_v6  ;;  %v4686_v6 = vrot.slane %v4684_v61, 1 }
 0x18d   : > { %v9401_v9 = vpop.f32.mrf.mxu0  ;;  %4479 = vmatmul.mubr.bf16.vlgmr.msra.gmra.mxu0 %v4228_v7  ;;  %v4700_v7 = vrot.slane %v4698_v63, 1  ;;  %v10534_v63 = vld [vmem:[%s12930_s1 + $0x2b8] sm:$0xff]  }
 0x18e   : > { %v9423_v12 = vpop.f32.mrf.mxu1  ;;  %4519 = vmatmul.mubr.bf16.vlgmr.msra.gmra.mxu1 %v4242_v10  ;;  %9694 = vmatpush3.bf16.msra.mxu0 %v10465_v8  ;;  %v10501_v8 = vld [vmem:[%s12930_s1 + $0x38] sm:$0xff]  }
 0x18f   : > { %v9402_v14 = vpop.f32.mrf.mxu0  ;;  %9716 = vmatpush3.bf16.msra.mxu1 %v10466_v11  ;;  %9695 = vmatprep.subr.bf16.mxu0 %v10467_v13  ;;  %v4679_v11 = vrot.slane %v4677_v3, 1 }
 0x190   : > { %v9403_v16 = vadd.f32 %v9402_v14, %v9401_v9  ;;  %v9424_v18 = vpop.f32.mrf.mxu1  ;;  %9717 = vmatprep.subr.bf16.mxu1 %v10468_v15  ;;  %v10502_v9 = vld [vmem:[%s12930_s1 + $0xb8] sm:$0xff]   ;;  %v4687_v14 = vor.u32 %v4686_v6, %v4682_v60  ;;  %v4701_v15 = vor.u32 %v4700_v7, %v4696_v62  ;;  %v10536_v6 = vld [vmem:[%s12930_s1 + $0x2f0] sm:$0xff]  }
 0x191   : > { %v9404_v21 = vpop.f32.mrf.mxu0  ;;  %v9425_v24 = vadd.f32 %v9424_v18, %v9423_v12  ;;  %v4693_v12 = vrot.slane %v4691_v5, 1  ;;  %v10503_v18 = vld [vmem:[%s12930_s1 + $0x70] sm:$0xff]   ;;  %v10533_v62 = vld [vmem:[%s12930_s1 + $0x238] sm:$0xff]  }
 0x192   : > { %v2309_v23 = vadd.f32 %v9403_v16, %v11971_v38  ;;  %v9426_v25 = vpop.f32.mrf.mxu1  ;;  %9696 = vmatpush3.bf16.msra.mxu0 %v10469_v20  ;;  %v10479_v38 = vld [vmem:[%s12930_s1 + $0x158] sm:$0xff]   ;;  %v4680_v20 = vor.u32 %v4679_v11, %v4675_v2  ;;  %4930 = vmatprep.mubr.bf16.mxu0 %v4687_v14  ;;  %v10538_v11 = vld [vmem:[%s12930_s1 + $0x2b0] sm:$0xff]  }
 0x193   : > { %v9405_v27 = vpop.f32.mrf.mxu0  ;;  %9718 = vmatpush3.bf16.msra.mxu1 %v10470_v22  ;;  %9697 = vmatprep.subr.bf16.mxu0 %v10471_v26  ;;  %v4694_v21 = vor.u32 %v4693_v12, %v4689_v4  ;;  %v10506_v26 = vld [vmem:[%s12930_s1 + $0xb0] sm:$0xff]  }
 0x194   : > { %v12077_v29 = vadd.f32 %v9425_v24, %v2309_v23  ;;  %v9427_v30 = vpop.f32.mrf.mxu1  ;;  %9719 = vmatprep.subr.bf16.mxu1 %v10472_v28  ;;  %v10504_v23 = vld [vmem:[%s12930_s1 + $0xf0] sm:$0xff]   ;;  %4970 = vmatprep.mubr.bf16.mxu1 %v4701_v15  ;;  %v10507_v28 = vld [vmem:[%s12930_s1 + $0x68] sm:$0xff]  }
 0x195   : > { %v10505_v24 = vld [vmem:[%s12930_s1 + $0x30] sm:$0xff]   ;;  %v10508_v30 = vld [vmem:[%s12930_s1 + $0xe8] sm:$0xff]  }
 0x196   : > { %9698 = vmatpush3.bf16.msra.mxu0 %v10473_v32  ;;  %v10509_v32 = vld [vmem:[%s12930_s1 + $0x28] sm:$0xff]   ;;  %v10535_v4 = vld [vmem:[%s12930_s1 + $0x270] sm:$0xff]  }
 0x197   : > { %9720 = vmatpush3.bf16.msra.mxu1 %v10474_v33  ;;  %9699 = vmatprep.subr.bf16.mxu0 %v10475_v34  ;;  %v10510_v33 = vld [vmem:[%s12930_s1 + $0xa8] sm:$0xff]   ;;  %v10511_v34 = vld [vmem:[%s12930_s1 + $0x60] sm:$0xff]  }
 0x198   : > { %9721 = vmatprep.subr.bf16.mxu1 %v10476_v35  ;;  %v10512_v35 = vld [vmem:[%s12930_s1 + $0xe0] sm:$0xff]   ;;  %v10541_v15 = vld [vmem:[%s12930_s1 + $0x228] sm:$0xff]  }
 0x19a   : > { %9700 = vmatpush3.bf16.msra.mxu0 %v10477_v36  ;;  %v10513_v36 = vld [vmem:[%s12930_s1 + $0x20] sm:$0xff]  }
 0x19b   : > { %9722 = vmatpush3.bf16.msra.mxu1 %v10478_v37  ;;  %9701 = vmatprep.subr.bf16.mxu0 %v10479_v38  ;;  %v10514_v37 = vld [vmem:[%s12930_s1 + $0xa0] sm:$0xff]   ;;  %v10515_v38 = vld [vmem:[%s12930_s1 + $0x58] sm:$0xff]  }
 0x19c   : > { %9723 = vmatprep.subr.bf16.mxu1 %v10480_v39  ;;  %v10516_v39 = vld [vmem:[%s12930_s1 + $0xd8] sm:$0xff]  }
 0x19e   : > { %9702 = vmatpush3.bf16.msra.mxu0 %v10481_v57  ;;  %v10517_v57 = vld [vmem:[%s12930_s1 + $0x18] sm:$0xff]  }
 0x19f   : > { %9724 = vmatpush3.bf16.msra.mxu1 %v10482_v17  ;;  %9703 = vmatprep.subr.bf16.mxu0 %v10483_v40  ;;  %v10518_v17 = vld [vmem:[%s12930_s1 + $0x98] sm:$0xff]   ;;  %v10519_v40 = vld [vmem:[%s12930_s1 + $0x50] sm:$0xff]  }
 0x1a0   : > { %9725 = vmatprep.subr.bf16.mxu1 %v10484_v41  ;;  %v10520_v41 = vld [vmem:[%s12930_s1 + $0xd0] sm:$0xff]  }
 0x1a2   : > { %9704 = vmatpush3.bf16.msra.mxu0 %v10485_v19  ;;  %v10521_v19 = vld [vmem:[%s12930_s1 + $0x10] sm:$0xff]  }
 0x1a3   : > { %9726 = vmatpush3.bf16.msra.mxu1 %v10486_v42  ;;  %9705 = vmatprep.subr.bf16.mxu0 %v10487_v43  ;;  %v10522_v42 = vld [vmem:[%s12930_s1 + $0x90] sm:$0xff]   ;;  %v10523_v43 = vld [vmem:[%s12930_s1 + $0x48] sm:$0xff]  }
 0x1a4   : > { %9727 = vmatprep.subr.bf16.mxu1 %v10488_v44  ;;  %v10524_v44 = vld [vmem:[%s12930_s1 + $0xc8] sm:$0xff]  }
 0x1a6   : > { %9706 = vmatpush3.bf16.msra.mxu0 %v10489_v45  ;;  %v10525_v45 = vld [vmem:[%s12930_s1 + $0x8] sm:$0xff]  }
 0x1a7   : > { %9728 = vmatpush3.bf16.msra.mxu1 %v10490_v46  ;;  %9707 = vmatprep.subr.bf16.mxu0 %v10491_v47  ;;  %v10526_v46 = vld [vmem:[%s12930_s1 + $0x88] sm:$0xff]   ;;  %v10527_v47 = vld [vmem:[%s12930_s1 + $0x40] sm:$0xff]  }
 0x1a8   : > { %9729 = vmatprep.subr.bf16.mxu1 %v10492_v48  ;;  %v10528_v48 = vld [vmem:[%s12930_s1 + $0xc0] sm:$0xff]  }
 0x1aa   : > { %9708 = vmatpush3.bf16.msra.mxu0 %v10493_v49 }
 0x1ab   : > { %9730 = vmatpush3.bf16.msra.mxu1 %v10494_v50  ;;  %9737 = vmatprep.subr.bf16.mxu0 %v10499_v58 }
 0x1ac   : > { %9759 = vmatprep.subr.bf16.mxu1 %v10500_v59  ;;  %v10532_v59 = vld [vmem:[%s12930_s1 + $0x2f8] sm:$0xff]  }
 0x1ad   : > { %v12157_v0 = vpop.f32.mrf.mxu0  ;;  %4931 = vmatmul.mubr.bf16.vlgmr.msra.gmra.mxu0 %v4680_v20 }
 0x1ae   : > { %v12159_v1 = vpop.f32.mrf.mxu1  ;;  %4971 = vmatmul.mubr.bf16.vlgmr.msra.gmra.mxu1 %v4694_v21  ;;  %9738 = vmatpush3.bf16.msra.mxu0 %v10501_v8  ;;  %v10543_v21 = vld [vmem:[%s12930_s1 + $0x260] sm:$0xff]  }
 0x1af   : > { %v12171_v10 = vpop.f32.mrf.mxu0  ;;  %9760 = vmatpush3.bf16.msra.mxu1 %v10502_v9  ;;  %9739 = vmatprep.subr.bf16.mxu0 %v10503_v18  ;;  %v10537_v9 = vld [vmem:[%s12930_s1 + $0x230] sm:$0xff]   ;;  %v10542_v18 = vld [vmem:[%s12930_s1 + $0x2a8] sm:$0xff]  }
 0x1b0   : > { %v12173_v13 = vpop.f32.mrf.mxu1  ;;  %9761 = vmatprep.subr.bf16.mxu1 %v10504_v23  ;;  %5206 = vmatprep.mubr.bf16.mxu0 %v8562_v54  ;;  %v9447_v49 = vadd.f32 %v12171_v10, %v12157_v0 }
 0x1b1   : > { %v9448_v16 = vpop.f32.mrf.mxu0  ;;  %5246 = vmatprep.mubr.bf16.mxu1 %v8564_v56  ;;  %v9469_v50 = vadd.f32 %v12173_v13, %v12159_v1  ;;  %v10531_v56 = vld [vmem:[%s12930_s1 + $0x278] sm:$0xff]  }
 0x1b2   : > { %v9470_v22 = vpop.f32.mrf.mxu1  ;;  %9740 = vmatpush3.bf16.msra.mxu0 %v10505_v24  ;;  %v8159_v16 = vld [vmem:[%s11855_s25 + $0x4] sm:$0x7] }
 0x1b3   : > { %v9449_v25 = vpop.f32.mrf.mxu0  ;;  %9762 = vmatpush3.bf16.msra.mxu1 %v10506_v26  ;;  %9741 = vmatprep.subr.bf16.mxu0 %v10507_v28  ;;  %v2702_v60 = vadd.f32 %v9469_v50, %v9447_v49  ;;  %v10544_v22 = vld [vmem:[%s12930_s1 + $0x2e0] sm:$0xff]   ;;  %v10548_v28 = vld [vmem:[%s12930_s1 + $0x2d8] sm:$0xff]  }
 0x1b4   : > { %v9471_v27 = vpop.f32.mrf.mxu1  ;;  %9763 = vmatprep.subr.bf16.mxu1 %v10508_v30  ;;  %v10545_v24 = vld [vmem:[%s12930_s1 + $0x220] sm:$0xff]   ;;  %v10549_v30 = vld [vmem:[%s12930_s1 + $0x218] sm:$0xff]  }
 0x1b5   : > { %v2707_v7 = vadd.f32 %v2702_v60, %v12077_v29  ;;  %v10539_v29 = vld [vmem:[%s12930_s1 + $0x268] sm:$0xff]   ;;  %v10546_v25 = vld [vmem:[%s12930_s1 + $0x2a0] sm:$0xff]   ;;  %v10547_v27 = vld [vmem:[%s12930_s1 + $0x258] sm:$0xff]  }
 0x1b6   : > { %9742 = vmatpush3.bf16.msra.mxu0 %v10509_v32  ;;  %v10550_v32 = vld [vmem:[%s12930_s1 + $0x298] sm:$0xff]  }
 0x1b7   : > { %9764 = vmatpush3.bf16.msra.mxu1 %v10510_v33  ;;  %9743 = vmatprep.subr.bf16.mxu0 %v10511_v34  ;;  %v10551_v33 = vld [vmem:[%s12930_s1 + $0x250] sm:$0xff]  }
 0x1b8   : > { %9765 = vmatprep.subr.bf16.mxu1 %v10512_v35  ;;  %v10552_v34 = vld [vmem:[%s12930_s1 + $0x2d0] sm:$0xff]  }
 0x1b9   : > { %v10553_v35 = vld [vmem:[%s12930_s1 + $0x210] sm:$0xff]  }
 0x1ba   : > { %9744 = vmatpush3.bf16.msra.mxu0 %v10513_v36  ;;  %v10554_v36 = vld [vmem:[%s12930_s1 + $0x290] sm:$0xff]  }
 0x1bb   : > { %9766 = vmatpush3.bf16.msra.mxu1 %v10514_v37  ;;  %9745 = vmatprep.subr.bf16.mxu0 %v10515_v38  ;;  %v10555_v37 = vld [vmem:[%s12930_s1 + $0x248] sm:$0xff]  }
 0x1bc   : > { %9767 = vmatprep.subr.bf16.mxu1 %v10516_v39  ;;  %v10556_v38 = vld [vmem:[%s12930_s1 + $0x2c8] sm:$0xff]  }
 0x1bd   : > { %v10557_v39 = vld [vmem:[%s12930_s1 + $0x208] sm:$0xff]  }
 0x1be   : > { %9746 = vmatpush3.bf16.msra.mxu0 %v10517_v57  ;;  %v10558_v57 = vld [vmem:[%s12930_s1 + $0x288] sm:$0xff]  }
 0x1bf   : > { %9768 = vmatpush3.bf16.msra.mxu1 %v10518_v17  ;;  %9747 = vmatprep.subr.bf16.mxu0 %v10519_v40  ;;  %v10559_v17 = vld [vmem:[%s12930_s1 + $0x240] sm:$0xff]  }
 0x1c0   : > { %9769 = vmatprep.subr.bf16.mxu1 %v10520_v41  ;;  %v10560_v40 = vld [vmem:[%s12930_s1 + $0x2c0] sm:$0xff]  }
 0x1c1   : > { %v10561_v41 = vld [vmem:[%s12930_s1 + $0x200] sm:$0xff]  }
 0x1c2   : > { %9748 = vmatpush3.bf16.msra.mxu0 %v10521_v19  ;;  %v10562_v19 = vld [vmem:[%s12930_s1 + $0x280] sm:$0xff]  }
 0x1c3   : > { %9770 = vmatpush3.bf16.msra.mxu1 %v10522_v42  ;;  %9749 = vmatprep.subr.bf16.mxu0 %v10523_v43  ;;  %v8629_v42 = vld [vmem:[%s10873_s27 + $0x40] sm:$0x77] }
 0x1c4   : > { %9771 = vmatprep.subr.bf16.mxu1 %v10524_v44  ;;  %v8696_v43 = vcombine.high %v8629_v42, %v8629_v42  ;;  %v8630_v44 = vld [vmem:[%s10873_s27 + $0x48] sm:$0x77]  ;;  %v12377_v49 = vcombine.low %v8629_v42, %v8629_v42  ;;  %v10599_v42 = vld [vmem:[%s12930_s1 + $0x178] sm:$0xff]  }
 0x1c5   : > { %v12379_v50 = vcombine.low %v8630_v44, %v8630_v44 }
 0x1c6   : > { %9750 = vmatpush3.bf16.msra.mxu0 %v10525_v45  ;;  %v8698_v45 = vcombine.high %v8630_v44, %v8630_v44 }
 0x1c7   : > { %9772 = vmatpush3.bf16.msra.mxu1 %v10526_v46  ;;  %9751 = vmatprep.subr.bf16.mxu0 %v10527_v47  ;;  %v10567_v46 = vld [vmem:[%s12930_s1 + $0x378] sm:$0xff]  }
 0x1c8   : > { %9773 = vmatprep.subr.bf16.mxu1 %v10528_v48  ;;  %v10568_v47 = vld [vmem:[%s12930_s1 + $0x3f8] sm:$0xff]   ;;  %v5680_v48 = vshrl.u32 %v8696_v43, 16 }
 0x1ca   : > { %9752 = vmatpush3.bf16.msra.mxu0 %v10529_v51 }
 0x1cb   : > { %9774 = vmatpush3.bf16.msra.mxu1 %v10530_v52  ;;  %9781 = vmatprep.subr.bf16.mxu0 %v10531_v56  ;;  %v10569_v52 = vld [vmem:[%s12930_s1 + $0x338] sm:$0xff]  }
 0x1cc   : > { %9803 = vmatprep.subr.bf16.mxu1 %v10532_v59  ;;  %v5694_v59 = vshrl.u32 %v8698_v45, 16 }
 0x1cd   : > { %v9489_v54 = vpop.f32.mrf.mxu0  ;;  %5207 = vmatmul.mubr.bf16.vlgmr.msra.gmra.mxu0 %v12147_v53  ;;  %v10540_v53 = vld [vmem:[%s12930_s1 + $0x2e8] sm:$0xff]  }
 0x1ce   : > { %v9511_v58 = vpop.f32.mrf.mxu1  ;;  %5247 = vmatmul.mubr.bf16.vlgmr.msra.gmra.mxu1 %v12149_v55  ;;  %9782 = vmatpush3.bf16.msra.mxu0 %v10533_v62  ;;  %v10735_v55 = vld [vmem:[%s12931_s2] ss:$0 sm:$0xff] }
 0x1cf   : > { %v9490_v61 = vpop.f32.mrf.mxu0  ;;  %9804 = vmatpush3.bf16.msra.mxu1 %v10534_v63  ;;  %9783 = vmatprep.subr.bf16.mxu0 %v10535_v4 }
 0x1d0   : > { %v9491_v0 = vadd.f32 %v9490_v61, %v9489_v54  ;;  %v9512_v1 = vpop.f32.mrf.mxu1  ;;  %9805 = vmatprep.subr.bf16.mxu1 %v10536_v6  ;;  %5559 = vmatprep.mubr.bf16.mxu0 %v8696_v43  ;;  %v5682_v54 = vshll.u32 %v8696_v43, 16  ;;  %v10571_v61 = vld [vmem:[%s12930_s1 + $0x370] sm:$0xff]   ;;  %v10600_v43 = vld [vmem:[%s12930_s1 + $0x1f8] sm:$0xff]  }
 0x1d1   : > { %v9513_v2 = vadd.f32 %v9512_v1, %v9511_v58  ;;  %v9492_v3 = vpop.f32.mrf.mxu0  ;;  %5599 = vmatprep.mubr.bf16.mxu1 %v8698_v45  ;;  %v10570_v58 = vld [vmem:[%s12930_s1 + $0x3b8] sm:$0xff]   ;;  %v10572_v1 = vld [vmem:[%s12930_s1 + $0x3f0] sm:$0xff]  }
 0x1d2   : > { %v9514_v5 = vpop.f32.mrf.mxu1  ;;  %9784 = vmatpush3.bf16.msra.mxu0 %v10537_v9  ;;  %v5684_v62 = vrot.slane %v5682_v54, 1 }
 0x1d3   : > { %v3071_v8 = vadd.f32 %v9513_v2, %v9491_v0  ;;  %v9493_v10 = vpop.f32.mrf.mxu0  ;;  %9806 = vmatpush3.bf16.msra.mxu1 %v10538_v11  ;;  %9785 = vmatprep.subr.bf16.mxu0 %v10539_v29  ;;  %v5696_v2 = vshll.u32 %v8698_v45, 16  ;;  %v10573_v5 = vld [vmem:[%s12930_s1 + $0x330] sm:$0xff]   ;;  %v10576_v29 = vld [vmem:[%s12930_s1 + $0x3e8] sm:$0xff]  }
 0x1d4   : > { %v9515_v12 = vpop.f32.mrf.mxu1  ;;  %9807 = vmatprep.subr.bf16.mxu1 %v10540_v53  ;;  %v5685_v6 = vor.u32 %v5684_v62, %v5680_v48 }
 0x1d5   : > { %v3076_v13 = vadd.f32 %v3071_v8, %v2707_v7  ;;  %v10574_v8 = vld [vmem:[%s12930_s1 + $0x3b0] sm:$0xff]   ;;  %v5698_v9 = vrot.slane %v5696_v2, 1  ;;  %v10575_v12 = vld [vmem:[%s12930_s1 + $0x368] sm:$0xff]  }
 0x1d6   : > { %9786 = vmatpush3.bf16.msra.mxu0 %v10541_v15  ;;  %v10579_v15 = vld [vmem:[%s12930_s1 + $0x360] sm:$0xff]  }
 0x1d7   : > { %v3077_v14 = vadd.f32 %v10735_v55, %v3076_v13  ;;  %9808 = vmatpush3.bf16.msra.mxu1 %v10542_v18  ;;  %9787 = vmatprep.subr.bf16.mxu0 %v10543_v21  ;;  %v5699_v53 = vor.u32 %v5698_v9, %v5694_v59  ;;  %v10577_v55 = vld [vmem:[%s12930_s1 + $0x328] sm:$0xff]   ;;  %v10581_v18 = vld [vmem:[%s12930_s1 + $0x320] sm:$0xff]   ;;  %v10583_v21 = vld [vmem:[%s12930_s1 + $0x358] sm:$0xff]  }
 0x1d8   : > { %9809 = vmatprep.subr.bf16.mxu1 %v10544_v22  ;;  %v10584_v22 = vld [vmem:[%s12930_s1 + $0x3d8] sm:$0xff]   ;;  %v10605_v59 = vld [vmem:[%s12930_s1 + $0x130] sm:$0xff]   ;;  %v10613_v9 = vld [vmem:[%s12930_s1 + $0x120] sm:$0xff]  }
 0x1d9   : > { %v3078_v20 = vmax.f32 %v3077_v14, 0.0  ;;  %v10578_v14 = vld [vmem:[%s12930_s1 + $0x3a8] sm:$0xff]  }
 0x1da   : > { %9788 = vmatpush3.bf16.msra.mxu0 %v10545_v24  ;;  %v10586_v24 = vld [vmem:[%s12930_s1 + $0x398] sm:$0xff]  }
 0x1db   : > { %v3079_v23 = vpack.c.bf16 %v3078_v20, %v3078_v20  ;;  %9810 = vmatpush3.bf16.msra.mxu1 %v10546_v25  ;;  %9789 = vmatprep.subr.bf16.mxu0 %v10547_v27  ;;  %v10582_v20 = vld [vmem:[%s12930_s1 + $0x3a0] sm:$0xff]   ;;  %v10587_v25 = vld [vmem:[%s12930_s1 + $0x350] sm:$0xff]  }
 0x1dc   : > { %9811 = vmatprep.subr.bf16.mxu1 %v10548_v28  ;;  %v10589_v27 = vld [vmem:[%s12930_s1 + $0x310] sm:$0xff]  }
 0x1dd   : > { %v3082_v26 = vsel %vm11839_vm2, %v3079_v23, %v8159_v16  ;;  %v10580_v16 = vld [vmem:[%s12930_s1 + $0x3e0] sm:$0xff]   ;;  %v10585_v23 = vld [vmem:[%s12930_s1 + $0x318] sm:$0xff]   ;;  %v10590_v28 = vld [vmem:[%s12930_s1 + $0x390] sm:$0xff]  }
 0x1de   : > { %8160 = vst [vmem:[%s11855_s25 + $0x4] sm:$0x7] %v3082_v26  ;;  %9790 = vmatpush3.bf16.msra.mxu0 %v10549_v30  ;;  %v10588_v26 = vld [vmem:[%s12930_s1 + $0x3d0] sm:$0xff]   ;;  %v10591_v30 = vld [vmem:[%s12930_s1 + $0x348] sm:$0xff]  }
 0x1df   : > { %9812 = vmatpush3.bf16.msra.mxu1 %v10550_v32  ;;  %9791 = vmatprep.subr.bf16.mxu0 %v10551_v33  ;;  %v10592_v32 = vld [vmem:[%s12930_s1 + $0x3c8] sm:$0xff]   ;;  %v5675_v33 = vshll.u32 %v12377_v49, 16 }
 0x1e0   : > { %9813 = vmatprep.subr.bf16.mxu1 %v10552_v34  ;;  %v10593_v34 = vld [vmem:[%s12930_s1 + $0x308] sm:$0xff]  }
 0x1e2   : > { %9792 = vmatpush3.bf16.msra.mxu0 %v10553_v35  ;;  %v5689_v35 = vshll.u32 %v12379_v50, 16 }
 0x1e3   : > { %9814 = vmatpush3.bf16.msra.mxu1 %v10554_v36  ;;  %9793 = vmatprep.subr.bf16.mxu0 %v10555_v37  ;;  %v10594_v36 = vld [vmem:[%s12930_s1 + $0x388] sm:$0xff]   ;;  %v5673_v37 = vshrl.u32 %v12377_v49, 16 }
 0x1e4   : > { %9815 = vmatprep.subr.bf16.mxu1 %v10556_v38  ;;  %v10595_v38 = vld [vmem:[%s12930_s1 + $0x340] sm:$0xff]  }
 0x1e6   : > { %9794 = vmatpush3.bf16.msra.mxu0 %v10557_v39  ;;  %v5687_v39 = vshrl.u32 %v12379_v50, 16 }
 0x1e7   : > { %9816 = vmatpush3.bf16.msra.mxu1 %v10558_v57  ;;  %9795 = vmatprep.subr.bf16.mxu0 %v10559_v17  ;;  %v10596_v57 = vld [vmem:[%s12930_s1 + $0x3c0] sm:$0xff]   ;;  %v5677_v17 = vrot.slane %v5675_v33, 1  ;;  %v10635_v33 = vld [vmem:[%s12930_s1 + $0x78] sm:$0xff]  }
 0x1e8   : > { %9817 = vmatprep.subr.bf16.mxu1 %v10560_v40  ;;  %v10597_v40 = vld [vmem:[%s12930_s1 + $0x300] sm:$0xff]  }
 0x1e9   : > { %v5678_v45 = vor.u32 %v5677_v17, %v5673_v37 }
 0x1ea   : > { %9796 = vmatpush3.bf16.msra.mxu0 %v10561_v41  ;;  %v5691_v41 = vrot.slane %v5689_v35, 1  ;;  %v10636_v35 = vld [vmem:[%s12930_s1 + $0xf8] sm:$0xff]  }
 0x1eb   : > { %9818 = vmatpush3.bf16.msra.mxu1 %v10562_v19  ;;  %9825 = vmatprep.subr.bf16.mxu0 %v10567_v46  ;;  %v10598_v19 = vld [vmem:[%s12930_s1 + $0x380] sm:$0xff]  }
 0x1ec   : > { %9847 = vmatprep.subr.bf16.mxu1 %v10568_v47  ;;  %v5692_v46 = vor.u32 %v5691_v41, %v5687_v39  ;;  %v10601_v47 = vld [vmem:[%s12930_s1 + $0x138] sm:$0xff]  }
 0x1ed   : > { %v9533_v51 = vpop.f32.mrf.mxu0  ;;  %5560 = vmatmul.mubr.bf16.vlgmr.msra.gmra.mxu0 %v12377_v49  ;;  %v10602_v49 = vld [vmem:[%s12930_s1 + $0x1b8] sm:$0xff]  }
 0x1ee   : > { %v9555_v56 = vpop.f32.mrf.mxu1  ;;  %5600 = vmatmul.mubr.bf16.vlgmr.msra.gmra.mxu1 %v12379_v50  ;;  %9826 = vmatpush3.bf16.msra.mxu0 %v10569_v52 }
 0x1ef   : > { %v9534_v60 = vpop.f32.mrf.mxu0  ;;  %9848 = vmatpush3.bf16.msra.mxu1 %v10570_v58  ;;  %9827 = vmatprep.subr.bf16.mxu0 %v10571_v61 }
 0x1f0   : > { %v9535_v63 = vadd.f32 %v9534_v60, %v9533_v51  ;;  %v9556_v0 = vpop.f32.mrf.mxu1  ;;  %9849 = vmatprep.subr.bf16.mxu1 %v10572_v1  ;;  %5928 = vmatprep.mubr.bf16.mxu0 %v5685_v6  ;;  %v10603_v51 = vld [vmem:[%s12930_s1 + $0x170] sm:$0xff]   ;;  %v10607_v1 = vld [vmem:[%s12930_s1 + $0x168] sm:$0xff]  }
 0x1f1   : > { %v9557_v3 = vadd.f32 %v9556_v0, %v9555_v56  ;;  %v9536_v4 = vpop.f32.mrf.mxu0  ;;  %5968 = vmatprep.mubr.bf16.mxu1 %v5699_v53  ;;  %v10604_v56 = vld [vmem:[%s12930_s1 + $0x1f0] sm:$0xff]   ;;  %v10610_v6 = vld [vmem:[%s12930_s1 + $0x1a8] sm:$0xff]  }
 0x1f2   : > { %v9558_v7 = vpop.f32.mrf.mxu1  ;;  %9828 = vmatpush3.bf16.msra.mxu0 %v10573_v5  ;;  %v10608_v4 = vld [vmem:[%s12930_s1 + $0x1e8] sm:$0xff]   ;;  %v10619_v53 = vld [vmem:[%s12930_s1 + $0x150] sm:$0xff]  }
 0x1f3   : > { %v12401_v10 = vadd.f32 %v9557_v3, %v9535_v63  ;;  %v9537_v11 = vpop.f32.mrf.mxu0  ;;  %9850 = vmatpush3.bf16.msra.mxu1 %v10574_v8  ;;  %9829 = vmatprep.subr.bf16.mxu0 %v10575_v12  ;;  %v10606_v63 = vld [vmem:[%s12930_s1 + $0x1b0] sm:$0xff]   ;;  %v10609_v5 = vld [vmem:[%s12930_s1 + $0x128] sm:$0xff]   ;;  %v10611_v7 = vld [vmem:[%s12930_s1 + $0x160] sm:$0xff]  }
 0x1f4   : > { %v9559_v13 = vpop.f32.mrf.mxu1  ;;  %9851 = vmatprep.subr.bf16.mxu1 %v10576_v29  ;;  %v10612_v8 = vld [vmem:[%s12930_s1 + $0x1e0] sm:$0xff]   ;;  %v10615_v11 = vld [vmem:[%s12930_s1 + $0x158] sm:$0xff]  }
 0x1f5   : > { %v10616_v12 = vld [vmem:[%s12930_s1 + $0x1d8] sm:$0xff]  }
 0x1f6   : > { %9830 = vmatpush3.bf16.msra.mxu0 %v10577_v55  ;;  %v10617_v13 = vld [vmem:[%s12930_s1 + $0x118] sm:$0xff]   ;;  %v10620_v55 = vld [vmem:[%s12930_s1 + $0x1d0] sm:$0xff]  }
 0x1f7   : > { %9852 = vmatpush3.bf16.msra.mxu1 %v10578_v14  ;;  %9831 = vmatprep.subr.bf16.mxu0 %v10579_v15  ;;  %v10618_v29 = vld [vmem:[%s12930_s1 + $0x198] sm:$0xff]   ;;  %v10621_v14 = vld [vmem:[%s12930_s1 + $0x110] sm:$0xff]  }
 0x1f8   : > { %9853 = vmatprep.subr.bf16.mxu1 %v10580_v16  ;;  %v10622_v15 = vld [vmem:[%s12930_s1 + $0x190] sm:$0xff]   ;;  %v10623_v16 = vld [vmem:[%s12930_s1 + $0x148] sm:$0xff]  }
 0x1fa   : > { %9832 = vmatpush3.bf16.msra.mxu0 %v10581_v18  ;;  %v10624_v18 = vld [vmem:[%s12930_s1 + $0x1c8] sm:$0xff]  }
 0x1fb   : > { %9854 = vmatpush3.bf16.msra.mxu1 %v10582_v20  ;;  %9833 = vmatprep.subr.bf16.mxu0 %v10583_v21  ;;  %v10625_v20 = vld [vmem:[%s12930_s1 + $0x108] sm:$0xff]  }
 0x1fc   : > { %9855 = vmatprep.subr.bf16.mxu1 %v10584_v22  ;;  %v10626_v21 = vld [vmem:[%s12930_s1 + $0x188] sm:$0xff]   ;;  %v10627_v22 = vld [vmem:[%s12930_s1 + $0x140] sm:$0xff]  }
 0x1fe   : > { %9834 = vmatpush3.bf16.msra.mxu0 %v10585_v23  ;;  %v10628_v23 = vld [vmem:[%s12930_s1 + $0x1c0] sm:$0xff]  }
 0x1ff   : > { %9856 = vmatpush3.bf16.msra.mxu1 %v10586_v24  ;;  %9835 = vmatprep.subr.bf16.mxu0 %v10587_v25  ;;  %v10629_v24 = vld [vmem:[%s12930_s1 + $0x100] sm:$0xff]  }
 0x200   : > { %9857 = vmatprep.subr.bf16.mxu1 %v10588_v26  ;;  %v10630_v25 = vld [vmem:[%s12930_s1 + $0x180] sm:$0xff]  }
 0x201   : > { %v8829_v26 = vld [vmem:[%s10873_s27 + $0x40] sm:$0x77] }
 0x202   : > { %9836 = vmatpush3.bf16.msra.mxu0 %v10589_v27  ;;  %v8830_v27 = vld [vmem:[%s10873_s27 + $0x48] sm:$0x77] }
 0x203   : > { %9858 = vmatpush3.bf16.msra.mxu1 %v10590_v28  ;;  %9837 = vmatprep.subr.bf16.mxu0 %v10591_v30  ;;  %v12580_v28 = vcombine.low %v8829_v26, %v8829_v26  ;;  %v8896_v30 = vcombine.high %v8829_v26, %v8829_v26  ;;  %v10665_v26 = vld [vmem:[%s12930_s1] sm:$0xff]  }
 0x204   : > { %9859 = vmatprep.subr.bf16.mxu1 %v10592_v32  ;;  %v12582_v32 = vcombine.low %v8830_v27, %v8830_v27 }
 0x205   : > { %v6134_v37 = vshll.u32 %v8896_v30, 16  ;;  %v6125_v39 = vshrl.u32 %v12580_v28, 16 }
 0x206   : > { %9838 = vmatpush3.bf16.msra.mxu0 %v10593_v34  ;;  %v8898_v34 = vcombine.high %v8830_v27, %v8830_v27  ;;  %v10666_v27 = vld [vmem:[%s12930_s1 + $0x80] sm:$0xff]  }
 0x207   : > { %9860 = vmatpush3.bf16.msra.mxu1 %v10594_v36  ;;  %9839 = vmatprep.subr.bf16.mxu0 %v10595_v38  ;;  %v6132_v36 = vshrl.u32 %v8896_v30, 16 }
 0x208   : > { %9861 = vmatprep.subr.bf16.mxu1 %v10596_v57  ;;  %v6127_v57 = vshll.u32 %v12580_v28, 16  ;;  %v6146_v17 = vshrl.u32 %v8898_v34, 16 }
 0x20a   : > { %9840 = vmatpush3.bf16.msra.mxu0 %v10597_v40  ;;  %v6148_v40 = vshll.u32 %v8898_v34, 16 }
 0x20b   : > { %9862 = vmatpush3.bf16.msra.mxu1 %v10598_v19  ;;  %9869 = vmatprep.subr.bf16.mxu0 %v10599_v42  ;;  %v6139_v19 = vshrl.u32 %v12582_v32, 16  ;;  %v6141_v42 = vshll.u32 %v12582_v32, 16 }
 0x20c   : > { %9891 = vmatprep.subr.bf16.mxu1 %v10600_v43  ;;  %v6136_v43 = vrot.slane %v6134_v37, 1 }
 0x20d   : > { %v9577_v44 = vpop.f32.mrf.mxu0  ;;  %5929 = vmatmul.mubr.bf16.vlgmr.msra.gmra.mxu0 %v5678_v45  ;;  %v10637_v45 = vld [vmem:[%s12930_s1 + $0x38] sm:$0xff]  }
 0x20e   : > { %v9599_v48 = vpop.f32.mrf.mxu1  ;;  %5969 = vmatmul.mubr.bf16.vlgmr.msra.gmra.mxu1 %v5692_v46  ;;  %9870 = vmatpush3.bf16.msra.mxu0 %v10601_v47  ;;  %v6150_v47 = vrot.slane %v6148_v40, 1 }
 0x20f   : > { %v9578_v50 = vpop.f32.mrf.mxu0  ;;  %9892 = vmatpush3.bf16.msra.mxu1 %v10602_v49  ;;  %9871 = vmatprep.subr.bf16.mxu0 %v10603_v51 }
 0x210   : > { %v9579_v52 = vadd.f32 %v9578_v50, %v9577_v44  ;;  %v9600_v54 = vpop.f32.mrf.mxu1  ;;  %9893 = vmatprep.subr.bf16.mxu1 %v10604_v56  ;;  %v6129_v44 = vrot.slane %v6127_v57, 1  ;;  %v6137_v50 = vor.u32 %v6136_v43, %v6132_v36  ;;  %v6151_v56 = vor.u32 %v6150_v47, %v6146_v17  ;;  %v10668_v36 = vld [vmem:[%s12930_s1 + $0x2f8] sm:$0xff]   ;;  %v10672_v43 = vld [vmem:[%s12930_s1 + $0x2f0] sm:$0xff]  }
 0x211   : > { %v9580_v58 = vpop.f32.mrf.mxu0  ;;  %v9601_v61 = vadd.f32 %v9600_v54, %v9599_v48  ;;  %v6143_v48 = vrot.slane %v6141_v42, 1 }
 0x212   : > { %v3759_v60 = vadd.f32 %v9579_v52, %v12401_v10  ;;  %v9602_v62 = vpop.f32.mrf.mxu1  ;;  %9872 = vmatpush3.bf16.msra.mxu0 %v10605_v59  ;;  %v10614_v10 = vld [vmem:[%s12930_s1 + $0x1a0] sm:$0xff]   ;;  %v6130_v51 = vor.u32 %v6129_v44, %v6125_v39  ;;  %v10638_v52 = vld [vmem:[%s12930_s1 + $0xb8] sm:$0xff]   ;;  %6380 = vmatprep.mubr.bf16.mxu0 %v6137_v50 }
 0x213   : > { %v9581_v0 = vpop.f32.mrf.mxu0  ;;  %9894 = vmatpush3.bf16.msra.mxu1 %v10606_v63  ;;  %9873 = vmatprep.subr.bf16.mxu0 %v10607_v1  ;;  %v6144_v58 = vor.u32 %v6143_v48, %v6139_v19  ;;  %v10641_v63 = vld [vmem:[%s12930_s1 + $0x30] sm:$0xff]   ;;  %v10670_v39 = vld [vmem:[%s12930_s1 + $0x2b8] sm:$0xff]  }
 0x214   : > { %v12507_v2 = vadd.f32 %v9601_v61, %v3759_v60  ;;  %v9603_v3 = vpop.f32.mrf.mxu1  ;;  %9895 = vmatprep.subr.bf16.mxu1 %v10608_v4  ;;  %v10639_v60 = vld [vmem:[%s12930_s1 + $0x70] sm:$0xff]   ;;  %6420 = vmatprep.mubr.bf16.mxu1 %v6151_v56  ;;  %v10644_v4 = vld [vmem:[%s12930_s1 + $0xe8] sm:$0xff]  }
 0x215   : > { %v10640_v61 = vld [vmem:[%s12930_s1 + $0xf0] sm:$0xff]   ;;  %v10643_v3 = vld [vmem:[%s12930_s1 + $0x68] sm:$0xff]  }
 0x216   : > { %9874 = vmatpush3.bf16.msra.mxu0 %v10609_v5  ;;  %v10642_v1 = vld [vmem:[%s12930_s1 + $0xb0] sm:$0xff]   ;;  %v10645_v5 = vld [vmem:[%s12930_s1 + $0x28] sm:$0xff]  }
 0x217   : > { %9896 = vmatpush3.bf16.msra.mxu1 %v10610_v6  ;;  %9875 = vmatprep.subr.bf16.mxu0 %v10611_v7  ;;  %v10646_v6 = vld [vmem:[%s12930_s1 + $0xa8] sm:$0xff]   ;;  %v10647_v7 = vld [vmem:[%s12930_s1 + $0x60] sm:$0xff]   ;;  %v10671_v19 = vld [vmem:[%s12930_s1 + $0x270] sm:$0xff]  }
 0x218   : > { %9897 = vmatprep.subr.bf16.mxu1 %v10612_v8  ;;  %v10648_v8 = vld [vmem:[%s12930_s1 + $0xe0] sm:$0xff]   ;;  %v10674_v48 = vld [vmem:[%s12930_s1 + $0x2b0] sm:$0xff]   ;;  %v10678_v56 = vld [vmem:[%s12930_s1 + $0x2a8] sm:$0xff]  }
 0x21a   : > { %9876 = vmatpush3.bf16.msra.mxu0 %v10613_v9  ;;  %v10649_v9 = vld [vmem:[%s12930_s1 + $0x20] sm:$0xff]  }
 0x21b   : > { %9898 = vmatpush3.bf16.msra.mxu1 %v10614_v10  ;;  %9877 = vmatprep.subr.bf16.mxu0 %v10615_v11  ;;  %v10650_v10 = vld [vmem:[%s12930_s1 + $0xa0] sm:$0xff]   ;;  %v10651_v11 = vld [vmem:[%s12930_s1 + $0x58] sm:$0xff]  }
 0x21c   : > { %9899 = vmatprep.subr.bf16.mxu1 %v10616_v12  ;;  %v10652_v12 = vld [vmem:[%s12930_s1 + $0xd8] sm:$0xff]  }
 0x21e   : > { %9878 = vmatpush3.bf16.msra.mxu0 %v10617_v13  ;;  %v10653_v13 = vld [vmem:[%s12930_s1 + $0x18] sm:$0xff]  }
 0x21f   : > { %9900 = vmatpush3.bf16.msra.mxu1 %v10618_v29  ;;  %9879 = vmatprep.subr.bf16.mxu0 %v10619_v53  ;;  %v10654_v29 = vld [vmem:[%s12930_s1 + $0x98] sm:$0xff]   ;;  %v10655_v53 = vld [vmem:[%s12930_s1 + $0x50] sm:$0xff]  }
 0x220   : > { %9901 = vmatprep.subr.bf16.mxu1 %v10620_v55  ;;  %v10656_v55 = vld [vmem:[%s12930_s1 + $0xd0] sm:$0xff]  }
 0x222   : > { %9880 = vmatpush3.bf16.msra.mxu0 %v10621_v14  ;;  %v10657_v14 = vld [vmem:[%s12930_s1 + $0x10] sm:$0xff]  }
 0x223   : > { %9902 = vmatpush3.bf16.msra.mxu1 %v10622_v15  ;;  %9881 = vmatprep.subr.bf16.mxu0 %v10623_v16  ;;  %v10658_v15 = vld [vmem:[%s12930_s1 + $0x90] sm:$0xff]   ;;  %v10659_v16 = vld [vmem:[%s12930_s1 + $0x48] sm:$0xff]  }
 0x224   : > { %9903 = vmatprep.subr.bf16.mxu1 %v10624_v18  ;;  %v10660_v18 = vld [vmem:[%s12930_s1 + $0xc8] sm:$0xff]  }
 0x226   : > { %9882 = vmatpush3.bf16.msra.mxu0 %v10625_v20  ;;  %v10661_v20 = vld [vmem:[%s12930_s1 + $0x8] sm:$0xff]  }
 0x227   : > { %9904 = vmatpush3.bf16.msra.mxu1 %v10626_v21  ;;  %9883 = vmatprep.subr.bf16.mxu0 %v10627_v22  ;;  %v10662_v21 = vld [vmem:[%s12930_s1 + $0x88] sm:$0xff]   ;;  %v10663_v22 = vld [vmem:[%s12930_s1 + $0x40] sm:$0xff]  }
 0x228   : > { %9905 = vmatprep.subr.bf16.mxu1 %v10628_v23 }
 0x22a   : > { %9884 = vmatpush3.bf16.msra.mxu0 %v10629_v24 }
 0x22b   : > { %9906 = vmatpush3.bf16.msra.mxu1 %v10630_v25  ;;  %9913 = vmatprep.subr.bf16.mxu0 %v10635_v33  ;;  %v10664_v25 = vld [vmem:[%s12930_s1 + $0xc0] sm:$0xff]  }
 0x22c   : > { %9935 = vmatprep.subr.bf16.mxu1 %v10636_v35 }
 0x22d   : > { %v12590_v38 = vpop.f32.mrf.mxu0  ;;  %6381 = vmatmul.mubr.bf16.vlgmr.msra.gmra.mxu0 %v6130_v51  ;;  %v10676_v51 = vld [vmem:[%s12930_s1 + $0x2e8] sm:$0xff]  }
 0x22e   : > { %v12594_v41 = vpop.f32.mrf.mxu1  ;;  %6421 = vmatmul.mubr.bf16.vlgmr.msra.gmra.mxu1 %v6144_v58  ;;  %9914 = vmatpush3.bf16.msra.mxu0 %v10637_v45 }
 0x22f   : > { %v12601_v46 = vpop.f32.mrf.mxu0  ;;  %9936 = vmatpush3.bf16.msra.mxu1 %v10638_v52  ;;  %9915 = vmatprep.subr.bf16.mxu0 %v10639_v60  ;;  %v10680_v60 = vld [vmem:[%s12930_s1 + $0x2e0] sm:$0xff]  }
 0x230   : > { %v12603_v49 = vpop.f32.mrf.mxu1  ;;  %9937 = vmatprep.subr.bf16.mxu1 %v10640_v61  ;;  %6656 = vmatprep.mubr.bf16.mxu0 %v8896_v30  ;;  %v9623_v23 = vadd.f32 %v12601_v46, %v12590_v38  ;;  %v10669_v38 = vld [vmem:[%s12930_s1 + $0x238] sm:$0xff]   ;;  %v10673_v46 = vld [vmem:[%s12930_s1 + $0x230] sm:$0xff]  }
 0x231   : > { %v9624_v54 = vpop.f32.mrf.mxu0  ;;  %6696 = vmatprep.mubr.bf16.mxu1 %v8898_v34  ;;  %v9645_v24 = vadd.f32 %v12603_v49, %v12594_v41  ;;  %v10667_v34 = vld [vmem:[%s12930_s1 + $0x278] sm:$0xff]  }
 0x232   : > { %v9646_v59 = vpop.f32.mrf.mxu1  ;;  %9916 = vmatpush3.bf16.msra.mxu0 %v10641_v63  ;;  %v8493_v54 = vld [vmem:[%s11855_s25 + $0x8] sm:$0x7]  ;;  %v10682_v63 = vld [vmem:[%s12930_s1 + $0x2a0] sm:$0xff]  }
 0x233   : > { %v9625_v62 = vpop.f32.mrf.mxu0  ;;  %9938 = vmatpush3.bf16.msra.mxu1 %v10642_v1  ;;  %9917 = vmatprep.subr.bf16.mxu0 %v10643_v3  ;;  %v4152_v35 = vadd.f32 %v9645_v24, %v9623_v23  ;;  %v10679_v59 = vld [vmem:[%s12930_s1 + $0x260] sm:$0xff]   ;;  %v10683_v1 = vld [vmem:[%s12930_s1 + $0x258] sm:$0xff]  }
 0x234   : > { %v9647_v0 = vpop.f32.mrf.mxu1  ;;  %9939 = vmatprep.subr.bf16.mxu1 %v10644_v4  ;;  %v10681_v62 = vld [vmem:[%s12930_s1 + $0x220] sm:$0xff]   ;;  %v10684_v3 = vld [vmem:[%s12930_s1 + $0x2d8] sm:$0xff]  }
 0x235   : > { %v4157_v44 = vadd.f32 %v4152_v35, %v12507_v2  ;;  %v10675_v2 = vld [vmem:[%s12930_s1 + $0x268] sm:$0xff]   ;;  %v10685_v4 = vld [vmem:[%s12930_s1 + $0x218] sm:$0xff]   ;;  %v10707_v35 = vld [vmem:[%s12930_s1 + $0x370] sm:$0xff]  }
 0x236   : > { %9918 = vmatpush3.bf16.msra.mxu0 %v10645_v5  ;;  %v10686_v5 = vld [vmem:[%s12930_s1 + $0x298] sm:$0xff]  }
 0x237   : > { %9940 = vmatpush3.bf16.msra.mxu1 %v10646_v6  ;;  %9919 = vmatprep.subr.bf16.mxu0 %v10647_v7  ;;  %v10687_v6 = vld [vmem:[%s12930_s1 + $0x250] sm:$0xff]   ;;  %v10705_v24 = vld [vmem:[%s12930_s1 + $0x338] sm:$0xff]  }
 0x238   : > { %9941 = vmatprep.subr.bf16.mxu1 %v10648_v8  ;;  %v10688_v7 = vld [vmem:[%s12930_s1 + $0x2d0] sm:$0xff]  }
 0x239   : > { %v10689_v8 = vld [vmem:[%s12930_s1 + $0x210] sm:$0xff]  }
 0x23a   : > { %9920 = vmatpush3.bf16.msra.mxu0 %v10649_v9  ;;  %v10690_v9 = vld [vmem:[%s12930_s1 + $0x290] sm:$0xff]  }
 0x23b   : > { %9942 = vmatpush3.bf16.msra.mxu1 %v10650_v10  ;;  %9921 = vmatprep.subr.bf16.mxu0 %v10651_v11  ;;  %v10691_v10 = vld [vmem:[%s12930_s1 + $0x248] sm:$0xff]  }
 0x23c   : > { %9943 = vmatprep.subr.bf16.mxu1 %v10652_v12  ;;  %v10692_v11 = vld [vmem:[%s12930_s1 + $0x2c8] sm:$0xff]  }
 0x23d   : > { %v10693_v12 = vld [vmem:[%s12930_s1 + $0x208] sm:$0xff]  }
 0x23e   : > { %9922 = vmatpush3.bf16.msra.mxu0 %v10653_v13  ;;  %v10694_v13 = vld [vmem:[%s12930_s1 + $0x288] sm:$0xff]  }
 0x23f   : > { %9944 = vmatpush3.bf16.msra.mxu1 %v10654_v29  ;;  %9923 = vmatprep.subr.bf16.mxu0 %v10655_v53  ;;  %v10695_v29 = vld [vmem:[%s12930_s1 + $0x240] sm:$0xff]  }
 0x240   : > { %9945 = vmatprep.subr.bf16.mxu1 %v10656_v55  ;;  %v10696_v53 = vld [vmem:[%s12930_s1 + $0x2c0] sm:$0xff]  }
 0x241   : > { %v10697_v55 = vld [vmem:[%s12930_s1 + $0x200] sm:$0xff]  }
 0x242   : > { %9924 = vmatpush3.bf16.msra.mxu0 %v10657_v14  ;;  %v10698_v14 = vld [vmem:[%s12930_s1 + $0x280] sm:$0xff]  }
 0x243   : > { %9946 = vmatpush3.bf16.msra.mxu1 %v10658_v15  ;;  %9925 = vmatprep.subr.bf16.mxu0 %v10659_v16  ;;  %v8963_v15 = vld [vmem:[%s10873_s27 + $0x50] sm:$0x77]  ;;  %v8964_v16 = vld [vmem:[%s10873_s27 + $0x58] sm:$0x77] }
 0x244   : > { %9947 = vmatprep.subr.bf16.mxu1 %v10660_v18  ;;  %v9030_v18 = vcombine.high %v8963_v15, %v8963_v15  ;;  %v12813_v23 = vcombine.low %v8963_v15, %v8963_v15  ;;  %v10734_v15 = vld [vmem:[%s12930_s1 + $0x380] sm:$0xff]  }
 0x246   : > { %9926 = vmatpush3.bf16.msra.mxu0 %v10661_v20  ;;  %v10703_v20 = vld [vmem:[%s12930_s1 + $0x378] sm:$0xff]  }
 0x247   : > { %9948 = vmatpush3.bf16.msra.mxu1 %v10662_v21  ;;  %9927 = vmatprep.subr.bf16.mxu0 %v10663_v22  ;;  %v9032_v21 = vcombine.high %v8964_v16, %v8964_v16  ;;  %v10704_v22 = vld [vmem:[%s12930_s1 + $0x3f8] sm:$0xff]  }
 0x248   : > { %9949 = vmatprep.subr.bf16.mxu1 %v10664_v25  ;;  %v7130_v25 = vshrl.u32 %v9030_v18, 16 }
 0x24a   : > { %9928 = vmatpush3.bf16.msra.mxu0 %v10665_v26  ;;  %v12818_v26 = vcombine.low %v8964_v16, %v8964_v16 }
 0x24b   : > { %9950 = vmatpush3.bf16.msra.mxu1 %v10666_v27  ;;  %9957 = vmatprep.subr.bf16.mxu0 %v10667_v34  ;;  %v7132_v34 = vshll.u32 %v9030_v18, 16 }
 0x24c   : > { %9979 = vmatprep.subr.bf16.mxu1 %v10668_v36  ;;  %v7144_v36 = vshrl.u32 %v9032_v21, 16 }
 0x24d   : > { %v9665_v30 = vpop.f32.mrf.mxu0  ;;  %6657 = vmatmul.mubr.bf16.vlgmr.msra.gmra.mxu0 %v12580_v28  ;;  %v12732_v28 = vld [vmem:[%s12931_s2] ss:$0 sm:$0xff] }
 0x24e   : > { %v9687_v33 = vpop.f32.mrf.mxu1  ;;  %6697 = vmatmul.mubr.bf16.vlgmr.msra.gmra.mxu1 %v12582_v32  ;;  %9958 = vmatpush3.bf16.msra.mxu0 %v10669_v38  ;;  %v10677_v32 = vld [vmem:[%s12930_s1 + $0x228] sm:$0xff]  }
 0x24f   : > { %v9666_v37 = vpop.f32.mrf.mxu0  ;;  %9980 = vmatpush3.bf16.msra.mxu1 %v10670_v39  ;;  %9959 = vmatprep.subr.bf16.mxu0 %v10671_v19  ;;  %v10708_v39 = vld [vmem:[%s12930_s1 + $0x3f0] sm:$0xff]   ;;  %v7146_v19 = vshll.u32 %v9032_v21, 16 }
 0x250   : > { %v9667_v57 = vadd.f32 %v9666_v37, %v9665_v30  ;;  %v9688_v17 = vpop.f32.mrf.mxu1  ;;  %9981 = vmatprep.subr.bf16.mxu1 %v10672_v43  ;;  %7009 = vmatprep.mubr.bf16.mxu0 %v9030_v18 }
 0x251   : > { %v9689_v40 = vadd.f32 %v9688_v17, %v9687_v33  ;;  %v9668_v41 = vpop.f32.mrf.mxu0  ;;  %7049 = vmatprep.mubr.bf16.mxu1 %v9032_v21  ;;  %v10706_v33 = vld [vmem:[%s12930_s1 + $0x3b8] sm:$0xff]  }
 0x252   : > { %v9690_v42 = vpop.f32.mrf.mxu1  ;;  %9960 = vmatpush3.bf16.msra.mxu0 %v10673_v46  ;;  %v10709_v41 = vld [vmem:[%s12930_s1 + $0x330] sm:$0xff]  }
 0x253   : > { %v4521_v45 = vadd.f32 %v9689_v40, %v9667_v57  ;;  %v9669_v47 = vpop.f32.mrf.mxu0  ;;  %9982 = vmatpush3.bf16.msra.mxu1 %v10674_v48  ;;  %9961 = vmatprep.subr.bf16.mxu0 %v10675_v2  ;;  %v7134_v57 = vrot.slane %v7132_v34, 1  ;;  %v7148_v48 = vrot.slane %v7146_v19, 1  ;;  %v10712_v2 = vld [vmem:[%s12930_s1 + $0x3e8] sm:$0xff]  }
 0x254   : > { %v9691_v49 = vpop.f32.mrf.mxu1  ;;  %9983 = vmatprep.subr.bf16.mxu1 %v10676_v51  ;;  %v10711_v47 = vld [vmem:[%s12930_s1 + $0x368] sm:$0xff]  }
 0x255   : > { %v4526_v50 = vadd.f32 %v4521_v45, %v4157_v44  ;;  %v10710_v44 = vld [vmem:[%s12930_s1 + $0x3b0] sm:$0xff]   ;;  %v7135_v45 = vor.u32 %v7134_v57, %v7130_v25  ;;  %v10713_v51 = vld [vmem:[%s12930_s1 + $0x328] sm:$0xff]  }
 0x256   : > { %9962 = vmatpush3.bf16.msra.mxu0 %v10677_v32  ;;  %v10714_v32 = vld [vmem:[%s12930_s1 + $0x3a8] sm:$0xff]  }
 0x257   : > { %v4527_v52 = vadd.f32 %v12732_v28, %v4526_v50  ;;  %9984 = vmatpush3.bf16.msra.mxu1 %v10678_v56  ;;  %9963 = vmatprep.subr.bf16.mxu0 %v10679_v59  ;;  %v10716_v56 = vld [vmem:[%s12930_s1 + $0x3e0] sm:$0xff]  }
 0x258   : > { %9985 = vmatprep.subr.bf16.mxu1 %v10680_v60  ;;  %v10718_v59 = vld [vmem:[%s12930_s1 + $0x3a0] sm:$0xff]   ;;  %v10719_v60 = vld [vmem:[%s12930_s1 + $0x358] sm:$0xff]  }
 0x259   : > { %v4528_v58 = vmax.f32 %v4527_v52, 0.0  ;;  %v7149_v52 = vor.u32 %v7148_v48, %v7144_v36 }
 0x25a   : > { %9964 = vmatpush3.bf16.msra.mxu0 %v10681_v62  ;;  %v10721_v62 = vld [vmem:[%s12930_s1 + $0x318] sm:$0xff]  }
 0x25b   : > { %v4529_v61 = vpack.c.bf16 %v4528_v58, %v4528_v58  ;;  %9986 = vmatpush3.bf16.msra.mxu1 %v10682_v63  ;;  %9965 = vmatprep.subr.bf16.mxu0 %v10683_v1  ;;  %v10717_v58 = vld [vmem:[%s12930_s1 + $0x320] sm:$0xff]   ;;  %v10722_v63 = vld [vmem:[%s12930_s1 + $0x398] sm:$0xff]   ;;  %v10724_v1 = vld [vmem:[%s12930_s1 + $0x3d0] sm:$0xff]  }
 0x25c   : > { %9987 = vmatprep.subr.bf16.mxu1 %v10684_v3  ;;  %v10725_v3 = vld [vmem:[%s12930_s1 + $0x310] sm:$0xff]  }
 0x25d   : > { %v4532_v0 = vsel %vm11839_vm2, %v4529_v61, %v8493_v54  ;;  %v10715_v54 = vld [vmem:[%s12930_s1 + $0x360] sm:$0xff]   ;;  %v10720_v61 = vld [vmem:[%s12930_s1 + $0x3d8] sm:$0xff]  }
 0x25e   : > { %8494 = vst [vmem:[%s11855_s25 + $0x8] sm:$0x7] %v4532_v0  ;;  %9966 = vmatpush3.bf16.msra.mxu0 %v10685_v4  ;;  %v10723_v0 = vld [vmem:[%s12930_s1 + $0x350] sm:$0xff]  }
 0x25f   : > { %9988 = vmatpush3.bf16.msra.mxu1 %v10686_v5  ;;  %9967 = vmatprep.subr.bf16.mxu0 %v10687_v6  ;;  %v10726_v4 = vld [vmem:[%s12930_s1 + $0x390] sm:$0xff]   ;;  %v10727_v5 = vld [vmem:[%s12930_s1 + $0x348] sm:$0xff]  }
 0x260   : > { %9989 = vmatprep.subr.bf16.mxu1 %v10688_v7  ;;  %v10728_v6 = vld [vmem:[%s12930_s1 + $0x3c8] sm:$0xff]  }
 0x261   : > { %v10729_v7 = vld [vmem:[%s12930_s1 + $0x308] sm:$0xff]  }
 0x262   : > { %9968 = vmatpush3.bf16.msra.mxu0 %v10689_v8  ;;  %v7125_v8 = vshll.u32 %v12813_v23, 16 }
 0x263   : > { %9990 = vmatpush3.bf16.msra.mxu1 %v10690_v9  ;;  %9969 = vmatprep.subr.bf16.mxu0 %v10691_v10  ;;  %v10730_v9 = vld [vmem:[%s12930_s1 + $0x388] sm:$0xff]   ;;  %v7139_v10 = vshll.u32 %v12818_v26, 16 }
 0x264   : > { %9991 = vmatprep.subr.bf16.mxu1 %v10692_v11  ;;  %v10731_v11 = vld [vmem:[%s12930_s1 + $0x340] sm:$0xff]  }
 0x266   : > { %9970 = vmatpush3.bf16.msra.mxu0 %v10693_v12  ;;  %v10732_v12 = vld [vmem:[%s12930_s1 + $0x3c0] sm:$0xff]  }
 0x267   : > { %9992 = vmatpush3.bf16.msra.mxu1 %v10694_v13  ;;  %9971 = vmatprep.subr.bf16.mxu0 %v10695_v29  ;;  %v7123_v13 = vshrl.u32 %v12813_v23, 16  ;;  %v7127_v29 = vrot.slane %v7125_v8, 1 }
 0x268   : > { %9993 = vmatprep.subr.bf16.mxu1 %v10696_v53  ;;  %v10733_v53 = vld [vmem:[%s12930_s1 + $0x300] sm:$0xff]  }
 0x269   : > { %v7128_v16 = vor.u32 %v7127_v29, %v7123_v13 }
 0x26a   : > { %9972 = vmatpush3.bf16.msra.mxu0 %v10697_v55  ;;  %v7137_v55 = vshrl.u32 %v12818_v26, 16 }
 0x26b   : > { %9994 = vmatpush3.bf16.msra.mxu1 %v10698_v14  ;;  %10001 = vmatprep.subr.bf16.mxu0 %v10703_v20  ;;  %v7141_v14 = vrot.slane %v7139_v10, 1 }
 0x26c   : > { %10023 = vmatprep.subr.bf16.mxu1 %v10704_v22 }
 0x26d   : > { %v9709_v27 = vpop.f32.mrf.mxu0  ;;  %7010 = vmatmul.mubr.bf16.vlgmr.msra.gmra.mxu0 %v12813_v23  ;;  %v7142_v21 = vor.u32 %v7141_v14, %v7137_v55 }
 0x26e   : > { %v9731_v30 = vpop.f32.mrf.mxu1  ;;  %7050 = vmatmul.mubr.bf16.vlgmr.msra.gmra.mxu1 %v12818_v26  ;;  %10002 = vmatpush3.bf16.msra.mxu0 %v10705_v24 }
 0x26f   : > { %v9710_v37 = vpop.f32.mrf.mxu0  ;;  %10024 = vmatpush3.bf16.msra.mxu1 %v10706_v33  ;;  %10003 = vmatprep.subr.bf16.mxu0 %v10707_v35 }
 0x270   : > { %v9732_v38 = vpop.f32.mrf.mxu1  ;;  %v9711_v17 = vadd.f32 %v9710_v37, %v9709_v27  ;;  %10025 = vmatprep.subr.bf16.mxu1 %v10708_v39  ;;  %7378 = vmatprep.mubr.bf16.mxu0 %v7135_v45 }
 0x271   : > { %v9733_v40 = vadd.f32 %v9732_v38, %v9731_v30  ;;  %v9712_v42 = vpop.f32.mrf.mxu0  ;;  %7418 = vmatprep.mubr.bf16.mxu1 %v7149_v52 }
 0x272   : > { %v9734_v43 = vpop.f32.mrf.mxu1  ;;  %10004 = vmatpush3.bf16.msra.mxu0 %v10709_v41 }
 0x273   : > { %v12837_v46 = vadd.f32 %v9733_v40, %v9711_v17  ;;  %v9713_v49 = vpop.f32.mrf.mxu0  ;;  %10026 = vmatpush3.bf16.msra.mxu1 %v10710_v44  ;;  %10005 = vmatprep.subr.bf16.mxu0 %v10711_v47 }
 0x274   : > { %v9735_v50 = vpop.f32.mrf.mxu1  ;;  %10027 = vmatprep.subr.bf16.mxu1 %v10712_v2 }
 0x276   : > { %10006 = vmatpush3.bf16.msra.mxu0 %v10713_v51 }
 0x277   : > { %10028 = vmatpush3.bf16.msra.mxu1 %v10714_v32  ;;  %10007 = vmatprep.subr.bf16.mxu0 %v10715_v54 }
 0x278   : > { %10029 = vmatprep.subr.bf16.mxu1 %v10716_v56 }
 0x27a   : > { %10008 = vmatpush3.bf16.msra.mxu0 %v10717_v58 }
 0x27b   : > { %10030 = vmatpush3.bf16.msra.mxu1 %v10718_v59  ;;  %10009 = vmatprep.subr.bf16.mxu0 %v10719_v60  ;;  %v8827_v60 = vld [vmem:[%s11855_s25 + $0xc] sm:$0x7] }
 0x27c   : > { %10031 = vmatprep.subr.bf16.mxu1 %v10720_v61 }
 0x27e   : > { %10010 = vmatpush3.bf16.msra.mxu0 %v10721_v62 }
 0x27f   : > { %10032 = vmatpush3.bf16.msra.mxu1 %v10722_v63  ;;  %10011 = vmatprep.subr.bf16.mxu0 %v10723_v0 }
 0x280   : > { %10033 = vmatprep.subr.bf16.mxu1 %v10724_v1 }
 0x282   : > { %10012 = vmatpush3.bf16.msra.mxu0 %v10725_v3 }
 0x283   : > { %10034 = vmatpush3.bf16.msra.mxu1 %v10726_v4  ;;  %10013 = vmatprep.subr.bf16.mxu0 %v10727_v5 }
 0x284   : > { %10035 = vmatprep.subr.bf16.mxu1 %v10728_v6 }
 0x286   : > { %10014 = vmatpush3.bf16.msra.mxu0 %v10729_v7 }
 0x287   : > { %10036 = vmatpush3.bf16.msra.mxu1 %v10730_v9  ;;  %10015 = vmatprep.subr.bf16.mxu0 %v10731_v11 }
 0x288   : > { %10037 = vmatprep.subr.bf16.mxu1 %v10732_v12 }
 0x28a   : > { %10016 = vmatpush3.bf16.msra.mxu0 %v10733_v53 }
 0x28b   : > { %10038 = vmatpush3.bf16.msra.mxu1 %v10734_v15 }
 0x28d   : > { %v9753_v18 = vpop.f32.mrf.mxu0  ;;  %7379 = vmatmul.mubr.bf16.vlgmr.msra.gmra.mxu0 %v7128_v16 }
 0x28e   : > { %v9775_v20 = vpop.f32.mrf.mxu1  ;;  %7419 = vmatmul.mubr.bf16.vlgmr.msra.gmra.mxu1 %v7142_v21 }
 0x28f   : > { %v9754_v22 = vpop.f32.mrf.mxu0 }
 0x290   : > { %v9776_v23 = vpop.f32.mrf.mxu1  ;;  %v9755_v24 = vadd.f32 %v9754_v22, %v9753_v18 }
 0x291   : > { %v9756_v25 = vpop.f32.mrf.mxu0  ;;  %v9777_v30 = vadd.f32 %v9776_v23, %v9775_v20 }
 0x292   : > { %v9778_v26 = vpop.f32.mrf.mxu1  ;;  %v5209_v27 = vadd.f32 %v9755_v24, %v12837_v46 }
 0x293   : > { %v9757_v33 = vpop.f32.mrf.mxu0 }
 0x294   : > { %v9779_v34 = vpop.f32.mrf.mxu1  ;;  %v5249_v35 = vadd.f32 %v9777_v30, %v5209_v27 }
 0x2ad   : > { %v9797_v36 = vpop.f32.mrf.mxu0 }
 0x2ae   : > { %v9819_v37 = vpop.f32.mrf.mxu1 }
 0x2af   : > { %v9798_v38 = vpop.f32.mrf.mxu0 }
 0x2b0   : > { %v9820_v39 = vpop.f32.mrf.mxu1  ;;  %v9799_v19 = vadd.f32 %v9798_v38, %v9797_v36 }
 0x2b1   : > { %v9800_v57 = vpop.f32.mrf.mxu0  ;;  %v9821_v42 = vadd.f32 %v9820_v39, %v9819_v37 }
 0x2b2   : > { %v9822_v17 = vpop.f32.mrf.mxu1 }
 0x2b3   : > { %v9801_v40 = vpop.f32.mrf.mxu0  ;;  %v5602_v45 = vadd.f32 %v9821_v42, %v9799_v19 }
 0x2b4   : > { %v9823_v41 = vpop.f32.mrf.mxu1 }
 0x2b5   : > { %v5607_v51 = vadd.f32 %v5602_v45, %v5249_v35 }
 0x2cd   : > { %v9841_v43 = vpop.f32.mrf.mxu0 }
 0x2ce   : > { %v9863_v44 = vpop.f32.mrf.mxu1 }
 0x2cf   : > { %v9842_v47 = vpop.f32.mrf.mxu0 }
 0x2d0   : > { %v9864_v46 = vpop.f32.mrf.mxu1  ;;  %v9843_v48 = vadd.f32 %v9842_v47, %v9841_v43 }
 0x2d1   : > { %v9865_v49 = vadd.f32 %v9864_v46, %v9863_v44  ;;  %v9844_v50 = vpop.f32.mrf.mxu0 }
 0x2d2   : > { %v9866_v2 = vpop.f32.mrf.mxu1 }
 0x2d3   : > { %v5971_v52 = vadd.f32 %v9865_v49, %v9843_v48  ;;  %v9845_v32 = vpop.f32.mrf.mxu0  ;;  %v9161_v49 = vld [vmem:[%s11855_s25 + $0x10] sm:$0x7] }
 0x2d4   : > { %v9867_v54 = vpop.f32.mrf.mxu1 }
 0x2d5   : > { %v5976_v56 = vadd.f32 %v5971_v52, %v5607_v51 }
 0x2d7   : > { %v5977_v58 = vadd.f32 %v12732_v28, %v5976_v56 }
 0x2d9   : > { %v5978_v59 = vmax.f32 %v5977_v58, 0.0 }
 0x2db   : > { %v5979_v61 = vpack.c.bf16 %v5978_v59, %v5978_v59 }
 0x2dd   : > { %v5982_v62 = vsel %vm11839_vm2, %v5979_v61, %v8827_v60 }
 0x2de   : > { %8828 = vst [vmem:[%s11855_s25 + $0xc] sm:$0x7] %v5982_v62 }
 0x2ed   : > { %v9885_v63 = vpop.f32.mrf.mxu0 }
 0x2ee   : > { %v9907_v0 = vpop.f32.mrf.mxu1 }
 0x2ef   : > { %v9886_v1 = vpop.f32.mrf.mxu0 }
 0x2f0   : > { %v9887_v3 = vadd.f32 %v9886_v1, %v9885_v63  ;;  %v9908_v4 = vpop.f32.mrf.mxu1 }
 0x2f1   : > { %v9909_v5 = vadd.f32 %v9908_v4, %v9907_v0  ;;  %v9888_v6 = vpop.f32.mrf.mxu0 }
 0x2f2   : > { %v9910_v7 = vpop.f32.mrf.mxu1 }
 0x2f3   : > { %v6423_v8 = vadd.f32 %v9909_v5, %v9887_v3  ;;  %v9889_v9 = vpop.f32.mrf.mxu0 }
 0x2f4   : > { %v9911_v10 = vpop.f32.mrf.mxu1 }
 0x30d   : > { %v9929_v11 = vpop.f32.mrf.mxu0 }
 0x30e   : > { %v9951_v12 = vpop.f32.mrf.mxu1 }
 0x30f   : > { %v9930_v13 = vpop.f32.mrf.mxu0 }
 0x310   : > { %v9931_v29 = vadd.f32 %v9930_v13, %v9929_v11  ;;  %v9952_v53 = vpop.f32.mrf.mxu1 }
 0x311   : > { %v9932_v55 = vpop.f32.mrf.mxu0  ;;  %v9953_v15 = vadd.f32 %v9952_v53, %v9951_v12 }
 0x312   : > { %v6659_v14 = vadd.f32 %v9931_v29, %v6423_v8  ;;  %v9954_v16 = vpop.f32.mrf.mxu1 }
 0x313   : > { %v9933_v18 = vpop.f32.mrf.mxu0 }
 0x314   : > { %v6699_v20 = vadd.f32 %v9953_v15, %v6659_v14  ;;  %v9955_v21 = vpop.f32.mrf.mxu1 }
 0x32d   : > { %v9973_v22 = vpop.f32.mrf.mxu0 }
 0x32e   : > { %v9995_v23 = vpop.f32.mrf.mxu1 }
 0x32f   : > { %v9974_v24 = vpop.f32.mrf.mxu0 }
 0x330   : > { %v9996_v25 = vpop.f32.mrf.mxu1  ;;  %v9975_v34 = vadd.f32 %v9974_v24, %v9973_v22 }
 0x331   : > { %v9976_v26 = vpop.f32.mrf.mxu0  ;;  %v9997_v35 = vadd.f32 %v9996_v25, %v9995_v23 }
 0x332   : > { %v9998_v27 = vpop.f32.mrf.mxu1 }
 0x333   : > { %v9977_v30 = vpop.f32.mrf.mxu0  ;;  %v7052_v38 = vadd.f32 %v9997_v35, %v9975_v34 }
 0x334   : > { %v9999_v33 = vpop.f32.mrf.mxu1 }
 0x335   : > { %v7057_v42 = vadd.f32 %v7052_v38, %v6699_v20 }
 0x34d   : > { %v10017_v36 = vpop.f32.mrf.mxu0 }
 0x34e   : > { %v10039_v37 = vpop.f32.mrf.mxu1 }
 0x34f   : > { %v10018_v39 = vpop.f32.mrf.mxu0 }
 0x350   : > { %v10019_v57 = vadd.f32 %v10018_v39, %v10017_v36  ;;  %v10040_v17 = vpop.f32.mrf.mxu1 }
 0x351   : > { %v10041_v40 = vadd.f32 %v10040_v17, %v10039_v37  ;;  %v10020_v41 = vpop.f32.mrf.mxu0 }
 0x352   : > { %v10042_v19 = vpop.f32.mrf.mxu1 }
 0x353   : > { %v7421_v43 = vadd.f32 %v10041_v40, %v10019_v57  ;;  %v10021_v44 = vpop.f32.mrf.mxu0 }
 0x354   : > { %v10043_v45 = vpop.f32.mrf.mxu1 }
 0x355   : > { %v7426_v47 = vadd.f32 %v7421_v43, %v7057_v42 }
 0x357   : > { %v7427_v46 = vadd.f32 %v12732_v28, %v7426_v47 }
 0x359   : > { %v7428_v48 = vmax.f32 %v7427_v46, 0.0 }
 0x35b   : > { %v7429_v50 = vpack.c.bf16 %v7428_v48, %v7428_v48 }
 0x35d   : > { %v7432_v2 = vsel %vm11839_vm2, %v7429_v50, %v9161_v49 }
 0x35e   : > { %9162 = vst [vmem:[%s11855_s25 + $0x10] sm:$0x7] %v7432_v2 }
 0x35f PF: > { %s13_s12 = sadd.s32 1, %s10743_s12  }
 0x360   : > { %p10_p4 = scmp.ge.s32.totalorder %s13_s12, 4  }
 0x362   :  { %12 = sbr.rel (!%p10_p4) target bundleno = 1 (0x1), region = 74 }

</bundles_post_ra>
